<compile_context>
chip_gen: v7x
topology: tpu7x:2x2x1
jax: 0.10.0
libtpu: 0.0.40
codegen_flags: <defaults>
</compile_context>

<pallas_src>
import functools
import math

import jax
import jax.numpy as jnp
import numpy as np
from jax.experimental import pallas as pl
from jax.experimental.pallas import tpu as pltpu

BN_EPS = 1e-5


def _round_up(x, m):
    return (x + m - 1) // m * m


# ----------------------------- Pallas kernels ------------------------------

def _conv3x3_mxu(load, w, b, *, Wp, L):
    """3x3 stride-1 conv over a zero-padded flat bf16 image as ONE MXU matmul.

    load(off, n) -> (Cin, n) bf16 lane-window of the padded-flat image.
    w: (Cout, 9*Cin) bf16, BN scale folded, tap-major; b: (Cout, 1) f32.
    Returns (Cout, L) f32 pre-activation over the contiguous valid run.
    """
    slab = jnp.concatenate(
        [load((t // 3) * Wp + (t % 3), L) for t in range(9)], axis=0)
    return jnp.dot(w, slab, preferred_element_type=jnp.float32) + b


def _embed(v, *, W, Wp, L, Lp_pad, dtype):
    """Zero the row-seam lanes and wrap the valid run with the zero pad ring,
    producing one lane-dense (C, Lp_pad) value (-> single unmasked store)."""
    col = jax.lax.broadcasted_iota(jnp.int32, (1, L), 1) % Wp
    v = jnp.where(col < W, v, 0.0)
    return jnp.pad(v, ((0, 0), (Wp + 1, Lp_pad - (Wp + 1) - L))).astype(dtype)


def _block_kernel(*refs, H, W, Lp_pad, Ho, Wo, Lpo_pad, with_stem, downsample):
    """Fused BasicBlock (+ optional stem conv) over one padded-flat image."""
    it = iter(refs)
    x_ref = next(it)
    if with_stem:
        sw_ref, sb_ref = next(it), next(it)
    w1_ref, b1_ref = next(it), next(it)
    w2_ref, b2_ref = next(it), next(it)
    if downsample:
        sel_ref, dsw_ref, dsb_ref = next(it), next(it), next(it)
    o_ref = next(it)
    if with_stem:
        stem_scr = next(it)
    y1_scr = next(it)

    Wp, L = W + 2, (H - 1) * (W + 2) + W          # input geometry
    Wpo, Lo = Wo + 2, (Ho - 1) * (Wo + 2) + Wo    # output geometry

    x_load = lambda off, n: x_ref[0, :, off:off + n]
    if with_stem:
        s = jnp.maximum(
            _conv3x3_mxu(x_load, sw_ref[...], sb_ref[...], Wp=Wp, L=L), 0.0)
        stem_scr[...] = _embed(s, W=W, Wp=Wp, L=L, Lp_pad=Lp_pad,
                               dtype=jnp.bfloat16)
        x_load = lambda off, n: stem_scr[:, off:off + n]

    # conv1 + bn1 + relu (one stacked-K MXU matmul over the 9-tap slab)
    y1 = jnp.maximum(
        _conv3x3_mxu(x_load, w1_ref[...], b1_ref[...], Wp=Wp, L=L), 0.0)

    if downsample:
        # In-kernel stride-2: one gather matmul (Sel) subsamples BOTH the
        # conv1 output and the residual into the half-res padded-flat layout
        # (zero ring / seams come for free from Sel's zero rows/columns).
        cmid = y1.shape[0]
        both = jnp.concatenate(
            [y1.astype(jnp.bfloat16), x_load(Wp + 1, L)], axis=0)
        half = jnp.dot(both, sel_ref[...], preferred_element_type=jnp.float32)
        y1_scr[...] = half[:cmid].astype(jnp.bfloat16)
        r_half = half[cmid:, Wpo + 1:Wpo + 1 + Lo].astype(jnp.bfloat16)
        # fused 1x1-conv + BN downsample of the residual
        res = jnp.dot(dsw_ref[...], r_half,
                      preferred_element_type=jnp.float32) + dsb_ref[...]
    else:
        y1_scr[...] = _embed(y1, W=W, Wp=Wp, L=L, Lp_pad=Lp_pad,
                             dtype=jnp.bfloat16)
        res = x_load(Wp + 1, L).astype(jnp.float32)   # identity skip, f32 add

    # conv2 + bn2 + residual + relu
    y1_load = lambda off, n: y1_scr[:, off:off + n]
    out = _conv3x3_mxu(y1_load, w2_ref[...], b2_ref[...], Wp=Wpo, L=Lo)
    out = jnp.maximum(out + res, 0.0)
    o_ref[0, :, :] = _embed(out, W=Wo, Wp=Wpo, L=Lo, Lp_pad=Lpo_pad,
                            dtype=o_ref.dtype)


def fused_block(x, *, H, W, w1, b1, w2, b2,
                stem_w=None, stem_b=None, sel=None, ds_w=None, ds_b=None):
    """One pallas_call per BasicBlock (grid over batch, megacore parallel)."""
    N, Cin, Lp_pad = x.shape
    with_stem = stem_w is not None
    downsample = sel is not None
    Cout = w1.shape[0]
    if downsample:
        Ho, Wo = H // 2, W // 2
        Lpo_pad = sel.shape[1]
    else:
        Ho, Wo, Lpo_pad = H, W, Lp_pad

    args = [x]
    specs = [pl.BlockSpec((1, Cin, Lp_pad), lambda n: (n, 0, 0))]

    def _full(a):                       # whole-array (un-tiled) 2-D operand
        assert a.ndim == 2
        args.append(a)
        specs.append(pl.BlockSpec(a.shape, lambda n: (0, 0)))

    if with_stem:
        _full(stem_w); _full(stem_b)
    _full(w1); _full(b1); _full(w2); _full(b2)
    if downsample:
        _full(sel); _full(ds_w); _full(ds_b)

    scratch = []
    if with_stem:
        scratch.append(pltpu.VMEM((stem_w.shape[0], Lp_pad), jnp.bfloat16))
    scratch.append(pltpu.VMEM((Cout, Lpo_pad), jnp.bfloat16))

    L = (H - 1) * (W + 2) + W
    Lo = (Ho - 1) * (Wo + 2) + Wo
    flops = 2 * w1.shape[0] * w1.shape[1] * L + 2 * w2.shape[0] * w2.shape[1] * Lo
    if with_stem:
        flops += 2 * stem_w.shape[0] * stem_w.shape[1] * L
    if downsample:
        flops += 2 * (Cout + Cin) * L * Lpo_pad
        flops += 2 * ds_w.shape[0] * ds_w.shape[1] * Lo
    flops *= N
    bytes_accessed = 2 * (int(x.size) + N * Cout * Lpo_pad)
    bytes_accessed += sum(int(a.size) * a.dtype.itemsize for a in args[1:])

    kernel = functools.partial(
        _block_kernel, H=H, W=W, Lp_pad=Lp_pad, Ho=Ho, Wo=Wo, Lpo_pad=Lpo_pad,
        with_stem=with_stem, downsample=downsample)
    return pl.pallas_call(
        kernel,
        out_shape=jax.ShapeDtypeStruct((N, Cout, Lpo_pad), jnp.bfloat16),
        grid=(N,),
        in_specs=specs,
        out_specs=pl.BlockSpec((1, Cout, Lpo_pad), lambda n: (n, 0, 0)),
        scratch_shapes=scratch,
        compiler_params=pltpu.CompilerParams(
            dimension_semantics=("parallel",)),
        cost_estimate=pl.CostEstimate(flops=int(flops), transcendentals=0,
                                      bytes_accessed=int(bytes_accessed)),
    )(*args)


def _tail_kernel(x_ref, fcw_ref, fcb_ref, ml_ref, ml2_ref, o_ref, *, inv_hw):
    # Global avgpool: pad ring / seams / lane-padding are exactly zero, so a
    # full-lane sum over the padded-flat layout equals the HxW window sum.
    feat = jnp.sum(x_ref[...].astype(jnp.float32), axis=2) * inv_hw   # (N, C)
    z = jax.lax.dot_general(feat, fcw_ref[...], (((1,), (1,)), ((), ())),
                            preferred_element_type=jnp.float32)
    z = z + fcb_ref[...]                                              # (N, F)
    xw = jax.lax.dot_general(z, ml_ref[...], (((1,), (1,)), ((), ())),
                             preferred_element_type=jnp.float32)      # (N, Ncls)
    x2 = jnp.sum(z * z, axis=1, keepdims=True)
    d = jnp.maximum(x2 + ml2_ref[...] - 2.0 * xw, 0.0)
    o_ref[...] = -jnp.sqrt(d)


def pooled_fc_euclid(x, fc_w, fc_b, maplabel, *, H, W):
    """Fused global avgpool + fc + Euclid distance head."""
    N, C, Lp = x.shape
    F = fc_w.shape[0]
    ncls = maplabel.shape[0]
    ml2 = jnp.sum(maplabel * maplabel, axis=1).reshape(1, ncls)   # hoisted
    kernel = functools.partial(_tail_kernel, inv_hw=1.0 / float(H * W))
    return pl.pallas_call(
        kernel,
        out_shape=jax.ShapeDtypeStruct((N, ncls), jnp.float32),
        grid=(1,),
        in_specs=[pl.BlockSpec((N, C, Lp), lambda i: (0, 0, 0)),
                  pl.BlockSpec((F, C), lambda i: (0, 0)),
                  pl.BlockSpec((1, F), lambda i: (0, 0)),
                  pl.BlockSpec((ncls, F), lambda i: (0, 0)),
                  pl.BlockSpec((1, ncls), lambda i: (0, 0))],
        out_specs=pl.BlockSpec((N, ncls), lambda i: (0, 0)),
        compiler_params=pltpu.CompilerParams(
            dimension_semantics=("arbitrary",)),
    )(x, fc_w, fc_b.reshape(1, F), maplabel, ml2)


# ------------------------------ JAX glue -----------------------------------

def pad_flatten(x_nchw):
    """(N, C, H, W) -> bf16 zero-padded flat (N, C, round_up((H+2)*(W+2),128))."""
    N, C, H, W = x_nchw.shape
    Lp = (H + 2) * (W + 2)
    Lp_pad = _round_up(Lp, 128)
    xp = jnp.pad(x_nchw, ((0, 0), (0, 0), (1, 1), (1, 1)))
    xf = xp.reshape(N, C, Lp)
    return jnp.pad(xf, ((0, 0), (0, 0), (0, Lp_pad - Lp))).astype(jnp.bfloat16)


def make_subsample_sel(H, W):
    """0/1 gather matrix mapping the full-res valid run to the half-res
    padded-flat layout (== stride-2 subsample + re-pad), host-built constant."""
    Wp = W + 2
    L = (H - 1) * Wp + W
    Hh, Wh = H // 2, W // 2
    Wph = Wh + 2
    Lph_pad = _round_up((Hh + 2) * Wph, 128)
    sel = np.zeros((L, Lph_pad), np.float32)
    for r in range(L):
        flat = Wp + 1 + r
        i, j = flat // Wp, flat % Wp
        if 1 <= j <= W:
            pi, pj = i - 1, j - 1
            if pi % 2 == 0 and pj % 2 == 0:
                sel[r, (pi // 2 + 1) * Wph + (pj // 2 + 1)] = 1.0
    return jnp.asarray(sel, jnp.bfloat16)


def bn_fold(gamma, beta, mean, var, eps=BN_EPS):
    scale = gamma / jnp.sqrt(var + eps)
    return scale, beta - mean * scale


def fold_conv3x3_bn(w_oikk, bn, cin_pad=None):
    scale, bias = bn_fold(**bn)
    cout, cin = w_oikk.shape[0], w_oikk.shape[1]
    w = w_oikk * scale[:, None, None, None]
    if cin_pad is not None and cin_pad > cin:
        w = jnp.pad(w, ((0, 0), (0, cin_pad - cin), (0, 0), (0, 0)))
        cin = cin_pad
    # tap-major stacked layout matching the in-kernel im2col slab rows
    w_st = jnp.transpose(w, (0, 2, 3, 1)).reshape(cout, 9 * cin)
    return w_st.astype(jnp.bfloat16), bias.reshape(cout, 1).astype(jnp.float32)


def fold_conv1x1_bn(w_oi11, bn):
    scale, bias = bn_fold(**bn)
    cout, cin = w_oi11.shape[0], w_oi11.shape[1]
    w = (w_oi11.reshape(cout, cin) * scale[:, None]).astype(jnp.bfloat16)
    return w, bias.reshape(cout, 1).astype(jnp.float32)


# --------------------------- parameter init --------------------------------

def init_conv(key, cout, cin, k):
    # matches: m.weight.data.normal_(0, sqrt(2 / (k*k*cout)))
    n = k * k * cout
    return jax.random.normal(key, (cout, cin, k, k), jnp.float32) * math.sqrt(2.0 / n)


def init_bn(c):
    # weight=1, bias=0 (per module init), fresh running stats.
    return dict(gamma=jnp.ones((c,), jnp.float32),
                beta=jnp.zeros((c,), jnp.float32),
                mean=jnp.zeros((c,), jnp.float32),
                var=jnp.ones((c,), jnp.float32))


def init_basic_block(key, inplanes, planes, stride):
    k1, k2, k3 = jax.random.split(key, 3)
    p = dict(conv1=init_conv(k1, planes, inplanes, 3), bn1=init_bn(planes),
             conv2=init_conv(k2, planes, planes, 3), bn2=init_bn(planes),
             stride=stride, downsample=None)
    if stride != 1 or inplanes != planes:
        p['downsample'] = dict(conv=init_conv(k3, planes, inplanes, 1),
                               bn=init_bn(planes))
    return p


def init_mapping_layer(key, depth, feature_num, num_classes):
    assert (depth - 2) % 6 == 0 and depth < 44, 'use BasicBlock depths (6n+2, <44)'
    n = (depth - 2) // 6
    ks = iter(jax.random.split(key, 8 + 3 * n))
    params = {'conv1': init_conv(next(ks), 16, 3, 3), 'bn1': init_bn(16)}
    inplanes = 16
    for li, (planes, stride) in enumerate([(16, 1), (32, 2), (64, 2)], start=1):
        blocks = [init_basic_block(next(ks), inplanes, planes, stride)]
        inplanes = planes
        for _ in range(1, n):
            blocks.append(init_basic_block(next(ks), inplanes, planes, 1))
        params[f'layer{li}'] = blocks
    bound = 1.0 / math.sqrt(64)
    params['fc_w'] = jax.random.uniform(next(ks), (feature_num, 64), jnp.float32,
                                        -bound, bound)
    params['fc_b'] = jax.random.uniform(next(ks), (feature_num,), jnp.float32,
                                        -bound, bound)
    # maplabel = MaplabelInit * InitFactor, synthetic deterministic init
    params['maplabel'] = jax.random.normal(next(ks), (num_classes, feature_num),
                                           jnp.float32)
    return params


# ------------------------------- forward -----------------------------------

def basic_block_call(p, x, h, w, *, stem=None):
    w1, b1 = fold_conv3x3_bn(p['conv1'], p['bn1'])
    w2, b2 = fold_conv3x3_bn(p['conv2'], p['bn2'])
    kw = dict(H=h, W=w, w1=w1, b1=b1, w2=w2, b2=b2)
    if stem is not None:
        kw['stem_w'], kw['stem_b'] = stem
    if p['stride'] == 2:
        kw['sel'] = make_subsample_sel(h, w)
        kw['ds_w'], kw['ds_b'] = fold_conv1x1_bn(p['downsample']['conv'],
                                                 p['downsample']['bn'])
        return fused_block(x, **kw), h // 2, w // 2
    # this CIFAR ResNet only changes channel count at stride-2 boundaries
    assert p['downsample'] is None
    return fused_block(x, **kw), h, w


def mapping_layer_forward(params, x_nchw):
    # defaults: Layeradjust='toLabel', Afun='Identity', Dmode='Euclid'
    N, C, H, W = x_nchw.shape
    cpad = (-C) % 8                       # sublane-align the RGB stem input
    if cpad:
        x_nchw = jnp.pad(x_nchw, ((0, 0), (0, cpad), (0, 0), (0, 0)))
    x = pad_flatten(x_nchw.astype(jnp.float32))
    stem = fold_conv3x3_bn(params['conv1'], params['bn1'], cin_pad=C + cpad)
    h, w = H, W
    for li in (1, 2, 3):
        for blk in params[f'layer{li}']:
            x, h, w = basic_block_call(blk, x, h, w, stem=stem)
            stem = None                   # stem is fused into the first block only
    # af = Identity; com_score = Euclid
    return pooled_fc_euclid(x, params['fc_w'], params['fc_b'],
                            params['maplabel'], H=h, W=w)


# --------------------------- pure-JAX reference -----------------------------

def _ref_conv_bn(x, w, bn, stride, relu):
    k = w.shape[2]
    pad = (k - 1) // 2
    scale, bias = bn_fold(**bn)
    y = jax.lax.conv_general_dilated(
        x, w, window_strides=(stride, stride),
        padding=[(pad, pad), (pad, pad)],
        dimension_numbers=('NCHW', 'OIHW', 'NCHW'))
    y = y * scale[None, :, None, None] + bias[None, :, None, None]
    return jnp.maximum(y, 0.0) if relu else y


def reference_forward(params, x):
    y = _ref_conv_bn(x, params['conv1'], params['bn1'], 1, True)
    for li in (1, 2, 3):
        for p in params[f'layer{li}']:
            out = _ref_conv_bn(y, p['conv1'], p['bn1'], p['stride'], True)
            out = _ref_conv_bn(out, p['conv2'], p['bn2'], 1, False)
            if p['downsample'] is not None:
                res = _ref_conv_bn(y, p['downsample']['conv'],
                                   p['downsample']['bn'], p['stride'], False)
            else:
                res = y
            y = jnp.maximum(out + res, 0.0)
    feat = jnp.mean(y, axis=(2, 3))
    z = feat @ params['fc_w'].T + params['fc_b']
    x2 = jnp.sum(z * z, axis=1, keepdims=True)
    w2 = jnp.sum(params['maplabel'] ** 2, axis=1)[None, :]
    d = jnp.maximum(x2 + w2 - 2.0 * (z @ params['maplabel'].T), 0.0)
    return -jnp.sqrt(d)


if __name__ == "__main__":
    key = jax.random.PRNGKey(0)
    kp, kx = jax.random.split(key)
    depth, feature_num, num_classes, batch = 8, 16, 10, 2
    params = init_mapping_layer(kp, depth, feature_num, num_classes)
    x = jax.random.normal(kx, (batch, 3, 32, 32), jnp.float32)    # NCHW like PyTorch
    fwd = jax.jit(functools.partial(mapping_layer_forward, params))
    out = jax.block_until_ready(fwd(x))
    assert out.shape == (batch, num_classes), out.shape
    assert bool(jnp.all(jnp.isfinite(out))) and bool(jnp.all(out <= 0.0))
    ref = jax.block_until_ready(
        jax.jit(functools.partial(reference_forward, params))(x))
    # bf16 MXU operands + bf16 inter-kernel activations, f32 accumulation
    np.testing.assert_allclose(np.asarray(out), np.asarray(ref),
                               rtol=5e-2, atol=5e-2)
    print("KERNEL_OK")
</pallas_src>

<mosaic_0001>
module attributes {stable_mosaic.version = 11 : i64} {
  func.func @_block_kernel(%arg0: i32, %arg1: memref<1x16x1280xbf16, #tpu.memory_space<vmem>>, %arg2: memref<32x144xbf16, #tpu.memory_space<vmem>>, %arg3: memref<32x1xf32, #tpu.memory_space<vmem>>, %arg4: memref<32x288xbf16, #tpu.memory_space<vmem>>, %arg5: memref<32x1xf32, #tpu.memory_space<vmem>>, %arg6: memref<1086x384xbf16, #tpu.memory_space<vmem>>, %arg7: memref<32x16xbf16, #tpu.memory_space<vmem>>, %arg8: memref<32x1xf32, #tpu.memory_space<vmem>>, %arg9: memref<1x32x384xbf16, #tpu.memory_space<vmem>>, %arg10: memref<32x384xbf16, #tpu.memory_space<vmem>>) attributes {dimension_semantics = [#tpu.dimension_semantics<parallel>], iteration_bounds = array<i64: 2>, scalar_prefetch = 0 : i64, scratch_operands = 1 : i64, tpu.core_type = #tpu.core_type<tc>, window_params = [{transform_indices = @transform_0, window_bounds = array<i64: 1, 16, 1280>}, {pipeline_mode = #tpu.pipeline_mode<synchronous>, transform_indices = @transform_1, window_bounds = array<i64: 32, 144>}, {pipeline_mode = #tpu.pipeline_mode<synchronous>, transform_indices = @transform_2, window_bounds = array<i64: 32, 1>}, {pipeline_mode = #tpu.pipeline_mode<synchronous>, transform_indices = @transform_3, window_bounds = array<i64: 32, 288>}, {pipeline_mode = #tpu.pipeline_mode<synchronous>, transform_indices = @transform_4, window_bounds = array<i64: 32, 1>}, {pipeline_mode = #tpu.pipeline_mode<synchronous>, transform_indices = @transform_5, window_bounds = array<i64: 1086, 384>}, {pipeline_mode = #tpu.pipeline_mode<synchronous>, transform_indices = @transform_6, window_bounds = array<i64: 32, 16>}, {pipeline_mode = #tpu.pipeline_mode<synchronous>, transform_indices = @transform_7, window_bounds = array<i64: 32, 1>}, {transform_indices = @transform_8, window_bounds = array<i64: 1, 32, 384>}]} {
    %c0 = arith.constant 0 : index
    %c0_0 = arith.constant 0 : index
    %0 = vector.load %arg2[%c0, %c0_0] : memref<32x144xbf16, #tpu.memory_space<vmem>>, vector<32x144xbf16>
    %c0_1 = arith.constant 0 : index
    %c0_2 = arith.constant 0 : index
    %1 = vector.load %arg3[%c0_1, %c0_2] : memref<32x1xf32, #tpu.memory_space<vmem>>, vector<32x1xf32>
    %c0_3 = arith.constant 0 : index
    %c0_4 = arith.constant 0 : index
    %c0_5 = arith.constant 0 : index
    %2 = vector.load %arg1[%c0_3, %c0_4, %c0_5] : memref<1x16x1280xbf16, #tpu.memory_space<vmem>>, vector<1x16x1086xbf16>
    %3 = vector.shape_cast %2 : vector<1x16x1086xbf16> to vector<16x1086xbf16>
    %c0_6 = arith.constant 0 : index
    %c0_7 = arith.constant 0 : index
    %c1 = arith.constant 1 : index
    %4 = vector.load %arg1[%c0_6, %c0_7, %c1] : memref<1x16x1280xbf16, #tpu.memory_space<vmem>>, vector<1x16x1086xbf16>
    %5 = vector.shape_cast %4 : vector<1x16x1086xbf16> to vector<16x1086xbf16>
    %c0_8 = arith.constant 0 : index
    %c0_9 = arith.constant 0 : index
    %c2 = arith.constant 2 : index
    %6 = vector.load %arg1[%c0_8, %c0_9, %c2] : memref<1x16x1280xbf16, #tpu.memory_space<vmem>>, vector<1x16x1086xbf16>
    %7 = vector.shape_cast %6 : vector<1x16x1086xbf16> to vector<16x1086xbf16>
    %c0_10 = arith.constant 0 : index
    %c0_11 = arith.constant 0 : index
    %c34 = arith.constant 34 : index
    %8 = vector.load %arg1[%c0_10, %c0_11, %c34] : memref<1x16x1280xbf16, #tpu.memory_space<vmem>>, vector<1x16x1086xbf16>
    %9 = vector.shape_cast %8 : vector<1x16x1086xbf16> to vector<16x1086xbf16>
    %c0_12 = arith.constant 0 : index
    %c0_13 = arith.constant 0 : index
    %c35 = arith.constant 35 : index
    %10 = vector.load %arg1[%c0_12, %c0_13, %c35] : memref<1x16x1280xbf16, #tpu.memory_space<vmem>>, vector<1x16x1086xbf16>
    %11 = vector.shape_cast %10 : vector<1x16x1086xbf16> to vector<16x1086xbf16>
    %c0_14 = arith.constant 0 : index
    %c0_15 = arith.constant 0 : index
    %c36 = arith.constant 36 : index
    %12 = vector.load %arg1[%c0_14, %c0_15, %c36] : memref<1x16x1280xbf16, #tpu.memory_space<vmem>>, vector<1x16x1086xbf16>
    %13 = vector.shape_cast %12 : vector<1x16x1086xbf16> to vector<16x1086xbf16>
    %c0_16 = arith.constant 0 : index
    %c0_17 = arith.constant 0 : index
    %c68 = arith.constant 68 : index
    %14 = vector.load %arg1[%c0_16, %c0_17, %c68] : memref<1x16x1280xbf16, #tpu.memory_space<vmem>>, vector<1x16x1086xbf16>
    %15 = vector.shape_cast %14 : vector<1x16x1086xbf16> to vector<16x1086xbf16>
    %c0_18 = arith.constant 0 : index
    %c0_19 = arith.constant 0 : index
    %c69 = arith.constant 69 : index
    %16 = vector.load %arg1[%c0_18, %c0_19, %c69] : memref<1x16x1280xbf16, #tpu.memory_space<vmem>>, vector<1x16x1086xbf16>
    %17 = vector.shape_cast %16 : vector<1x16x1086xbf16> to vector<16x1086xbf16>
    %c0_20 = arith.constant 0 : index
    %c0_21 = arith.constant 0 : index
    %c70 = arith.constant 70 : index
    %18 = vector.load %arg1[%c0_20, %c0_21, %c70] : memref<1x16x1280xbf16, #tpu.memory_space<vmem>>, vector<1x16x1086xbf16>
    %19 = vector.shape_cast %18 : vector<1x16x1086xbf16> to vector<16x1086xbf16>
    %20 = tpu.concatenate %3, %5, %7, %9, %11, %13, %15, %17, %19 in 0 : vector<16x1086xbf16>, vector<16x1086xbf16>, vector<16x1086xbf16>, vector<16x1086xbf16>, vector<16x1086xbf16>, vector<16x1086xbf16>, vector<16x1086xbf16>, vector<16x1086xbf16>, vector<16x1086xbf16> -> vector<144x1086xbf16>
    %cst = arith.constant dense<0.000000e+00> : vector<32x1086xf32>
    %21 = tpu.matmul %0, %20, %cst {dimension_numbers = #tpu.dot_dimension_numbers<[1], [0], [0], [1], [0, 0, 1, 1], [], []>} : vector<32x144xbf16>, vector<144x1086xbf16>, vector<32x1086xf32> -> vector<32x1086xf32>
    %22 = vector.broadcast %1 : vector<32x1xf32> to vector<32x1086xf32>
    %23 = arith.addf %21, %22 : vector<32x1086xf32>
    %cst_22 = arith.constant 0.000000e+00 : f32
    %24 = vector.broadcast %cst_22 : f32 to vector<32x1086xf32>
    %25 = arith.maximumf %23, %24 : vector<32x1086xf32>
    %26 = arith.truncf %25 : vector<32x1086xf32> to vector<32x1086xbf16>
    %c0_23 = arith.constant 0 : index
    %c0_24 = arith.constant 0 : index
    %c35_25 = arith.constant 35 : index
    %27 = vector.load %arg1[%c0_23, %c0_24, %c35_25] : memref<1x16x1280xbf16, #tpu.memory_space<vmem>>, vector<1x16x1086xbf16>
    %28 = vector.shape_cast %27 : vector<1x16x1086xbf16> to vector<16x1086xbf16>
    %29 = tpu.concatenate %26, %28 in 0 : vector<32x1086xbf16>, vector<16x1086xbf16> -> vector<48x1086xbf16>
    %c0_26 = arith.constant 0 : index
    %c0_27 = arith.constant 0 : index
    %30 = vector.load %arg6[%c0_26, %c0_27] : memref<1086x384xbf16, #tpu.memory_space<vmem>>, vector<1086x384xbf16>
    %cst_28 = arith.constant dense<0.000000e+00> : vector<48x384xf32>
    %31 = tpu.matmul %29, %30, %cst_28 {dimension_numbers = #tpu.dot_dimension_numbers<[1], [0], [0], [1], [0, 0, 1, 1], [], []>} : vector<48x1086xbf16>, vector<1086x384xbf16>, vector<48x384xf32> -> vector<48x384xf32>
    %32 = vector.extract_strided_slice %31 {offsets = [0, 0], sizes = [32, 384], strides = [1, 1]} : vector<48x384xf32> to vector<32x384xf32>
    %33 = arith.truncf %32 : vector<32x384xf32> to vector<32x384xbf16>
    %c0_29 = arith.constant 0 : index
    %c0_30 = arith.constant 0 : index
    %34 = vector.load %arg10[%c0_29, %c0_30] : memref<32x384xbf16, #tpu.memory_space<vmem>>, vector<32x384xbf16>
    tpu.vector_store %arg10[%c0_29, %c0_30], %33 {strides = array<i32>} : memref<32x384xbf16, #tpu.memory_space<vmem>>, vector<32x384xbf16>,
    %35 = vector.extract_strided_slice %31 {offsets = [32, 19], sizes = [16, 286], strides = [1, 1]} : vector<48x384xf32> to vector<16x286xf32>
    %36 = arith.truncf %35 : vector<16x286xf32> to vector<16x286xbf16>
    %c0_31 = arith.constant 0 : index
    %c0_32 = arith.constant 0 : index
    %37 = vector.load %arg7[%c0_31, %c0_32] : memref<32x16xbf16, #tpu.memory_space<vmem>>, vector<32x16xbf16>
    %cst_33 = arith.constant dense<0.000000e+00> : vector<32x286xf32>
    %38 = tpu.matmul %37, %36, %cst_33 {dimension_numbers = #tpu.dot_dimension_numbers<[1], [0], [0], [1], [0, 0, 1, 1], [], []>} : vector<32x16xbf16>, vector<16x286xbf16>, vector<32x286xf32> -> vector<32x286xf32>
    %c0_34 = arith.constant 0 : index
    %c0_35 = arith.constant 0 : index
    %39 = vector.load %arg8[%c0_34, %c0_35] : memref<32x1xf32, #tpu.memory_space<vmem>>, vector<32x1xf32>
    %40 = vector.broadcast %39 : vector<32x1xf32> to vector<32x286xf32>
    %41 = arith.addf %38, %40 : vector<32x286xf32>
    %c0_36 = arith.constant 0 : index
    %c0_37 = arith.constant 0 : index
    %42 = vector.load %arg4[%c0_36, %c0_37] : memref<32x288xbf16, #tpu.memory_space<vmem>>, vector<32x288xbf16>
    %c0_38 = arith.constant 0 : index
    %c0_39 = arith.constant 0 : index
    %43 = vector.load %arg5[%c0_38, %c0_39] : memref<32x1xf32, #tpu.memory_space<vmem>>, vector<32x1xf32>
    %c0_40 = arith.constant 0 : index
    %c0_41 = arith.constant 0 : index
    %44 = vector.load %arg10[%c0_40, %c0_41] : memref<32x384xbf16, #tpu.memory_space<vmem>>, vector<32x286xbf16>
    %c0_42 = arith.constant 0 : index
    %c1_43 = arith.constant 1 : index
    %45 = vector.load %arg10[%c0_42, %c1_43] : memref<32x384xbf16, #tpu.memory_space<vmem>>, vector<32x286xbf16>
    %c0_44 = arith.constant 0 : index
    %c2_45 = arith.constant 2 : index
    %46 = vector.load %arg10[%c0_44, %c2_45] : memref<32x384xbf16, #tpu.memory_space<vmem>>, vector<32x286xbf16>
    %c0_46 = arith.constant 0 : index
    %c18 = arith.constant 18 : index
    %47 = vector.load %arg10[%c0_46, %c18] : memref<32x384xbf16, #tpu.memory_space<vmem>>, vector<32x286xbf16>
    %c0_47 = arith.constant 0 : index
    %c19 = arith.constant 19 : index
    %48 = vector.load %arg10[%c0_47, %c19] : memref<32x384xbf16, #tpu.memory_space<vmem>>, vector<32x286xbf16>
    %c0_48 = arith.constant 0 : index
    %c20 = arith.constant 20 : index
    %49 = vector.load %arg10[%c0_48, %c20] : memref<32x384xbf16, #tpu.memory_space<vmem>>, vector<32x286xbf16>
    %c0_49 = arith.constant 0 : index
    %c36_50 = arith.constant 36 : index
    %50 = vector.load %arg10[%c0_49, %c36_50] : memref<32x384xbf16, #tpu.memory_space<vmem>>, vector<32x286xbf16>
    %c0_51 = arith.constant 0 : index
    %c37 = arith.constant 37 : index
    %51 = vector.load %arg10[%c0_51, %c37] : memref<32x384xbf16, #tpu.memory_space<vmem>>, vector<32x286xbf16>
    %c0_52 = arith.constant 0 : index
    %c38 = arith.constant 38 : index
    %52 = vector.load %arg10[%c0_52, %c38] : memref<32x384xbf16, #tpu.memory_space<vmem>>, vector<32x286xbf16>
    %53 = tpu.concatenate %44, %45, %46, %47, %48, %49, %50, %51, %52 in 0 : vector<32x286xbf16>, vector<32x286xbf16>, vector<32x286xbf16>, vector<32x286xbf16>, vector<32x286xbf16>, vector<32x286xbf16>, vector<32x286xbf16>, vector<32x286xbf16>, vector<32x286xbf16> -> vector<288x286xbf16>
    %cst_53 = arith.constant dense<0.000000e+00> : vector<32x286xf32>
    %54 = tpu.matmul %42, %53, %cst_53 {dimension_numbers = #tpu.dot_dimension_numbers<[1], [0], [0], [1], [0, 0, 1, 1], [], []>} : vector<32x288xbf16>, vector<288x286xbf16>, vector<32x286xf32> -> vector<32x286xf32>
    %55 = vector.broadcast %43 : vector<32x1xf32> to vector<32x286xf32>
    %56 = arith.addf %54, %55 : vector<32x286xf32>
    %57 = arith.addf %56, %41 : vector<32x286xf32>
    %cst_54 = arith.constant 0.000000e+00 : f32
    %58 = vector.broadcast %cst_54 : f32 to vector<32x286xf32>
    %59 = arith.maximumf %57, %58 : vector<32x286xf32>
    %60 = tpu.iota {dimensions = array<i32: 1>} : vector<1x286xi32>
    %c18_i32 = arith.constant 18 : i32
    %c0_i32 = arith.constant 0 : i32
    %61 = arith.cmpi eq, %c18_i32, %c0_i32 : i32
    %c1_i32 = arith.constant 1 : i32
    %62 = arith.select %61, %c1_i32, %c18_i32 : i32
    %63 = vector.broadcast %62 : i32 to vector<1x286xi32>
    %64 = arith.remsi %60, %63 : vector<1x286xi32>
    %c0_i32_55 = arith.constant 0 : i32
    %65 = vector.broadcast %c0_i32_55 : i32 to vector<1x286xi32>
    %66 = arith.cmpi ne, %64, %65 : vector<1x286xi32>
    %c0_i32_56 = arith.constant 0 : i32
    %67 = vector.broadcast %c0_i32_56 : i32 to vector<1x286xi32>
    %68 = arith.cmpi slt, %64, %67 : vector<1x286xi32>
    %c0_i32_57 = arith.constant 0 : i32
    %69 = arith.cmpi slt, %62, %c0_i32_57 : i32
    %70 = vector.broadcast %69 : i1 to vector<1x286xi1>
    %71 = vector.broadcast %70 : vector<1x286xi1> to vector<1x286xi1>
    %72 = arith.xori %68, %71 : vector<1x286xi1>
    %73 = arith.andi %72, %66 : vector<1x286xi1>
    %74 = vector.broadcast %62 : i32 to vector<1x286xi32>
    %75 = arith.addi %64, %74 : vector<1x286xi32>
    %76 = arith.select %73, %75, %64 : vector<1x286xi1>, vector<1x286xi32>
    %c16_i32 = arith.constant 16 : i32
    %77 = vector.broadcast %c16_i32 : i32 to vector<1x286xi32>
    %78 = arith.cmpi slt, %76, %77 : vector<1x286xi32>
    %cst_58 = arith.constant 0.000000e+00 : f32
    %79 = vector.shape_cast %78 : vector<1x286xi1> to vector<1x286xi1>
    %80 = vector.broadcast %79 : vector<1x286xi1> to vector<32x286xi1>
    %81 = vector.broadcast %cst_58 : f32 to vector<32x286xf32>
    %82 = arith.select %80, %59, %81 : vector<32x286xi1>, vector<32x286xf32>
    %c0_i32_59 = arith.constant 0 : i32
    %83 = arith.sitofp %c0_i32_59 : i32 to f32
    %84 = vector.broadcast %83 : f32 to vector<32x19xf32>
    %85 = tpu.concatenate %84, %82 in 1 : vector<32x19xf32>, vector<32x286xf32> -> vector<32x305xf32>
    %86 = vector.broadcast %83 : f32 to vector<32x79xf32>
    %87 = tpu.concatenate %85, %86 in 1 : vector<32x305xf32>, vector<32x79xf32> -> vector<32x384xf32>
    %88 = arith.truncf %87 : vector<32x384xf32> to vector<32x384xbf16>
    %c0_60 = arith.constant 0 : index
    %c0_61 = arith.constant 0 : index
    %c0_62 = arith.constant 0 : index
    %89 = vector.load %arg9[%c0_60, %c0_61, %c0_62] : memref<1x32x384xbf16, #tpu.memory_space<vmem>>, vector<1x32x384xbf16>
    %90 = vector.shape_cast %89 : vector<1x32x384xbf16> to vector<32x384xbf16>
    %91 = vector.shape_cast %88 : vector<32x384xbf16> to vector<1x32x384xbf16>
    tpu.vector_store %arg9[%c0_60, %c0_61, %c0_62], %91 {strides = array<i32>} : memref<1x32x384xbf16, #tpu.memory_space<vmem>>, vector<1x32x384xbf16>,
    return
  }
  func.func @transform_0(%arg0: i32) -> (i32, i32, i32) {
    %c0_i32 = arith.constant 0 : i32
    %c0_i32_0 = arith.constant 0 : i32
    %c0_i32_1 = arith.constant 0 : i32
    return %arg0, %c0_i32, %c0_i32_0 : i32, i32, i32
  }
  func.func @transform_1(%arg0: i32) -> (i32, i32) {
    %c0_i32 = arith.constant 0 : i32
    %c0_i32_0 = arith.constant 0 : i32
    %c0_i32_1 = arith.constant 0 : i32
    return %c0_i32, %c0_i32_0 : i32, i32
  }
  func.func @transform_2(%arg0: i32) -> (i32, i32) {
    %c0_i32 = arith.constant 0 : i32
    %c0_i32_0 = arith.constant 0 : i32
    %c0_i32_1 = arith.constant 0 : i32
    return %c0_i32, %c0_i32_0 : i32, i32
  }
  func.func @transform_3(%arg0: i32) -> (i32, i32) {
    %c0_i32 = arith.constant 0 : i32
    %c0_i32_0 = arith.constant 0 : i32
    %c0_i32_1 = arith.constant 0 : i32
    return %c0_i32, %c0_i32_0 : i32, i32
  }
  func.func @transform_4(%arg0: i32) -> (i32, i32) {
    %c0_i32 = arith.constant 0 : i32
    %c0_i32_0 = arith.constant 0 : i32
    %c0_i32_1 = arith.constant 0 : i32
    return %c0_i32, %c0_i32_0 : i32, i32
  }
  func.func @transform_5(%arg0: i32) -> (i32, i32) {
    %c0_i32 = arith.constant 0 : i32
    %c0_i32_0 = arith.constant 0 : i32
    %c0_i32_1 = arith.constant 0 : i32
    return %c0_i32, %c0_i32_0 : i32, i32
  }
  func.func @transform_6(%arg0: i32) -> (i32, i32) {
    %c0_i32 = arith.constant 0 : i32
    %c0_i32_0 = arith.constant 0 : i32
    %c0_i32_1 = arith.constant 0 : i32
    return %c0_i32, %c0_i32_0 : i32, i32
  }
  func.func @transform_7(%arg0: i32) -> (i32, i32) {
    %c0_i32 = arith.constant 0 : i32
    %c0_i32_0 = arith.constant 0 : i32
    %c0_i32_1 = arith.constant 0 : i32
    return %c0_i32, %c0_i32_0 : i32, i32
  }
  func.func @transform_8(%arg0: i32) -> (i32, i32, i32) {
    %c0_i32 = arith.constant 0 : i32
    %c0_i32_0 = arith.constant 0 : i32
    %c0_i32_1 = arith.constant 0 : i32
    return %arg0, %c0_i32, %c0_i32_0 : i32, i32, i32
  }
}

module attributes {stable_mosaic.version = 11 : i64} {
  func.func @_block_kernel(%arg0: i32, %arg1: memref<1x8x1280xbf16, #tpu.memory_space<vmem>>, %arg2: memref<16x72xbf16, #tpu.memory_space<vmem>>, %arg3: memref<16x1xf32, #tpu.memory_space<vmem>>, %arg4: memref<16x144xbf16, #tpu.memory_space<vmem>>, %arg5: memref<16x1xf32, #tpu.memory_space<vmem>>, %arg6: memref<16x144xbf16, #tpu.memory_space<vmem>>, %arg7: memref<16x1xf32, #tpu.memory_space<vmem>>, %arg8: memref<1x16x1280xbf16, #tpu.memory_space<vmem>>, %arg9: memref<16x1280xbf16, #tpu.memory_space<vmem>>, %arg10: memref<16x1280xbf16, #tpu.memory_space<vmem>>) attributes {dimension_semantics = [#tpu.dimension_semantics<parallel>], iteration_bounds = array<i64: 2>, scalar_prefetch = 0 : i64, scratch_operands = 2 : i64, tpu.core_type = #tpu.core_type<tc>, window_params = [{transform_indices = @transform_0, window_bounds = array<i64: 1, 8, 1280>}, {pipeline_mode = #tpu.pipeline_mode<synchronous>, transform_indices = @transform_1, window_bounds = array<i64: 16, 72>}, {pipeline_mode = #tpu.pipeline_mode<synchronous>, transform_indices = @transform_2, window_bounds = array<i64: 16, 1>}, {pipeline_mode = #tpu.pipeline_mode<synchronous>, transform_indices = @transform_3, window_bounds = array<i64: 16, 144>}, {pipeline_mode = #tpu.pipeline_mode<synchronous>, transform_indices = @transform_4, window_bounds = array<i64: 16, 1>}, {pipeline_mode = #tpu.pipeline_mode<synchronous>, transform_indices = @transform_5, window_bounds = array<i64: 16, 144>}, {pipeline_mode = #tpu.pipeline_mode<synchronous>, transform_indices = @transform_6, window_bounds = array<i64: 16, 1>}, {transform_indices = @transform_7, window_bounds = array<i64: 1, 16, 1280>}]} {
    %c0 = arith.constant 0 : index
    %c0_0 = arith.constant 0 : index
    %0 = vector.load %arg2[%c0, %c0_0] : memref<16x72xbf16, #tpu.memory_space<vmem>>, vector<16x72xbf16>
    %c0_1 = arith.constant 0 : index
    %c0_2 = arith.constant 0 : index
    %1 = vector.load %arg3[%c0_1, %c0_2] : memref<16x1xf32, #tpu.memory_space<vmem>>, vector<16x1xf32>
    %c0_3 = arith.constant 0 : index
    %c0_4 = arith.constant 0 : index
    %c0_5 = arith.constant 0 : index
    %2 = vector.load %arg1[%c0_3, %c0_4, %c0_5] : memref<1x8x1280xbf16, #tpu.memory_space<vmem>>, vector<1x8x1086xbf16>
    %3 = vector.shape_cast %2 : vector<1x8x1086xbf16> to vector<8x1086xbf16>
    %c0_6 = arith.constant 0 : index
    %c0_7 = arith.constant 0 : index
    %c1 = arith.constant 1 : index
    %4 = vector.load %arg1[%c0_6, %c0_7, %c1] : memref<1x8x1280xbf16, #tpu.memory_space<vmem>>, vector<1x8x1086xbf16>
    %5 = vector.shape_cast %4 : vector<1x8x1086xbf16> to vector<8x1086xbf16>
    %c0_8 = arith.constant 0 : index
    %c0_9 = arith.constant 0 : index
    %c2 = arith.constant 2 : index
    %6 = vector.load %arg1[%c0_8, %c0_9, %c2] : memref<1x8x1280xbf16, #tpu.memory_space<vmem>>, vector<1x8x1086xbf16>
    %7 = vector.shape_cast %6 : vector<1x8x1086xbf16> to vector<8x1086xbf16>
    %c0_10 = arith.constant 0 : index
    %c0_11 = arith.constant 0 : index
    %c34 = arith.constant 34 : index
    %8 = vector.load %arg1[%c0_10, %c0_11, %c34] : memref<1x8x1280xbf16, #tpu.memory_space<vmem>>, vector<1x8x1086xbf16>
    %9 = vector.shape_cast %8 : vector<1x8x1086xbf16> to vector<8x1086xbf16>
    %c0_12 = arith.constant 0 : index
    %c0_13 = arith.constant 0 : index
    %c35 = arith.constant 35 : index
    %10 = vector.load %arg1[%c0_12, %c0_13, %c35] : memref<1x8x1280xbf16, #tpu.memory_space<vmem>>, vector<1x8x1086xbf16>
    %11 = vector.shape_cast %10 : vector<1x8x1086xbf16> to vector<8x1086xbf16>
    %c0_14 = arith.constant 0 : index
    %c0_15 = arith.constant 0 : index
    %c36 = arith.constant 36 : index
    %12 = vector.load %arg1[%c0_14, %c0_15, %c36] : memref<1x8x1280xbf16, #tpu.memory_space<vmem>>, vector<1x8x1086xbf16>
    %13 = vector.shape_cast %12 : vector<1x8x1086xbf16> to vector<8x1086xbf16>
    %c0_16 = arith.constant 0 : index
    %c0_17 = arith.constant 0 : index
    %c68 = arith.constant 68 : index
    %14 = vector.load %arg1[%c0_16, %c0_17, %c68] : memref<1x8x1280xbf16, #tpu.memory_space<vmem>>, vector<1x8x1086xbf16>
    %15 = vector.shape_cast %14 : vector<1x8x1086xbf16> to vector<8x1086xbf16>
    %c0_18 = arith.constant 0 : index
    %c0_19 = arith.constant 0 : index
    %c69 = arith.constant 69 : index
    %16 = vector.load %arg1[%c0_18, %c0_19, %c69] : memref<1x8x1280xbf16, #tpu.memory_space<vmem>>, vector<1x8x1086xbf16>
    %17 = vector.shape_cast %16 : vector<1x8x1086xbf16> to vector<8x1086xbf16>
    %c0_20 = arith.constant 0 : index
    %c0_21 = arith.constant 0 : index
    %c70 = arith.constant 70 : index
    %18 = vector.load %arg1[%c0_20, %c0_21, %c70] : memref<1x8x1280xbf16, #tpu.memory_space<vmem>>, vector<1x8x1086xbf16>
    %19 = vector.shape_cast %18 : vector<1x8x1086xbf16> to vector<8x1086xbf16>
    %20 = tpu.concatenate %3, %5, %7, %9, %11, %13, %15, %17, %19 in 0 : vector<8x1086xbf16>, vector<8x1086xbf16>, vector<8x1086xbf16>, vector<8x1086xbf16>, vector<8x1086xbf16>, vector<8x1086xbf16>, vector<8x1086xbf16>, vector<8x1086xbf16>, vector<8x1086xbf16> -> vector<72x1086xbf16>
    %cst = arith.constant dense<0.000000e+00> : vector<16x1086xf32>
    %21 = tpu.matmul %0, %20, %cst {dimension_numbers = #tpu.dot_dimension_numbers<[1], [0], [0], [1], [0, 0, 1, 1], [], []>} : vector<16x72xbf16>, vector<72x1086xbf16>, vector<16x1086xf32> -> vector<16x1086xf32>
    %22 = vector.broadcast %1 : vector<16x1xf32> to vector<16x1086xf32>
    %23 = arith.addf %21, %22 : vector<16x1086xf32>
    %cst_22 = arith.constant 0.000000e+00 : f32
    %24 = vector.broadcast %cst_22 : f32 to vector<16x1086xf32>
    %25 = arith.maximumf %23, %24 : vector<16x1086xf32>
    %26 = tpu.iota {dimensions = array<i32: 1>} : vector<1x1086xi32>
    %c34_i32 = arith.constant 34 : i32
    %c0_i32 = arith.constant 0 : i32
    %27 = arith.cmpi eq, %c34_i32, %c0_i32 : i32
    %c1_i32 = arith.constant 1 : i32
    %28 = arith.select %27, %c1_i32, %c34_i32 : i32
    %29 = vector.broadcast %28 : i32 to vector<1x1086xi32>
    %30 = arith.remsi %26, %29 : vector<1x1086xi32>
    %c0_i32_23 = arith.constant 0 : i32
    %31 = vector.broadcast %c0_i32_23 : i32 to vector<1x1086xi32>
    %32 = arith.cmpi ne, %30, %31 : vector<1x1086xi32>
    %c0_i32_24 = arith.constant 0 : i32
    %33 = vector.broadcast %c0_i32_24 : i32 to vector<1x1086xi32>
    %34 = arith.cmpi slt, %30, %33 : vector<1x1086xi32>
    %c0_i32_25 = arith.constant 0 : i32
    %35 = arith.cmpi slt, %28, %c0_i32_25 : i32
    %36 = vector.broadcast %35 : i1 to vector<1x1086xi1>
    %37 = vector.broadcast %36 : vector<1x1086xi1> to vector<1x1086xi1>
    %38 = arith.xori %34, %37 : vector<1x1086xi1>
    %39 = arith.andi %38, %32 : vector<1x1086xi1>
    %40 = vector.broadcast %28 : i32 to vector<1x1086xi32>
    %41 = arith.addi %30, %40 : vector<1x1086xi32>
    %42 = arith.select %39, %41, %30 : vector<1x1086xi1>, vector<1x1086xi32>
    %c32_i32 = arith.constant 32 : i32
    %43 = vector.broadcast %c32_i32 : i32 to vector<1x1086xi32>
    %44 = arith.cmpi slt, %42, %43 : vector<1x1086xi32>
    %cst_26 = arith.constant 0.000000e+00 : f32
    %45 = vector.shape_cast %44 : vector<1x1086xi1> to vector<1x1086xi1>
    %46 = vector.broadcast %45 : vector<1x1086xi1> to vector<16x1086xi1>
    %47 = vector.broadcast %cst_26 : f32 to vector<16x1086xf32>
    %48 = arith.select %46, %25, %47 : vector<16x1086xi1>, vector<16x1086xf32>
    %c0_i32_27 = arith.constant 0 : i32
    %49 = arith.sitofp %c0_i32_27 : i32 to f32
    %50 = vector.broadcast %49 : f32 to vector<16x35xf32>
    %51 = tpu.concatenate %50, %48 in 1 : vector<16x35xf32>, vector<16x1086xf32> -> vector<16x1121xf32>
    %52 = vector.broadcast %49 : f32 to vector<16x159xf32>
    %53 = tpu.concatenate %51, %52 in 1 : vector<16x1121xf32>, vector<16x159xf32> -> vector<16x1280xf32>
    %54 = arith.truncf %53 : vector<16x1280xf32> to vector<16x1280xbf16>
    %c0_28 = arith.constant 0 : index
    %c0_29 = arith.constant 0 : index
    %55 = vector.load %arg9[%c0_28, %c0_29] : memref<16x1280xbf16, #tpu.memory_space<vmem>>, vector<16x1280xbf16>
    tpu.vector_store %arg9[%c0_28, %c0_29], %54 {strides = array<i32>} : memref<16x1280xbf16, #tpu.memory_space<vmem>>, vector<16x1280xbf16>,
    %c0_30 = arith.constant 0 : index
    %c0_31 = arith.constant 0 : index
    %56 = vector.load %arg4[%c0_30, %c0_31] : memref<16x144xbf16, #tpu.memory_space<vmem>>, vector<16x144xbf16>
    %c0_32 = arith.constant 0 : index
    %c0_33 = arith.constant 0 : index
    %57 = vector.load %arg5[%c0_32, %c0_33] : memref<16x1xf32, #tpu.memory_space<vmem>>, vector<16x1xf32>
    %c0_34 = arith.constant 0 : index
    %c0_35 = arith.constant 0 : index
    %58 = vector.load %arg9[%c0_34, %c0_35] : memref<16x1280xbf16, #tpu.memory_space<vmem>>, vector<16x1086xbf16>
    %c0_36 = arith.constant 0 : index
    %c1_37 = arith.constant 1 : index
    %59 = vector.load %arg9[%c0_36, %c1_37] : memref<16x1280xbf16, #tpu.memory_space<vmem>>, vector<16x1086xbf16>
    %c0_38 = arith.constant 0 : index
    %c2_39 = arith.constant 2 : index
    %60 = vector.load %arg9[%c0_38, %c2_39] : memref<16x1280xbf16, #tpu.memory_space<vmem>>, vector<16x1086xbf16>
    %c0_40 = arith.constant 0 : index
    %c34_41 = arith.constant 34 : index
    %61 = vector.load %arg9[%c0_40, %c34_41] : memref<16x1280xbf16, #tpu.memory_space<vmem>>, vector<16x1086xbf16>
    %c0_42 = arith.constant 0 : index
    %c35_43 = arith.constant 35 : index
    %62 = vector.load %arg9[%c0_42, %c35_43] : memref<16x1280xbf16, #tpu.memory_space<vmem>>, vector<16x1086xbf16>
    %c0_44 = arith.constant 0 : index
    %c36_45 = arith.constant 36 : index
    %63 = vector.load %arg9[%c0_44, %c36_45] : memref<16x1280xbf16, #tpu.memory_space<vmem>>, vector<16x1086xbf16>
    %c0_46 = arith.constant 0 : index
    %c68_47 = arith.constant 68 : index
    %64 = vector.load %arg9[%c0_46, %c68_47] : memref<16x1280xbf16, #tpu.memory_space<vmem>>, vector<16x1086xbf16>
    %c0_48 = arith.constant 0 : index
    %c69_49 = arith.constant 69 : index
    %65 = vector.load %arg9[%c0_48, %c69_49] : memref<16x1280xbf16, #tpu.memory_space<vmem>>, vector<16x1086xbf16>
    %c0_50 = arith.constant 0 : index
    %c70_51 = arith.constant 70 : index
    %66 = vector.load %arg9[%c0_50, %c70_51] : memref<16x1280xbf16, #tpu.memory_space<vmem>>, vector<16x1086xbf16>
    %67 = tpu.concatenate %58, %59, %60, %61, %62, %63, %64, %65, %66 in 0 : vector<16x1086xbf16>, vector<16x1086xbf16>, vector<16x1086xbf16>, vector<16x1086xbf16>, vector<16x1086xbf16>, vector<16x1086xbf16>, vector<16x1086xbf16>, vector<16x1086xbf16>, vector<16x1086xbf16> -> vector<144x1086xbf16>
    %cst_52 = arith.constant dense<0.000000e+00> : vector<16x1086xf32>
    %68 = tpu.matmul %56, %67, %cst_52 {dimension_numbers = #tpu.dot_dimension_numbers<[1], [0], [0], [1], [0, 0, 1, 1], [], []>} : vector<16x144xbf16>, vector<144x1086xbf16>, vector<16x1086xf32> -> vector<16x1086xf32>
    %69 = vector.broadcast %57 : vector<16x1xf32> to vector<16x1086xf32>
    %70 = arith.addf %68, %69 : vector<16x1086xf32>
    %cst_53 = arith.constant 0.000000e+00 : f32
    %71 = vector.broadcast %cst_53 : f32 to vector<16x1086xf32>
    %72 = arith.maximumf %70, %71 : vector<16x1086xf32>
    %73 = tpu.iota {dimensions = array<i32: 1>} : vector<1x1086xi32>
    %c34_i32_54 = arith.constant 34 : i32
    %c0_i32_55 = arith.constant 0 : i32
    %74 = arith.cmpi eq, %c34_i32_54, %c0_i32_55 : i32
    %c1_i32_56 = arith.constant 1 : i32
    %75 = arith.select %74, %c1_i32_56, %c34_i32_54 : i32
    %76 = vector.broadcast %75 : i32 to vector<1x1086xi32>
    %77 = arith.remsi %73, %76 : vector<1x1086xi32>
    %c0_i32_57 = arith.constant 0 : i32
    %78 = vector.broadcast %c0_i32_57 : i32 to vector<1x1086xi32>
    %79 = arith.cmpi ne, %77, %78 : vector<1x1086xi32>
    %c0_i32_58 = arith.constant 0 : i32
    %80 = vector.broadcast %c0_i32_58 : i32 to vector<1x1086xi32>
    %81 = arith.cmpi slt, %77, %80 : vector<1x1086xi32>
    %c0_i32_59 = arith.constant 0 : i32
    %82 = arith.cmpi slt, %75, %c0_i32_59 : i32
    %83 = vector.broadcast %82 : i1 to vector<1x1086xi1>
    %84 = vector.broadcast %83 : vector<1x1086xi1> to vector<1x1086xi1>
    %85 = arith.xori %81, %84 : vector<1x1086xi1>
    %86 = arith.andi %85, %79 : vector<1x1086xi1>
    %87 = vector.broadcast %75 : i32 to vector<1x1086xi32>
    %88 = arith.addi %77, %87 : vector<1x1086xi32>
    %89 = arith.select %86, %88, %77 : vector<1x1086xi1>, vector<1x1086xi32>
    %c32_i32_60 = arith.constant 32 : i32
    %90 = vector.broadcast %c32_i32_60 : i32 to vector<1x1086xi32>
    %91 = arith.cmpi slt, %89, %90 : vector<1x1086xi32>
    %cst_61 = arith.constant 0.000000e+00 : f32
    %92 = vector.shape_cast %91 : vector<1x1086xi1> to vector<1x1086xi1>
    %93 = vector.broadcast %92 : vector<1x1086xi1> to vector<16x1086xi1>
    %94 = vector.broadcast %cst_61 : f32 to vector<16x1086xf32>
    %95 = arith.select %93, %72, %94 : vector<16x1086xi1>, vector<16x1086xf32>
    %c0_i32_62 = arith.constant 0 : i32
    %96 = arith.sitofp %c0_i32_62 : i32 to f32
    %97 = vector.broadcast %96 : f32 to vector<16x35xf32>
    %98 = tpu.concatenate %97, %95 in 1 : vector<16x35xf32>, vector<16x1086xf32> -> vector<16x1121xf32>
    %99 = vector.broadcast %96 : f32 to vector<16x159xf32>
    %100 = tpu.concatenate %98, %99 in 1 : vector<16x1121xf32>, vector<16x159xf32> -> vector<16x1280xf32>
    %101 = arith.truncf %100 : vector<16x1280xf32> to vector<16x1280xbf16>
    %c0_63 = arith.constant 0 : index
    %c0_64 = arith.constant 0 : index
    %102 = vector.load %arg10[%c0_63, %c0_64] : memref<16x1280xbf16, #tpu.memory_space<vmem>>, vector<16x1280xbf16>
    tpu.vector_store %arg10[%c0_63, %c0_64], %101 {strides = array<i32>} : memref<16x1280xbf16, #tpu.memory_space<vmem>>, vector<16x1280xbf16>,
    %c0_65 = arith.constant 0 : index
    %c35_66 = arith.constant 35 : index
    %103 = vector.load %arg9[%c0_65, %c35_66] : memref<16x1280xbf16, #tpu.memory_space<vmem>>, vector<16x1086xbf16>
    %104 = arith.extf %103 : vector<16x1086xbf16> to vector<16x1086xf32>
    %c0_67 = arith.constant 0 : index
    %c0_68 = arith.constant 0 : index
    %105 = vector.load %arg6[%c0_67, %c0_68] : memref<16x144xbf16, #tpu.memory_space<vmem>>, vector<16x144xbf16>
    %c0_69 = arith.constant 0 : index
    %c0_70 = arith.constant 0 : index
    %106 = vector.load %arg7[%c0_69, %c0_70] : memref<16x1xf32, #tpu.memory_space<vmem>>, vector<16x1xf32>
    %c0_71 = arith.constant 0 : index
    %c0_72 = arith.constant 0 : index
    %107 = vector.load %arg10[%c0_71, %c0_72] : memref<16x1280xbf16, #tpu.memory_space<vmem>>, vector<16x1086xbf16>
    %c0_73 = arith.constant 0 : index
    %c1_74 = arith.constant 1 : index
    %108 = vector.load %arg10[%c0_73, %c1_74] : memref<16x1280xbf16, #tpu.memory_space<vmem>>, vector<16x1086xbf16>
    %c0_75 = arith.constant 0 : index
    %c2_76 = arith.constant 2 : index
    %109 = vector.load %arg10[%c0_75, %c2_76] : memref<16x1280xbf16, #tpu.memory_space<vmem>>, vector<16x1086xbf16>
    %c0_77 = arith.constant 0 : index
    %c34_78 = arith.constant 34 : index
    %110 = vector.load %arg10[%c0_77, %c34_78] : memref<16x1280xbf16, #tpu.memory_space<vmem>>, vector<16x1086xbf16>
    %c0_79 = arith.constant 0 : index
    %c35_80 = arith.constant 35 : index
    %111 = vector.load %arg10[%c0_79, %c35_80] : memref<16x1280xbf16, #tpu.memory_space<vmem>>, vector<16x1086xbf16>
    %c0_81 = arith.constant 0 : index
    %c36_82 = arith.constant 36 : index
    %112 = vector.load %arg10[%c0_81, %c36_82] : memref<16x1280xbf16, #tpu.memory_space<vmem>>, vector<16x1086xbf16>
    %c0_83 = arith.constant 0 : index
    %c68_84 = arith.constant 68 : index
    %113 = vector.load %arg10[%c0_83, %c68_84] : memref<16x1280xbf16, #tpu.memory_space<vmem>>, vector<16x1086xbf16>
    %c0_85 = arith.constant 0 : index
    %c69_86 = arith.constant 69 : index
    %114 = vector.load %arg10[%c0_85, %c69_86] : memref<16x1280xbf16, #tpu.memory_space<vmem>>, vector<16x1086xbf16>
    %c0_87 = arith.constant 0 : index
    %c70_88 = arith.constant 70 : index
    %115 = vector.load %arg10[%c0_87, %c70_88] : memref<16x1280xbf16, #tpu.memory_space<vmem>>, vector<16x1086xbf16>
    %116 = tpu.concatenate %107, %108, %109, %110, %111, %112, %113, %114, %115 in 0 : vector<16x1086xbf16>, vector<16x1086xbf16>, vector<16x1086xbf16>, vector<16x1086xbf16>, vector<16x1086xbf16>, vector<16x1086xbf16>, vector<16x1086xbf16>, vector<16x1086xbf16>, vector<16x1086xbf16> -> vector<144x1086xbf16>
    %cst_89 = arith.constant dense<0.000000e+00> : vector<16x1086xf32>
    %117 = tpu.matmul %105, %116, %cst_89 {dimension_numbers = #tpu.dot_dimension_numbers<[1], [0], [0], [1], [0, 0, 1, 1], [], []>} : vector<16x144xbf16>, vector<144x1086xbf16>, vector<16x1086xf32> -> vector<16x1086xf32>
    %118 = vector.broadcast %106 : vector<16x1xf32> to vector<16x1086xf32>
    %119 = arith.addf %117, %118 : vector<16x1086xf32>
    %120 = arith.addf %119, %104 : vector<16x1086xf32>
    %cst_90 = arith.constant 0.000000e+00 : f32
    %121 = vector.broadcast %cst_90 : f32 to vector<16x1086xf32>
    %122 = arith.maximumf %120, %121 : vector<16x1086xf32>
    %123 = tpu.iota {dimensions = array<i32: 1>} : vector<1x1086xi32>
    %c34_i32_91 = arith.constant 34 : i32
    %c0_i32_92 = arith.constant 0 : i32
    %124 = arith.cmpi eq, %c34_i32_91, %c0_i32_92 : i32
    %c1_i32_93 = arith.constant 1 : i32
    %125 = arith.select %124, %c1_i32_93, %c34_i32_91 : i32
    %126 = vector.broadcast %125 : i32 to vector<1x1086xi32>
    %127 = arith.remsi %123, %126 : vector<1x1086xi32>
    %c0_i32_94 = arith.constant 0 : i32
    %128 = vector.broadcast %c0_i32_94 : i32 to vector<1x1086xi32>
    %129 = arith.cmpi ne, %127, %128 : vector<1x1086xi32>
    %c0_i32_95 = arith.constant 0 : i32
    %130 = vector.broadcast %c0_i32_95 : i32 to vector<1x1086xi32>
    %131 = arith.cmpi slt, %127, %130 : vector<1x1086xi32>
    %c0_i32_96 = arith.constant 0 : i32
    %132 = arith.cmpi slt, %125, %c0_i32_96 : i32
    %133 = vector.broadcast %132 : i1 to vector<1x1086xi1>
    %134 = vector.broadcast %133 : vector<1x1086xi1> to vector<1x1086xi1>
    %135 = arith.xori %131, %134 : vector<1x1086xi1>
    %136 = arith.andi %135, %129 : vector<1x1086xi1>
    %137 = vector.broadcast %125 : i32 to vector<1x1086xi32>
    %138 = arith.addi %127, %137 : vector<1x1086xi32>
    %139 = arith.select %136, %138, %127 : vector<1x1086xi1>, vector<1x1086xi32>
    %c32_i32_97 = arith.constant 32 : i32
    %140 = vector.broadcast %c32_i32_97 : i32 to vector<1x1086xi32>
    %141 = arith.cmpi slt, %139, %140 : vector<1x1086xi32>
    %cst_98 = arith.constant 0.000000e+00 : f32
    %142 = vector.shape_cast %141 : vector<1x1086xi1> to vector<1x1086xi1>
    %143 = vector.broadcast %142 : vector<1x1086xi1> to vector<16x1086xi1>
    %144 = vector.broadcast %cst_98 : f32 to vector<16x1086xf32>
    %145 = arith.select %143, %122, %144 : vector<16x1086xi1>, vector<16x1086xf32>
    %c0_i32_99 = arith.constant 0 : i32
    %146 = arith.sitofp %c0_i32_99 : i32 to f32
    %147 = vector.broadcast %146 : f32 to vector<16x35xf32>
    %148 = tpu.concatenate %147, %145 in 1 : vector<16x35xf32>, vector<16x1086xf32> -> vector<16x1121xf32>
    %149 = vector.broadcast %146 : f32 to vector<16x159xf32>
    %150 = tpu.concatenate %148, %149 in 1 : vector<16x1121xf32>, vector<16x159xf32> -> vector<16x1280xf32>
    %151 = arith.truncf %150 : vector<16x1280xf32> to vector<16x1280xbf16>
    %c0_100 = arith.constant 0 : index
    %c0_101 = arith.constant 0 : index
    %c0_102 = arith.constant 0 : index
    %152 = vector.load %arg8[%c0_100, %c0_101, %c0_102] : memref<1x16x1280xbf16, #tpu.memory_space<vmem>>, vector<1x16x1280xbf16>
    %153 = vector.shape_cast %152 : vector<1x16x1280xbf16> to vector<16x1280xbf16>
    %154 = vector.shape_cast %151 : vector<16x1280xbf16> to vector<1x16x1280xbf16>
    tpu.vector_store %arg8[%c0_100, %c0_101, %c0_102], %154 {strides = array<i32>} : memref<1x16x1280xbf16, #tpu.memory_space<vmem>>, vector<1x16x1280xbf16>,
    return
  }
  func.func @transform_0(%arg0: i32) -> (i32, i32, i32) {
    %c0_i32 = arith.constant 0 : i32
    %c0_i32_0 = arith.constant 0 : i32
    %c0_i32_1 = arith.constant 0 : i32
    return %arg0, %c0_i32, %c0_i32_0 : i32, i32, i32
  }
  func.func @transform_1(%arg0: i32) -> (i32, i32) {
    %c0_i32 = arith.constant 0 : i32
    %c0_i32_0 = arith.constant 0 : i32
    %c0_i32_1 = arith.constant 0 : i32
    return %c0_i32, %c0_i32_0 : i32, i32
  }
  func.func @transform_2(%arg0: i32) -> (i32, i32) {
    %c0_i32 = arith.constant 0 : i32
    %c0_i32_0 = arith.constant 0 : i32
    %c0_i32_1 = arith.constant 0 : i32
    return %c0_i32, %c0_i32_0 : i32, i32
  }
  func.func @transform_3(%arg0: i32) -> (i32, i32) {
    %c0_i32 = arith.constant 0 : i32
    %c0_i32_0 = arith.constant 0 : i32
    %c0_i32_1 = arith.constant 0 : i32
    return %c0_i32, %c0_i32_0 : i32, i32
  }
  func.func @transform_4(%arg0: i32) -> (i32, i32) {
    %c0_i32 = arith.constant 0 : i32
    %c0_i32_0 = arith.constant 0 : i32
    %c0_i32_1 = arith.constant 0 : i32
    return %c0_i32, %c0_i32_0 : i32, i32
  }
  func.func @transform_5(%arg0: i32) -> (i32, i32) {
    %c0_i32 = arith.constant 0 : i32
    %c0_i32_0 = arith.constant 0 : i32
    %c0_i32_1 = arith.constant 0 : i32
    return %c0_i32, %c0_i32_0 : i32, i32
  }
  func.func @transform_6(%arg0: i32) -> (i32, i32) {
    %c0_i32 = arith.constant 0 : i32
    %c0_i32_0 = arith.constant 0 : i32
    %c0_i32_1 = arith.constant 0 : i32
    return %c0_i32, %c0_i32_0 : i32, i32
  }
  func.func @transform_7(%arg0: i32) -> (i32, i32, i32) {
    %c0_i32 = arith.constant 0 : i32
    %c0_i32_0 = arith.constant 0 : i32
    %c0_i32_1 = arith.constant 0 : i32
    return %arg0, %c0_i32, %c0_i32_0 : i32, i32, i32
  }
}

module attributes {stable_mosaic.version = 11 : i64} {
  func.func @_block_kernel(%arg0: i32, %arg1: memref<1x32x384xbf16, #tpu.memory_space<vmem>>, %arg2: memref<64x288xbf16, #tpu.memory_space<vmem>>, %arg3: memref<64x1xf32, #tpu.memory_space<vmem>>, %arg4: memref<64x576xbf16, #tpu.memory_space<vmem>>, %arg5: memref<64x1xf32, #tpu.memory_space<vmem>>, %arg6: memref<286x128xbf16, #tpu.memory_space<vmem>>, %arg7: memref<64x32xbf16, #tpu.memory_space<vmem>>, %arg8: memref<64x1xf32, #tpu.memory_space<vmem>>, %arg9: memref<1x64x128xbf16, #tpu.memory_space<vmem>>, %arg10: memref<64x128xbf16, #tpu.memory_space<vmem>>) attributes {dimension_semantics = [#tpu.dimension_semantics<parallel>], iteration_bounds = array<i64: 2>, scalar_prefetch = 0 : i64, scratch_operands = 1 : i64, tpu.core_type = #tpu.core_type<tc>, window_params = [{transform_indices = @transform_0, window_bounds = array<i64: 1, 32, 384>}, {pipeline_mode = #tpu.pipeline_mode<synchronous>, transform_indices = @transform_1, window_bounds = array<i64: 64, 288>}, {pipeline_mode = #tpu.pipeline_mode<synchronous>, transform_indices = @transform_2, window_bounds = array<i64: 64, 1>}, {pipeline_mode = #tpu.pipeline_mode<synchronous>, transform_indices = @transform_3, window_bounds = array<i64: 64, 576>}, {pipeline_mode = #tpu.pipeline_mode<synchronous>, transform_indices = @transform_4, window_bounds = array<i64: 64, 1>}, {pipeline_mode = #tpu.pipeline_mode<synchronous>, transform_indices = @transform_5, window_bounds = array<i64: 286, 128>}, {pipeline_mode = #tpu.pipeline_mode<synchronous>, transform_indices = @transform_6, window_bounds = array<i64: 64, 32>}, {pipeline_mode = #tpu.pipeline_mode<synchronous>, transform_indices = @transform_7, window_bounds = array<i64: 64, 1>}, {transform_indices = @transform_8, window_bounds = array<i64: 1, 64, 128>}]} {
    %c0 = arith.constant 0 : index
    %c0_0 = arith.constant 0 : index
    %0 = vector.load %arg2[%c0, %c0_0] : memref<64x288xbf16, #tpu.memory_space<vmem>>, vector<64x288xbf16>
    %c0_1 = arith.constant 0 : index
    %c0_2 = arith.constant 0 : index
    %1 = vector.load %arg3[%c0_1, %c0_2] : memref<64x1xf32, #tpu.memory_space<vmem>>, vector<64x1xf32>
    %c0_3 = arith.constant 0 : index
    %c0_4 = arith.constant 0 : index
    %c0_5 = arith.constant 0 : index
    %2 = vector.load %arg1[%c0_3, %c0_4, %c0_5] : memref<1x32x384xbf16, #tpu.memory_space<vmem>>, vector<1x32x286xbf16>
    %3 = vector.shape_cast %2 : vector<1x32x286xbf16> to vector<32x286xbf16>
    %c0_6 = arith.constant 0 : index
    %c0_7 = arith.constant 0 : index
    %c1 = arith.constant 1 : index
    %4 = vector.load %arg1[%c0_6, %c0_7, %c1] : memref<1x32x384xbf16, #tpu.memory_space<vmem>>, vector<1x32x286xbf16>
    %5 = vector.shape_cast %4 : vector<1x32x286xbf16> to vector<32x286xbf16>
    %c0_8 = arith.constant 0 : index
    %c0_9 = arith.constant 0 : index
    %c2 = arith.constant 2 : index
    %6 = vector.load %arg1[%c0_8, %c0_9, %c2] : memref<1x32x384xbf16, #tpu.memory_space<vmem>>, vector<1x32x286xbf16>
    %7 = vector.shape_cast %6 : vector<1x32x286xbf16> to vector<32x286xbf16>
    %c0_10 = arith.constant 0 : index
    %c0_11 = arith.constant 0 : index
    %c18 = arith.constant 18 : index
    %8 = vector.load %arg1[%c0_10, %c0_11, %c18] : memref<1x32x384xbf16, #tpu.memory_space<vmem>>, vector<1x32x286xbf16>
    %9 = vector.shape_cast %8 : vector<1x32x286xbf16> to vector<32x286xbf16>
    %c0_12 = arith.constant 0 : index
    %c0_13 = arith.constant 0 : index
    %c19 = arith.constant 19 : index
    %10 = vector.load %arg1[%c0_12, %c0_13, %c19] : memref<1x32x384xbf16, #tpu.memory_space<vmem>>, vector<1x32x286xbf16>
    %11 = vector.shape_cast %10 : vector<1x32x286xbf16> to vector<32x286xbf16>
    %c0_14 = arith.constant 0 : index
    %c0_15 = arith.constant 0 : index
    %c20 = arith.constant 20 : index
    %12 = vector.load %arg1[%c0_14, %c0_15, %c20] : memref<1x32x384xbf16, #tpu.memory_space<vmem>>, vector<1x32x286xbf16>
    %13 = vector.shape_cast %12 : vector<1x32x286xbf16> to vector<32x286xbf16>
    %c0_16 = arith.constant 0 : index
    %c0_17 = arith.constant 0 : index
    %c36 = arith.constant 36 : index
    %14 = vector.load %arg1[%c0_16, %c0_17, %c36] : memref<1x32x384xbf16, #tpu.memory_space<vmem>>, vector<1x32x286xbf16>
    %15 = vector.shape_cast %14 : vector<1x32x286xbf16> to vector<32x286xbf16>
    %c0_18 = arith.constant 0 : index
    %c0_19 = arith.constant 0 : index
    %c37 = arith.constant 37 : index
    %16 = vector.load %arg1[%c0_18, %c0_19, %c37] : memref<1x32x384xbf16, #tpu.memory_space<vmem>>, vector<1x32x286xbf16>
    %17 = vector.shape_cast %16 : vector<1x32x286xbf16> to vector<32x286xbf16>
    %c0_20 = arith.constant 0 : index
    %c0_21 = arith.constant 0 : index
    %c38 = arith.constant 38 : index
    %18 = vector.load %arg1[%c0_20, %c0_21, %c38] : memref<1x32x384xbf16, #tpu.memory_space<vmem>>, vector<1x32x286xbf16>
    %19 = vector.shape_cast %18 : vector<1x32x286xbf16> to vector<32x286xbf16>
    %20 = tpu.concatenate %3, %5, %7, %9, %11, %13, %15, %17, %19 in 0 : vector<32x286xbf16>, vector<32x286xbf16>, vector<32x286xbf16>, vector<32x286xbf16>, vector<32x286xbf16>, vector<32x286xbf16>, vector<32x286xbf16>, vector<32x286xbf16>, vector<32x286xbf16> -> vector<288x286xbf16>
    %cst = arith.constant dense<0.000000e+00> : vector<64x286xf32>
    %21 = tpu.matmul %0, %20, %cst {dimension_numbers = #tpu.dot_dimension_numbers<[1], [0], [0], [1], [0, 0, 1, 1], [], []>} : vector<64x288xbf16>, vector<288x286xbf16>, vector<64x286xf32> -> vector<64x286xf32>
    %22 = vector.broadcast %1 : vector<64x1xf32> to vector<64x286xf32>
    %23 = arith.addf %21, %22 : vector<64x286xf32>
    %cst_22 = arith.constant 0.000000e+00 : f32
    %24 = vector.broadcast %cst_22 : f32 to vector<64x286xf32>
    %25 = arith.maximumf %23, %24 : vector<64x286xf32>
    %26 = arith.truncf %25 : vector<64x286xf32> to vector<64x286xbf16>
    %c0_23 = arith.constant 0 : index
    %c0_24 = arith.constant 0 : index
    %c19_25 = arith.constant 19 : index
    %27 = vector.load %arg1[%c0_23, %c0_24, %c19_25] : memref<1x32x384xbf16, #tpu.memory_space<vmem>>, vector<1x32x286xbf16>
    %28 = vector.shape_cast %27 : vector<1x32x286xbf16> to vector<32x286xbf16>
    %29 = tpu.concatenate %26, %28 in 0 : vector<64x286xbf16>, vector<32x286xbf16> -> vector<96x286xbf16>
    %c0_26 = arith.constant 0 : index
    %c0_27 = arith.constant 0 : index
    %30 = vector.load %arg6[%c0_26, %c0_27] : memref<286x128xbf16, #tpu.memory_space<vmem>>, vector<286x128xbf16>
    %cst_28 = arith.constant dense<0.000000e+00> : vector<96x128xf32>
    %31 = tpu.matmul %29, %30, %cst_28 {dimension_numbers = #tpu.dot_dimension_numbers<[1], [0], [0], [1], [0, 0, 1, 1], [], []>} : vector<96x286xbf16>, vector<286x128xbf16>, vector<96x128xf32> -> vector<96x128xf32>
    %32 = vector.extract_strided_slice %31 {offsets = [0, 0], sizes = [64, 128], strides = [1, 1]} : vector<96x128xf32> to vector<64x128xf32>
    %33 = arith.truncf %32 : vector<64x128xf32> to vector<64x128xbf16>
    %c0_29 = arith.constant 0 : index
    %c0_30 = arith.constant 0 : index
    %34 = vector.load %arg10[%c0_29, %c0_30] : memref<64x128xbf16, #tpu.memory_space<vmem>>, vector<64x128xbf16>
    tpu.vector_store %arg10[%c0_29, %c0_30], %33 {strides = array<i32>} : memref<64x128xbf16, #tpu.memory_space<vmem>>, vector<64x128xbf16>,
    %35 = vector.extract_strided_slice %31 {offsets = [64, 11], sizes = [32, 78], strides = [1, 1]} : vector<96x128xf32> to vector<32x78xf32>
    %36 = arith.truncf %35 : vector<32x78xf32> to vector<32x78xbf16>
    %c0_31 = arith.constant 0 : index
    %c0_32 = arith.constant 0 : index
    %37 = vector.load %arg7[%c0_31, %c0_32] : memref<64x32xbf16, #tpu.memory_space<vmem>>, vector<64x32xbf16>
    %cst_33 = arith.constant dense<0.000000e+00> : vector<64x78xf32>
    %38 = tpu.matmul %37, %36, %cst_33 {dimension_numbers = #tpu.dot_dimension_numbers<[1], [0], [0], [1], [0, 0, 1, 1], [], []>} : vector<64x32xbf16>, vector<32x78xbf16>, vector<64x78xf32> -> vector<64x78xf32>
    %c0_34 = arith.constant 0 : index
    %c0_35 = arith.constant 0 : index
    %39 = vector.load %arg8[%c0_34, %c0_35] : memref<64x1xf32, #tpu.memory_space<vmem>>, vector<64x1xf32>
    %40 = vector.broadcast %39 : vector<64x1xf32> to vector<64x78xf32>
    %41 = arith.addf %38, %40 : vector<64x78xf32>
    %c0_36 = arith.constant 0 : index
    %c0_37 = arith.constant 0 : index
    %42 = vector.load %arg4[%c0_36, %c0_37] : memref<64x576xbf16, #tpu.memory_space<vmem>>, vector<64x576xbf16>
    %c0_38 = arith.constant 0 : index
    %c0_39 = arith.constant 0 : index
    %43 = vector.load %arg5[%c0_38, %c0_39] : memref<64x1xf32, #tpu.memory_space<vmem>>, vector<64x1xf32>
    %c0_40 = arith.constant 0 : index
    %c0_41 = arith.constant 0 : index
    %44 = vector.load %arg10[%c0_40, %c0_41] : memref<64x128xbf16, #tpu.memory_space<vmem>>, vector<64x78xbf16>
    %c0_42 = arith.constant 0 : index
    %c1_43 = arith.constant 1 : index
    %45 = vector.load %arg10[%c0_42, %c1_43] : memref<64x128xbf16, #tpu.memory_space<vmem>>, vector<64x78xbf16>
    %c0_44 = arith.constant 0 : index
    %c2_45 = arith.constant 2 : index
    %46 = vector.load %arg10[%c0_44, %c2_45] : memref<64x128xbf16, #tpu.memory_space<vmem>>, vector<64x78xbf16>
    %c0_46 = arith.constant 0 : index
    %c10 = arith.constant 10 : index
    %47 = vector.load %arg10[%c0_46, %c10] : memref<64x128xbf16, #tpu.memory_space<vmem>>, vector<64x78xbf16>
    %c0_47 = arith.constant 0 : index
    %c11 = arith.constant 11 : index
    %48 = vector.load %arg10[%c0_47, %c11] : memref<64x128xbf16, #tpu.memory_space<vmem>>, vector<64x78xbf16>
    %c0_48 = arith.constant 0 : index
    %c12 = arith.constant 12 : index
    %49 = vector.load %arg10[%c0_48, %c12] : memref<64x128xbf16, #tpu.memory_space<vmem>>, vector<64x78xbf16>
    %c0_49 = arith.constant 0 : index
    %c20_50 = arith.constant 20 : index
    %50 = vector.load %arg10[%c0_49, %c20_50] : memref<64x128xbf16, #tpu.memory_space<vmem>>, vector<64x78xbf16>
    %c0_51 = arith.constant 0 : index
    %c21 = arith.constant 21 : index
    %51 = vector.load %arg10[%c0_51, %c21] : memref<64x128xbf16, #tpu.memory_space<vmem>>, vector<64x78xbf16>
    %c0_52 = arith.constant 0 : index
    %c22 = arith.constant 22 : index
    %52 = vector.load %arg10[%c0_52, %c22] : memref<64x128xbf16, #tpu.memory_space<vmem>>, vector<64x78xbf16>
    %53 = tpu.concatenate %44, %45, %46, %47, %48, %49, %50, %51, %52 in 0 : vector<64x78xbf16>, vector<64x78xbf16>, vector<64x78xbf16>, vector<64x78xbf16>, vector<64x78xbf16>, vector<64x78xbf16>, vector<64x78xbf16>, vector<64x78xbf16>, vector<64x78xbf16> -> vector<576x78xbf16>
    %cst_53 = arith.constant dense<0.000000e+00> : vector<64x78xf32>
    %54 = tpu.matmul %42, %53, %cst_53 {dimension_numbers = #tpu.dot_dimension_numbers<[1], [0], [0], [1], [0, 0, 1, 1], [], []>} : vector<64x576xbf16>, vector<576x78xbf16>, vector<64x78xf32> -> vector<64x78xf32>
    %55 = vector.broadcast %43 : vector<64x1xf32> to vector<64x78xf32>
    %56 = arith.addf %54, %55 : vector<64x78xf32>
    %57 = arith.addf %56, %41 : vector<64x78xf32>
    %cst_54 = arith.constant 0.000000e+00 : f32
    %58 = vector.broadcast %cst_54 : f32 to vector<64x78xf32>
    %59 = arith.maximumf %57, %58 : vector<64x78xf32>
    %60 = tpu.iota {dimensions = array<i32: 1>} : vector<1x78xi32>
    %c10_i32 = arith.constant 10 : i32
    %c0_i32 = arith.constant 0 : i32
    %61 = arith.cmpi eq, %c10_i32, %c0_i32 : i32
    %c1_i32 = arith.constant 1 : i32
    %62 = arith.select %61, %c1_i32, %c10_i32 : i32
    %63 = vector.broadcast %62 : i32 to vector<1x78xi32>
    %64 = arith.remsi %60, %63 : vector<1x78xi32>
    %c0_i32_55 = arith.constant 0 : i32
    %65 = vector.broadcast %c0_i32_55 : i32 to vector<1x78xi32>
    %66 = arith.cmpi ne, %64, %65 : vector<1x78xi32>
    %c0_i32_56 = arith.constant 0 : i32
    %67 = vector.broadcast %c0_i32_56 : i32 to vector<1x78xi32>
    %68 = arith.cmpi slt, %64, %67 : vector<1x78xi32>
    %c0_i32_57 = arith.constant 0 : i32
    %69 = arith.cmpi slt, %62, %c0_i32_57 : i32
    %70 = vector.broadcast %69 : i1 to vector<1x78xi1>
    %71 = vector.broadcast %70 : vector<1x78xi1> to vector<1x78xi1>
    %72 = arith.xori %68, %71 : vector<1x78xi1>
    %73 = arith.andi %72, %66 : vector<1x78xi1>
    %74 = vector.broadcast %62 : i32 to vector<1x78xi32>
    %75 = arith.addi %64, %74 : vector<1x78xi32>
    %76 = arith.select %73, %75, %64 : vector<1x78xi1>, vector<1x78xi32>
    %c8_i32 = arith.constant 8 : i32
    %77 = vector.broadcast %c8_i32 : i32 to vector<1x78xi32>
    %78 = arith.cmpi slt, %76, %77 : vector<1x78xi32>
    %cst_58 = arith.constant 0.000000e+00 : f32
    %79 = vector.shape_cast %78 : vector<1x78xi1> to vector<1x78xi1>
    %80 = vector.broadcast %79 : vector<1x78xi1> to vector<64x78xi1>
    %81 = vector.broadcast %cst_58 : f32 to vector<64x78xf32>
    %82 = arith.select %80, %59, %81 : vector<64x78xi1>, vector<64x78xf32>
    %c0_i32_59 = arith.constant 0 : i32
    %83 = arith.sitofp %c0_i32_59 : i32 to f32
    %84 = vector.broadcast %83 : f32 to vector<64x11xf32>
    %85 = tpu.concatenate %84, %82 in 1 : vector<64x11xf32>, vector<64x78xf32> -> vector<64x89xf32>
    %86 = vector.broadcast %83 : f32 to vector<64x39xf32>
    %87 = tpu.concatenate %85, %86 in 1 : vector<64x89xf32>, vector<64x39xf32> -> vector<64x128xf32>
    %88 = arith.truncf %87 : vector<64x128xf32> to vector<64x128xbf16>
    %c0_60 = arith.constant 0 : index
    %c0_61 = arith.constant 0 : index
    %c0_62 = arith.constant 0 : index
    %89 = vector.load %arg9[%c0_60, %c0_61, %c0_62] : memref<1x64x128xbf16, #tpu.memory_space<vmem>>, vector<1x64x128xbf16>
    %90 = vector.shape_cast %89 : vector<1x64x128xbf16> to vector<64x128xbf16>
    %91 = vector.shape_cast %88 : vector<64x128xbf16> to vector<1x64x128xbf16>
    tpu.vector_store %arg9[%c0_60, %c0_61, %c0_62], %91 {strides = array<i32>} : memref<1x64x128xbf16, #tpu.memory_space<vmem>>, vector<1x64x128xbf16>,
    return
  }
  func.func @transform_0(%arg0: i32) -> (i32, i32, i32) {
    %c0_i32 = arith.constant 0 : i32
    %c0_i32_0 = arith.constant 0 : i32
    %c0_i32_1 = arith.constant 0 : i32
    return %arg0, %c0_i32, %c0_i32_0 : i32, i32, i32
  }
  func.func @transform_1(%arg0: i32) -> (i32, i32) {
    %c0_i32 = arith.constant 0 : i32
    %c0_i32_0 = arith.constant 0 : i32
    %c0_i32_1 = arith.constant 0 : i32
    return %c0_i32, %c0_i32_0 : i32, i32
  }
  func.func @transform_2(%arg0: i32) -> (i32, i32) {
    %c0_i32 = arith.constant 0 : i32
    %c0_i32_0 = arith.constant 0 : i32
    %c0_i32_1 = arith.constant 0 : i32
    return %c0_i32, %c0_i32_0 : i32, i32
  }
  func.func @transform_3(%arg0: i32) -> (i32, i32) {
    %c0_i32 = arith.constant 0 : i32
    %c0_i32_0 = arith.constant 0 : i32
    %c0_i32_1 = arith.constant 0 : i32
    return %c0_i32, %c0_i32_0 : i32, i32
  }
  func.func @transform_4(%arg0: i32) -> (i32, i32) {
    %c0_i32 = arith.constant 0 : i32
    %c0_i32_0 = arith.constant 0 : i32
    %c0_i32_1 = arith.constant 0 : i32
    return %c0_i32, %c0_i32_0 : i32, i32
  }
  func.func @transform_5(%arg0: i32) -> (i32, i32) {
    %c0_i32 = arith.constant 0 : i32
    %c0_i32_0 = arith.constant 0 : i32
    %c0_i32_1 = arith.constant 0 : i32
    return %c0_i32, %c0_i32_0 : i32, i32
  }
  func.func @transform_6(%arg0: i32) -> (i32, i32) {
    %c0_i32 = arith.constant 0 : i32
    %c0_i32_0 = arith.constant 0 : i32
    %c0_i32_1 = arith.constant 0 : i32
    return %c0_i32, %c0_i32_0 : i32, i32
  }
  func.func @transform_7(%arg0: i32) -> (i32, i32) {
    %c0_i32 = arith.constant 0 : i32
    %c0_i32_0 = arith.constant 0 : i32
    %c0_i32_1 = arith.constant 0 : i32
    return %c0_i32, %c0_i32_0 : i32, i32
  }
  func.func @transform_8(%arg0: i32) -> (i32, i32, i32) {
    %c0_i32 = arith.constant 0 : i32
    %c0_i32_0 = arith.constant 0 : i32
    %c0_i32_1 = arith.constant 0 : i32
    return %arg0, %c0_i32, %c0_i32_0 : i32, i32, i32
  }
}

module attributes {stable_mosaic.version = 11 : i64} {
  func.func @_tail_kernel(%arg0: i32, %arg1: memref<2x64x128xbf16, #tpu.memory_space<vmem>>, %arg2: memref<16x64xf32, #tpu.memory_space<vmem>>, %arg3: memref<1x16xf32, #tpu.memory_space<vmem>>, %arg4: memref<10x16xf32, #tpu.memory_space<vmem>>, %arg5: memref<1x10xf32, #tpu.memory_space<vmem>>, %arg6: memref<2x10xf32, #tpu.memory_space<vmem>>) attributes {dimension_semantics = [#tpu.dimension_semantics<arbitrary>], iteration_bounds = array<i64: 1>, scalar_prefetch = 0 : i64, scratch_operands = 0 : i64, tpu.core_type = #tpu.core_type<tc>, window_params = [{pipeline_mode = #tpu.pipeline_mode<synchronous>, transform_indices = @transform_0, window_bounds = array<i64: 2, 64, 128>}, {pipeline_mode = #tpu.pipeline_mode<synchronous>, transform_indices = @transform_1, window_bounds = array<i64: 16, 64>}, {pipeline_mode = #tpu.pipeline_mode<synchronous>, transform_indices = @transform_2, window_bounds = array<i64: 1, 16>}, {pipeline_mode = #tpu.pipeline_mode<synchronous>, transform_indices = @transform_3, window_bounds = array<i64: 10, 16>}, {pipeline_mode = #tpu.pipeline_mode<synchronous>, transform_indices = @transform_4, window_bounds = array<i64: 1, 10>}, {pipeline_mode = #tpu.pipeline_mode<synchronous>, transform_indices = @transform_5, window_bounds = array<i64: 2, 10>}]} {
    %c0 = arith.constant 0 : index
    %c0_0 = arith.constant 0 : index
    %c0_1 = arith.constant 0 : index
    %0 = vector.load %arg1[%c0, %c0_0, %c0_1] : memref<2x64x128xbf16, #tpu.memory_space<vmem>>, vector<2x64x128xbf16>
    %1 = arith.extf %0 : vector<2x64x128xbf16> to vector<2x64x128xf32>
    %cst = arith.constant dense<0.000000e+00> : vector<2x64xf32>
    %2 = vector.multi_reduction <add>, %1, %cst [2] : vector<2x64x128xf32> to vector<2x64xf32>
    %cst_2 = arith.constant 1.562500e-02 : f32
    %3 = vector.broadcast %cst_2 : f32 to vector<2x64xf32>
    %4 = arith.mulf %2, %3 : vector<2x64xf32>
    %c0_3 = arith.constant 0 : index
    %c0_4 = arith.constant 0 : index
    %5 = vector.load %arg2[%c0_3, %c0_4] : memref<16x64xf32, #tpu.memory_space<vmem>>, vector<16x64xf32>
    %cst_5 = arith.constant dense<0.000000e+00> : vector<2x16xf32>
    %6 = tpu.matmul %4, %5, %cst_5 {dimension_numbers = #tpu.dot_dimension_numbers<[1], [1], [0], [0], [0, 0, 1, 0], [], []>} : vector<2x64xf32>, vector<16x64xf32>, vector<2x16xf32> -> vector<2x16xf32>
    %c0_6 = arith.constant 0 : index
    %c0_7 = arith.constant 0 : index
    %7 = vector.load %arg3[%c0_6, %c0_7] : memref<1x16xf32, #tpu.memory_space<vmem>>, vector<1x16xf32>
    %8 = vector.broadcast %7 : vector<1x16xf32> to vector<2x16xf32>
    %9 = arith.addf %6, %8 : vector<2x16xf32>
    %c0_8 = arith.constant 0 : index
    %c0_9 = arith.constant 0 : index
    %10 = vector.load %arg4[%c0_8, %c0_9] : memref<10x16xf32, #tpu.memory_space<vmem>>, vector<10x16xf32>
    %cst_10 = arith.constant dense<0.000000e+00> : vector<2x10xf32>
    %11 = tpu.matmul %9, %10, %cst_10 {dimension_numbers = #tpu.dot_dimension_numbers<[1], [1], [0], [0], [0, 0, 1, 0], [], []>} : vector<2x16xf32>, vector<10x16xf32>, vector<2x10xf32> -> vector<2x10xf32>
    %12 = arith.mulf %9, %9 : vector<2x16xf32>
    %cst_11 = arith.constant dense<0.000000e+00> : vector<2xf32>
    %13 = vector.multi_reduction <add>, %12, %cst_11 [1] : vector<2x16xf32> to vector<2xf32>
    %14 = vector.shape_cast %13 : vector<2xf32> to vector<2x1xf32>
    %c0_12 = arith.constant 0 : index
    %c0_13 = arith.constant 0 : index
    %15 = vector.load %arg5[%c0_12, %c0_13] : memref<1x10xf32, #tpu.memory_space<vmem>>, vector<1x10xf32>
    %16 = vector.broadcast %14 : vector<2x1xf32> to vector<2x10xf32>
    %17 = vector.broadcast %15 : vector<1x10xf32> to vector<2x10xf32>
    %18 = arith.addf %16, %17 : vector<2x10xf32>
    %cst_14 = arith.constant 2.000000e+00 : f32
    %19 = vector.broadcast %cst_14 : f32 to vector<2x10xf32>
    %20 = arith.mulf %19, %11 : vector<2x10xf32>
    %21 = arith.subf %18, %20 : vector<2x10xf32>
    %cst_15 = arith.constant 0.000000e+00 : f32
    %22 = vector.broadcast %cst_15 : f32 to vector<2x10xf32>
    %23 = arith.maximumf %21, %22 : vector<2x10xf32>
    %24 = math.sqrt %23 : vector<2x10xf32>
    %cst_16 = arith.constant 0.000000e+00 : f32
    %25 = vector.broadcast %cst_16 : f32 to vector<2x10xf32>
    %26 = arith.subf %25, %24 : vector<2x10xf32>
    %c0_17 = arith.constant 0 : index
    %c0_18 = arith.constant 0 : index
    %27 = vector.load %arg6[%c0_17, %c0_18] : memref<2x10xf32, #tpu.memory_space<vmem>>, vector<2x10xf32>
    tpu.vector_store %arg6[%c0_17, %c0_18], %26 {strides = array<i32>} : memref<2x10xf32, #tpu.memory_space<vmem>>, vector<2x10xf32>,
    return
  }
  func.func @transform_0(%arg0: i32) -> (i32, i32, i32) {
    %c0_i32 = arith.constant 0 : i32
    %c0_i32_0 = arith.constant 0 : i32
    %c0_i32_1 = arith.constant 0 : i32
    %c0_i32_2 = arith.constant 0 : i32
    return %c0_i32, %c0_i32_0, %c0_i32_1 : i32, i32, i32
  }
  func.func @transform_1(%arg0: i32) -> (i32, i32) {
    %c0_i32 = arith.constant 0 : i32
    %c0_i32_0 = arith.constant 0 : i32
    %c0_i32_1 = arith.constant 0 : i32
    return %c0_i32, %c0_i32_0 : i32, i32
  }
  func.func @transform_2(%arg0: i32) -> (i32, i32) {
    %c0_i32 = arith.constant 0 : i32
    %c0_i32_0 = arith.constant 0 : i32
    %c0_i32_1 = arith.constant 0 : i32
    return %c0_i32, %c0_i32_0 : i32, i32
  }
  func.func @transform_3(%arg0: i32) -> (i32, i32) {
    %c0_i32 = arith.constant 0 : i32
    %c0_i32_0 = arith.constant 0 : i32
    %c0_i32_1 = arith.constant 0 : i32
    return %c0_i32, %c0_i32_0 : i32, i32
  }
  func.func @transform_4(%arg0: i32) -> (i32, i32) {
    %c0_i32 = arith.constant 0 : i32
    %c0_i32_0 = arith.constant 0 : i32
    %c0_i32_1 = arith.constant 0 : i32
    return %c0_i32, %c0_i32_0 : i32, i32
  }
  func.func @transform_5(%arg0: i32) -> (i32, i32) {
    %c0_i32 = arith.constant 0 : i32
    %c0_i32_0 = arith.constant 0 : i32
    %c0_i32_1 = arith.constant 0 : i32
    return %c0_i32, %c0_i32_0 : i32, i32
  }
}

</mosaic_0001>

<bundles_post_ra>
// kernel: mapping_layer_forward.4
= control target key start
LH: loop header
LB: loop body
LE: loop exit
PB: predicated region body
PF: predicated region fallthrough
CT: control target
= control target key end

     0   :  { %s3376_s24 = smov 0   ;;  %s4997_s0 = inlined_call_operand.vmem [shape: bf16[2,8,1280], index: 0, kind: input, shape index: {}]   ;;  %s4998_s1 = inlined_call_operand.vmem [shape: bf16[16,72], index: 1, kind: input, shape index: {}]   ;;  %s4999_s2 = inlined_call_operand.vmem [shape: f32[16,1], index: 2, kind: input, shape index: {}, may-alias: {2,4,6}]   ;;  %s5000_s3 = inlined_call_operand.vmem [shape: bf16[16,144], index: 3, kind: input, shape index: {}]   ;;  %s5001_s4 = inlined_call_operand.vmem [shape: f32[16,1], index: 4, kind: input, shape index: {}, may-alias: {2,4,6}]   ;;  %s5002_s5 = inlined_call_operand.vmem [shape: bf16[16,144], index: 5, kind: input, shape index: {}]   ;;  %s5003_s6 = inlined_call_operand.vmem [shape: f32[16,1], index: 6, kind: input, shape index: {}, may-alias: {2,4,6}]   ;;  %s5004_s7 = inlined_call_operand.vmem [shape: bf16[2,16,1280], index: 7, kind: output, shape index: {}]  }
   0x1 LB: > { %s2968_s25 = sadd.s32 4294967295, %s3321_s24   ;;  %p2972_p0 = scmp.ge.s32.totalorder %s3321_s24, 1  ;;  %s3321_s24 = sphi %s3376_s24, %s17_s24  }
   0x2   : > { %p237_p1 = scmp.lt.s32.totalorder %s3321_s24, 3 }
   0x4   : > { %p238_p2 = pnand %p2972_p0, %p237_p1 }
   0x5   : > { %p269_p3 = scmp.lt.s32.totalorder (!%p238_p2), %s2968_s25, 1  ;;  %s3323_s30 = smov (!%p238_p2), 127   ;;  %v3331_v6 = vmov (!%p238_p2), 0   ;;  %vm5015_vm0 = vcmask (!%p238_p2), 1039360   ;;  %vm567_vm1 = vcmask (!%p238_p2), 1043456   ;;  %vm5011_vm2 = vcmask (!%p238_p2), 1031168  }
   0x6   : > { %241 = sbr.rel (%p238_p2) target bundleno = 1751 (0x6d7), region = 48  ;;  %s3324_s8 = smov (!%p238_p2), 126   ;;  %790 = vmatprep.mubr.bf16.mxu0 (!%p238_p2), %v3331_v6  ;;  %833 = vmatprep.mubr.bf16.mxu1 (!%p238_p2), %v3331_v6  ;;  %vm5010_vm3 = vcmask (!%p238_p2), 769024   ;;  %vm5009_vm4 = vcmask (!%p238_p2), 760832   ;;  %vm5008_vm5 = vcmask (!%p238_p2), 752640   ;;  %v282_v49 = vld [vmem:[%s4999_s2] sm:$0xff] (!%p238_p2) }
   0x7   : > { %s3325_s9 = smov (!%p238_p2), 94   ;;  %s3326_s10 = smov (!%p238_p2), 93   ;;  %3116 = vset.pattern.permute.xlu0 (!%p238_p2), %v3331_v6  ;;  %3115 = vset.pattern.permute.xlu1 (!%p238_p2), %v3331_v6  ;;  %vm5007_vm6 = vcmask (!%p238_p2), 490496   ;;  %vm5006_vm7 = vcmask (!%p238_p2), 482304   ;;  %v283_v52 = vld [vmem:[%s4999_s2 + $0x8] sm:$0xff] (!%p238_p2)  ;;  %vm5005_vm8 = vcmask (!%p238_p2), 474112  }
   0x8   : > { %s3327_s11 = smov (!%p238_p2), 92   ;;  %s3328_s12 = smov (!%p238_p2), 60   ;;  %vm727_vm9 = vcmask (!%p238_p2), 588800   ;;  %vm3333_vm10 = vmmov (!%p238_p2), 0  }
   0x9   : > { %s3329_s13 = smov (!%p238_p2), 59   ;;  %s3330_s14 = smov (!%p238_p2), 58  }
   0xa   : > { %s3334_s21 = smov (!%p238_p2), 35  }
   0xd   : > { %s5245_s25 = smov (!%p269_p3, %s2968_s25), 1 }
   0xe   : > { %s3074_s26 = smul.u32 40, %s5245_s25 }
  0x10   : > { %s3390_s29 = scalar_lea.vmem %s4997_s0, %s3074_s26 }
  0x11   : > { %v284_v0 = vld [vmem:[%s3390_s29] sm:$0xff]  ;;  %v285_v1 = vld [vmem:[%s3390_s29 + $0x8] sm:$0xff]  ;;  %v286_v5 = vld [vmem:[%s3390_s29 + $0x10] sm:$0xff] }
  0x12   : > { %v3394_v2 = vcombine.high %v284_v0, %v284_v0  ;;  %v3396_v3 = vcombine.low %v284_v0, %v284_v0  ;;  %v3402_v4 = vcombine.low %v285_v1, %v285_v1  ;;  %v3453_v7 = vcombine.high %v285_v1, %v285_v1  ;;  %v287_v9 = vld [vmem:[%s3390_s29 + $0x18] sm:$0xff]  ;;  %v3529_v13 = vld [vmem:[%s3390_s29 + $0x20] ss:$0 sps:$4 sm:$0xff]  }
  0x13   : > { %v3455_v8 = vcombine.low %v286_v5, %v286_v5  ;;  %v3462_v10 = vcombine.high %v286_v5, %v286_v5  ;;  %v3464_v11 = vcombine.low %v287_v9, %v287_v9  ;;  %v3526_v12 = vcombine.high %v287_v9, %v287_v9  ;;  %v293_v24 = vld [vmem:[%s3390_s29 + $0x20] sm:$0xff] }
  0x14   : > { %319 = vrot.lane.b32.xlu0 %v3394_v2, %s3323_s30  ;;  %317 = vrot.lane.b32.xlu1 %v3396_v3, %s3323_s30  ;;  %v2992_v30 = vcombine.low %v293_v24, %v293_v24  ;;  %v2993_v38 = vcombine.high %v293_v24, %v293_v24  ;;  %v3625_v5 = vld [vmem:[%s4998_s1] sm:$0xff]  }
  0x18   : > { %321 = vrot.lane.b32.xlu0 %v3402_v4, %s3323_s30  ;;  %346 = vrot.lane.b32.xlu1 %v3394_v2, %s3324_s8 }
  0x1c   : > { %348 = vrot.lane.b32.xlu0 %v3402_v4, %s3324_s8  ;;  %373 = vrot.lane.b32.xlu1 %v3394_v2, %s3325_s9 }
  0x20   : > { %375 = vrot.lane.b32.xlu0 %v3402_v4, %s3325_s9  ;;  %344 = vrot.lane.b32.xlu1 %v3396_v3, %s3324_s8 }
  0x24   : > { %371 = vrot.lane.b32.xlu0 %v3396_v3, %s3325_s9  ;;  %400 = vrot.lane.b32.xlu1 %v3394_v2, %s3326_s10 }
  0x28   : > { %402 = vrot.lane.b32.xlu0 %v3402_v4, %s3326_s10  ;;  %427 = vrot.lane.b32.xlu1 %v3394_v2, %s3327_s11 }
  0x2c   : > { %429 = vrot.lane.b32.xlu0 %v3402_v4, %s3327_s11  ;;  %398 = vrot.lane.b32.xlu1 %v3396_v3, %s3326_s10 }
  0x30   : > { %425 = vrot.lane.b32.xlu0 %v3396_v3, %s3327_s11  ;;  %479 = vrot.lane.b32.xlu1 %v3394_v2, %s3328_s12 }
  0x34   : > { %481 = vrot.lane.b32.xlu0 %v3402_v4, %s3328_s12  ;;  %509 = vrot.lane.b32.xlu1 %v3394_v2, %s3329_s13 }
  0x38   : > { %511 = vrot.lane.b32.xlu0 %v3402_v4, %s3329_s13  ;;  %477 = vrot.lane.b32.xlu1 %v3396_v3, %s3328_s12 }
  0x3c   : > { %507 = vrot.lane.b32.xlu0 %v3396_v3, %s3329_s13  ;;  %537 = vrot.lane.b32.xlu1 %v3396_v3, %s3330_s14 }
  0x40   : > { %539 = vrot.lane.b32.xlu0 %v3394_v2, %s3330_s14  ;;  %541 = vrot.lane.b32.xlu1 %v3402_v4, %s3330_s14 }
  0x44   : > { %323 = vrot.lane.b32.xlu0 %v3453_v7, %s3323_s30  ;;  %325 = vrot.lane.b32.xlu1 %v3455_v8, %s3323_s30 }
  0x48   : > { %327 = vrot.lane.b32.xlu0 %v3462_v10, %s3323_s30  ;;  %329 = vrot.lane.b32.xlu1 %v3464_v11, %s3323_s30 }
  0x4c   : > { %350 = vrot.lane.b32.xlu0 %v3453_v7, %s3324_s8  ;;  %352 = vrot.lane.b32.xlu1 %v3455_v8, %s3324_s8 }
  0x50   : > { %377 = vrot.lane.b32.xlu0 %v3453_v7, %s3325_s9  ;;  %379 = vrot.lane.b32.xlu1 %v3455_v8, %s3325_s9 }
  0x54   : > { %354 = vrot.lane.b32.xlu0 %v3462_v10, %s3324_s8  ;;  %356 = vrot.lane.b32.xlu1 %v3464_v11, %s3324_s8 }
  0x58   : > { %381 = vrot.lane.b32.xlu0 %v3462_v10, %s3325_s9  ;;  %383 = vrot.lane.b32.xlu1 %v3464_v11, %s3325_s9 }
  0x5c   : > { %404 = vrot.lane.b32.xlu0 %v3453_v7, %s3326_s10  ;;  %406 = vrot.lane.b32.xlu1 %v3455_v8, %s3326_s10 }
  0x60   : > { %431 = vrot.lane.b32.xlu0 %v3453_v7, %s3327_s11  ;;  %433 = vrot.lane.b32.xlu1 %v3455_v8, %s3327_s11 }
  0x64   : > { %408 = vrot.lane.b32.xlu0 %v3462_v10, %s3326_s10  ;;  %410 = vrot.lane.b32.xlu1 %v3464_v11, %s3326_s10 }
  0x68   : > { %435 = vrot.lane.b32.xlu0 %v3462_v10, %s3327_s11  ;;  %437 = vrot.lane.b32.xlu1 %v3464_v11, %s3327_s11 }
  0x6c   : > { %483 = vrot.lane.b32.xlu0 %v3453_v7, %s3328_s12  ;;  %485 = vrot.lane.b32.xlu1 %v3455_v8, %s3328_s12 }
  0x70   : > { %513 = vrot.lane.b32.xlu0 %v3453_v7, %s3329_s13  ;;  %515 = vrot.lane.b32.xlu1 %v3455_v8, %s3329_s13 }
  0x74   : > { %487 = vrot.lane.b32.xlu0 %v3462_v10, %s3328_s12  ;;  %489 = vrot.lane.b32.xlu1 %v3464_v11, %s3328_s12 }
  0x78   : > { %517 = vrot.lane.b32.xlu0 %v3462_v10, %s3329_s13  ;;  %519 = vrot.lane.b32.xlu1 %v3464_v11, %s3329_s13 }
  0x7c   : > { %543 = vrot.lane.b32.xlu0 %v3453_v7, %s3330_s14  ;;  %545 = vrot.lane.b32.xlu1 %v3455_v8, %s3330_s14 }
  0x80   : > { %547 = vrot.lane.b32.xlu0 %v3462_v10, %s3330_s14  ;;  %549 = vrot.lane.b32.xlu1 %v3464_v11, %s3330_s14 }
  0x84   : > { %331 = vrot.lane.b32.xlu0 %v3526_v12, %s3323_s30  ;;  %333 = vrot.lane.b32.xlu1 %v3529_v13, %s3323_s30 }
  0x86   : > { %v320_v14 = vpop.permute.xlu0 %319  ;;  %v318_v15 = vpop.permute.xlu1 %317 }
  0x87   : > { %v336_v16 = vsel %vm5015_vm0, %v318_v15, %v320_v14 }
  0x88   : > { %358 = vrot.lane.b32.xlu0 %v3526_v12, %s3324_s8  ;;  %360 = vrot.lane.b32.xlu1 %v3529_v13, %s3324_s8  ;;  %v570_v21 = vsel %vm567_vm1, %v3396_v3, %v336_v16 }
  0x8a   : > { %v3540_v17 = vpop.permute.xlu0 %321  ;;  %v347_v18 = vpop.permute.xlu1 %346 }
  0x8b   : > { %v337_v19 = vsel %vm5015_vm0, %v320_v14, %v3540_v17 }
  0x8c   : > { %385 = vrot.lane.b32.xlu0 %v3526_v12, %s3325_s9  ;;  %387 = vrot.lane.b32.xlu1 %v3529_v13, %s3325_s9  ;;  %v574_v20 = vsel %vm567_vm1, %v3394_v2, %v337_v19 }
  0x8d   : > { %758 = vmatprep.subr.bf16.mxu0 %v574_v20 }
  0x8e   : > { %v3552_v22 = vpop.permute.xlu0 %348  ;;  %759 = vmatpush1.bf16.msra.mxu0 %v570_v21  ;;  %v374_v23 = vpop.permute.xlu1 %373 }
  0x8f   : > { %v364_v27 = vsel %vm5011_vm2, %v347_v18, %v3552_v22 }
  0x90   : > { %412 = vrot.lane.b32.xlu0 %v3526_v12, %s3326_s10  ;;  %414 = vrot.lane.b32.xlu1 %v3529_v13, %s3326_s10 }
  0x92   : > { %v3559_v25 = vpop.permute.xlu0 %375  ;;  %v345_v26 = vpop.permute.xlu1 %344 }
  0x93   : > { %v391_v28 = vsel %vm5010_vm3, %v374_v23, %v3559_v25  ;;  %v363_v33 = vsel %vm5011_vm2, %v345_v26, %v347_v18 }
  0x94   : > { %439 = vrot.lane.b32.xlu0 %v3526_v12, %s3327_s11  ;;  %441 = vrot.lane.b32.xlu1 %v3529_v13, %s3327_s11  ;;  %v610_v29 = vsel %vm567_vm1, %v364_v27, %v391_v28 }
  0x95   : > { %760 = vmatprep.subr.bf16.mxu0 %v610_v29 }
  0x96   : > { %v372_v31 = vpop.permute.xlu0 %371  ;;  %v401_v32 = vpop.permute.xlu1 %400 }
  0x97   : > { %v390_v34 = vsel %vm5010_vm3, %v372_v31, %v374_v23 }
  0x98   : > { %491 = vrot.lane.b32.xlu0 %v3526_v12, %s3328_s12  ;;  %493 = vrot.lane.b32.xlu1 %v2992_v30, %s3328_s12  ;;  %v606_v35 = vsel %vm567_vm1, %v363_v33, %v390_v34 }
  0x99   : > { %761 = vmatpush1.bf16.msra.mxu0 %v606_v35 }
  0x9a   : > { %v3576_v36 = vpop.permute.xlu0 %402  ;;  %v428_v37 = vpop.permute.xlu1 %427 }
  0x9b   : > { %v418_v41 = vsel %vm5009_vm4, %v401_v32, %v3576_v36 }
  0x9c   : > { %521 = vrot.lane.b32.xlu0 %v3526_v12, %s3329_s13  ;;  %523 = vrot.lane.b32.xlu1 %v2992_v30, %s3329_s13 }
  0x9e   : > { %v3581_v39 = vpop.permute.xlu0 %429  ;;  %v399_v40 = vpop.permute.xlu1 %398 }
  0x9f   : > { %v445_v42 = vsel %vm5008_vm5, %v428_v37, %v3581_v39  ;;  %v417_v46 = vsel %vm5009_vm4, %v399_v40, %v401_v32 }
  0xa0   : > { %495 = vrot.lane.b32.xlu0 %v2993_v38, %s3328_s12  ;;  %525 = vrot.lane.b32.xlu1 %v2993_v38, %s3329_s13  ;;  %v646_v43 = vsel %vm567_vm1, %v418_v41, %v445_v42 }
  0xa1   : > { %762 = vmatprep.subr.bf16.mxu0 %v646_v43 }
  0xa2   : > { %v426_v44 = vpop.permute.xlu0 %425  ;;  %v480_v45 = vpop.permute.xlu1 %479 }
  0xa3   : > { %v444_v47 = vsel %vm5008_vm5, %v426_v44, %v428_v37 }
  0xa4   : > { %551 = vrot.lane.b32.xlu0 %v3526_v12, %s3330_s14  ;;  %553 = vrot.lane.b32.xlu1 %v2992_v30, %s3330_s14  ;;  %v642_v48 = vsel %vm567_vm1, %v417_v46, %v444_v47 }
  0xa5   : > { %763 = vmatpush1.bf16.msra.mxu0 %v642_v48 }
  0xa6   : > { %v3599_v50 = vpop.permute.xlu0 %481  ;;  %v510_v51 = vpop.permute.xlu1 %509 }
  0xa7   : > { %v499_v55 = vsel %vm5007_vm6, %v480_v45, %v3599_v50 }
  0xa8   : > { %555 = vrot.lane.b32.xlu0 %v2993_v38, %s3330_s14  ;;  %714 = vperm.xlu1 %3115, %v282_v49  }
  0xaa   : > { %v3605_v53 = vpop.permute.xlu0 %511  ;;  %v478_v54 = vpop.permute.xlu1 %477 }
  0xab   : > { %v529_v56 = vsel %vm5006_vm7, %v510_v51, %v3605_v53  ;;  %v498_v60 = vsel %vm5007_vm6, %v478_v54, %v480_v45 }
  0xac   : > { %v682_v57 = vsel %vm567_vm1, %v499_v55, %v529_v56  ;;  %719 = vperm.xlu0 %3116, %v283_v52  }
  0xad   : > { %764 = vmatprep.subr.bf16.mxu0 %v682_v57 }
  0xae   : > { %v508_v58 = vpop.permute.xlu0 %507  ;;  %v538_v59 = vpop.permute.xlu1 %537 }
  0xaf   : > { %v528_v61 = vsel %vm5006_vm7, %v508_v58, %v510_v51 }
  0xb0   : > { %v678_v62 = vsel %vm567_vm1, %v498_v60, %v528_v61 }
  0xb1   : > { %765 = vmatpush1.bf16.msra.mxu0 %v678_v62 }
  0xb2   : > { %v540_v63 = vpop.permute.xlu0 %539  ;;  %v3615_v0 = vpop.permute.xlu1 %541 }
  0xb3   : > { %v559_v1 = vsel %vm5005_vm8, %v540_v63, %v3615_v0  ;;  %v558_v2 = vsel %vm5005_vm8, %v538_v59, %v540_v63 }
  0xb4   : > { %2995 = vmatprep.subr.msk.bf16.mxu0 %vm567_vm1, %v559_v1  ;;  %v732_v3 = vsel %vm567_vm1, %v558_v2, 0 }
  0xb5   : > { %767 = vmatpush1.bf16.msra.mxu0 %v732_v3 }
  0xb6   : > { %v324_v9 = vpop.permute.xlu0 %323  ;;  %v326_v14 = vpop.permute.xlu1 %325 }
  0xb7   : > { %v339_v15 = vsel %vm5015_vm0, %v324_v9, %v326_v14  ;;  %v338_v16 = vsel %vm5015_vm0, %v3540_v17, %v324_v9 }
  0xb8   : > { %v582_v18 = vsel %vm567_vm1, %v3453_v7, %v339_v15  ;;  %v578_v19 = vsel %vm567_vm1, %v3402_v4, %v338_v16  ;;  %2996 = vmatmul.mubr.msk.bf16.vlgmr.msra.gmra.mrb[0].mxu0 %vm727_vm9, %v3625_v5 }
  0xb9   : > { %801 = vmatprep.subr.bf16.mxu1 %v582_v18  ;;  %876 = vmatprep.mubr.bf16.mxu0 %v3331_v6 }
  0xba   : > { %v328_v20 = vpop.permute.xlu0 %327  ;;  %802 = vmatpush1.bf16.msra.mxu1 %v578_v19  ;;  %v3637_v21 = vpop.permute.xlu1 %329 }
  0xbb   : > { %v340_v23 = vsel %vm5015_vm0, %v326_v14, %v328_v20  ;;  %v341_v17 = vsel %vm5015_vm0, %v328_v20, %v3637_v21 }
  0xbc   : > { %v590_v7 = vsel %vm567_vm1, %v3462_v10, %v341_v17  ;;  %v586_v4 = vsel %vm567_vm1, %v3455_v8, %v340_v23 }
  0xbd   : > { %844 = vmatprep.subr.bf16.mxu0 %v590_v7 }
  0xbe   : > { %v351_v24 = vpop.permute.xlu0 %350  ;;  %845 = vmatpush1.bf16.msra.mxu0 %v586_v4  ;;  %v353_v26 = vpop.permute.xlu1 %352 }
  0xbf   : > { %v365_v29 = vsel %vm5011_vm2, %v3552_v22, %v351_v24  ;;  %v366_v30 = vsel %vm5011_vm2, %v351_v24, %v353_v26 }
  0xc2   : > { %v378_v27 = vpop.permute.xlu0 %377  ;;  %v380_v28 = vpop.permute.xlu1 %379 }
  0xc3   : > { %v392_v31 = vsel %vm5010_vm3, %v3559_v25, %v378_v27  ;;  %v393_v32 = vsel %vm5010_vm3, %v378_v27, %v380_v28 }
  0xc4   : > { %v618_v10 = vsel %vm567_vm1, %v366_v30, %v393_v32  ;;  %v614_v8 = vsel %vm567_vm1, %v365_v29, %v392_v31 }
  0xc5   : > { %803 = vmatprep.subr.bf16.mxu1 %v618_v10 }
  0xc6   : > { %v355_v33 = vpop.permute.xlu0 %354  ;;  %804 = vmatpush1.bf16.msra.mxu1 %v614_v8  ;;  %v3654_v34 = vpop.permute.xlu1 %356 }
  0xc7   : > { %v367_v22 = vsel %vm5011_vm2, %v353_v26, %v355_v33  ;;  %v368_v38 = vsel %vm5011_vm2, %v355_v33, %v3654_v34 }
  0xca   : > { %v382_v35 = vpop.permute.xlu0 %381  ;;  %v3656_v37 = vpop.permute.xlu1 %383 }
  0xcb   : > { %v394_v25 = vsel %vm5010_vm3, %v380_v28, %v382_v35  ;;  %v395_v40 = vsel %vm5010_vm3, %v382_v35, %v3656_v37 }
  0xcc   : > { %v626_v41 = vsel %vm567_vm1, %v368_v38, %v395_v40  ;;  %v622_v42 = vsel %vm567_vm1, %v367_v22, %v394_v25  ;;  %v3332_v25 = vmov 0.0  }
  0xcd   : > { %846 = vmatprep.subr.bf16.mxu0 %v626_v41 }
  0xce   : > { %v405_v43 = vpop.permute.xlu0 %404  ;;  %847 = vmatpush1.bf16.msra.mxu0 %v622_v42  ;;  %v407_v44 = vpop.permute.xlu1 %406 }
  0xcf   : > { %v419_v47 = vsel %vm5009_vm4, %v3576_v36, %v405_v43  ;;  %v420_v48 = vsel %vm5009_vm4, %v405_v43, %v407_v44 }
  0xd2   : > { %v432_v45 = vpop.permute.xlu0 %431  ;;  %v434_v46 = vpop.permute.xlu1 %433 }
  0xd3   : > { %v446_v49 = vsel %vm5008_vm5, %v3581_v39, %v432_v45  ;;  %v447_v51 = vsel %vm5008_vm5, %v432_v45, %v434_v46 }
  0xd4   : > { %v654_v52 = vsel %vm567_vm1, %v420_v48, %v447_v51  ;;  %v650_v54 = vsel %vm567_vm1, %v419_v47, %v446_v49 }
  0xd5   : > { %805 = vmatprep.subr.bf16.mxu1 %v654_v52 }
  0xd6   : > { %v409_v55 = vpop.permute.xlu0 %408  ;;  %806 = vmatpush1.bf16.msra.mxu1 %v650_v54  ;;  %v3674_v56 = vpop.permute.xlu1 %410 }
  0xd7   : > { %v421_v36 = vsel %vm5009_vm4, %v407_v44, %v409_v55  ;;  %v422_v59 = vsel %vm5009_vm4, %v409_v55, %v3674_v56 }
  0xda   : > { %v436_v57 = vpop.permute.xlu0 %435  ;;  %v3676_v58 = vpop.permute.xlu1 %437 }
  0xdb   : > { %v448_v39 = vsel %vm5008_vm5, %v434_v46, %v436_v57  ;;  %v449_v60 = vsel %vm5008_vm5, %v436_v57, %v3676_v58 }
  0xdc   : > { %v662_v61 = vsel %vm567_vm1, %v422_v59, %v449_v60  ;;  %v658_v62 = vsel %vm567_vm1, %v421_v36, %v448_v39 }
  0xdd   : > { %848 = vmatprep.subr.bf16.mxu0 %v662_v61 }
  0xde   : > { %v484_v63 = vpop.permute.xlu0 %483  ;;  %849 = vmatpush1.bf16.msra.mxu0 %v658_v62  ;;  %v486_v1 = vpop.permute.xlu1 %485 }
  0xdf   : > { %v500_v9 = vsel %vm5007_vm6, %v3599_v50, %v484_v63  ;;  %v501_v14 = vsel %vm5007_vm6, %v484_v63, %v486_v1 }
  0xe2   : > { %v514_v2 = vpop.permute.xlu0 %513  ;;  %v516_v3 = vpop.permute.xlu1 %515 }
  0xe3   : > { %v530_v15 = vsel %vm5006_vm7, %v3605_v53, %v514_v2  ;;  %v531_v16 = vsel %vm5006_vm7, %v514_v2, %v516_v3 }
  0xe4   : > { %v690_v18 = vsel %vm567_vm1, %v501_v14, %v531_v16  ;;  %v686_v19 = vsel %vm567_vm1, %v500_v9, %v530_v15 }
  0xe5   : > { %807 = vmatprep.subr.bf16.mxu1 %v690_v18 }
  0xe6   : > { %v488_v20 = vpop.permute.xlu0 %487  ;;  %808 = vmatpush1.bf16.msra.mxu1 %v686_v19  ;;  %v3694_v23 = vpop.permute.xlu1 %489 }
  0xe7   : > { %v502_v50 = vsel %vm5007_vm6, %v486_v1, %v488_v20  ;;  %v503_v4 = vsel %vm5007_vm6, %v488_v20, %v3694_v23 }
  0xea   : > { %v518_v17 = vpop.permute.xlu0 %517  ;;  %v3696_v7 = vpop.permute.xlu1 %519 }
  0xeb   : > { %v532_v53 = vsel %vm5006_vm7, %v516_v3, %v518_v17  ;;  %v533_v24 = vsel %vm5006_vm7, %v518_v17, %v3696_v7 }
  0xec   : > { %v698_v26 = vsel %vm567_vm1, %v503_v4, %v533_v24  ;;  %v694_v27 = vsel %vm567_vm1, %v502_v50, %v532_v53 }
  0xed   : > { %850 = vmatprep.subr.bf16.mxu0 %v698_v26 }
  0xee   : > { %v544_v28 = vpop.permute.xlu0 %543  ;;  %851 = vmatpush1.bf16.msra.mxu0 %v694_v27  ;;  %v546_v29 = vpop.permute.xlu1 %545 }
  0xef   : > { %v561_v30 = vsel %vm5005_vm8, %v544_v28, %v546_v29  ;;  %v560_v31 = vsel %vm5005_vm8, %v3615_v0, %v544_v28 }
  0xf0   : > { %2997 = vmatprep.subr.msk.bf16.mxu1 %vm567_vm1, %v561_v30  ;;  %v738_v32 = vsel %vm567_vm1, %v560_v31, 0 }
  0xf1   : > { %810 = vmatpush1.bf16.msra.mxu1 %v738_v32 }
  0xf2   : > { %v548_v10 = vpop.permute.xlu0 %547  ;;  %v3711_v8 = vpop.permute.xlu1 %549 }
  0xf3   : > { %v562_v33 = vsel %vm5005_vm8, %v546_v29, %v548_v10  ;;  %v563_v35 = vsel %vm5005_vm8, %v548_v10, %v3711_v8  ;;  %v989_v29 = vlaneseq }
  0xf4   : > { %2998 = vmatmul.mubr.msk.bf16.vlgmr.msra.gmra.mrb[0].mxu1 %vm727_vm9, %v3625_v5  ;;  %2999 = vmatprep.subr.msk.bf16.mxu0 %vm567_vm1, %v563_v35  ;;  %v744_v0 = vsel %vm567_vm1, %v562_v33, 0 }
  0xf5   : > { %853 = vmatpush1.bf16.msra.mxu0 %v744_v0  ;;  %919 = vmatprep.mubr.bf16.mxu1 %v3331_v6  ;;  %v3778_v30 = vand.u32 127, %v989_v29 }
  0xf6   : > { %v332_v22 = vpop.permute.xlu0 %331  ;;  %v334_v38 = vpop.permute.xlu1 %333  ;;  %3060 = vmatprep.subr.bf16.mxu0 %v3332_v25 }
  0xf7   : > { %v342_v40 = vsel %vm5015_vm0, %v3637_v21, %v332_v22  ;;  %v343_v41 = vsel %vm5015_vm0, %v332_v22, %v334_v38  ;;  %v602_v42 = vsel %vm567_vm1, %v3529_v13, %v334_v38  ;;  %v991_v31 = vadd.s32 128, %v3778_v30 }
  0xf8   : > { %3000 = vmatmul.mubr.msk.bf16.vlgmr.msra.gmra.mrb[4].mxu0 %vm727_vm9, %v3625_v5  ;;  %v598_v43 = vsel %vm567_vm1, %v3526_v12, %v343_v41  ;;  %v594_v44 = vsel %vm567_vm1, %v3464_v11, %v342_v40  ;;  %v3782_v32 = vmul.u32.u64.low 4042322161, %v3778_v30  ;;  %v3783_v10 = vmul.u32.u64.high 4042322161, %v3778_v30, %v3782_v32 }
  0xf9   : > { %887 = vmatprep.subr.bf16.mxu1 %v598_v43  ;;  %3061 = vmatpush3.bf16.msra.mxu0 %v602_v42 }
  0xfa   : > { %v359_v45 = vpop.permute.xlu0 %358  ;;  %888 = vmatpush1.bf16.msra.mxu1 %v594_v44  ;;  %v361_v46 = vpop.permute.xlu1 %360  ;;  %3062 = vmatprep.subr.bf16.mxu0 %v3332_v25  ;;  %v1005_v35 = vshrl.u32 %v3783_v10, 5 }
  0xfb   : > { %3070 = vmatprep.mubr.msk.bf16.mxu0 %vm3333_vm10, %v3332_v25  ;;  %v370_v13 = vsel %vm5011_vm2, %v359_v45, %v361_v46  ;;  %v369_v12 = vsel %vm5011_vm2, %v3654_v34, %v359_v45 }
  0xfc   : > { %v1006_v22 = vmul.u32 34, %v1005_v35 }
  0xfe   : > { %v386_v21 = vpop.permute.xlu0 %385  ;;  %v388_v47 = vpop.permute.xlu1 %387 }
  0xff   : > { %v396_v11 = vsel %vm5010_vm3, %v3656_v37, %v386_v21  ;;  %v397_v48 = vsel %vm5010_vm3, %v386_v21, %v388_v47  ;;  %v638_v49 = vsel %vm567_vm1, %v361_v46, %v388_v47 }
 0x100   : > { %v634_v51 = vsel %vm567_vm1, %v370_v13, %v397_v48  ;;  %v630_v52 = vsel %vm567_vm1, %v369_v12, %v396_v11  ;;  %3063 = vmatpush3.bf16.msra.mxu0 %v638_v49 }
 0x101   : > { %889 = vmatprep.subr.bf16.mxu1 %v634_v51  ;;  %3064 = vmatprep.subr.bf16.mxu0 %v3332_v25 }
 0x102   : > { %v413_v54 = vpop.permute.xlu0 %412  ;;  %890 = vmatpush1.bf16.msra.mxu1 %v630_v52  ;;  %v415_v55 = vpop.permute.xlu1 %414 }
 0x103   : > { %v424_v34 = vsel %vm5009_vm4, %v413_v54, %v415_v55  ;;  %v423_v37 = vsel %vm5009_vm4, %v3674_v56, %v413_v54 }
 0x106   : > { %v440_v57 = vpop.permute.xlu0 %439  ;;  %v442_v36 = vpop.permute.xlu1 %441 }
 0x107   : > { %v450_v59 = vsel %vm5008_vm5, %v3676_v58, %v440_v57  ;;  %v451_v39 = vsel %vm5008_vm5, %v440_v57, %v442_v36  ;;  %v674_v60 = vsel %vm567_vm1, %v415_v55, %v442_v36  ;;  %v993_v57 = vadd.s32 384, %v3778_v30 }
 0x108   : > { %v670_v61 = vsel %vm567_vm1, %v424_v34, %v451_v39  ;;  %v666_v62 = vsel %vm567_vm1, %v423_v37, %v450_v59  ;;  %3065 = vmatpush3.bf16.msra.mxu0 %v674_v60  ;;  %v992_v34 = vadd.s32 256, %v3778_v30  ;;  %v994_v59 = vadd.s32 512, %v3778_v30 }
 0x109   : > { %891 = vmatprep.subr.bf16.mxu1 %v670_v61  ;;  %3066 = vmatprep.subr.bf16.mxu0 %v3332_v25  ;;  %v3814_v39 = vmul.u32.u64.low 4042322161, %v993_v57  ;;  %v3815_v60 = vmul.u32.u64.high 4042322161, %v993_v57, %v3814_v39 }
 0x10a   : > { %v492_v63 = vpop.permute.xlu0 %491  ;;  %892 = vmatpush1.bf16.msra.mxu1 %v666_v62  ;;  %v494_v1 = vpop.permute.xlu1 %493  ;;  %v3810_v36 = vmul.u32.u64.low 4042322161, %v992_v34  ;;  %v3811_v37 = vmul.u32.u64.high 4042322161, %v992_v34, %v3810_v36  ;;  %v3817_v61 = vmul.u32.u64.low 4042322161, %v994_v59  ;;  %v3818_v62 = vmul.u32.u64.high 4042322161, %v994_v59, %v3817_v61 }
 0x10b   : > { %v505_v56 = vsel %vm5007_vm6, %v492_v63, %v494_v1  ;;  %v504_v58 = vsel %vm5007_vm6, %v3694_v23, %v492_v63  ;;  %v996_v39 = vadd.s32 768, %v3778_v30 }
 0x10c   : > { %v1027_v63 = vshrl.u32 %v3811_v37, 5 }
 0x10e   : > { %v522_v2 = vpop.permute.xlu0 %521  ;;  %v524_v3 = vpop.permute.xlu1 %523 }
 0x10f   : > { %v534_v9 = vsel %vm5006_vm7, %v3696_v7, %v522_v2  ;;  %v535_v14 = vsel %vm5006_vm7, %v522_v2, %v524_v3  ;;  %v1049_v2 = vshrl.u32 %v3818_v62, 5 }
 0x110   : > { %v706_v15 = vsel %vm567_vm1, %v505_v56, %v535_v14  ;;  %v702_v16 = vsel %vm567_vm1, %v504_v58, %v534_v9  ;;  %v1028_v56 = vmul.u32 34, %v1027_v63 }
 0x111   : > { %893 = vmatprep.subr.bf16.mxu1 %v706_v15  ;;  %v1050_v9 = vmul.u32 34, %v1049_v2  ;;  %v997_v2 = vadd.s32 896, %v3778_v30 }
 0x112   : > { %v496_v18 = vpop.permute.xlu0 %495  ;;  %894 = vmatpush1.bf16.msra.mxu1 %v702_v16  ;;  %v526_v19 = vpop.permute.xlu1 %525  ;;  %v1029_v58 = vsub.s32 %v992_v34, %v1028_v56  ;;  %v995_v34 = vadd.s32 640, %v3778_v30 }
 0x113   : > { %v506_v20 = vsel %vm5007_vm6, %v494_v1, %v496_v18  ;;  %v536_v17 = vsel %vm5006_vm7, %v524_v3, %v526_v19  ;;  %v1038_v1 = vshrl.u32 %v3815_v60, 5  ;;  %v1051_v16 = vsub.s32 %v994_v59, %v1050_v9 }
 0x114   : > { %v710_v50 = vsel %vm567_vm1, %v506_v20, %v536_v17  ;;  %v1127_v18 = vadd.s32 34, %v1029_v58  ;;  %v998_v9 = vadd.s32 1024, %v3778_v30 }
 0x115   : > { %3067 = vmatpush3.bf16.msra.mxu0 %v710_v50  ;;  %v1039_v3 = vmul.u32 34, %v1038_v1  ;;  %v3883_v63 = vmul.u32.u64.low 4042322161, %v995_v34  ;;  %v3884_v1 = vmul.u32.u64.high 4042322161, %v995_v34, %v3883_v63 }
 0x116   : > { %v552_v23 = vpop.permute.xlu0 %551  ;;  %v554_v4 = vpop.permute.xlu1 %553  ;;  %3068 = vmatprep.subr.bf16.mxu0 %v3332_v25 }
 0x117   : > { %v564_v7 = vsel %vm5005_vm8, %v3711_v8, %v552_v23  ;;  %v565_v53 = vsel %vm5005_vm8, %v552_v23, %v554_v4  ;;  %v3785_v8 = vmul.u32.u64.low 4042322161, %v991_v31  ;;  %v3786_v33 = vmul.u32.u64.high 4042322161, %v991_v31, %v3785_v8 }
 0x118   : > { %3001 = vmatprep.subr.msk.bf16.mxu1 %vm567_vm1, %v565_v53  ;;  %v750_v24 = vsel %vm567_vm1, %v564_v7, 0  ;;  %v1040_v14 = vsub.s32 %v993_v57, %v1039_v3  ;;  %v1129_v7 = vadd.s32 34, %v1051_v16 }
 0x119   : > { %896 = vmatpush1.bf16.msra.mxu1 %v750_v24  ;;  %v1016_v0 = vshrl.u32 %v3786_v33, 5 }
 0x11a   : > { %v556_v26 = vpop.permute.xlu0 %555 }
 0x11b   : > { %v566_v27 = vsel %vm5005_vm8, %v554_v4, %v556_v26  ;;  %v1017_v38 = vmul.u32 34, %v1016_v0  ;;  %vm1111_vm8 = vcmp.lt.s32.totalorder %v1051_v16, 0  ;;  %v1128_v4 = vadd.s32 34, %v1040_v14 }
 0x11c   : > { %v756_v28 = vsel %vm567_vm1, %v566_v27, 0  ;;  %3002 = vmatmul.mubr.msk.bf16.vlgmr.msra.gmra.mrb[4].mxu1 %vm727_vm9, %v3625_v5 }
 0x11d   : > { %3069 = vmatpush3.bf16.msra.mxu0 %v756_v28  ;;  %v1018_v25 = vsub.s32 %v991_v31, %v1017_v38 }
 0x11f   : > { %vm1099_vm13 = vcmp.ne.s32.totalorder %v1018_v25, 0  ;;  %vm1108_vm14 = vcmp.lt.s32.totalorder %v1018_v25, 0  ;;  %v1126_v41 = vadd.s32 34, %v1018_v25 }
 0x120   : > { %3071 = vmatmul.mubr.msk.bf16.vlgmr.msra.gmra.mrb[8].mxu0 %vm727_vm9, %v3625_v5  ;;  %v1007_v5 = vsub.s32 %v3778_v30, %v1006_v22  ;;  %vm1117_vm1 = vmand %vm1108_vm14, %vm1099_vm13  ;;  %vm1101_vm14 = vcmp.ne.s32.totalorder %v1040_v14, 0 }
 0x121   : > { %v1135_v45 = vsel %vm1117_vm1, %v1126_v41, %v1018_v25  ;;  %vm1102_vm1 = vcmp.ne.s32.totalorder %v1051_v16, 0 }
 0x122   : > { %vm1098_vm11 = vcmp.ne.s32.totalorder %v1007_v5, 0  ;;  %vm1107_vm12 = vcmp.lt.s32.totalorder %v1007_v5, 0  ;;  %v1125_v40 = vadd.s32 34, %v1007_v5  ;;  %vm3799_vm10 = vcmp.lt.s32.totalorder %v1135_v45, 32 }
 0x123   : > { %vm1116_vm15 = vmand %vm1107_vm12, %vm1098_vm11  ;;  %vm1100_vm11 = vcmp.ne.s32.totalorder %v1029_v58, 0  ;;  %vm1109_vm12 = vcmp.lt.s32.totalorder %v1029_v58, 0 }
 0x124   : > { %v1134_v43 = vsel %vm1116_vm15, %v1125_v40, %v1007_v5  ;;  %vm3825_vm13 = vmand %vm1109_vm12, %vm1100_vm11  ;;  %vm1110_vm15 = vcmp.lt.s32.totalorder %v1040_v14, 0 }
 0x125   : > { %vm3795_vm9 = vcmp.lt.s32.totalorder %v1134_v43, 32  ;;  %v1136_v50 = vsel %vm3825_vm13, %v1127_v18, %v1029_v58  ;;  %vm3833_vm7 = vmand %vm1110_vm15, %vm1101_vm14  ;;  %v3888_v3 = vmul.u32.u64.low 4042322161, %v996_v39  ;;  %v3889_v58 = vmul.u32.u64.high 4042322161, %v996_v39, %v3888_v3 }
 0x126   : > { %vm3837_vm11 = vmand %vm1111_vm8, %vm1102_vm1  ;;  %vm3842_vm12 = vcmp.lt.s32.totalorder %v1136_v50, 32  ;;  %v1137_v33 = vsel %vm3833_vm7, %v1128_v4, %v1040_v14  ;;  %v3896_v18 = vmul.u32.u64.low 4042322161, %v998_v9  ;;  %v3897_v19 = vmul.u32.u64.high 4042322161, %v998_v9, %v3896_v18 }
 0x127   : > { %v3791_v42 = vpop.permute.xlu1 %714  ;;  %v1138_v22 = vsel %vm3837_vm11, %v1129_v7, %v1051_v16  ;;  %vm3860_vm7 = vcmp.lt.s32.totalorder %v1137_v33, 32  ;;  %v3893_v14 = vmul.u32.u64.low 4042322161, %v997_v2  ;;  %v3894_v16 = vmul.u32.u64.high 4042322161, %v997_v2, %v3893_v14 }
 0x128   : > { %vm3864_vm8 = vcmp.lt.s32.totalorder %v1138_v22, 32  ;;  %v1093_v7 = vshrl.u32 %v3897_v19, 5 }
 0x129   : > { %v1082_v23 = vshrl.u32 %v3894_v16, 5 }
 0x12b   : > { %v3823_v15 = vpop.permute.xlu0 %719  ;;  %v1083_v30 = vmul.u32 34, %v1082_v23 }
 0x18b   : > { %v792_v44 = vpop.f32.mrb[0].mxu0 }
 0x18c   : > { %v794_v46 = vpop.f32.mrb[1].mxu0  ;;  %v793_v13 = vadd.f32 %v792_v44, %v3791_v42 }
 0x18d   : > { %v796_v21 = vpop.f32.mrb[2].mxu0  ;;  %v795_v47 = vadd.f32 %v794_v46, %v3791_v42 }
 0x18e   : > { %v798_v11 = vpop.f32.mrb[3].mxu0  ;;  %v971_v49 = vmax.f32 %v793_v13, 0.0  ;;  %v797_v20 = vadd.f32 %v796_v21, %v3823_v15 }
 0x18f   : > { %v972_v51 = vmax.f32 %v795_v47, 0.0  ;;  %v799_v17 = vadd.f32 %v798_v11, %v3823_v15 }
 0x190   : > { %v1170_v52 = vsel %vm3795_vm9, %v971_v49, 0.0  ;;  %v980_v26 = vmax.f32 %v797_v20, 0.0  ;;  %v1060_v20 = vshrl.u32 %v3884_v1, 5 }
 0x191   : > { %v1171_v54 = vsel %vm3799_vm10, %v972_v51, 0.0  ;;  %v981_v29 = vmax.f32 %v799_v17, 0.0  ;;  %v1071_v17 = vshrl.u32 %v3889_v58, 5 }
 0x192   : > { %v3117_v55 = vpack.i.bf16 %v1171_v54, %v1170_v52  ;;  %v1179_v25 = vsel %vm3795_vm9, %v980_v26, 0.0  ;;  %v1061_v50 = vmul.u32 34, %v1060_v20  ;;  %v1094_v26 = vmul.u32 34, %v1093_v7 }
 0x193   : > { %v1180_v46 = vsel %vm3799_vm10, %v981_v29, 0.0  ;;  %v1072_v4 = vmul.u32 34, %v1071_v17 }
 0x194   : > { %3118 = vrot.lane.b32.xlu1 %v3117_v55, %s3334_s21 }
 0x195   : > { %v1073_v24 = vsub.s32 %v996_v39, %v1072_v4 }
 0x197   : > { %vm1104_vm15 = vcmp.ne.s32.totalorder %v1073_v24, 0  ;;  %vm1113_vm1 = vcmp.lt.s32.totalorder %v1073_v24, 0 }
 0x198   : > { %vm3908_vm6 = vmand %vm1113_vm1, %vm1104_vm15 }
 0x1c7   : > { %v835_v53 = vpop.f32.mrb[0].mxu1 }
 0x1c8   : > { %v836_v27 = vadd.f32 %v835_v53, %v3791_v42  ;;  %v837_v28 = vpop.f32.mrb[1].mxu1  ;;  %v1062_v53 = vsub.s32 %v995_v34, %v1061_v50 }
 0x1c9   : > { %v838_v32 = vadd.f32 %v837_v28, %v3791_v42  ;;  %v839_v10 = vpop.f32.mrb[2].mxu1  ;;  %v1095_v28 = vsub.s32 %v998_v9, %v1094_v26 }
 0x1ca   : > { %v973_v8 = vmax.f32 %v836_v27, 0.0  ;;  %v840_v35 = vadd.f32 %v839_v10, %v3823_v15  ;;  %v841_v0 = vpop.f32.mrb[3].mxu1  ;;  %vm1103_vm13 = vcmp.ne.s32.totalorder %v1062_v53, 0  ;;  %vm1112_vm14 = vcmp.lt.s32.totalorder %v1062_v53, 0 }
 0x1cb   : > { %v842_v38 = vadd.f32 %v841_v0, %v3823_v15  ;;  %v878_v5 = vpop.f32.mrb[4].mxu0  ;;  %v974_v41 = vmax.f32 %v838_v32, 0.0  ;;  %v1084_v27 = vsub.s32 %v997_v2, %v1083_v30  ;;  %v1130_v29 = vadd.s32 34, %v1062_v53  ;;  %vm3903_vm11 = vmand %vm1112_vm14, %vm1103_vm13 }
 0x1cc   : > { %v1172_v40 = vsel %vm3842_vm12, %v973_v8, 0.0  ;;  %v982_v43 = vmax.f32 %v840_v35, 0.0  ;;  %v879_v44 = vadd.f32 %v878_v5, %v3791_v42  ;;  %v880_v45 = vpop.f32.mrb[5].mxu0  ;;  %v1131_v10 = vadd.s32 34, %v1073_v24 }
 0x1cd   : > { %v882_v47 = vpop.f32.mrb[6].mxu0  ;;  %v3122_v11 = vpack.i.bf16 %v1179_v25, %v1172_v40  ;;  %v983_v51 = vmax.f32 %v842_v38, 0.0  ;;  %v1173_v36 = vsel %vm3860_vm7, %v974_v41, 0.0  ;;  %v881_v8 = vadd.f32 %v880_v45, %v3791_v42 }
 0x1ce   : > { %v1181_v49 = vsel %vm3842_vm12, %v982_v43, 0.0  ;;  %v975_v52 = vmax.f32 %v879_v44, 0.0  ;;  %v883_v54 = vadd.f32 %v882_v47, %v3823_v15  ;;  %v884_v55 = vpop.f32.mrb[7].mxu0  ;;  %vm1105_vm5 = vcmp.ne.s32.totalorder %v1084_v27, 0 }
 0x1cf   : > { %3123 = vrot.lane.b32.xlu1 %v3122_v11, %s3334_s21  ;;  %v3127_v57 = vpack.i.bf16 %v1181_v49, %v1180_v46  ;;  %v1182_v61 = vsel %vm3860_vm7, %v983_v51, 0.0  ;;  %vm1114_vm4 = vcmp.lt.s32.totalorder %v1084_v27, 0  ;;  %vm1106_vm3 = vcmp.ne.s32.totalorder %v1095_v28, 0 }
 0x1d0   : > { %v1174_v37 = vsel %vm3864_vm8, %v975_v52, 0.0  ;;  %v984_v59 = vmax.f32 %v883_v54, 0.0  ;;  %vm1115_vm2 = vcmp.lt.s32.totalorder %v1095_v28, 0  ;;  %v1139_v35 = vsel %vm3903_vm11, %v1130_v29, %v1062_v53  ;;  %vm3917_vm13 = vmand %vm1114_vm4, %vm1105_vm5 }
 0x1d1   : > { %3128 = vrot.lane.b32.xlu0 %v3127_v57, %s3334_s21  ;;  %v3132_v60 = vpack.i.bf16 %v1174_v37, %v1173_v36  ;;  %v885_v0 = vadd.f32 %v884_v55, %v3823_v15  ;;  %v1140_v22 = vsel %vm3908_vm6, %v1131_v10, %v1073_v24  ;;  %v1132_v5 = vadd.s32 34, %v1084_v27  ;;  %vm3921_vm14 = vmand %vm1115_vm2, %vm1106_vm3 }
 0x1d2   : > { %v1183_v62 = vsel %vm3864_vm8, %v984_v59, 0.0  ;;  %v1133_v25 = vadd.s32 34, %v1095_v28  ;;  %v976_v40 = vmax.f32 %v881_v8, 0.0  ;;  %vm3925_vm15 = vcmp.lt.s32.totalorder %v1139_v35, 32 }
 0x1d3   : > { %3133 = vrot.lane.b32.xlu1 %v3132_v60, %s3334_s21  ;;  %v3142_v56 = vpack.i.bf16 %v1183_v62, %v1182_v61  ;;  %v985_v47 = vmax.f32 %v885_v0, 0.0  ;;  %vm3930_vm4 = vcmp.lt.s32.totalorder %v1140_v22, 32  ;;  %v1141_v54 = vsel %vm3917_vm13, %v1132_v5, %v1084_v27 }
 0x1d4   : > { %v1142_v57 = vsel %vm3921_vm14, %v1133_v25, %v1095_v28  ;;  %v1175_v36 = vsel %vm3925_vm15, %v976_v40, 0.0  ;;  %vm3948_vm2 = vcmp.lt.s32.totalorder %v1141_v54, 32  ;;  %vm5013_vm5 = vcmask 285696  }
 0x1d5   : > { %3143 = vrot.lane.b32.xlu0 %v3142_v56, %s3334_s21  ;;  %v1184_v1 = vsel %vm3925_vm15, %v985_v47, 0.0  ;;  %vm3952_vm3 = vcmp.lt.s32.totalorder %v1142_v57, 32  ;;  %vm3982_vm6 = vmneg %vm5013_vm5  ;;  %vm5016_vm11 = vcmask 130048   ;;  %vm5014_vm13 = vcmask 793600  }
 0x1d6   : > { %vm5012_vm1 = vmpackc.low %vm3982_vm6, %vm3982_vm6  ;;  %vm5051_vm14 = vcmask 1031168  }
 0x1ef   : > { %v921_v41 = vpop.f32.mrb[4].mxu1 }
 0x1f0   : > { %v922_v45 = vadd.f32 %v921_v41, %v3791_v42  ;;  %v923_v46 = vpop.f32.mrb[5].mxu1 }
 0x1f1   : > { %v924_v49 = vadd.f32 %v923_v46, %v3791_v42  ;;  %v925_v51 = vpop.f32.mrb[6].mxu1 }
 0x1f2   : > { %v977_v52 = vmax.f32 %v922_v45, 0.0  ;;  %v926_v55 = vadd.f32 %v925_v51, %v3823_v15  ;;  %v927_v34 = vpop.f32.mrb[7].mxu1 }
 0x1f3   : > { %v928_v37 = vadd.f32 %v927_v34, %v3823_v15  ;;  %v964_v59 = vpop.f32.mrb[8].mxu0  ;;  %v978_v60 = vmax.f32 %v924_v49, 0.0 }
 0x1f4   : > { %v1176_v39 = vsel %vm3930_vm4, %v977_v52, 0.0  ;;  %v986_v61 = vmax.f32 %v926_v55, 0.0  ;;  %v965_v62 = vadd.f32 %v964_v59, %v3791_v42  ;;  %v3072_v63 = vpop.f32.mrb[9].mxu0 }
 0x1f5   : > { %v967_v3 = vpop.f32.mrb[10].mxu0  ;;  %v3137_v58 = vpack.i.bf16 %v1176_v39, %v1175_v36  ;;  %v987_v14 = vmax.f32 %v928_v37, 0.0  ;;  %v1177_v20 = vsel %vm3948_vm2, %v978_v60, 0.0 }
 0x1f6   : > { %v1185_v9 = vsel %vm3930_vm4, %v986_v61, 0.0  ;;  %v979_v16 = vmax.f32 %v965_v62, 0.0  ;;  %v968_v42 = vadd.f32 %v967_v3, %v3823_v15  ;;  %v3073_v18 = vpop.f32.mrb[11].mxu0 }
 0x1f7   : > { %3138 = vrot.lane.b32.xlu1 %v3137_v58, %s3334_s21  ;;  %v3147_v19 = vpack.i.bf16 %v1185_v9, %v1184_v1  ;;  %v1186_v4 = vsel %vm3948_vm2, %v987_v14, 0.0  ;;  %v4067_v9 = vld [vmem:[%s5000_s3 + $0x4] ss:$8 sps:$4 sm:$0xff]  }
 0x1f8   : > { %v1178_v17 = vsel %vm3952_vm3, %v979_v16, 0.0  ;;  %v988_v50 = vmax.f32 %v968_v42, 0.0  ;;  %3006 = vmatprep.mubr.msk.bf16.mxu1 %vm5016_vm11, %v4067_v9  ;;  %3007 = vmatprep.mubr.msk.bf16.mxu0 %vm5016_vm11, %v4067_v9 }
 0x1f9   : > { %3148 = vrot.lane.b32.xlu0 %v3147_v19, %s3334_s21  ;;  %v3152_v23 = vpack.i.bf16 %v1178_v17, %v1177_v20 }
 0x1fa   : > { %v1187_v15 = vsel %vm3952_vm3, %v988_v50, 0.0 }
 0x1fb   : > { %3153 = vrot.lane.b32.xlu1 %v3152_v23, %s3334_s21  ;;  %v3157_v7 = vpack.i.bf16 %v1187_v15, %v1186_v4 }
 0x1fd   : > { %3158 = vrot.lane.b32.xlu0 %v3157_v7, %s3334_s21 }
 0x206   : > { %v3119_v53 = vpop.permute.xlu1 %3118 }
 0x207   : > { %v3120_v30 = vunpack.i.l.bf16 %v3119_v53  ;;  %v3121_v26 = vunpack.i.h.bf16 %v3119_v53 }
 0x209   : > { %v3972_v32 = vsel %vm5013_vm5, 0.0, %v3120_v30  ;;  %v3987_v38 = vsel %vm5013_vm5, %v3120_v30, %v3121_v26 }
 0x241   : > { %v3124_v24 = vpop.permute.xlu1 %3123 }
 0x242   : > { %v3126_v27 = vunpack.i.h.bf16 %v3124_v24  ;;  %v3125_v28 = vunpack.i.l.bf16 %v3124_v24 }
 0x243   : > { %v3129_v29 = vpop.permute.xlu0 %3128 }
 0x244   : > { %v3975_v10 = vsel %vm5013_vm5, 0.0, %v3126_v27  ;;  %v3131_v8 = vunpack.i.h.bf16 %v3129_v29  ;;  %v3130_v35 = vunpack.i.l.bf16 %v3129_v29  ;;  %v3990_v5 = vsel %vm5013_vm5, %v3121_v26, %v3125_v28 }
 0x245   : > { %v1282_v33 = vpack.c.bf16 %v3975_v10, %v3972_v32  ;;  %v3979_v0 = vpop.permute.xlu1 %3133  ;;  %v3041_v47 = vpack.c.bf16 %v3126_v27, %v3120_v30 }
 0x246   : > { %v3993_v25 = vsel %vm5013_vm5, %v3126_v27, %v3130_v35  ;;  %v3996_v40 = vsel %vm5013_vm5, %v3130_v35, %v3131_v8  ;;  %v3135_v41 = vunpack.i.l.bf16 %v3979_v0  ;;  %v3136_v16 = vunpack.i.h.bf16 %v3979_v0 }
 0x247   : > { %v3999_v43 = vpop.permute.xlu0 %3143  ;;  %1369 = vrot.lane.b32.xlu0 %v1282_v33, %s3324_s8  ;;  %1334 = vrot.lane.b32.xlu1 %v1282_v33, %s3323_s30  ;;  %v1283_v45 = vpack.c.bf16 %v3993_v25, %v3987_v38  ;;  %v1284_v46 = vpack.c.bf16 %v3996_v40, %v3990_v5 }
 0x248   : > { %v3145_v49 = vunpack.i.l.bf16 %v3999_v43  ;;  %v4014_v51 = vsel %vm5013_vm5, %v3125_v28, %v3135_v41  ;;  %v3146_v14 = vunpack.i.h.bf16 %v3999_v43  ;;  %v4086_v18 = vsel %vm5013_vm5, %v3135_v41, %v3136_v16 }
 0x249   : > { %1656 = vmatprep.subr.bf16.mxu1 %v1283_v45 }
 0x24a   : > { %v4017_v52 = vsel %vm5013_vm5, %v3131_v8, %v3145_v49  ;;  %3042 = vmatpush1.bf16.msk.msra.mxu1 %vm5012_vm1, %v3041_v47  ;;  %v4080_v42 = vsel %vm5013_vm5, %v3145_v49, %v3146_v14  ;;  %vm5052_vm1 = vmmov %vm5051_vm14 }
 0x24b   : > { %1439 = vrot.lane.b32.xlu0 %v1282_v33, %s3326_s10  ;;  %v1285_v54 = vpack.c.bf16 %v4017_v52, %v4014_v51  ;;  %1404 = vrot.lane.b32.xlu1 %v1282_v33, %s3325_s9  ;;  %v4091_v19 = vpack.c.bf16 %v4080_v42, %v4086_v18 }
 0x24d   : > { %1699 = vmatprep.subr.bf16.mxu0 %v1285_v54 }
 0x24e   : > { %1700 = vmatpush1.bf16.msra.mxu0 %v1284_v46 }
 0x24f   : > { %1519 = vrot.lane.b32.xlu0 %v1282_v33, %s3328_s12  ;;  %1474 = vrot.lane.b32.xlu1 %v1282_v33, %s3327_s11 }
 0x253   : > { %1595 = vrot.lane.b32.xlu0 %v1282_v33, %s3330_s14  ;;  %1557 = vrot.lane.b32.xlu1 %v1282_v33, %s3329_s13 }
 0x257   : > { %1338 = vrot.lane.b32.xlu0 %v1284_v46, %s3323_s30  ;;  %1336 = vrot.lane.b32.xlu1 %v1283_v45, %s3323_s30 }
 0x25b   : > { %1340 = vrot.lane.b32.xlu0 %v1285_v54, %s3323_s30  ;;  %1373 = vrot.lane.b32.xlu1 %v1284_v46, %s3324_s8 }
 0x25f   : > { %1371 = vrot.lane.b32.xlu0 %v1283_v45, %s3324_s8  ;;  %1375 = vrot.lane.b32.xlu1 %v1285_v54, %s3324_s8 }
 0x263   : > { %1408 = vrot.lane.b32.xlu0 %v1284_v46, %s3325_s9  ;;  %1406 = vrot.lane.b32.xlu1 %v1283_v45, %s3325_s9 }
 0x267   : > { %1410 = vrot.lane.b32.xlu0 %v1285_v54, %s3325_s9  ;;  %1443 = vrot.lane.b32.xlu1 %v1284_v46, %s3326_s10 }
 0x269   : > { %v3139_v36 = vpop.permute.xlu1 %3138 }
 0x26a   : > { %v3141_v50 = vunpack.i.h.bf16 %v3139_v36  ;;  %v3140_v23 = vunpack.i.l.bf16 %v3139_v36 }
 0x26b   : > { %v3149_v37 = vpop.permute.xlu0 %3148  ;;  %1441 = vrot.lane.b32.xlu0 %v1283_v45, %s3326_s10  ;;  %1445 = vrot.lane.b32.xlu1 %v1285_v54, %s3326_s10 }
 0x26c   : > { %v3151_v20 = vunpack.i.h.bf16 %v3149_v37  ;;  %v3150_v17 = vunpack.i.l.bf16 %v3149_v37  ;;  %v4114_v7 = vsel %vm5013_vm5, %v3140_v23, %v3141_v50  ;;  %v4119_v53 = vsel %vm5013_vm5, %v3136_v16, %v3140_v23 }
 0x26d   : > { %v3154_v59 = vpop.permute.xlu1 %3153 }
 0x26e   : > { %v3156_v39 = vunpack.i.h.bf16 %v3154_v59  ;;  %v3155_v60 = vunpack.i.l.bf16 %v3154_v59  ;;  %v4106_v4 = vsel %vm5013_vm5, %v3150_v17, %v3151_v20  ;;  %v4109_v15 = vsel %vm5013_vm5, %v3146_v14, %v3150_v17 }
 0x26f   : > { %v3159_v61 = vpop.permute.xlu0 %3158  ;;  %1478 = vrot.lane.b32.xlu0 %v1284_v46, %s3327_s11  ;;  %1476 = vrot.lane.b32.xlu1 %v1283_v45, %s3327_s11  ;;  %v4123_v30 = vpack.c.bf16 %v4106_v4, %v4114_v7  ;;  %v4127_v24 = vpack.c.bf16 %v4109_v15, %v4119_v53  ;;  %v3335_v17 = vmov 0.0|0.0  }
 0x270   : > { %v3161_v62 = vunpack.i.h.bf16 %v3159_v61  ;;  %v3160_v63 = vunpack.i.l.bf16 %v3159_v61  ;;  %v4053_v1 = vsel %vm5013_vm5, %v3155_v60, %v3156_v39  ;;  %v4137_v27 = vsel %vm5013_vm5, %v3141_v50, %v3155_v60 }
 0x271   : > { %v4175_v8 = vsel %vm5014_vm13, %v4053_v1, 0.0 }
 0x272   : > { %v4056_v3 = vsel %vm5013_vm5, %v3160_v63, %v3161_v62  ;;  %v4130_v26 = vsel %vm5013_vm5, %v3151_v20, %v3160_v63  ;;  %vm5053_vm5 = vcmask 769024  }
 0x273   : > { %v3044_v58 = vpack.c.bf16 %v4056_v3, %v4053_v1  ;;  %1480 = vrot.lane.b32.xlu0 %v1285_v54, %s3327_s11  ;;  %1523 = vrot.lane.b32.xlu1 %v1284_v46, %s3328_s12  ;;  %v4141_v28 = vpack.c.bf16 %v4130_v26, %v4137_v27  ;;  %v4169_v29 = vsel %vm5014_vm13, %v4056_v3, 0.0 }
 0x274   : > { %v1290_v33 = vpack.c.bf16 %v4169_v29, %v4175_v8 }
 0x277   : > { %1521 = vrot.lane.b32.xlu0 %v1283_v45, %s3328_s12  ;;  %1525 = vrot.lane.b32.xlu1 %v1285_v54, %s3328_s12 }
 0x27b   : > { %1561 = vrot.lane.b32.xlu0 %v1284_v46, %s3329_s13  ;;  %1559 = vrot.lane.b32.xlu1 %v1283_v45, %s3329_s13 }
 0x27f   : > { %1563 = vrot.lane.b32.xlu0 %v1285_v54, %s3329_s13  ;;  %1599 = vrot.lane.b32.xlu1 %v1284_v46, %s3330_s14 }
 0x283   : > { %1597 = vrot.lane.b32.xlu0 %v1283_v45, %s3330_s14  ;;  %1601 = vrot.lane.b32.xlu1 %v1285_v54, %s3330_s14 }
 0x287   : > { %1377 = vrot.lane.b32.xlu0 %v4091_v19, %s3324_s8  ;;  %1342 = vrot.lane.b32.xlu1 %v4091_v19, %s3323_s30 }
 0x28b   : > { %1447 = vrot.lane.b32.xlu0 %v4091_v19, %s3326_s10  ;;  %1412 = vrot.lane.b32.xlu1 %v4091_v19, %s3325_s9 }
 0x28f   : > { %1527 = vrot.lane.b32.xlu0 %v4091_v19, %s3328_s12  ;;  %1482 = vrot.lane.b32.xlu1 %v4091_v19, %s3327_s11 }
 0x293   : > { %1603 = vrot.lane.b32.xlu0 %v4091_v19, %s3330_s14  ;;  %1565 = vrot.lane.b32.xlu1 %v4091_v19, %s3329_s13 }
 0x297   : > { %1346 = vrot.lane.b32.xlu0 %v4123_v30, %s3323_s30  ;;  %1344 = vrot.lane.b32.xlu1 %v4127_v24, %s3323_s30 }
 0x29b   : > { %1381 = vrot.lane.b32.xlu0 %v4123_v30, %s3324_s8  ;;  %1348 = vrot.lane.b32.xlu1 %v4141_v28, %s3323_s30 }
 0x29f   : > { %1416 = vrot.lane.b32.xlu0 %v4123_v30, %s3325_s9  ;;  %1379 = vrot.lane.b32.xlu1 %v4127_v24, %s3324_s8 }
 0x2a3   : > { %1451 = vrot.lane.b32.xlu0 %v4123_v30, %s3326_s10  ;;  %1383 = vrot.lane.b32.xlu1 %v4141_v28, %s3324_s8 }
 0x2a7   : > { %1486 = vrot.lane.b32.xlu0 %v4123_v30, %s3327_s11  ;;  %1414 = vrot.lane.b32.xlu1 %v4127_v24, %s3325_s9 }
 0x2ab   : > { %1531 = vrot.lane.b32.xlu0 %v4123_v30, %s3328_s12  ;;  %1418 = vrot.lane.b32.xlu1 %v4141_v28, %s3325_s9 }
 0x2af   : > { %1569 = vrot.lane.b32.xlu0 %v4123_v30, %s3329_s13  ;;  %1449 = vrot.lane.b32.xlu1 %v4127_v24, %s3326_s10 }
 0x2b3   : > { %1607 = vrot.lane.b32.xlu0 %v4123_v30, %s3330_s14  ;;  %1453 = vrot.lane.b32.xlu1 %v4141_v28, %s3326_s10 }
 0x2b7   : > { %1350 = vrot.lane.b32.xlu0 %v1290_v33, %s3323_s30  ;;  %1484 = vrot.lane.b32.xlu1 %v4127_v24, %s3327_s11 }
 0x2b9   : > { %v1370_v35 = vpop.permute.xlu0 %1369  ;;  %v1335_v0 = vpop.permute.xlu1 %1334 }
 0x2bb   : > { %1385 = vrot.lane.b32.xlu0 %v1290_v33, %s3324_s8  ;;  %1488 = vrot.lane.b32.xlu1 %v4141_v28, %s3327_s11 }
 0x2bd   : > { %v1440_v41 = vpop.permute.xlu0 %1439  ;;  %v1405_v43 = vpop.permute.xlu1 %1404 }
 0x2bf   : > { %1420 = vrot.lane.b32.xlu0 %v1290_v33, %s3325_s9  ;;  %1529 = vrot.lane.b32.xlu1 %v4127_v24, %s3328_s12 }
 0x2c1   : > { %v1520_v45 = vpop.permute.xlu0 %1519  ;;  %v1475_v46 = vpop.permute.xlu1 %1474 }
 0x2c3   : > { %1455 = vrot.lane.b32.xlu0 %v1290_v33, %s3326_s10  ;;  %1533 = vrot.lane.b32.xlu1 %v4141_v28, %s3328_s12 }
 0x2c5   : > { %v4193_v47 = vpop.permute.xlu0 %1595  ;;  %v4195_v49 = vpop.permute.xlu1 %1557 }
 0x2c7   : > { %1490 = vrot.lane.b32.xlu0 %v1290_v33, %s3327_s11  ;;  %1567 = vrot.lane.b32.xlu1 %v4127_v24, %s3329_s13 }
 0x2c9   : > { %v4200_v54 = vpop.permute.xlu0 %1338  ;;  %v1337_v36 = vpop.permute.xlu1 %1336 }
 0x2ca   : > { %v1353_v37 = vsel %vm5015_vm0, %v1337_v36, %v4200_v54  ;;  %v1352_v59 = vsel %vm5015_vm0, %v1335_v0, %v1337_v36 }
 0x2cb   : > { %1535 = vrot.lane.b32.xlu0 %v1290_v33, %s3328_s12  ;;  %1571 = vrot.lane.b32.xlu1 %v4141_v28, %s3329_s13 }
 0x2cc   : > { %1658 = vmatprep.subr.bf16.mxu1 %v1353_v37 }
 0x2cd   : > { %1659 = vmatpush1.bf16.msra.mxu1 %v1352_v59  ;;  %v4208_v39 = vpop.permute.xlu0 %1340  ;;  %v4210_v60 = vpop.permute.xlu1 %1373 }
 0x2cf   : > { %1573 = vrot.lane.b32.xlu0 %v1290_v33, %s3329_s13  ;;  %1605 = vrot.lane.b32.xlu1 %v4127_v24, %s3330_s14 }
 0x2d1   : > { %v1372_v61 = vpop.permute.xlu0 %1371  ;;  %v4215_v62 = vpop.permute.xlu1 %1375 }
 0x2d2   : > { %v1388_v63 = vsel %vm5051_vm14, %v1372_v61, %v4210_v60  ;;  %v1387_v14 = vsel %vm5052_vm1, %v1370_v35, %v1372_v61  ;;  %vm5054_vm14 = vmmov %vm5053_vm5 }
 0x2d3   : > { %1611 = vrot.lane.b32.xlu0 %v1290_v33, %s3330_s14  ;;  %1660 = vmatprep.subr.bf16.mxu1 %v1388_v63  ;;  %v1304_v33 = vld [vmem:[%s5001_s4] sm:$0xff] }
 0x2d4   : > { %1609 = vrot.lane.b32.xlu1 %v4141_v28, %s3330_s14  ;;  %1661 = vmatpush1.bf16.msra.mxu1 %v1387_v14 }
 0x2d5   : > { %v4223_v16 = vpop.permute.xlu0 %1408  ;;  %v1407_v20 = vpop.permute.xlu1 %1406 }
 0x2d6   : > { %v1423_v50 = vsel %vm5053_vm5, %v1407_v20, %v4223_v16  ;;  %v1422_v23 = vsel %vm5054_vm14, %v1405_v43, %v1407_v20  ;;  %v1305_v43 = vld [vmem:[%s5001_s4 + $0x8] sm:$0xff]  ;;  %vm5055_vm5 = vcmask 760832   ;;  %vm5057_vm14 = vcmask 752640  }
 0x2d7   : > { %1575 = vrot.lane.b32.xlu0 %v3335_v17, %s3329_s13  ;;  %1662 = vmatprep.subr.bf16.mxu1 %v1423_v50  ;;  %vm5056_vm1 = vmmov %vm5055_vm5 }
 0x2d8   : > { %1537 = vrot.lane.b32.xlu1 %v3335_v17, %s3328_s12  ;;  %1663 = vmatpush1.bf16.msra.mxu1 %v1422_v23  ;;  %vm5058_vm13 = vmmov %vm5057_vm14 }
 0x2d9   : > { %v1411_v35 = vpop.permute.xlu0 %1410  ;;  %v4235_v0 = vpop.permute.xlu1 %1443 }
 0x2db   : > { %1635 = vperm.xlu0 %3116, %v1304_v33  }
 0x2dc   : > { %1613 = vrot.lane.b32.xlu1 %v3335_v17, %s3330_s14 }
 0x2dd   : > { %v1442_v36 = vpop.permute.xlu0 %1441  ;;  %v1446_v37 = vpop.permute.xlu1 %1445 }
 0x2de   : > { %v1458_v59 = vsel %vm5055_vm5, %v1442_v36, %v4235_v0  ;;  %v1457_v61 = vsel %vm5056_vm1, %v1440_v41, %v1442_v36  ;;  %vm5059_vm5 = vcmask 490496  }
 0x2df   : > { %1664 = vmatprep.subr.bf16.mxu1 %v1458_v59  ;;  %vm5060_vm1 = vmmov %vm5059_vm5 }
 0x2e0   : > { %1640 = vperm.xlu1 %3115, %v1305_v43   ;;  %1665 = vmatpush1.bf16.msra.mxu1 %v1457_v61 }
 0x2e1   : > { %v4245_v63 = vpop.permute.xlu0 %1478  ;;  %v1477_v14 = vpop.permute.xlu1 %1476 }
 0x2e2   : > { %v1493_v20 = vsel %vm5057_vm14, %v1477_v14, %v4245_v63  ;;  %v1492_v50 = vsel %vm5058_vm13, %v1475_v46, %v1477_v14  ;;  %vm5061_vm13 = vcmask 482304  }
 0x2e3   : > { %1666 = vmatprep.subr.bf16.mxu1 %v1493_v20  ;;  %vm5062_vm14 = vmmov %vm5061_vm13 }
 0x2e4   : > { %1667 = vmatpush1.bf16.msra.mxu1 %v1492_v50 }
 0x2e5   : > { %v1481_v23 = vpop.permute.xlu0 %1480  ;;  %v4250_v33 = vpop.permute.xlu1 %1523 }
 0x2e9   : > { %v1522_v34 = vpop.permute.xlu0 %1521  ;;  %v4252_v57 = vpop.permute.xlu1 %1525 }
 0x2ea   : > { %v1540_v41 = vsel %vm5059_vm5, %v1522_v34, %v4250_v33  ;;  %v1539_v36 = vsel %vm5060_vm1, %v1520_v45, %v1522_v34  ;;  %vm5063_vm5 = vcmask 474112  }
 0x2eb   : > { %1668 = vmatprep.subr.bf16.mxu1 %v1540_v41  ;;  %vm5064_vm1 = vmmov %vm5063_vm5  ;;  %v4274_v41 = vld [vmem:[%s5000_s3] ss:$8 sps:$4 sm:$0xff]  }
 0x2ec   : > { %1669 = vmatpush1.bf16.msra.mxu1 %v1539_v36 }
 0x2ed   : > { %v4257_v43 = vpop.permute.xlu0 %1561  ;;  %v1560_v59 = vpop.permute.xlu1 %1559 }
 0x2ee   : > { %v1578_v46 = vsel %vm5061_vm13, %v1560_v59, %v4257_v43  ;;  %v1577_v61 = vsel %vm5062_vm14, %v4195_v49, %v1560_v59  ;;  %vm5065_vm13 = vcmask 1031168  }
 0x2ef   : > { %1670 = vmatprep.subr.bf16.mxu1 %v1578_v46  ;;  %vm5066_vm14 = vmmov %vm5065_vm13 }
 0x2f0   : > { %1671 = vmatpush1.bf16.msra.mxu1 %v1577_v61 }
 0x2f1   : > { %v1564_v14 = vpop.permute.xlu0 %1563  ;;  %v4263_v20 = vpop.permute.xlu1 %1599 }
 0x2f5   : > { %v1598_v50 = vpop.permute.xlu0 %1597  ;;  %v4265_v55 = vpop.permute.xlu1 %1601 }
 0x2f6   : > { %v1616_v34 = vsel %vm5063_vm5, %v1598_v50, %v4263_v20  ;;  %v1615_v45 = vsel %vm5064_vm1, %v4193_v47, %v1598_v50  ;;  %v1354_v47 = vsel %vm5015_vm0, %v4200_v54, %v4208_v39  ;;  %v1389_v50 = vsel %vm5066_vm14, %v4210_v60, %v4215_v62 }
 0x2f7   : > { %1672 = vmatprep.subr.bf16.mxu1 %v1616_v34  ;;  %vm5067_vm5 = vcmask 769024  }
 0x2f8   : > { %1673 = vmatpush1.bf16.msra.mxu1 %v1615_v45  ;;  %vm5068_vm1 = vmmov %vm5067_vm5 }
 0x2f9   : > { %v1378_v49 = vpop.permute.xlu0 %1377  ;;  %1742 = vmatprep.subr.bf16.mxu1 %v4127_v24  ;;  %v1343_v36 = vpop.permute.xlu1 %1342 }
 0x2fa   : > { %v1355_v59 = vsel %vm5015_vm0, %v4208_v39, %v1343_v36  ;;  %v1390_v61 = vsel %vm5065_vm13, %v4215_v62, %v1378_v49  ;;  %v1424_v39 = vsel %vm5068_vm1, %v4223_v16, %v1411_v35  ;;  %vm5069_vm13 = vcmask 760832  }
 0x2fb   : > { %1689 = vmatmul.mubr.bf16.vlgmr.msra.gmra.mrb[8].mxu1 %v4274_v41  ;;  %1701 = vmatprep.subr.bf16.mxu0 %v1355_v59  ;;  %vm5070_vm14 = vmmov %vm5069_vm13 }
 0x2fc   : > { %1743 = vmatpush1.bf16.msra.mxu1 %v4091_v19  ;;  %1702 = vmatpush1.bf16.msra.mxu0 %v1354_v47  ;;  %v1459_v60 = vsel %vm5070_vm14, %v4235_v0, %v1446_v37 }
 0x2fd   : > { %v4284_v46 = vpop.permute.xlu0 %1447  ;;  %3008 = vmatprep.mubr.msk.bf16.mxu1 %vm5016_vm11, %v4067_v9  ;;  %1703 = vmatprep.subr.bf16.mxu0 %v1390_v61  ;;  %v1413_v24 = vpop.permute.xlu1 %1412 }
 0x2fe   : > { %v1425_v19 = vsel %vm5067_vm5, %v1411_v35, %v1413_v24  ;;  %v1460_v59 = vsel %vm5069_vm13, %v1446_v37, %v4284_v46  ;;  %vm5071_vm5 = vcmask 752640   ;;  %vm5073_vm13 = vcmask 490496  }
 0x2ff   : > { %vm5072_vm1 = vmmov %vm5071_vm5 }
 0x300   : > { %1704 = vmatpush1.bf16.msra.mxu0 %v1389_v50  ;;  %vm5074_vm14 = vmmov %vm5073_vm13 }
 0x301   : > { %v4293_v34 = vpop.permute.xlu0 %1527  ;;  %1705 = vmatprep.subr.bf16.mxu0 %v1425_v19  ;;  %v4296_v54 = vpop.permute.xlu1 %1482  ;;  %v1494_v19 = vsel %vm5072_vm1, %v4245_v63, %v1481_v23  ;;  %vm5076_vm1 = vcmask 1031168  }
 0x302   : > { %v1495_v61 = vsel %vm5071_vm5, %v1481_v23, %v4296_v54  ;;  %v1542_v0 = vsel %vm5073_vm13, %v4252_v57, %v4293_v34  ;;  %vm5075_vm5 = vcmask 482304  }
 0x303   : > { %vm5078_vm13 = vmmov %vm5075_vm5 }
 0x304   : > { %1706 = vmatpush1.bf16.msra.mxu0 %v1424_v39 }
 0x305   : > { %v4300_v45 = vpop.permute.xlu0 %1603  ;;  %1707 = vmatprep.subr.bf16.mxu0 %v1460_v59  ;;  %v4304_v47 = vpop.permute.xlu1 %1565  ;;  %v1541_v59 = vsel %vm5074_vm14, %v4250_v33, %v4252_v57  ;;  %vm5079_vm14 = vcmask 474112  }
 0x306   : > { %v1618_v57 = vsel %vm5079_vm14, %v4265_v55, %v4300_v45 }
 0x308   : > { %1708 = vmatpush1.bf16.msra.mxu0 %v1459_v60 }
 0x309   : > { %v1347_v62 = vpop.permute.xlu0 %1346  ;;  %1709 = vmatprep.subr.bf16.mxu0 %v1495_v61  ;;  %v1345_v50 = vpop.permute.xlu1 %1344 }
 0x30a   : > { %v1357_v16 = vsel %vm5015_vm0, %v1345_v50, %v1347_v62  ;;  %v1356_v35 = vsel %vm5015_vm0, %v1343_v36, %v1345_v50  ;;  %v1580_v36 = vsel %vm5075_vm5, %v1564_v14, %v4304_v47  ;;  %vm5077_vm0 = vmmov %vm5076_vm1  ;;  %v1579_v50 = vsel %vm5078_vm13, %v4257_v43, %v1564_v14 }
 0x30b   : > { %1744 = vmatprep.subr.bf16.mxu1 %v1357_v16  ;;  %vm5080_vm5 = vmmov %vm5079_vm14  ;;  %vm5083_vm13 = vcmask 760832  }
 0x30c   : > { %1710 = vmatpush1.bf16.msra.mxu0 %v1494_v19  ;;  %1745 = vmatpush1.bf16.msra.mxu1 %v1356_v35  ;;  %v1617_v35 = vsel %vm5080_vm5, %v4263_v20, %v4265_v55  ;;  %vm5084_vm14 = vmmov %vm5083_vm13  ;;  %vm5085_vm5 = vcmask 1039360  }
 0x30d   : > { %v1382_v39 = vpop.permute.xlu0 %1381  ;;  %1711 = vmatprep.subr.bf16.mxu0 %v1542_v0  ;;  %v1349_v37 = vpop.permute.xlu1 %1348 }
 0x310   : > { %1712 = vmatpush1.bf16.msra.mxu0 %v1541_v59 }
 0x311   : > { %v1417_v60 = vpop.permute.xlu0 %1416  ;;  %1713 = vmatprep.subr.bf16.mxu0 %v1580_v36  ;;  %v1380_v63 = vpop.permute.xlu1 %1379 }
 0x312   : > { %v1392_v23 = vsel %vm5076_vm1, %v1380_v63, %v1382_v39  ;;  %v1391_v61 = vsel %vm5077_vm0, %v1378_v49, %v1380_v63  ;;  %vm5081_vm0 = vcmask 769024  }
 0x313   : > { %1746 = vmatprep.subr.bf16.mxu1 %v1392_v23  ;;  %vm5082_vm1 = vmmov %vm5081_vm0 }
 0x314   : > { %1714 = vmatpush1.bf16.msra.mxu0 %v1579_v50  ;;  %1747 = vmatpush1.bf16.msra.mxu1 %v1391_v61 }
 0x315   : > { %v1452_v16 = vpop.permute.xlu0 %1451  ;;  %1715 = vmatprep.subr.bf16.mxu0 %v1618_v57  ;;  %v1384_v33 = vpop.permute.xlu1 %1383 }
 0x318   : > { %1716 = vmatpush1.bf16.msra.mxu0 %v1617_v35 }
 0x319   : > { %v1487_v19 = vpop.permute.xlu0 %1486  ;;  %1785 = vmatprep.subr.bf16.mxu0 %v4141_v28  ;;  %v1415_v49 = vpop.permute.xlu1 %1414 }
 0x31a   : > { %v1427_v43 = vsel %vm5081_vm0, %v1415_v49, %v1417_v60  ;;  %v1426_v14 = vsel %vm5082_vm1, %v1413_v24, %v1415_v49  ;;  %vm5086_vm0 = vcmask 752640  }
 0x31b   : > { %1732 = vmatmul.mubr.bf16.vlgmr.msra.gmra.mrb[12].mxu0 %v4274_v41  ;;  %1748 = vmatprep.subr.bf16.mxu1 %v1427_v43  ;;  %vm5087_vm1 = vmmov %vm5086_vm0 }
 0x31c   : > { %1749 = vmatpush1.bf16.msra.mxu1 %v1426_v14  ;;  %1786 = vmatpush1.bf16.msra.mxu0 %v4123_v30 }
 0x31d   : > { %v1532_v0 = vpop.permute.xlu0 %1531  ;;  %v1419_v59 = vpop.permute.xlu1 %1418  ;;  %3009 = vmatprep.mubr.msk.bf16.mxu0 %vm5016_vm11, %v4067_v9 }
 0x321   : > { %v4339_v55 = vpop.permute.xlu0 %1569  ;;  %v1450_v20 = vpop.permute.xlu1 %1449 }
 0x322   : > { %v1462_v28 = vsel %vm5083_vm13, %v1450_v20, %v1452_v16  ;;  %v1461_v36 = vsel %vm5084_vm14, %v4284_v46, %v1450_v20  ;;  %vm5088_vm13 = vmmov %vm5085_vm5  ;;  %vm5089_vm14 = vcmask 1031168  }
 0x323   : > { %1750 = vmatprep.subr.bf16.mxu1 %v1462_v28  ;;  %v1358_v35 = vsel %vm5088_vm13, %v1347_v62, %v1349_v37  ;;  %vm5090_vm11 = vmmov %vm5089_vm14 }
 0x324   : > { %1751 = vmatpush1.bf16.msra.mxu1 %v1461_v36  ;;  %v1393_v14 = vsel %vm5090_vm11, %v1382_v39, %v1384_v33 }
 0x325   : > { %v4344_v24 = vpop.permute.xlu0 %1607  ;;  %v1454_v63 = vpop.permute.xlu1 %1453 }
 0x329   : > { %v4346_v23 = vpop.permute.xlu0 %1350  ;;  %v1485_v30 = vpop.permute.xlu1 %1484 }
 0x32a   : > { %v1359_v61 = vsel %vm5085_vm5, %v1349_v37, %v4346_v23  ;;  %v1497_v50 = vsel %vm5086_vm0, %v1485_v30, %v1487_v19  ;;  %v1496_v57 = vsel %vm5087_vm1, %v4296_v54, %v1485_v30  ;;  %vm5091_vm5 = vcmask 769024  }
 0x32b   : > { %1787 = vmatprep.subr.bf16.mxu0 %v1359_v61  ;;  %1752 = vmatprep.subr.bf16.mxu1 %v1497_v50  ;;  %vm5092_vm0 = vcmask 490496   ;;  %vm5094_vm13 = vmmov %vm5091_vm5 }
 0x32c   : > { %1788 = vmatpush1.bf16.msra.mxu0 %v1358_v35  ;;  %1753 = vmatpush1.bf16.msra.mxu1 %v1496_v57  ;;  %vm5093_vm1 = vmmov %vm5092_vm0  ;;  %v1428_v62 = vsel %vm5094_vm13, %v1417_v60, %v1419_v59 }
 0x32d   : > { %v1386_v46 = vpop.permute.xlu0 %1385  ;;  %v1489_v49 = vpop.permute.xlu1 %1488 }
 0x32e   : > { %v1394_v43 = vsel %vm5089_vm14, %v1384_v33, %v1386_v46  ;;  %vm5095_vm14 = vcmask 760832  }
 0x32f   : > { %1789 = vmatprep.subr.bf16.mxu0 %v1394_v43  ;;  %vm5096_vm11 = vmmov %vm5095_vm14 }
 0x330   : > { %1790 = vmatpush1.bf16.msra.mxu0 %v1393_v14  ;;  %v1463_v33 = vsel %vm5096_vm11, %v1452_v16, %v1454_v63 }
 0x331   : > { %v1421_v20 = vpop.permute.xlu0 %1420  ;;  %v1530_v28 = vpop.permute.xlu1 %1529 }
 0x332   : > { %v1429_v36 = vsel %vm5091_vm5, %v1419_v59, %v1421_v20  ;;  %v1544_v61 = vsel %vm5092_vm0, %v1530_v28, %v1532_v0  ;;  %v1543_v54 = vsel %vm5093_vm1, %v4293_v34, %v1530_v28  ;;  %vm5097_vm5 = vcmask 752640  }
 0x333   : > { %1791 = vmatprep.subr.bf16.mxu0 %v1429_v36  ;;  %1754 = vmatprep.subr.bf16.mxu1 %v1544_v61  ;;  %vm5098_vm0 = vcmask 482304   ;;  %vm5100_vm13 = vmmov %vm5097_vm5 }
 0x334   : > { %1792 = vmatpush1.bf16.msra.mxu0 %v1428_v62  ;;  %1755 = vmatpush1.bf16.msra.mxu1 %v1543_v54  ;;  %vm5099_vm1 = vmmov %vm5098_vm0  ;;  %v1498_v59 = vsel %vm5100_vm13, %v1487_v19, %v1489_v49 }
 0x335   : > { %v1456_v37 = vpop.permute.xlu0 %1455  ;;  %v1534_v30 = vpop.permute.xlu1 %1533 }
 0x336   : > { %v1464_v39 = vsel %vm5095_vm14, %v1454_v63, %v1456_v37  ;;  %vm5101_vm14 = vcmask 490496  }
 0x337   : > { %1793 = vmatprep.subr.bf16.mxu0 %v1464_v39  ;;  %vm5102_vm11 = vmmov %vm5101_vm14 }
 0x338   : > { %1794 = vmatpush1.bf16.msra.mxu0 %v1463_v33  ;;  %v1545_v63 = vsel %vm5102_vm11, %v1532_v0, %v1534_v30 }
 0x339   : > { %v1491_v50 = vpop.permute.xlu0 %1490  ;;  %v1568_v57 = vpop.permute.xlu1 %1567 }
 0x33a   : > { %v1499_v35 = vsel %vm5097_vm5, %v1489_v49, %v1491_v50  ;;  %v1582_v34 = vsel %vm5098_vm0, %v1568_v57, %v4339_v55  ;;  %v1581_v60 = vsel %vm5099_vm1, %v4304_v47, %v1568_v57  ;;  %vm5103_vm5 = vmmov %vm5098_vm0  ;;  %vm5104_vm0 = vcmask 474112  }
 0x33b   : > { %1795 = vmatprep.subr.bf16.mxu0 %v1499_v35  ;;  %1756 = vmatprep.subr.bf16.mxu1 %v1582_v34  ;;  %vm5105_vm1 = vmmov %vm5104_vm0 }
 0x33c   : > { %1796 = vmatpush1.bf16.msra.mxu0 %v1498_v59  ;;  %1757 = vmatpush1.bf16.msra.mxu1 %v1581_v60  ;;  %vm5106_vm13 = vmmov %vm5103_vm5 }
 0x33d   : > { %v1536_v43 = vpop.permute.xlu0 %1535  ;;  %v1572_v14 = vpop.permute.xlu1 %1571 }
 0x33e   : > { %v1546_v16 = vsel %vm5101_vm14, %v1534_v30, %v1536_v43  ;;  %v1583_v49 = vsel %vm5106_vm13, %v4339_v55, %v1572_v14  ;;  %vm5107_vm14 = vcmask 793600   ;;  %vm5112_vm13 = vcmask 490496  }
 0x33f   : > { %1797 = vmatprep.subr.bf16.mxu0 %v1546_v16  ;;  %vm4381_vm11 = vmpackc.low %vm5107_vm14, %vm5107_vm14  ;;  %vm5113_vm14 = vcmask 482304  }
 0x340   : > { %1798 = vmatpush1.bf16.msra.mxu0 %v1545_v63 }
 0x341   : > { %v1574_v28 = vpop.permute.xlu0 %1573  ;;  %v1606_v36 = vpop.permute.xlu1 %1605 }
 0x342   : > { %v1584_v61 = vsel %vm5103_vm5, %v1572_v14, %v1574_v28  ;;  %v1620_v47 = vsel %vm5104_vm0, %v1606_v36, %v4344_v24  ;;  %v1619_v19 = vsel %vm5105_vm1, %v4300_v45, %v1606_v36  ;;  %vm5110_vm5 = vmmov %vm5104_vm0  ;;  %vm5111_vm1 = vcmask 130048  }
 0x343   : > { %1799 = vmatprep.subr.bf16.mxu0 %v1584_v61  ;;  %1758 = vmatprep.subr.bf16.mxu1 %v1620_v47 }
 0x344   : > { %1800 = vmatpush1.bf16.msra.mxu0 %v1583_v49  ;;  %1759 = vmatpush1.bf16.msra.mxu1 %v1619_v19 }
 0x345   : > { %v1612_v54 = vpop.permute.xlu0 %1611  ;;  %1828 = vmatprep.subr.bf16.mxu1 %v3331_v6 }
 0x346   : > { %v1610_v0 = vpop.permute.xlu1 %1609 }
 0x347   : > { %v1622_v30 = vsel %vm5110_vm5, %v1610_v0, %v1612_v54  ;;  %v1621_v45 = vsel %vm5104_vm0, %v4344_v24, %v1610_v0  ;;  %1775 = vmatmul.mubr.bf16.vlgmr.msra.gmra.mrb[12].mxu1 %v4274_v41  ;;  %vm5114_vm5 = vmmov %vm5104_vm0  ;;  %vm5115_vm0 = vcmask 285696  }
 0x348   : > { %1801 = vmatprep.subr.bf16.mxu0 %v1622_v30  ;;  %3045 = vmatpush1.bf16.msk.msra.mxu1 %vm4381_vm11, %v3044_v58 }
 0x349   : > { %1802 = vmatpush1.bf16.msra.mxu0 %v1621_v45  ;;  %1830 = vmatprep.subr.bf16.mxu1 %v3331_v6  ;;  %v1576_v58 = vpop.permute.xlu0 %1575 }
 0x34a   : > { %3010 = vmatprep.mubr.msk.bf16.mxu1 %vm5111_vm1, %v4067_v9  ;;  %v1538_v1 = vpop.permute.xlu1 %1537  ;;  %v1585_v9 = vsel %vm5113_vm14, %v1574_v28, %v1576_v58  ;;  %vm5116_vm1 = vmmov %vm5115_vm0 }
 0x34b   : > { %v1547_v3 = vsel %vm5112_vm13, %v1536_v43, %v1538_v1  ;;  %vm5117_vm13 = vmmov %vm5115_vm0 }
 0x34c   : > { %1818 = vmatmul.mubr.bf16.vlgmr.msra.gmra.mrb[16].mxu0 %v4274_v41  ;;  %1831 = vmatpush1.bf16.msra.mxu1 %v4346_v23  ;;  %vm5118_vm14 = vmmov %vm5115_vm0 }
 0x34d   : > { %1832 = vmatprep.subr.bf16.mxu1 %v3331_v6 }
 0x34e   : > { %v1614_v55 = vpop.permute.xlu1 %1613 }
 0x34f   : > { %v1623_v24 = vsel %vm5114_vm5, %v1612_v54, %v1614_v55  ;;  %vm5119_vm5 = vmpackc.low %vm3982_vm6, %vm3982_vm6 }
 0x350   : > { %1833 = vmatpush1.bf16.msra.mxu1 %v1386_v46  ;;  %vm5120_vm6 = vmmov %vm5115_vm0 }
 0x351   : > { %1834 = vmatprep.subr.bf16.mxu1 %v3331_v6 }
 0x354   : > { %1835 = vmatpush1.bf16.msra.mxu1 %v1421_v20 }
 0x355   : > { %1836 = vmatprep.subr.bf16.mxu1 %v3331_v6 }
 0x358   : > { %1837 = vmatpush1.bf16.msra.mxu1 %v1456_v37 }
 0x359   : > { %1838 = vmatprep.subr.bf16.mxu1 %v3331_v6 }
 0x35a   : > { %v4410_v23 = vpop.permute.xlu0 %1635 }
 0x35c   : > { %1839 = vmatpush1.bf16.msra.mxu1 %v1491_v50 }
 0x35d   : > { %1840 = vmatprep.subr.bf16.mxu1 %v3331_v6 }
 0x360   : > { %1841 = vmatpush1.bf16.msra.mxu1 %v1547_v3 }
 0x361   : > { %1842 = vmatprep.subr.bf16.mxu1 %v3331_v6 }
 0x364   : > { %1843 = vmatpush1.bf16.msra.mxu1 %v1585_v9 }
 0x365   : > { %1844 = vmatprep.subr.bf16.mxu1 %v3331_v6 }
 0x368   : > { %1845 = vmatpush1.bf16.msra.mxu1 %v1623_v24 }
 0x36b   : > { %1861 = vmatmul.mubr.bf16.vlgmr.msra.gmra.mrb[16].mxu1 %v4274_v41  ;;  %v4419_v41 = vpop.permute.xlu1 %1640 }
 0x3ce   : > { %v1690_v46 = vpop.f32.mrb[8].mxu1 }
 0x3cf   : > { %v1691_v20 = vadd.f32 %v1690_v46, %v4410_v23  ;;  %v1692_v37 = vpop.f32.mrb[9].mxu1 }
 0x3d0   : > { %v1693_v39 = vadd.f32 %v1692_v37, %v4410_v23  ;;  %v1694_v33 = vpop.f32.mrb[10].mxu1 }
 0x3d1   : > { %v1869_v50 = vmax.f32 %v1691_v20, 0.0  ;;  %v1696_v57 = vpop.f32.mrb[11].mxu1  ;;  %v1695_v43 = vadd.f32 %v1694_v33, %v4419_v41 }
 0x3d2   : > { %v1870_v35 = vmax.f32 %v1693_v39, 0.0  ;;  %v1697_v14 = vadd.f32 %v1696_v57, %v4419_v41 }
 0x3d3   : > { %v1887_v34 = vsel %vm3795_vm9, %v1869_v50, 0.0  ;;  %v1878_v63 = vmax.f32 %v1695_v43, 0.0 }
 0x3d4   : > { %v1888_v60 = vsel %vm3799_vm10, %v1870_v35, 0.0  ;;  %v1879_v47 = vmax.f32 %v1697_v14, 0.0 }
 0x3d5   : > { %v3162_v59 = vpack.i.bf16 %v1888_v60, %v1887_v34  ;;  %v1896_v0 = vsel %vm3795_vm9, %v1878_v63, 0.0 }
 0x3d6   : > { %v1897_v3 = vsel %vm3799_vm10, %v1879_v47, 0.0 }
 0x3d7   : > { %3163 = vrot.lane.b32.xlu0 %v3162_v59, %s3334_s21 }
 0x3ee   : > { %v1733_v16 = vpop.f32.mrb[12].mxu0 }
 0x3ef   : > { %v1734_v28 = vadd.f32 %v1733_v16, %v4410_v23  ;;  %v1735_v36 = vpop.f32.mrb[13].mxu0 }
 0x3f0   : > { %v1737_v61 = vpop.f32.mrb[14].mxu0  ;;  %v1736_v55 = vadd.f32 %v1735_v36, %v4410_v23 }
 0x3f1   : > { %v1871_v19 = vmax.f32 %v1734_v28, 0.0  ;;  %v1738_v49 = vadd.f32 %v1737_v61, %v4419_v41  ;;  %v1739_v54 = vpop.f32.mrb[15].mxu0 }
 0x3f2   : > { %v1740_v24 = vadd.f32 %v1739_v54, %v4419_v41  ;;  %v1872_v46 = vmax.f32 %v1736_v55, 0.0 }
 0x3f3   : > { %v1889_v30 = vsel %vm3842_vm12, %v1871_v19, 0.0  ;;  %v1880_v45 = vmax.f32 %v1738_v49, 0.0 }
 0x3f4   : > { %v3167_v1 = vpack.i.bf16 %v1896_v0, %v1889_v30  ;;  %v1881_v33 = vmax.f32 %v1740_v24, 0.0  ;;  %v1890_v59 = vsel %vm3860_vm7, %v1872_v46, 0.0 }
 0x3f5   : > { %v1898_v58 = vsel %vm3842_vm12, %v1880_v45, 0.0 }
 0x3f6   : > { %v3172_v9 = vpack.i.bf16 %v1898_v58, %v1897_v3  ;;  %3168 = vrot.lane.b32.xlu1 %v3167_v1, %s3334_s21  ;;  %v1899_v47 = vsel %vm3860_vm7, %v1881_v33, 0.0 }
 0x3f8   : > { %3173 = vrot.lane.b32.xlu0 %v3172_v9, %s3334_s21 }
 0x41a   : > { %v1776_v20 = vpop.f32.mrb[12].mxu1 }
 0x41b   : > { %v1777_v37 = vadd.f32 %v1776_v20, %v4410_v23  ;;  %v1778_v39 = vpop.f32.mrb[13].mxu1 }
 0x41c   : > { %v1779_v50 = vadd.f32 %v1778_v39, %v4410_v23  ;;  %v1780_v57 = vpop.f32.mrb[14].mxu1 }
 0x41d   : > { %v1873_v35 = vmax.f32 %v1777_v37, 0.0  ;;  %v1781_v34 = vadd.f32 %v1780_v57, %v4419_v41  ;;  %v1782_v60 = vpop.f32.mrb[15].mxu1 }
 0x41e   : > { %v1783_v43 = vadd.f32 %v1782_v60, %v4419_v41  ;;  %v1874_v63 = vmax.f32 %v1779_v50, 0.0 }
 0x41f   : > { %v1819_v14 = vpop.f32.mrb[16].mxu0  ;;  %v1891_v16 = vsel %vm3864_vm8, %v1873_v35, 0.0  ;;  %v1882_v28 = vmax.f32 %v1781_v34, 0.0 }
 0x420   : > { %v1820_v36 = vadd.f32 %v1819_v14, %v4410_v23  ;;  %v1821_v61 = vpop.f32.mrb[17].mxu0  ;;  %v3177_v19 = vpack.i.bf16 %v1891_v16, %v1890_v59  ;;  %v1883_v0 = vmax.f32 %v1783_v43, 0.0  ;;  %v1892_v58 = vsel %vm3925_vm15, %v1874_v63, 0.0 }
 0x421   : > { %v1823_v49 = vpop.f32.mrb[18].mxu0  ;;  %v1900_v54 = vsel %vm3864_vm8, %v1882_v28, 0.0  ;;  %v1822_v39 = vadd.f32 %v1821_v61, %v4410_v23 }
 0x422   : > { %v1875_v30 = vmax.f32 %v1820_v36, 0.0  ;;  %v1824_v45 = vadd.f32 %v1823_v49, %v4419_v41  ;;  %v1825_v1 = vpop.f32.mrb[19].mxu0  ;;  %v3182_v3 = vpack.i.bf16 %v1900_v54, %v1899_v47  ;;  %3178 = vrot.lane.b32.xlu1 %v3177_v19, %s3334_s21  ;;  %v1901_v46 = vsel %vm3925_vm15, %v1883_v0, 0.0 }
 0x423   : > { %v1826_v33 = vadd.f32 %v1825_v1, %v4419_v41  ;;  %v1876_v57 = vmax.f32 %v1822_v39, 0.0 }
 0x424   : > { %v1893_v9 = vsel %vm3930_vm4, %v1875_v30, 0.0  ;;  %v1884_v55 = vmax.f32 %v1824_v45, 0.0  ;;  %3183 = vrot.lane.b32.xlu0 %v3182_v3, %s3334_s21 }
 0x425   : > { %v3187_v24 = vpack.i.bf16 %v1893_v9, %v1892_v58  ;;  %v1885_v59 = vmax.f32 %v1826_v33, 0.0  ;;  %v1894_v63 = vsel %vm3948_vm2, %v1876_v57, 0.0 }
 0x426   : > { %v1902_v20 = vsel %vm3930_vm4, %v1884_v55, 0.0 }
 0x427   : > { %v3192_v37 = vpack.i.bf16 %v1902_v20, %v1901_v46  ;;  %3188 = vrot.lane.b32.xlu1 %v3187_v24, %s3334_s21  ;;  %v1903_v47 = vsel %vm3948_vm2, %v1885_v59, 0.0 }
 0x429   : > { %3193 = vrot.lane.b32.xlu0 %v3192_v37, %s3334_s21 }
 0x43e   : > { %v1862_v50 = vpop.f32.mrb[16].mxu1 }
 0x43f   : > { %v1863_v35 = vadd.f32 %v1862_v50, %v4410_v23  ;;  %v1864_v34 = vpop.f32.mrb[17].mxu1 }
 0x440   : > { %v1865_v60 = vpop.f32.mrb[18].mxu1 }
 0x441   : > { %v1877_v43 = vmax.f32 %v1863_v35, 0.0  ;;  %v1866_v14 = vadd.f32 %v1865_v60, %v4419_v41  ;;  %v1867_v16 = vpop.f32.mrb[19].mxu1 }
 0x443   : > { %v1895_v28 = vsel %vm3952_vm3, %v1877_v43, 0.0  ;;  %v1886_v36 = vmax.f32 %v1866_v14, 0.0 }
 0x444   : > { %v3197_v61 = vpack.i.bf16 %v1895_v28, %v1894_v63 }
 0x445   : > { %v1904_v23 = vsel %vm3952_vm3, %v1886_v36, 0.0 }
 0x446   : > { %v3202_v19 = vpack.i.bf16 %v1904_v23, %v1903_v47  ;;  %3198 = vrot.lane.b32.xlu1 %v3197_v61, %s3334_s21  ;;  %v4524_v47 = vld [vmem:[%s5002_s5 + $0x4] ss:$8 sps:$4 sm:$0xff]  }
 0x448   : > { %3203 = vrot.lane.b32.xlu0 %v3202_v19, %s3334_s21 }
 0x449   : > { %v3164_v41 = vpop.permute.xlu0 %3163 }
 0x44a   : > { %v3165_v49 = vunpack.i.l.bf16 %v3164_v41  ;;  %v3166_v30 = vunpack.i.h.bf16 %v3164_v41 }
 0x44c   : > { %v1993_v1 = vsel %vm5115_vm0, 0.0, %v3165_v49  ;;  %v1959_v55 = vsel %vm5117_vm13, %v3165_v49, %v3166_v30  ;;  %vm5122_vm13 = vmmov %vm5115_vm0 }
 0x468   : > { %v3169_v54 = vpop.permute.xlu1 %3168 }
 0x469   : > { %v3171_v0 = vunpack.i.h.bf16 %v3169_v54  ;;  %v3170_v37 = vunpack.i.l.bf16 %v3169_v54 }
 0x46a   : > { %v3174_v45 = vpop.permute.xlu0 %3173 }
 0x46b   : > { %v1994_v3 = vsel %vm5116_vm1, 0.0, %v3171_v0  ;;  %v3175_v9 = vunpack.i.l.bf16 %v3174_v45  ;;  %v3049_v20 = vpack.c.bf16 %v3171_v0, %v3165_v49  ;;  %v3176_v22 = vunpack.i.h.bf16 %v3174_v45  ;;  %vm5121_vm1 = vmmov %vm5115_vm0 }
 0x46c   : > { %v1997_v58 = vpack.c.bf16 %v1994_v3, %v1993_v1  ;;  %v1960_v33 = vsel %vm5115_vm0, %v3166_v30, %v3170_v37 }
 0x46d   : > { %v1967_v24 = vsel %vm5118_vm14, %v3171_v0, %v3175_v9  ;;  %v1968_v39 = vsel %vm5120_vm6, %v3175_v9, %v3176_v22  ;;  %vm5123_vm14 = vmmov %vm5115_vm0  ;;  %vm5125_vm6 = vcmask 130048  }
 0x46e   : > { %2110 = vrot.lane.b32.xlu0 %v1997_v58, %s3324_s8  ;;  %2075 = vrot.lane.b32.xlu1 %v1997_v58, %s3323_s30  ;;  %v1998_v46 = vpack.c.bf16 %v1967_v24, %v1959_v55  ;;  %v1999_v50 = vpack.c.bf16 %v1968_v39, %v1960_v33 }
 0x46f   : > { %3013 = vmatprep.mubr.msk.bf16.mxu0 %vm5125_vm6, %v4524_v47 }
 0x470   : > { %2396 = vmatprep.subr.bf16.mxu0 %v1998_v46 }
 0x471   : > { %3050 = vmatpush1.bf16.msk.msra.mxu0 %vm5119_vm5, %v3049_v20  ;;  %vm5124_vm5 = vmmov %vm5115_vm0 }
 0x472   : > { %2180 = vrot.lane.b32.xlu0 %v1997_v58, %s3326_s10  ;;  %2145 = vrot.lane.b32.xlu1 %v1997_v58, %s3325_s9  ;;  %vm5126_vm0 = vmmov %vm5125_vm6 }
 0x473   : > { %3014 = vmatprep.mubr.msk.bf16.mxu1 %vm5126_vm0, %v4524_v47  ;;  %vm5130_vm6 = vmmov %vm5121_vm1 }
 0x474   : > { %vm5131_vm0 = vmmov %vm5121_vm1 }
 0x476   : > { %2260 = vrot.lane.b32.xlu0 %v1997_v58, %s3328_s12  ;;  %2215 = vrot.lane.b32.xlu1 %v1997_v58, %s3327_s11 }
 0x47a   : > { %2336 = vrot.lane.b32.xlu0 %v1997_v58, %s3330_s14  ;;  %2298 = vrot.lane.b32.xlu1 %v1997_v58, %s3329_s13 }
 0x47e   : > { %2112 = vrot.lane.b32.xlu0 %v1998_v46, %s3324_s8  ;;  %2077 = vrot.lane.b32.xlu1 %v1998_v46, %s3323_s30 }
 0x482   : > { %2182 = vrot.lane.b32.xlu0 %v1998_v46, %s3326_s10  ;;  %2147 = vrot.lane.b32.xlu1 %v1998_v46, %s3325_s9 }
 0x486   : > { %2262 = vrot.lane.b32.xlu0 %v1998_v46, %s3328_s12  ;;  %2217 = vrot.lane.b32.xlu1 %v1998_v46, %s3327_s11 }
 0x48a   : > { %2338 = vrot.lane.b32.xlu0 %v1998_v46, %s3330_s14  ;;  %2300 = vrot.lane.b32.xlu1 %v1998_v46, %s3329_s13 }
 0x48e   : > { %2079 = vrot.lane.b32.xlu0 %v1999_v50, %s3323_s30  ;;  %2114 = vrot.lane.b32.xlu1 %v1999_v50, %s3324_s8 }
 0x492   : > { %2149 = vrot.lane.b32.xlu0 %v1999_v50, %s3325_s9  ;;  %2184 = vrot.lane.b32.xlu1 %v1999_v50, %s3326_s10 }
 0x494   : > { %v3179_v57 = vpop.permute.xlu1 %3178 }
 0x495   : > { %v3180_v35 = vunpack.i.l.bf16 %v3179_v57  ;;  %v3181_v60 = vunpack.i.h.bf16 %v3179_v57 }
 0x496   : > { %v3184_v34 = vpop.permute.xlu0 %3183  ;;  %2219 = vrot.lane.b32.xlu0 %v1999_v50, %s3327_s11  ;;  %2264 = vrot.lane.b32.xlu1 %v1999_v50, %s3328_s12 }
 0x497   : > { %v3186_v59 = vunpack.i.h.bf16 %v3184_v34  ;;  %v3185_v43 = vunpack.i.l.bf16 %v3184_v34  ;;  %v1961_v14 = vsel %vm5121_vm1, %v3170_v37, %v3180_v35  ;;  %v1962_v36 = vsel %vm5124_vm5, %v3180_v35, %v3181_v60  ;;  %vm5129_vm5 = vmmov %vm5121_vm1 }
 0x499   : > { %v1969_v16 = vsel %vm5122_vm13, %v3176_v22, %v3185_v43  ;;  %v1970_v63 = vsel %vm5123_vm14, %v3185_v43, %v3186_v59  ;;  %v3189_v19 = vpop.permute.xlu1 %3188  ;;  %vm5127_vm13 = vmmov %vm5121_vm1 }
 0x49a   : > { %v2000_v28 = vpack.c.bf16 %v1969_v16, %v1961_v14  ;;  %2302 = vrot.lane.b32.xlu0 %v1999_v50, %s3329_s13  ;;  %2340 = vrot.lane.b32.xlu1 %v1999_v50, %s3330_s14  ;;  %v4516_v61 = vpack.c.bf16 %v1970_v63, %v1962_v36  ;;  %v3191_v54 = vunpack.i.h.bf16 %v3189_v19  ;;  %v3190_v0 = vunpack.i.l.bf16 %v3189_v19  ;;  %vm5128_vm14 = vmmov %vm5121_vm1 }
 0x49b   : > { %v3194_v23 = vpop.permute.xlu0 %3193 }
 0x49c   : > { %2439 = vmatprep.subr.bf16.mxu1 %v2000_v28  ;;  %v3196_v41 = vunpack.i.h.bf16 %v3194_v23  ;;  %v3195_v49 = vunpack.i.l.bf16 %v3194_v23  ;;  %v1964_v55 = vsel %vm5128_vm14, %v3190_v0, %v3191_v54  ;;  %v1963_v20 = vsel %vm5129_vm5, %v3181_v60, %v3190_v0 }
 0x49d   : > { %2440 = vmatpush1.bf16.msra.mxu1 %v1999_v50  ;;  %vm5134_vm14 = vcmask 793600  }
 0x49e   : > { %2083 = vrot.lane.b32.xlu0 %v4516_v61, %s3323_s30  ;;  %2081 = vrot.lane.b32.xlu1 %v2000_v28, %s3323_s30  ;;  %v1972_v45 = vsel %vm5121_vm1, %v3195_v49, %v3196_v41  ;;  %v1971_v58 = vsel %vm5127_vm13, %v3186_v59, %v3195_v49  ;;  %vm5132_vm1 = vmmov %vm5131_vm0 }
 0x49f   : > { %v4555_v22 = vpack.c.bf16 %v1972_v45, %v1964_v55  ;;  %v4557_v37 = vpack.c.bf16 %v1971_v58, %v1963_v20  ;;  %vm5133_vm13 = vmmov %vm5131_vm0 }
 0x4a0   : > { %vm5135_vm5 = vmmov %vm5134_vm14 }
 0x4a2   : > { %2118 = vrot.lane.b32.xlu0 %v4516_v61, %s3324_s8  ;;  %2116 = vrot.lane.b32.xlu1 %v2000_v28, %s3324_s8 }
 0x4a6   : > { %2153 = vrot.lane.b32.xlu0 %v4516_v61, %s3325_s9  ;;  %2151 = vrot.lane.b32.xlu1 %v2000_v28, %s3325_s9 }
 0x4aa   : > { %2188 = vrot.lane.b32.xlu0 %v4516_v61, %s3326_s10  ;;  %2186 = vrot.lane.b32.xlu1 %v2000_v28, %s3326_s10 }
 0x4ae   : > { %2223 = vrot.lane.b32.xlu0 %v4516_v61, %s3327_s11  ;;  %2221 = vrot.lane.b32.xlu1 %v2000_v28, %s3327_s11 }
 0x4b2   : > { %2268 = vrot.lane.b32.xlu0 %v4516_v61, %s3328_s12  ;;  %2266 = vrot.lane.b32.xlu1 %v2000_v28, %s3328_s12 }
 0x4b6   : > { %2306 = vrot.lane.b32.xlu0 %v4516_v61, %s3329_s13  ;;  %2304 = vrot.lane.b32.xlu1 %v2000_v28, %s3329_s13 }
 0x4b8   : > { %v3199_v30 = vpop.permute.xlu1 %3198 }
 0x4b9   : > { %v3201_v1 = vunpack.i.h.bf16 %v3199_v30  ;;  %v3200_v3 = vunpack.i.l.bf16 %v3199_v30 }
 0x4ba   : > { %v3204_v9 = vpop.permute.xlu0 %3203  ;;  %2344 = vrot.lane.b32.xlu0 %v4516_v61, %s3330_s14  ;;  %2342 = vrot.lane.b32.xlu1 %v2000_v28, %s3330_s14 }
 0x4bb   : > { %v3206_v24 = vunpack.i.h.bf16 %v3204_v9  ;;  %v3205_v46 = vunpack.i.l.bf16 %v3204_v9  ;;  %v4560_v39 = vsel %vm5130_vm6, %v3200_v3, %v3201_v1  ;;  %v1965_v35 = vsel %vm5133_vm13, %v3191_v54, %v3200_v3  ;;  %v2045_v9 = vld [vmem:[%s5003_s6] sm:$0xff] }
 0x4bc   : > { %v1995_v59 = vsel %vm5135_vm5, %v4560_v39, 0.0  ;;  %vm5136_vm6 = vcmask 1039360  }
 0x4bd   : > { %v4563_v33 = vsel %vm5131_vm0, %v3205_v46, %v3206_v24  ;;  %v1973_v57 = vsel %vm5132_vm1, %v3196_v41, %v3205_v46  ;;  %vm5137_vm0 = vmmov %vm5136_vm6  ;;  %vm5138_vm1 = vcmask 1031168  }
 0x4be   : > { %v3052_v50 = vpack.c.bf16 %v4563_v33, %v4560_v39  ;;  %2087 = vrot.lane.b32.xlu0 %v4555_v22, %s3323_s30  ;;  %2085 = vrot.lane.b32.xlu1 %v4557_v37, %s3323_s30  ;;  %v4601_v34 = vpack.c.bf16 %v1973_v57, %v1965_v35  ;;  %v1996_v60 = vsel %vm5134_vm14, %v4563_v33, 0.0  ;;  %vm5139_vm13 = vmmov %vm5138_vm1  ;;  %vm5140_vm14 = vcmask 769024  }
 0x4bf   : > { %v2005_v43 = vpack.c.bf16 %v1996_v60, %v1995_v59  ;;  %v3207_v60 = vpack.i.bf16 %v4175_v8, %v4137_v27  ;;  %v2046_v59 = vld [vmem:[%s5003_s6 + $0x8] sm:$0xff]  ;;  %v3212_v27 = vpack.i.bf16 %v4169_v29, %v4130_v26  ;;  %vm5141_vm5 = vmmov %vm5140_vm14 }
 0x4c2   : > { %2122 = vrot.lane.b32.xlu0 %v4555_v22, %s3324_s8  ;;  %2120 = vrot.lane.b32.xlu1 %v4557_v37, %s3324_s8 }
 0x4c6   : > { %2157 = vrot.lane.b32.xlu0 %v4555_v22, %s3325_s9  ;;  %2155 = vrot.lane.b32.xlu1 %v4557_v37, %s3325_s9 }
 0x4ca   : > { %2192 = vrot.lane.b32.xlu0 %v4555_v22, %s3326_s10  ;;  %2190 = vrot.lane.b32.xlu1 %v4557_v37, %s3326_s10 }
 0x4ce   : > { %2227 = vrot.lane.b32.xlu0 %v4555_v22, %s3327_s11  ;;  %2225 = vrot.lane.b32.xlu1 %v4557_v37, %s3327_s11 }
 0x4d2   : > { %2272 = vrot.lane.b32.xlu0 %v4555_v22, %s3328_s12  ;;  %2270 = vrot.lane.b32.xlu1 %v4557_v37, %s3328_s12 }
 0x4d6   : > { %2310 = vrot.lane.b32.xlu0 %v4555_v22, %s3329_s13  ;;  %2308 = vrot.lane.b32.xlu1 %v4557_v37, %s3329_s13 }
 0x4da   : > { %2348 = vrot.lane.b32.xlu0 %v4555_v22, %s3330_s14  ;;  %2346 = vrot.lane.b32.xlu1 %v4557_v37, %s3330_s14 }
 0x4de   : > { %2312 = vrot.lane.b32.xlu0 %v4601_v34, %s3329_s13  ;;  %2278 = vrot.lane.b32.xlu1 %v3335_v17, %s3328_s12 }
 0x4e0   : > { %v2111_v14 = vpop.permute.xlu0 %2110  ;;  %v2076_v16 = vpop.permute.xlu1 %2075 }
 0x4e2   : > { %2091 = vrot.lane.b32.xlu0 %v2005_v43, %s3323_s30  ;;  %2089 = vrot.lane.b32.xlu1 %v4601_v34, %s3323_s30 }
 0x4e4   : > { %v2181_v63 = vpop.permute.xlu0 %2180  ;;  %v2146_v28 = vpop.permute.xlu1 %2145 }
 0x4e6   : > { %2126 = vrot.lane.b32.xlu0 %v2005_v43, %s3324_s8  ;;  %2124 = vrot.lane.b32.xlu1 %v4601_v34, %s3324_s8 }
 0x4e8   : > { %v4617_v36 = vpop.permute.xlu0 %2260  ;;  %v4619_v23 = vpop.permute.xlu1 %2215 }
 0x4ea   : > { %2161 = vrot.lane.b32.xlu0 %v2005_v43, %s3325_s9  ;;  %2159 = vrot.lane.b32.xlu1 %v4601_v34, %s3325_s9 }
 0x4ec   : > { %v4624_v19 = vpop.permute.xlu0 %2336  ;;  %v4626_v41 = vpop.permute.xlu1 %2298 }
 0x4ee   : > { %2196 = vrot.lane.b32.xlu0 %v2005_v43, %s3326_s10  ;;  %2194 = vrot.lane.b32.xlu1 %v4601_v34, %s3326_s10 }
 0x4f0   : > { %v2113_v49 = vpop.permute.xlu0 %2112  ;;  %v2078_v54 = vpop.permute.xlu1 %2077 }
 0x4f1   : > { %v2093_v20 = vsel %vm5137_vm0, %v2076_v16, %v2078_v54  ;;  %v2128_v16 = vsel %vm5139_vm13, %v2111_v14, %v2113_v49  ;;  %v5142_v14 = vpack.i.bf16 %v3987_v38, %v3972_v32  ;;  %v5145_v32 = vpack.i.bf16 %v4014_v51, %v3990_v5 }
 0x4f2   : > { %2231 = vrot.lane.b32.xlu0 %v2005_v43, %s3327_s11  ;;  %2229 = vrot.lane.b32.xlu1 %v4601_v34, %s3327_s11  ;;  %vm5147_vm13 = vcmask 1039360  }
 0x4f4   : > { %v2183_v0 = vpop.permute.xlu0 %2182  ;;  %v2148_v30 = vpop.permute.xlu1 %2147 }
 0x4f5   : > { %v2163_v8 = vsel %vm5141_vm5, %v2146_v28, %v2148_v30 }
 0x4f6   : > { %2276 = vrot.lane.b32.xlu0 %v2005_v43, %s3328_s12  ;;  %2274 = vrot.lane.b32.xlu1 %v4601_v34, %s3328_s12 }
 0x4f8   : > { %v4637_v45 = vpop.permute.xlu0 %2262  ;;  %v2218_v1 = vpop.permute.xlu1 %2217 }
 0x4fa   : > { %2316 = vrot.lane.b32.xlu0 %v3335_v17, %s3329_s13  ;;  %2314 = vrot.lane.b32.xlu1 %v2005_v43, %s3329_s13  ;;  %s3075_s13 = smul.u32 80, %s5245_s25 }
 0x4fc   : > { %v4642_v3 = vpop.permute.xlu0 %2338  ;;  %v4644_v58 = vpop.permute.xlu1 %2300  ;;  %s4960_s20 = scalar_lea.vmem %s5004_s7, %s3075_s13 }
 0x4fe   : > { %2352 = vrot.lane.b32.xlu0 %v2005_v43, %s3330_s14  ;;  %2350 = vrot.lane.b32.xlu1 %v4601_v34, %s3330_s14 }
 0x500   : > { %v2080_v55 = vpop.permute.xlu0 %2079  ;;  %v2115_v24 = vpop.permute.xlu1 %2114 }
 0x501   : > { %v2094_v46 = vsel %vm5136_vm6, %v2078_v54, %v2080_v55  ;;  %v2129_v57 = vsel %vm5138_vm1, %v2113_v49, %v2115_v24  ;;  %vm5143_vm6 = vcmask 760832   ;;  %vm5146_vm1 = vcmask 752640  }
 0x502   : > { %2376 = vperm.xlu0 %3116, %v2045_v9   ;;  %2398 = vmatprep.subr.bf16.mxu0 %v2094_v46  ;;  %vm5144_vm0 = vmmov %vm5143_vm6 }
 0x503   : > { %2354 = vrot.lane.b32.xlu1 %v3335_v17, %s3330_s14  ;;  %2399 = vmatpush1.bf16.msra.mxu0 %v2093_v20  ;;  %v2198_v29 = vsel %vm5144_vm0, %v2181_v63, %v2183_v0  ;;  %v5148_v63 = vpack.i.bf16 %v3996_v40, %v3993_v25  ;;  %vm5150_vm5 = vmmov %vm5146_vm1  ;;  %v3247_v25 = vpack.i.bf16 %v4106_v4, %v4109_v15  ;;  %vm5152_vm0 = vcmask 1031168  }
 0x504   : > { %v2150_v35 = vpop.permute.xlu0 %2149  ;;  %2400 = vmatprep.subr.bf16.mxu0 %v2129_v57  ;;  %v4662_v43 = vpop.permute.xlu1 %2184  ;;  %v3227_v57 = vpack.i.bf16 %v4119_v53, %v4086_v18  ;;  %v3232_v18 = vpack.i.bf16 %v3975_v10, %v4114_v7  ;;  %v2233_v51 = vsel %vm5150_vm5, %v4619_v23, %v2218_v1  ;;  %v3242_v7 = vpack.i.bf16 %v4080_v42, %v4017_v52 }
 0x505   : > { %v2164_v54 = vsel %vm5140_vm14, %v2148_v30, %v2150_v35  ;;  %v2199_v49 = vsel %vm5143_vm6, %v2183_v0, %v4662_v43  ;;  %vm5149_vm14 = vmmov %vm5147_vm13  ;;  %vm5151_vm6 = vcmask 490496   ;;  %vm5156_vm5 = vcmask 769024  }
 0x506   : > { %3208 = vrot.lane.b32.xlu0 %v3207_v60, %s3326_s10 }
 0x507   : > { %2381 = vperm.xlu1 %3115, %v2046_v59   ;;  %2401 = vmatpush1.bf16.msra.mxu0 %v2128_v16 }
 0x508   : > { %v4667_v9 = vpop.permute.xlu0 %2219  ;;  %2402 = vmatprep.subr.bf16.mxu0 %v2164_v54  ;;  %v4669_v46 = vpop.permute.xlu1 %2264 }
 0x509   : > { %v2234_v38 = vsel %vm5146_vm1, %v2218_v1, %v4667_v9  ;;  %v2281_v10 = vsel %vm5151_vm6, %v4637_v45, %v4669_v46  ;;  %vm5153_vm1 = vmmov %vm5152_vm0 }
 0x50a   : > { %3218 = vrot.lane.b32.xlu0 %v5142_v14, %s3326_s10 }
 0x50b   : > { %3213 = vrot.lane.b32.xlu1 %v3212_v27, %s3326_s10  ;;  %2403 = vmatpush1.bf16.msra.mxu0 %v2163_v8 }
 0x50c   : > { %v4681_v20 = vpop.permute.xlu0 %2302  ;;  %2404 = vmatprep.subr.bf16.mxu0 %v2199_v49  ;;  %v4685_v26 = vpop.permute.xlu1 %2340 }
 0x50e   : > { %3228 = vrot.lane.b32.xlu0 %v3227_v57, %s3326_s10 }
 0x50f   : > { %3223 = vrot.lane.b32.xlu1 %v5145_v32, %s3326_s10  ;;  %2405 = vmatpush1.bf16.msra.mxu0 %v2198_v29 }
 0x510   : > { %v4695_v28 = vpop.permute.xlu0 %2083  ;;  %2406 = vmatprep.subr.bf16.mxu0 %v2234_v38  ;;  %v2082_v30 = vpop.permute.xlu1 %2081 }
 0x511   : > { %v2095_v53 = vsel %vm5147_vm13, %v2080_v55, %v2082_v30  ;;  %v2096_v5 = vsel %vm5149_vm14, %v2082_v30, %v4695_v28  ;;  %vm5154_vm13 = vmmov %vm5151_vm6  ;;  %vm5155_vm14 = vcmask 482304  }
 0x512   : > { %3238 = vrot.lane.b32.xlu0 %v5148_v63, %s3326_s10  ;;  %2441 = vmatprep.subr.bf16.mxu1 %v2096_v5  ;;  %v2280_v55 = vsel %vm5154_vm13, %v4617_v36, %v4637_v45  ;;  %v2319_v52 = vsel %vm5155_vm14, %v4644_v58, %v4681_v20  ;;  %vm5157_vm6 = vmmov %vm5156_vm5  ;;  %vm5160_vm13 = vcmask 760832  }
 0x513   : > { %3233 = vrot.lane.b32.xlu1 %v3232_v18, %s3326_s10  ;;  %2407 = vmatpush1.bf16.msra.mxu0 %v2233_v51 }
 0x514   : > { %2442 = vmatpush1.bf16.msra.mxu1 %v2095_v53  ;;  %v4709_v0 = vpop.permute.xlu0 %2118  ;;  %v2117_v40 = vpop.permute.xlu1 %2116  ;;  %2408 = vmatprep.subr.bf16.mxu0 %v2281_v10 }
 0x515   : > { %v2130_v23 = vsel %vm5152_vm0, %v2115_v24, %v2117_v40  ;;  %v2131_v1 = vsel %vm5153_vm1, %v2117_v40, %v4709_v0  ;;  %vm5158_vm0 = vmmov %vm5155_vm14  ;;  %vm5159_vm1 = vcmask 474112  }
 0x516   : > { %3248 = vrot.lane.b32.xlu0 %v3247_v25, %s3326_s10  ;;  %2443 = vmatprep.subr.bf16.mxu1 %v2131_v1  ;;  %v2318_v36 = vsel %vm5158_vm0, %v4626_v41, %v4644_v58  ;;  %v2357_v60 = vsel %vm5159_vm1, %v4642_v3, %v4685_v26  ;;  %vm5161_vm14 = vmmov %vm5160_vm13  ;;  %v4752_v58 = vld [vmem:[%s5002_s5] ss:$8 sps:$4 sm:$0xff]  }
 0x517   : > { %3243 = vrot.lane.b32.xlu1 %v3242_v7, %s3326_s10  ;;  %2409 = vmatpush1.bf16.msra.mxu0 %v2280_v55 }
 0x518   : > { %2444 = vmatpush1.bf16.msra.mxu1 %v2130_v23  ;;  %v4726_v4 = vpop.permute.xlu0 %2153  ;;  %v2152_v42 = vpop.permute.xlu1 %2151  ;;  %2410 = vmatprep.subr.bf16.mxu0 %v2319_v52 }
 0x519   : > { %v2165_v15 = vsel %vm5156_vm5, %v2150_v35, %v2152_v42  ;;  %v2166_v24 = vsel %vm5157_vm6, %v2152_v42, %v4726_v4  ;;  %vm5162_vm5 = vmmov %vm5159_vm1  ;;  %vm5163_vm6 = vcmask 752640   ;;  %vm5165_vm1 = vcmask 130048  }
 0x51a   : > { %2445 = vmatprep.subr.bf16.mxu1 %v2166_v24  ;;  %v2356_v41 = vsel %vm5162_vm5, %v4624_v19, %v4642_v3  ;;  %vm5164_vm0 = vmmov %vm5163_vm6  ;;  %vm5168_vm5 = vcmask 482304  }
 0x51b   : > { %2411 = vmatpush1.bf16.msra.mxu0 %v2318_v36 }
 0x51c   : > { %2446 = vmatpush1.bf16.msra.mxu1 %v2165_v15  ;;  %v4737_v45 = vpop.permute.xlu0 %2188  ;;  %v2187_v59 = vpop.permute.xlu1 %2186  ;;  %2412 = vmatprep.subr.bf16.mxu0 %v2357_v60 }
 0x51d   : > { %v2200_v35 = vsel %vm5160_vm13, %v4662_v43, %v2187_v59  ;;  %v2201_v16 = vsel %vm5161_vm14, %v2187_v59, %v4737_v45  ;;  %vm5166_vm13 = vcmask 490496  }
 0x51e   : > { %2447 = vmatprep.subr.bf16.mxu1 %v2201_v16  ;;  %vm5167_vm14 = vmmov %vm5166_vm13 }
 0x51f   : > { %2413 = vmatpush1.bf16.msra.mxu0 %v2356_v41 }
 0x520   : > { %2448 = vmatpush1.bf16.msra.mxu1 %v2200_v35  ;;  %v2224_v54 = vpop.permute.xlu0 %2223  ;;  %v2222_v27 = vpop.permute.xlu1 %2221  ;;  %2482 = vmatprep.subr.bf16.mxu0 %v4557_v37 }
 0x521   : > { %v2235_v43 = vsel %vm5163_vm6, %v4667_v9, %v2222_v27  ;;  %v2236_v8 = vsel %vm5164_vm0, %v2222_v27, %v2224_v54  ;;  %vm5169_vm6 = vmmov %vm5168_vm5  ;;  %vm5170_vm0 = vcmask 474112  }
 0x522   : > { %2429 = vmatmul.mubr.bf16.vlgmr.msra.gmra.mrb[20].mxu0 %v4752_v58  ;;  %2449 = vmatprep.subr.bf16.mxu1 %v2236_v8 }
 0x523   : > { %2483 = vmatpush1.bf16.msra.mxu0 %v4516_v61  ;;  %3015 = vmatprep.mubr.msk.bf16.mxu0 %vm5165_vm1, %v4524_v47  ;;  %vm5171_vm1 = vmmov %vm5170_vm0 }
 0x524   : > { %2450 = vmatpush1.bf16.msra.mxu1 %v2235_v43  ;;  %v2269_v19 = vpop.permute.xlu0 %2268  ;;  %v2267_v3 = vpop.permute.xlu1 %2266 }
 0x525   : > { %v2282_v14 = vsel %vm5166_vm13, %v4669_v46, %v2267_v3  ;;  %v2283_v37 = vsel %vm5167_vm14, %v2267_v3, %v2269_v19  ;;  %vm5172_vm13 = vcmask 1039360  }
 0x526   : > { %2451 = vmatprep.subr.bf16.mxu1 %v2283_v37  ;;  %vm5173_vm14 = vmmov %vm5172_vm13 }
 0x528   : > { %2452 = vmatpush1.bf16.msra.mxu1 %v2282_v14  ;;  %v2307_v9 = vpop.permute.xlu0 %2306  ;;  %v2305_v49 = vpop.permute.xlu1 %2304 }
 0x529   : > { %v2320_v57 = vsel %vm5168_vm5, %v4681_v20, %v2305_v49  ;;  %v2321_v29 = vsel %vm5169_vm6, %v2305_v49, %v2307_v9  ;;  %vm5174_vm5 = vcmask 130048   ;;  %vm5175_vm6 = vcmask 1031168  }
 0x52a   : > { %2453 = vmatprep.subr.bf16.mxu1 %v2321_v29 }
 0x52c   : > { %2454 = vmatpush1.bf16.msra.mxu1 %v2320_v57  ;;  %v2345_v61 = vpop.permute.xlu0 %2344  ;;  %v2343_v32 = vpop.permute.xlu1 %2342 }
 0x52d   : > { %v2358_v38 = vsel %vm5170_vm0, %v4685_v26, %v2343_v32  ;;  %v2359_v46 = vsel %vm5171_vm1, %v2343_v32, %v2345_v61  ;;  %vm5176_vm0 = vmmov %vm5175_vm6  ;;  %vm5177_vm1 = vcmask 769024  }
 0x52e   : > { %2455 = vmatprep.subr.bf16.mxu1 %v2359_v46 }
 0x530   : > { %2456 = vmatpush1.bf16.msra.mxu1 %v2358_v38  ;;  %v2088_v30 = vpop.permute.xlu0 %2087  ;;  %v2086_v18 = vpop.permute.xlu1 %2085 }
 0x531   : > { %2525 = vmatprep.subr.bf16.mxu1 %v4601_v34  ;;  %v2097_v20 = vsel %vm5172_vm13, %v4695_v28, %v2086_v18  ;;  %v2098_v53 = vsel %vm5173_vm14, %v2086_v18, %v2088_v30  ;;  %vm5178_vm13 = vmmov %vm5177_vm1  ;;  %vm5179_vm14 = vcmask 760832  }
 0x532   : > { %2484 = vmatprep.subr.bf16.mxu0 %v2098_v53 }
 0x533   : > { %2472 = vmatmul.mubr.bf16.vlgmr.msra.gmra.mrb[20].mxu1 %v4752_v58  ;;  %2485 = vmatpush1.bf16.msra.mxu0 %v2097_v20 }
 0x534   : > { %2526 = vmatpush1.bf16.msra.mxu1 %v4555_v22  ;;  %v2123_v26 = vpop.permute.xlu0 %2122  ;;  %v2121_v63 = vpop.permute.xlu1 %2120  ;;  %3016 = vmatprep.mubr.msk.bf16.mxu1 %vm5174_vm5, %v4524_v47  ;;  %vm5180_vm5 = vmmov %vm5179_vm14 }
 0x535   : > { %v2132_v34 = vsel %vm5175_vm6, %v4709_v0, %v2121_v63  ;;  %v2133_v5 = vsel %vm5176_vm0, %v2121_v63, %v2123_v26  ;;  %vm5181_vm6 = vcmask 752640  }
 0x536   : > { %2486 = vmatprep.subr.bf16.mxu0 %v2133_v5  ;;  %vm5182_vm0 = vmmov %vm5181_vm6 }
 0x537   : > { %2487 = vmatpush1.bf16.msra.mxu0 %v2132_v34 }
 0x538   : > { %v2158_v28 = vpop.permute.xlu0 %2157  ;;  %v2156_v51 = vpop.permute.xlu1 %2155 }
 0x539   : > { %v2167_v10 = vsel %vm5177_vm1, %v4726_v4, %v2156_v51  ;;  %v2168_v25 = vsel %vm5178_vm13, %v2156_v51, %v2158_v28  ;;  %vm5183_vm1 = vcmask 490496  }
 0x53a   : > { %2488 = vmatprep.subr.bf16.mxu0 %v2168_v25  ;;  %vm5184_vm13 = vmmov %vm5183_vm1 }
 0x53b   : > { %2489 = vmatpush1.bf16.msra.mxu0 %v2167_v10 }
 0x53c   : > { %v4785_v22 = vpop.permute.xlu0 %2192  ;;  %v2191_v40 = vpop.permute.xlu1 %2190 }
 0x53d   : > { %v2202_v7 = vsel %vm5179_vm14, %v4737_v45, %v2191_v40  ;;  %v2203_v0 = vsel %vm5180_vm5, %v2191_v40, %v4785_v22  ;;  %vm5185_vm14 = vcmask 482304  }
 0x53e   : > { %2490 = vmatprep.subr.bf16.mxu0 %v2203_v0  ;;  %vm5186_vm5 = vmmov %vm5185_vm14 }
 0x53f   : > { %2491 = vmatpush1.bf16.msra.mxu0 %v2202_v7 }
 0x540   : > { %v4791_v23 = vpop.permute.xlu0 %2227  ;;  %v2226_v1 = vpop.permute.xlu1 %2225 }
 0x541   : > { %v2237_v55 = vsel %vm5181_vm6, %v2224_v54, %v2226_v1  ;;  %v2238_v4 = vsel %vm5182_vm0, %v2226_v1, %v4791_v23  ;;  %vm5187_vm6 = vcmask 474112  }
 0x542   : > { %2492 = vmatprep.subr.bf16.mxu0 %v2238_v4  ;;  %vm5188_vm0 = vmmov %vm5187_vm6 }
 0x543   : > { %2493 = vmatpush1.bf16.msra.mxu0 %v2237_v55 }
 0x544   : > { %v4796_v52 = vpop.permute.xlu0 %2272  ;;  %v2271_v42 = vpop.permute.xlu1 %2270 }
 0x545   : > { %v2284_v15 = vsel %vm5183_vm1, %v2269_v19, %v2271_v42  ;;  %v2285_v24 = vsel %vm5184_vm13, %v2271_v42, %v4796_v52  ;;  %vm5189_vm1 = vcmask 130048   ;;  %vm5190_vm13 = vcmask 1039360  }
 0x546   : > { %2494 = vmatprep.subr.bf16.mxu0 %v2285_v24 }
 0x547   : > { %2495 = vmatpush1.bf16.msra.mxu0 %v2284_v15 }
 0x548   : > { %v4801_v36 = vpop.permute.xlu0 %2310  ;;  %v2309_v45 = vpop.permute.xlu1 %2308 }
 0x549   : > { %v2322_v60 = vsel %vm5185_vm14, %v2307_v9, %v2309_v45  ;;  %v2323_v59 = vsel %vm5186_vm5, %v2309_v45, %v4801_v36  ;;  %vm5191_vm14 = vmmov %vm5190_vm13  ;;  %vm5192_vm5 = vcmask 1031168  }
 0x54a   : > { %2496 = vmatprep.subr.bf16.mxu0 %v2323_v59 }
 0x54b   : > { %2497 = vmatpush1.bf16.msra.mxu0 %v2322_v60 }
 0x54c   : > { %v4806_v35 = vpop.permute.xlu0 %2348  ;;  %v2347_v16 = vpop.permute.xlu1 %2346 }
 0x54d   : > { %v2360_v41 = vsel %vm5187_vm6, %v2345_v61, %v2347_v16  ;;  %v2361_v54 = vsel %vm5188_vm0, %v2347_v16, %v4806_v35  ;;  %vm5194_vm6 = vcmask 769024  }
 0x54e   : > { %2498 = vmatprep.subr.bf16.mxu0 %v2361_v54  ;;  %vm5195_vm0 = vmmov %vm5194_vm6 }
 0x54f   : > { %2499 = vmatpush1.bf16.msra.mxu0 %v2360_v41 }
 0x550   : > { %v2313_v27 = vpop.permute.xlu0 %2312  ;;  %v2279_v43 = vpop.permute.xlu1 %2278  ;;  %2568 = vmatprep.subr.bf16.mxu0 %v3331_v6 }
 0x552   : > { %2515 = vmatmul.mubr.bf16.vlgmr.msra.gmra.mrb[24].mxu0 %v4752_v58 }
 0x553   : > { %3053 = vmatpush1.bf16.msk.msra.mxu0 %vm4381_vm11, %v3052_v50  ;;  %3017 = vmatprep.mubr.msk.bf16.mxu0 %vm5189_vm1, %v4524_v47  ;;  %vm5193_vm11 = vmmov %vm5192_vm5  ;;  %vm5196_vm1 = vcmask 760832  }
 0x554   : > { %v2092_v8 = vpop.permute.xlu0 %2091  ;;  %v2090_v19 = vpop.permute.xlu1 %2089  ;;  %2570 = vmatprep.subr.bf16.mxu0 %v3331_v6 }
 0x555   : > { %v2099_v3 = vsel %vm5190_vm13, %v2088_v30, %v2090_v19  ;;  %v2100_v14 = vsel %vm5191_vm14, %v2090_v19, %v2092_v8  ;;  %vm5197_vm13 = vmmov %vm5196_vm1  ;;  %vm5198_vm14 = vcmask 752640  }
 0x556   : > { %2527 = vmatprep.subr.bf16.mxu1 %v2100_v14 }
 0x557   : > { %2528 = vmatpush1.bf16.msra.mxu1 %v2099_v3  ;;  %2571 = vmatpush1.bf16.msra.mxu0 %v2092_v8 }
 0x558   : > { %v2127_v37 = vpop.permute.xlu0 %2126  ;;  %v2125_v9 = vpop.permute.xlu1 %2124  ;;  %2572 = vmatprep.subr.bf16.mxu0 %v3331_v6 }
 0x559   : > { %v2134_v62 = vsel %vm5192_vm5, %v2123_v26, %v2125_v9  ;;  %v2135_v39 = vsel %vm5193_vm11, %v2125_v9, %v2127_v37  ;;  %vm5199_vm5 = vmmov %vm5198_vm14  ;;  %vm5200_vm11 = vcmask 490496  }
 0x55a   : > { %2529 = vmatprep.subr.bf16.mxu1 %v2135_v39 }
 0x55b   : > { %2530 = vmatpush1.bf16.msra.mxu1 %v2134_v62  ;;  %2573 = vmatpush1.bf16.msra.mxu0 %v2127_v37 }
 0x55c   : > { %v2162_v47 = vpop.permute.xlu0 %2161  ;;  %v2160_v33 = vpop.permute.xlu1 %2159  ;;  %2574 = vmatprep.subr.bf16.mxu0 %v3331_v6 }
 0x55d   : > { %v2169_v50 = vsel %vm5194_vm6, %v2158_v28, %v2160_v33  ;;  %v2170_v49 = vsel %vm5195_vm0, %v2160_v33, %v2162_v47  ;;  %vm5201_vm6 = vmmov %vm5200_vm11 }
 0x55e   : > { %2531 = vmatprep.subr.bf16.mxu1 %v2170_v49  ;;  %vm5202_vm0 = vmmov %vm5201_vm6 }
 0x55f   : > { %2532 = vmatpush1.bf16.msra.mxu1 %v2169_v50  ;;  %2575 = vmatpush1.bf16.msra.mxu0 %v2162_v47 }
 0x560   : > { %v2197_v57 = vpop.permute.xlu0 %2196  ;;  %v2195_v29 = vpop.permute.xlu1 %2194  ;;  %2576 = vmatprep.subr.bf16.mxu0 %v3331_v6 }
 0x561   : > { %v2204_v61 = vsel %vm5196_vm1, %v4785_v22, %v2195_v29  ;;  %v2205_v32 = vsel %vm5197_vm13, %v2195_v29, %v2197_v57  ;;  %vm5203_vm1 = vcmask 482304  }
 0x562   : > { %2533 = vmatprep.subr.bf16.mxu1 %v2205_v32  ;;  %vm5204_vm13 = vmmov %vm5203_vm1 }
 0x563   : > { %2534 = vmatpush1.bf16.msra.mxu1 %v2204_v61  ;;  %2577 = vmatpush1.bf16.msra.mxu0 %v2197_v57 }
 0x564   : > { %v2232_v38 = vpop.permute.xlu0 %2231  ;;  %v2230_v46 = vpop.permute.xlu1 %2229  ;;  %2578 = vmatprep.subr.bf16.mxu0 %v3331_v6 }
 0x565   : > { %v2239_v30 = vsel %vm5198_vm14, %v4791_v23, %v2230_v46  ;;  %v2240_v18 = vsel %vm5199_vm5, %v2230_v46, %v2232_v38  ;;  %vm5205_vm14 = vmmov %vm5203_vm1  ;;  %vm5206_vm5 = vcmask 474112  }
 0x566   : > { %2535 = vmatprep.subr.bf16.mxu1 %v2240_v18  ;;  %v2324_v25 = vsel %vm5205_vm14, %v4801_v36, %v2313_v27 }
 0x567   : > { %2536 = vmatpush1.bf16.msra.mxu1 %v2239_v30  ;;  %2579 = vmatpush1.bf16.msra.mxu0 %v2232_v38 }
 0x568   : > { %v2277_v20 = vpop.permute.xlu0 %2276  ;;  %v2275_v26 = vpop.permute.xlu1 %2274  ;;  %2580 = vmatprep.subr.bf16.mxu0 %v3331_v6 }
 0x569   : > { %v2288_v53 = vsel %vm5200_vm11, %v2277_v20, %v2279_v43  ;;  %v2286_v63 = vsel %vm5201_vm6, %v4796_v52, %v2275_v26  ;;  %v2287_v34 = vsel %vm5202_vm0, %v2275_v26, %v2277_v20  ;;  %vm5207_vm11 = vmmov %vm5206_vm5  ;;  %vm5209_vm0 = vcmask 760832  }
 0x56a   : > { %2537 = vmatprep.subr.bf16.mxu1 %v2287_v34  ;;  %vm5208_vm6 = vmmov %vm5206_vm5 }
 0x56b   : > { %2538 = vmatpush1.bf16.msra.mxu1 %v2286_v63  ;;  %2581 = vmatpush1.bf16.msra.mxu0 %v2288_v53  ;;  %vm5212_vm14 = vmmov %vm5209_vm0 }
 0x56c   : > { %v2317_v5 = vpop.permute.xlu0 %2316  ;;  %v2315_v28 = vpop.permute.xlu1 %2314  ;;  %2582 = vmatprep.subr.bf16.mxu0 %v3331_v6 }
 0x56d   : > { %v2326_v51 = vsel %vm5203_vm1, %v2315_v28, %v2317_v5  ;;  %v2325_v10 = vsel %vm5204_vm13, %v2313_v27, %v2315_v28  ;;  %vm5210_vm1 = vmmov %vm5209_vm0 }
 0x56e   : > { %2539 = vmatprep.subr.bf16.mxu1 %v2325_v10  ;;  %vm5211_vm13 = vmmov %vm5209_vm0 }
 0x56f   : > { %2540 = vmatpush1.bf16.msra.mxu1 %v2324_v25  ;;  %2583 = vmatpush1.bf16.msra.mxu0 %v2326_v51 }
 0x570   : > { %v2353_v22 = vpop.permute.xlu0 %2352  ;;  %v2351_v40 = vpop.permute.xlu1 %2350  ;;  %2584 = vmatprep.subr.bf16.mxu0 %v3331_v6 }
 0x571   : > { %v2362_v7 = vsel %vm5206_vm5, %v4806_v35, %v2351_v40  ;;  %v2363_v0 = vsel %vm5207_vm11, %v2351_v40, %v2353_v22  ;;  %vm5213_vm5 = vmmov %vm5209_vm0 }
 0x572   : > { %2541 = vmatprep.subr.bf16.mxu1 %v2363_v0  ;;  %vm5214_vm11 = vmmov %vm5209_vm0 }
 0x573   : > { %2542 = vmatpush1.bf16.msra.mxu1 %v2362_v7 }
 0x575   : > { %v2355_v23 = vpop.permute.xlu1 %2354 }
 0x576   : > { %v2364_v1 = vsel %vm5208_vm6, %v2353_v22, %v2355_v23  ;;  %2558 = vmatmul.mubr.bf16.vlgmr.msra.gmra.mrb[24].mxu1 %v4752_v58  ;;  %vm5215_vm6 = vmmov %vm5209_vm0 }
 0x577   : > { %2585 = vmatpush1.bf16.msra.mxu0 %v2364_v1 }
 0x57a   : > { %2601 = vmatmul.mubr.bf16.vlgmr.msra.gmra.mrb[28].mxu0 %v4752_v58 }
 0x581   : > { %v4854_v55 = vpop.permute.xlu0 %2376 }
 0x585   : > { %v4856_v4 = vpop.permute.xlu0 %3208 }
 0x586   : > { %v4858_v6 = vpop.permute.xlu1 %2381 }
 0x589   : > { %v3219_v52 = vpop.permute.xlu0 %3218 }
 0x58a   : > { %v4860_v42 = vpop.permute.xlu1 %3213  ;;  %v3221_v35 = vunpack.i.h.bf16 %v3219_v52  ;;  %v3220_v16 = vunpack.i.l.bf16 %v3219_v52 }
 0x58b   : > { %v3216_v13 = vunpack.i.h.bf16 %v4860_v42 }
 0x58c   : > { %v2664_v8 = vsel %vm5210_vm1, %v3220_v16, %v3221_v35  ;;  %vm5218_vm1 = vmmov %vm5209_vm0 }
 0x58d   : > { %v4862_v15 = vpop.permute.xlu0 %3228 }
 0x58e   : > { %v3224_v24 = vpop.permute.xlu1 %3223  ;;  %v3230_v30 = vunpack.i.l.bf16 %v4862_v15 }
 0x58f   : > { %v3225_v41 = vunpack.i.l.bf16 %v3224_v24  ;;  %v3226_v46 = vunpack.i.h.bf16 %v3224_v24 }
 0x591   : > { %v3239_v36 = vpop.permute.xlu0 %3238  ;;  %v2665_v37 = vsel %vm5211_vm13, %v3221_v35, %v3225_v41  ;;  %v2666_v28 = vsel %vm5213_vm5, %v3225_v41, %v3226_v46  ;;  %v2667_v22 = vsel %vm5214_vm11, %v3226_v46, %v3230_v30  ;;  %vm5219_vm13 = vmmov %vm5209_vm0 }
 0x592   : > { %v3240_v45 = vunpack.i.l.bf16 %v3239_v36  ;;  %v4864_v60 = vpop.permute.xlu1 %3233  ;;  %v3241_v61 = vunpack.i.h.bf16 %v3239_v36  ;;  %vm5223_vm5 = vmmov %vm5209_vm0 }
 0x593   : > { %v3236_v59 = vunpack.i.h.bf16 %v4864_v60 }
 0x594   : > { %v2673_v20 = vsel %vm5212_vm14, %v3240_v45, %v3241_v61  ;;  %vm5222_vm14 = vmmov %vm5209_vm0 }
 0x595   : > { %v2672_v58 = vsel %vm5209_vm0, %v3236_v59, %v3240_v45 }
 0x596   : > { %v3244_v32 = vpop.permute.xlu1 %3243 }
 0x597   : > { %v3245_v18 = vunpack.i.l.bf16 %v3244_v32  ;;  %v3246_v26 = vunpack.i.h.bf16 %v3244_v32 }
 0x599   : > { %v2674_v23 = vsel %vm5215_vm6, %v3241_v61, %v3245_v18  ;;  %v2675_v45 = vsel %vm5209_vm0, %v3245_v18, %v3246_v26 }
 0x5f5   : > { %v2430_v54 = vpop.f32.mrb[20].mxu0 }
 0x5f6   : > { %v2431_v27 = vadd.f32 %v2430_v54, %v4854_v55  ;;  %v2432_v43 = vpop.f32.mrb[21].mxu0 }
 0x5f7   : > { %v2433_v19 = vadd.f32 %v2432_v43, %v4854_v55  ;;  %v2434_v3 = vpop.f32.mrb[22].mxu0 }
 0x5f8   : > { %v2698_v14 = vadd.f32 %v2664_v8, %v2431_v27  ;;  %v2435_v9 = vadd.f32 %v2434_v3, %v4858_v6  ;;  %v2436_v62 = vpop.f32.mrb[23].mxu0  ;;  %v3231_v3 = vunpack.i.h.bf16 %v4862_v15 }
 0x5f9   : > { %v2699_v39 = vadd.f32 %v2665_v37, %v2433_v19  ;;  %v2437_v38 = vadd.f32 %v2436_v62, %v4858_v6  ;;  %v3249_v19 = vpop.permute.xlu0 %3248 }
 0x5fa   : > { %v2716_v47 = vmax.f32 %v2698_v14, 0.0  ;;  %v4873_v33 = vadd.f32 %v2672_v58, %v2435_v9  ;;  %v3235_v14 = vunpack.i.l.bf16 %v4864_v60  ;;  %v3250_v37 = vunpack.i.l.bf16 %v3249_v19 }
 0x5fb   : > { %v2717_v50 = vmax.f32 %v2699_v39, 0.0  ;;  %v2708_v63 = vadd.f32 %v2673_v20, %v2437_v38 }
 0x5fc   : > { %v2734_v49 = vsel %vm3795_vm9, %v2716_v47, 0.0  ;;  %v2676_v15 = vsel %vm5218_vm1, %v3246_v26, %v3250_v37  ;;  %v3251_v26 = vunpack.i.h.bf16 %v3249_v19 }
 0x5fd   : > { %v2735_v57 = vsel %vm3799_vm10, %v2717_v50, 0.0  ;;  %v2726_v52 = vmax.f32 %v2708_v63, 0.0 }
 0x5fe   : > { %v3252_v29 = vpack.i.bf16 %v2735_v57, %v2734_v49 }
 0x5ff   : > { %v2744_v54 = vsel %vm3799_vm10, %v2726_v52, 0.0  ;;  %vm5216_vm10 = vmmov %vm5209_vm0 }
 0x600   : > { %3253 = vrot.lane.b32.xlu1 %v3252_v29, %s3334_s21  ;;  %v2668_v39 = vsel %vm5216_vm10, %v3230_v30, %v3231_v3 }
 0x606   : > { %v2473_v53 = vpop.f32.mrb[20].mxu1 }
 0x607   : > { %v2474_v34 = vadd.f32 %v2473_v53, %v4854_v55  ;;  %v2475_v5 = vpop.f32.mrb[21].mxu1 }
 0x608   : > { %v2476_v51 = vadd.f32 %v2475_v5, %v4854_v55  ;;  %v2477_v10 = vpop.f32.mrb[22].mxu1 }
 0x609   : > { %v2700_v25 = vadd.f32 %v2666_v28, %v2474_v34  ;;  %v2478_v40 = vadd.f32 %v2477_v10, %v4858_v6  ;;  %v2479_v7 = vpop.f32.mrb[23].mxu1  ;;  %v3210_v10 = vunpack.i.l.bf16 %v4856_v4 }
 0x60a   : > { %v2701_v0 = vadd.f32 %v2667_v22, %v2476_v51  ;;  %v2480_v1 = vadd.f32 %v2479_v7, %v4858_v6  ;;  %v3211_v51 = vunpack.i.h.bf16 %v4856_v4 }
 0x60b   : > { %v2718_v24 = vmax.f32 %v2700_v25, 0.0  ;;  %v2709_v36 = vadd.f32 %v2674_v23, %v2478_v40  ;;  %v2677_v25 = vsel %vm5219_vm13, %v3250_v37, %v3251_v26  ;;  %v3215_v40 = vunpack.i.l.bf16 %v4860_v42 }
 0x60c   : > { %v2719_v59 = vmax.f32 %v2701_v0, 0.0  ;;  %v2710_v58 = vadd.f32 %v2675_v45, %v2480_v1 }
 0x60d   : > { %v2736_v35 = vsel %vm3842_vm12, %v2718_v24, 0.0  ;;  %v2727_v16 = vmax.f32 %v2709_v36, 0.0  ;;  %v2725_v24 = vmax.f32 %v4873_v33, 0.0  ;;  %v2678_v42 = vsel %vm5222_vm14, %v3251_v26, %v3215_v40 }
 0x60e   : > { %v2737_v41 = vsel %vm3860_vm7, %v2719_v59, 0.0  ;;  %v2728_v60 = vmax.f32 %v2710_v58, 0.0  ;;  %v2679_v33 = vsel %vm5223_vm5, %v3215_v40, %v3216_v13 }
 0x60f   : > { %v3257_v27 = vpack.i.bf16 %v2737_v41, %v2736_v35  ;;  %v2745_v43 = vsel %vm3842_vm12, %v2727_v16, 0.0  ;;  %vm5217_vm12 = vmmov %vm5209_vm0 }
 0x610   : > { %v3262_v8 = vpack.i.bf16 %v2745_v43, %v2744_v54  ;;  %v2669_v49 = vsel %vm5217_vm12, %v3231_v3, %v3235_v14  ;;  %v2746_v53 = vsel %vm3860_vm7, %v2728_v60, 0.0  ;;  %vm5220_vm7 = vmmov %vm5209_vm0 }
 0x611   : > { %3258 = vrot.lane.b32.xlu0 %v3257_v27, %s3334_s21  ;;  %v2670_v23 = vsel %vm5220_vm7, %v3235_v14, %v3210_v10  ;;  %vm5236_vm7 = vcmask 793600  }
 0x612   : > { %3263 = vrot.lane.b32.xlu1 %v3262_v8, %s3334_s21 }
 0x625   : > { %v2516_v9 = vpop.f32.mrb[24].mxu0 }
 0x626   : > { %v2517_v62 = vadd.f32 %v2516_v9, %v4854_v55  ;;  %v2518_v48 = vpop.f32.mrb[25].mxu0 }
 0x627   : > { %v2519_v31 = vadd.f32 %v2518_v48, %v4854_v55  ;;  %v2520_v47 = vpop.f32.mrb[26].mxu0  ;;  %v2743_v48 = vsel %vm3795_vm9, %v2725_v24, 0.0  ;;  %vm5224_vm9 = vcmask 285696  }
 0x628   : > { %v2702_v50 = vadd.f32 %v2668_v39, %v2517_v62  ;;  %v2521_v57 = vadd.f32 %v2520_v47, %v4858_v6  ;;  %v2522_v29 = vpop.f32.mrb[27].mxu0 }
 0x629   : > { %v2703_v61 = vadd.f32 %v2669_v49, %v2519_v31  ;;  %v2523_v28 = vadd.f32 %v2522_v29, %v4858_v6 }
 0x62a   : > { %v2720_v32 = vmax.f32 %v2702_v50, 0.0  ;;  %v2711_v38 = vadd.f32 %v2676_v15, %v2521_v57 }
 0x62b   : > { %v2721_v46 = vmax.f32 %v2703_v61, 0.0  ;;  %v2712_v7 = vadd.f32 %v2677_v25, %v2523_v28 }
 0x62c   : > { %v2738_v18 = vsel %vm3864_vm8, %v2720_v32, 0.0  ;;  %v2729_v30 = vmax.f32 %v2711_v38, 0.0 }
 0x62d   : > { %v2739_v20 = vsel %vm3925_vm15, %v2721_v46, 0.0  ;;  %v2730_v27 = vmax.f32 %v2712_v7, 0.0 }
 0x62e   : > { %v3267_v63 = vpack.i.bf16 %v2739_v20, %v2738_v18  ;;  %v2747_v34 = vsel %vm3864_vm8, %v2729_v30, 0.0  ;;  %vm5221_vm8 = vmmov %vm5209_vm0 }
 0x62f   : > { %v3287_v5 = vpack.i.bf16 %v2747_v34, %v2746_v53  ;;  %v2671_v4 = vsel %vm5221_vm8, %v3210_v10, %v3211_v51  ;;  %v2748_v50 = vsel %vm3925_vm15, %v2730_v27, 0.0  ;;  %vm5225_vm15 = vmmov %vm5224_vm9 }
 0x630   : > { %3268 = vrot.lane.b32.xlu1 %v3267_v63, %s3334_s21  ;;  %vm5237_vm8 = vmmov %vm5236_vm7 }
 0x649   : > { %v2559_v22 = vpop.f32.mrb[24].mxu1 }
 0x64a   : > { %v2560_v21 = vadd.f32 %v2559_v22, %v4854_v55  ;;  %v2561_v0 = vpop.f32.mrb[25].mxu1 }
 0x64b   : > { %v2562_v1 = vadd.f32 %v2561_v0, %v4854_v55  ;;  %v2563_v52 = vpop.f32.mrb[26].mxu1 }
 0x64c   : > { %v2704_v36 = vadd.f32 %v2670_v23, %v2560_v21  ;;  %v2564_v45 = vadd.f32 %v2563_v52, %v4858_v6  ;;  %v2565_v59 = vpop.f32.mrb[27].mxu1 }
 0x64d   : > { %v2602_v58 = vpop.f32.mrb[28].mxu0  ;;  %v2705_v35 = vadd.f32 %v2671_v4, %v2562_v1  ;;  %v2566_v16 = vadd.f32 %v2565_v59, %v4858_v6 }
 0x64e   : > { %v2603_v41 = vadd.f32 %v2602_v58, %v4854_v55  ;;  %v2604_v54 = vpop.f32.mrb[29].mxu0  ;;  %v2722_v43 = vmax.f32 %v2704_v36, 0.0  ;;  %v2713_v8 = vadd.f32 %v2678_v42, %v2564_v45 }
 0x64f   : > { %v2605_v19 = vpop.f32.mrb[30].mxu0  ;;  %v2723_v3 = vmax.f32 %v2705_v35, 0.0  ;;  %v2714_v14 = vadd.f32 %v2679_v33, %v2566_v16 }
 0x650   : > { %v2706_v37 = vadd.f32 %v3211_v51, %v2603_v41  ;;  %v2606_v9 = vadd.f32 %v2605_v19, %v4858_v6  ;;  %v2607_v62 = vpop.f32.mrb[31].mxu0  ;;  %v2740_v39 = vsel %vm3930_vm4, %v2722_v43, 0.0  ;;  %v2731_v55 = vmax.f32 %v2713_v8, 0.0 }
 0x651   : > { %v3272_v31 = vpack.i.bf16 %v2743_v48, %v2740_v39  ;;  %v2732_v57 = vmax.f32 %v2714_v14, 0.0  ;;  %v2741_v6 = vsel %vm3948_vm2, %v2723_v3, 0.0 }
 0x652   : > { %v2724_v47 = vmax.f32 %v2706_v37, 0.0  ;;  %v2749_v49 = vsel %vm3930_vm4, %v2731_v55, 0.0  ;;  %v2715_v29 = vadd.f32 %v3216_v13, %v2606_v9  ;;  %vm5226_vm4 = vmmov %vm5224_vm9 }
 0x653   : > { %v3292_v12 = vpack.i.bf16 %v2749_v49, %v2748_v50  ;;  %3273 = vrot.lane.b32.xlu0 %v3272_v31, %s3334_s21  ;;  %v2750_v44 = vsel %vm3948_vm2, %v2732_v57, 0.0  ;;  %vm5227_vm2 = vmmov %vm5226_vm4 }
 0x654   : > { %v2742_v61 = vsel %vm3952_vm3, %v2724_v47, 0.0  ;;  %v2733_v60 = vmax.f32 %v2715_v29, 0.0  ;;  %vm5229_vm11 = vmmov %vm5227_vm2 }
 0x655   : > { %v3277_v15 = vpack.i.bf16 %v2742_v61, %v2741_v6  ;;  %vm5230_vm6 = vmmov %vm5227_vm2 }
 0x656   : > { %v2751_v11 = vsel %vm3952_vm3, %v2733_v60, 0.0  ;;  %vm5228_vm3 = vmmov %vm5227_vm2 }
 0x657   : > { %3278 = vrot.lane.b32.xlu1 %v3277_v15, %s3334_s21  ;;  %v3282_v32 = vpack.i.bf16 %v2751_v11, %v2750_v44  ;;  %vm5231_vm0 = vmmov %vm5227_vm2 }
 0x658   : > { %vm5232_vm10 = vmmov %vm5231_vm0 }
 0x659   : > { %3283 = vrot.lane.b32.xlu0 %v3282_v32, %s3334_s21  ;;  %vm5233_vm12 = vmmov %vm5231_vm0 }
 0x65a   : > { %vm5234_vm1 = vmmov %vm5231_vm0 }
 0x65b   : > { %3293 = vrot.lane.b32.xlu1 %v3292_v12, %s3334_s21  ;;  %vm5235_vm13 = vmmov %vm5231_vm0 }
 0x65c   : > { %vm5238_vm14 = vmmov %vm5231_vm0 }
 0x65d   : > { %3288 = vrot.lane.b32.xlu0 %v3287_v5, %s3334_s21  ;;  %vm5239_vm5 = vmmov %vm5231_vm0 }
 0x672   : > { %v3254_v38 = vpop.permute.xlu1 %3253 }
 0x673   : > { %v3256_v46 = vunpack.i.h.bf16 %v3254_v38  ;;  %v3255_v18 = vunpack.i.l.bf16 %v3254_v38 }
 0x675   : > { %v2806_v56 = vsel %vm5224_vm9, %v3255_v18, %v3256_v46  ;;  %v2840_v2 = vsel %vm5225_vm15, 0.0, %v3255_v18  ;;  %vm5240_vm9 = vmmov %vm5231_vm0 }
 0x676   : > { %v3030_v30 = vpack.c.bf16 %v2806_v56, %v2840_v2  ;;  %vm5241_vm15 = vmmov %vm5231_vm0 }
 0x678   : > { %2903 = vst [vmem:[%s4960_s20] sm:$0xff] %v3030_v30 }
 0x683   : > { %v3259_v20 = vpop.permute.xlu0 %3258 }
 0x684   : > { %v3261_v53 = vunpack.i.h.bf16 %v3259_v20  ;;  %v3260_v63 = vunpack.i.l.bf16 %v3259_v20  ;;  %v3264_v28 = vpop.permute.xlu1 %3263 }
 0x685   : > { %v3265_v21 = vunpack.i.l.bf16 %v3264_v28  ;;  %v3266_v43 = vunpack.i.h.bf16 %v3264_v28 }
 0x686   : > { %v2807_v34 = vsel %vm5226_vm4, %v3256_v46, %v3260_v63  ;;  %v2808_v5 = vsel %vm5227_vm2, %v3260_v63, %v3261_v53  ;;  %vm5242_vm4 = vmmov %vm5231_vm0 }
 0x687   : > { %v3031_v26 = vpack.c.bf16 %v2808_v5, %v2807_v34  ;;  %v2815_v47 = vsel %vm5240_vm9, %v3265_v21, %v3266_v43  ;;  %vm5243_vm2 = vmmov %vm5231_vm0 }
 0x689   : > { %2904 = vst [vmem:[%s4960_s20 + $0x8] sm:$0xff] %v3031_v26 }
 0x6a2   : > { %v3269_v51 = vpop.permute.xlu1 %3268 }
 0x6a3   : > { %v3271_v10 = vunpack.i.h.bf16 %v3269_v51  ;;  %v3270_v25 = vunpack.i.l.bf16 %v3269_v51 }
 0x6a5   : > { %v2809_v22 = vsel %vm5228_vm3, %v3261_v53, %v3270_v25  ;;  %v2810_v13 = vsel %vm5229_vm11, %v3270_v25, %v3271_v10 }
 0x6a6   : > { %v3032_v40 = vpack.c.bf16 %v2810_v13, %v2809_v22 }
 0x6a8   : > { %2905 = vst [vmem:[%s4960_s20 + $0x10] sm:$0xff] %v3032_v40 }
 0x6c5   : > { %v3274_v7 = vpop.permute.xlu0 %3273 }
 0x6c6   : > { %v3276_v0 = vunpack.i.h.bf16 %v3274_v7  ;;  %v3275_v23 = vunpack.i.l.bf16 %v3274_v7 }
 0x6c8   : > { %v2841_v1 = vsel %vm5230_vm6, 0.0, %v3276_v0  ;;  %v2814_v52 = vsel %vm5231_vm0, %v3276_v0, %v3265_v21  ;;  %v2811_v59 = vsel %vm5232_vm10, %v3271_v10, %v3275_v23 }
 0x6c9   : > { %v3279_v24 = vpop.permute.xlu1 %3278  ;;  %v3034_v36 = vpack.c.bf16 %v2814_v52, %v2841_v1 }
 0x6ca   : > { %v3281_v4 = vunpack.i.h.bf16 %v3279_v24  ;;  %v3280_v45 = vunpack.i.l.bf16 %v3279_v24 }
 0x6cb   : > { %2908 = vst [vmem:[%s4960_s20 + $0x28] sm:$0xff] %v3034_v36  ;;  %v3284_v35 = vpop.permute.xlu0 %3283 }
 0x6cc   : > { %v2812_v58 = vsel %vm5233_vm12, %v3275_v23, %v3280_v45  ;;  %v2813_v42 = vsel %vm5234_vm1, %v3280_v45, %v3281_v4  ;;  %v3286_v41 = vunpack.i.h.bf16 %v3284_v35  ;;  %v3285_v54 = vunpack.i.l.bf16 %v3284_v35 }
 0x6cd   : > { %v3033_v16 = vpack.c.bf16 %v2812_v58, %v2811_v59  ;;  %v3294_v27 = vpop.permute.xlu1 %3293  ;;  %v2842_v3 = vsel %vm5236_vm7, %v2813_v42, 0.0 }
 0x6ce   : > { %v3296_v8 = vunpack.i.h.bf16 %v3294_v27  ;;  %v3295_v33 = vunpack.i.l.bf16 %v3294_v27  ;;  %v2821_v19 = vsel %vm5235_vm13, %v3285_v54, %v3286_v41 }
 0x6cf   : > { %2906 = vst [vmem:[%s4960_s20 + $0x18] sm:$0xff] %v3033_v16  ;;  %v2843_v14 = vsel %vm5237_vm8, %v2821_v19, 0.0  ;;  %v3289_v62 = vpop.permute.xlu0 %3288 }
 0x6d0   : > { %v2820_v37 = vsel %vm5238_vm14, %v3296_v8, %v3285_v54  ;;  %v2819_v9 = vsel %vm5239_vm5, %v3295_v33, %v3296_v8  ;;  %v2852_v48 = vpack.c.bf16 %v2843_v14, %v2842_v3  ;;  %v3291_v55 = vunpack.i.h.bf16 %v3289_v62 }
 0x6d1   : > { %v3037_v39 = vpack.c.bf16 %v2820_v37, %v2819_v9  ;;  %v3290_v31 = vunpack.i.l.bf16 %v3289_v62 }
 0x6d2   : > { %v3022_v50 = vcombine.low %v2852_v48, %v3335_v17  ;;  %v3027_v49 = vcombine.high %v2852_v48, %v3335_v17  ;;  %v2818_v6 = vsel %vm5243_vm2, %v3291_v55, %v3295_v33 }
 0x6d3   : > { %2911 = vst [vmem:[%s4960_s20 + $0x40] sm:$0xff] %v3037_v39  ;;  %v2816_v57 = vsel %vm5241_vm15, %v3266_v43, %v3290_v31  ;;  %v2817_v29 = vsel %vm5242_vm4, %v3290_v31, %v3291_v55 }
 0x6d4   : > { %v3035_v12 = vpack.c.bf16 %v2816_v57, %v2815_v47  ;;  %2907 = vst [vmem:[%s4960_s20 + $0x20] sm:$0xff] %v3022_v50  ;;  %2912 = vst [vmem:[%s4960_s20 + $0x48] sm:$0xff] %v3027_v49  ;;  %v3036_v61 = vpack.c.bf16 %v2818_v6, %v2817_v29 }
 0x6d6   : > { %2909 = vst [vmem:[%s4960_s20 + $0x30] sm:$0xff] %v3035_v12  ;;  %2910 = vst [vmem:[%s4960_s20 + $0x38] sm:$0xff] %v3036_v61 }
 0x6d7 PF: > { %s17_s24 = sadd.s32 1, %s3321_s24  }
 0x6d8   : > { %p14_p4 = scmp.ge.s32.totalorder %s17_s24, 4  }
 0x6da   :  { %16 = sbr.rel (!%p14_p4) target bundleno = 1 (0x1), region = 78 }

// kernel: mapping_layer_forward.7
= control target key start
LH: loop header
LB: loop body
LE: loop exit
PB: predicated region body
PF: predicated region fallthrough
CT: control target
= control target key end

     0   :  { %s634_s0 = inlined_call_operand.vmem [shape: bf16[2,64,128], index: 0, kind: input, shape index: {}]   ;;  %s635_s1 = inlined_call_operand.vmem [shape: f32[16,64], index: 1, kind: input, shape index: {}]   ;;  %s636_s2 = inlined_call_operand.vmem [shape: f32[1,16], index: 2, kind: input, shape index: {}]   ;;  %s637_s3 = inlined_call_operand.vmem [shape: f32[10,16], index: 3, kind: input, shape index: {}]   ;;  %s638_s4 = inlined_call_operand.vmem [shape: f32[1,10], index: 4, kind: input, shape index: {}]   ;;  %s639_s5 = inlined_call_operand.hbm [shape: f32[2,10], index: 5, kind: output, shape index: {}]  }
   0x1   :  { %v466_v0 = vld [vmem:[%s634_s0 + $0x20] sm:$0xff]  }
   0x2   :  { %v432_v1 = vld [vmem:[%s634_s0] sm:$0xff]   ;;  %v449_v2 = vunpack.c.l.bf16 %v466_v0 }
   0x3   :  { %v433_v3 = vunpack.c.l.bf16 %v432_v1 }
   0x4   :  { %10 = vsyncpa [#allocation3], 0  ;;  %69 = vadd.xlane.f32.xlu1 %v449_v2  ;;  %v450_v4 = vunpack.c.h.bf16 %v466_v0  ;;  %v434_v5 = vunpack.c.h.bf16 %v432_v1  ;;  %v467_v6 = vld [vmem:[%s634_s0 + $0x28] sm:$0xff]   ;;  %v468_v12 = vld [vmem:[%s634_s0 + $0x30] sm:$0xff]   ;;  %vm222_vm0 = vcmask 523264   ;;  %v528_v27 = vmov 0.0|0.0  }
   0x5   :  { %53 = vadd.xlane.f32.xlu0 %v433_v3  ;;  %v463_v7 = vld [vmem:[%s634_s0 + $0x8] sm:$0xff]   ;;  %v453_v8 = vunpack.c.l.bf16 %v467_v6  ;;  %v454_v10 = vunpack.c.h.bf16 %v467_v6  ;;  %v464_v13 = vld [vmem:[%s634_s0 + $0x10] sm:$0xff]   ;;  %v457_v14 = vunpack.c.l.bf16 %v468_v12  ;;  %v458_v16 = vunpack.c.h.bf16 %v468_v12  ;;  %v469_v18 = vld [vmem:[%s634_s0 + $0x38] sm:$0xff]   ;;  %490 = vmatprep.subr.bf16.mxu0 %v528_v27 }
   0x6   :  { %v437_v9 = vunpack.c.l.bf16 %v463_v7  ;;  %v438_v11 = vunpack.c.h.bf16 %v463_v7  ;;  %v441_v15 = vunpack.c.l.bf16 %v464_v13  ;;  %v442_v17 = vunpack.c.h.bf16 %v464_v13  ;;  %v465_v19 = vld [vmem:[%s634_s0 + $0x18] sm:$0xff]   ;;  %v101_v24 = vld [vmem:[%s635_s1] sm:$0xff]  ;;  %v102_v25 = vld [vmem:[%s635_s1 + $0x8] sm:$0xff]  ;;  %494 = vmatprep.subr.bf16.mxu1 %v528_v27 }
   0x7   :  { %v461_v20 = vunpack.c.l.bf16 %v469_v18  ;;  %v445_v21 = vunpack.c.l.bf16 %v465_v19  ;;  %v462_v22 = vunpack.c.h.bf16 %v469_v18  ;;  %v446_v23 = vunpack.c.h.bf16 %v465_v19  ;;  %vm492_vm1 = vmpackc.low %vm222_vm0, %vm222_vm0  ;;  %v301_v29 = vld [vmem:[%s637_s3] sm:$0xff]  ;;  %v302_v30 = vld [vmem:[%s637_s3 + $0x8] sm:$0x3] }
   0x8   :  { %71 = vadd.xlane.f32.xlu1 %v450_v4  ;;  %v491_v26 = vpack.c.bf16 %v102_v25, %v101_v24  ;;  %vm529_vm2 = vmmov 0   ;;  %v530_v28 = vmov 0.0   ;;  %vm303_vm3 = vcmask 130048  }
   0x9   :  { %55 = vadd.xlane.f32.xlu0 %v434_v5  ;;  %480 = vmatprep.mubr.msk.f32.mxu0 %vm529_vm2, %v530_v28  ;;  %v495_v31 = vpack.c.bf16 %v302_v30, %v301_v29  ;;  %vm496_vm4 = vmpackc.low %vm303_vm3, %vm303_vm3  ;;  %v126_v36 = vlaneseq  ;;  %vm137_vm5 = vcmask 130112   ;;  %vm144_vm6 = vcmask 195712  }
   0xa   :  { %493 = vmatpush3.bf16.xpose.msk.msra.mxu0 %vm492_vm1, %v491_v26  ;;  %487 = vmatprep.mubr.msk.f32.mxu1 %vm529_vm2, %v530_v28  ;;  %vm151_vm7 = vcmask 261312   ;;  %vm158_vm8 = vcmask 326912   ;;  %vm165_vm9 = vcmask 392512   ;;  %vm172_vm10 = vcmask 458112  }
   0xb   :  { %497 = vmatpush3.bf16.xpose.msk.msra.mxu1 %vm496_vm4, %v495_v31  ;;  %v127_v39 = vand.u32 127, %v126_v36  ;;  %v129_v40 = vshrl.u32 %v126_v36, 7  ;;  %vm179_vm11 = vcmask 523712   ;;  %vm220_vm12 = vcmask 1041409  }
   0xc   :  { %73 = vadd.xlane.f32.xlu1 %v453_v8  ;;  %vm384_vm13 = vcmask 123904  }
   0xd   :  { %57 = vadd.xlane.f32.xlu0 %v437_v9  ;;  %v132_v43 = vadd.s32 4294967288, %v127_v39  ;;  %v139_v44 = vadd.s32 4294967280, %v127_v39  ;;  %v146_v45 = vadd.s32 4294967272, %v127_v39  ;;  %v153_v46 = vadd.s32 4294967264, %v127_v39 }
   0xe   :  { %v130_v47 = vsub.s32 %v127_v39, %v129_v40  ;;  %v160_v52 = vadd.s32 4294967256, %v127_v39  ;;  %v167_v54 = vadd.s32 4294967248, %v127_v39  ;;  %v174_v6 = vadd.s32 4294967240, %v127_v39 }
   0xf   :  { %v135_v50 = vsub.s32 %v132_v43, %v129_v40  ;;  %v142_v51 = vsub.s32 %v139_v44, %v129_v40  ;;  %v149_v53 = vsub.s32 %v146_v45, %v129_v40  ;;  %v156_v57 = vsub.s32 %v153_v46, %v129_v40 }
  0x10   :  { %75 = vadd.xlane.f32.xlu1 %v454_v10  ;;  %v163_v2 = vsub.s32 %v160_v52, %v129_v40  ;;  %v170_v5 = vsub.s32 %v167_v54, %v129_v40 }
  0x11   :  { %59 = vadd.xlane.f32.xlu0 %v438_v11 }
  0x14   :  { %77 = vadd.xlane.f32.xlu1 %v457_v14 }
  0x15   :  { %61 = vadd.xlane.f32.xlu0 %v441_v15 }
  0x18   :  { %79 = vadd.xlane.f32.xlu1 %v458_v16 }
  0x19   :  { %63 = vadd.xlane.f32.xlu0 %v442_v17 }
  0x1c   :  { %81 = vadd.xlane.f32.xlu1 %v461_v20 }
  0x1d   :  { %65 = vadd.xlane.f32.xlu0 %v445_v21 }
  0x20   :  { %83 = vadd.xlane.f32.xlu1 %v462_v22 }
  0x21   :  { %67 = vadd.xlane.f32.xlu0 %v446_v23  ;;  %v177_v23 = vsub.s32 %v174_v6, %v129_v40 }
  0x91   :  { %v70_v32 = vpop.xlane.xlu1 %69 }
  0x92   :  { %v54_v33 = vpop.xlane.xlu0 %53  ;;  %v93_v58 = vmul.f32 0.015625, %v70_v32 }
  0x93   :  { %v85_v59 = vmul.f32 0.015625, %v54_v33 }
  0x94   :  { %v184_v11 = vrot.slane %v93_v58, %v130_v47 }
  0x95   :  { %v72_v34 = vpop.xlane.xlu1 %71  ;;  %v131_v12 = vrot.slane %v85_v59, %v130_v47 }
  0x96   :  { %v56_v35 = vpop.xlane.xlu0 %55  ;;  %v94_v55 = vmul.f32 0.015625, %v72_v34 }
  0x97   :  { %v86_v56 = vmul.f32 0.015625, %v56_v35 }
  0x98   :  { %v188_v7 = vrot.slane %v94_v55, %v135_v50  ;;  %v430_v55 = vld [vmem:[%s638_s4] ss:$0 sm:$0xff] }
  0x99   :  { %v74_v37 = vpop.xlane.xlu1 %73  ;;  %v136_v8 = vrot.slane %v86_v56, %v135_v50 }
  0x9a   :  { %v58_v38 = vpop.xlane.xlu0 %57  ;;  %v95_v60 = vmul.f32 0.015625, %v74_v37  ;;  %v189_v24 = vsel %vm137_vm5, %v188_v7, %v184_v11 }
  0x9b   :  { %v87_v61 = vmul.f32 0.015625, %v58_v38  ;;  %v138_v25 = vsel %vm137_vm5, %v136_v8, %v131_v12 }
  0x9c   :  { %v193_v13 = vrot.slane %v95_v60, %v142_v51 }
  0x9d   :  { %v76_v41 = vpop.xlane.xlu1 %75  ;;  %v143_v14 = vrot.slane %v87_v61, %v142_v51 }
  0x9e   :  { %v60_v42 = vpop.xlane.xlu0 %59  ;;  %v96_v0 = vmul.f32 0.015625, %v76_v41  ;;  %v194_v28 = vsel %vm144_vm6, %v193_v13, %v189_v24 }
  0x9f   :  { %v88_v1 = vmul.f32 0.015625, %v60_v42  ;;  %v145_v29 = vsel %vm144_vm6, %v143_v14, %v138_v25 }
  0xa0   :  { %v198_v17 = vrot.slane %v96_v0, %v149_v53 }
  0xa1   :  { %v78_v48 = vpop.xlane.xlu1 %77  ;;  %v150_v18 = vrot.slane %v88_v1, %v149_v53 }
  0xa2   :  { %v62_v49 = vpop.xlane.xlu0 %61  ;;  %v97_v3 = vmul.f32 0.015625, %v78_v48  ;;  %v199_v34 = vsel %vm151_vm7, %v198_v17, %v194_v28 }
  0xa3   :  { %v89_v4 = vmul.f32 0.015625, %v62_v49  ;;  %v152_v35 = vsel %vm151_vm7, %v150_v18, %v145_v29  ;;  %v423_v49 = vld [vmem:[%s636_s2] ss:$0 sm:$0xff]  ;;  %s531_s2 = smov [#allocation2]  }
  0xa4   :  { %v203_v21 = vrot.slane %v97_v3, %v156_v57  ;;  %s415_s18 = sshll.u32 %s531_s2, 4  ;;  %s416_s18 = int_to_ptr.vmem [resolvable:$true] %s415_s18 }
  0xa5   :  { %v80_v62 = vpop.xlane.xlu1 %79  ;;  %v157_v22 = vrot.slane %v89_v4, %v156_v57  ;;  %s504_s4 = scalar_lea.vmem %s416_s18, 32  ;;  %p509_p1 = scmp.lt.s32.totalorder %s416_s18, %s416_s18 }
  0xa6   :  { %v64_v63 = vpop.xlane.xlu0 %63  ;;  %v98_v9 = vmul.f32 0.015625, %v80_v62  ;;  %v204_v38 = vsel %vm158_vm8, %v203_v21, %v199_v34  ;;  %p505_p0 = scmp.ne.s32.totalorder %s416_s18, %s504_s4  ;;  %p510_p2 = scmp.lt.s32.totalorder %s504_s4, %s504_s4 }
  0xa7   :  { %v90_v10 = vmul.f32 0.015625, %v64_v63  ;;  %v159_v39 = vsel %vm158_vm8, %v157_v22, %v152_v35 }
  0xa8   :  { %v208_v26 = vrot.slane %v98_v9, %v163_v2  ;;  %p511_p3 = por %p510_p2, %p509_p1 }
  0xa9   :  { %v82_v15 = vpop.xlane.xlu1 %81  ;;  %v164_v27 = vrot.slane %v90_v10, %v163_v2 }
  0xaa   :  { %v66_v16 = vpop.xlane.xlu0 %65  ;;  %v99_v19 = vmul.f32 0.015625, %v82_v15  ;;  %v209_v40 = vsel %vm165_vm9, %v208_v26, %v204_v38  ;;  %p512_p4 = pnand %p511_p3, %p505_p0 }
  0xab   :  { %v91_v20 = vmul.f32 0.015625, %v66_v16  ;;  %v166_v41 = vsel %vm165_vm9, %v164_v27, %v159_v39 }
  0xac   :  { %v213_v30 = vrot.slane %v99_v19, %v170_v5 }
  0xad   :  { %v171_v31 = vrot.slane %v91_v20, %v170_v5  ;;  %v84_v32 = vpop.xlane.xlu1 %83 }
  0xae   :  { %v68_v33 = vpop.xlane.xlu0 %67  ;;  %v100_v36 = vmul.f32 0.015625, %v84_v32  ;;  %v214_v44 = vsel %vm172_vm10, %v213_v30, %v209_v40 }
  0xaf   :  { %v92_v37 = vmul.f32 0.015625, %v68_v33  ;;  %v173_v45 = vsel %vm172_vm10, %v171_v31, %v166_v41 }
  0xb0   :  { %v218_v42 = vrot.slane %v100_v36, %v177_v23 }
  0xb1   :  { %v178_v43 = vrot.slane %v92_v37, %v177_v23 }
  0xb2   :  { %v219_v47 = vsel %vm179_vm11, %v218_v42, %v214_v44 }
  0xb3   :  { %v180_v46 = vsel %vm179_vm11, %v178_v43, %v173_v45 }
  0xb4   :  { %v221_v48 = vsel %vm220_vm12, %v219_v47, %v180_v46 }
  0xb5   :  { %481 = vmatmul.mubr.msk.f32.vlgmr.msra.gmra.mrb[0].mxu0 %vm222_vm0, %v221_v48  ;;  %vm407_vm0 = vcmask 74752  }
 0x188   :  { %v297_v50 = vpop.f32.mrb[0].mxu0 }
 0x189   :  { %v298_v51 = vadd.f32 %v423_v49, %v297_v50  ;;  %v482_v52 = vpop.f32.mrb[1].mxu0 }
 0x18b   :  { %488 = vmatmul.mubr.msk.f32.vlgmr.msra.gmra.mrb[0].mxu1 %vm303_vm3, %v298_v51  ;;  %v383_v53 = vmul.f32 %v298_v51, %v298_v51 }
 0x18d   :  { %v385_v54 = vsel %vm384_vm13, %v383_v53, 0.0 }
 0x18e   :  { %386 = vadd.xlane.f32.xlu0 %v385_v54 }
 0x21b   :  { %v387_v56 = vpop.xlane.xlu0 %386 }
 0x21c   :  { %v395_v58 = vadd.f32 %v430_v55, %v387_v56 }
 0x25e   :  { %v379_v57 = vpop.f32.mrb[0].mxu1 }
 0x25f   :  { %v396_v59 = vmul.f32 2.0, %v379_v57  ;;  %v489_v60 = vpop.f32.mrb[1].mxu1 }
 0x261   :  { %v397_v61 = vsub.f32 %v395_v58, %v396_v59 }
 0x263   :  { %v398_v62 = vmax.f32 %v397_v61, 0.0 }
 0x265   :  { %502 = vrsqrt.f32 %v398_v62  ;;  %vm401_vm14 = vcmp.eq.f32.partialorder %v398_v62, inf  ;;  %v404_v1 = vand.u32 2147483648, %v398_v62  ;;  %vm403_vm15 = vcmp.eq.f32.partialorder %v398_v62, 0.0 }
 0x26f   :  { %v503_v63 = vpop.eup %502 }
 0x270   :  { %v400_v0 = vmul.f32 %v503_v63, %v398_v62 }
 0x272   :  { %v402_v2 = vsel %vm401_vm14, %v398_v62, %v400_v0 }
 0x273   :  { %v405_v3 = vsel %vm403_vm15, %v404_v1, %v402_v2 }
 0x274   :  { %v406_v4 = vsub.f32 0.0, %v405_v3 }
 0x276   :  { %408 = vst.msk [vmem:[#allocation2] sm:$0x3] %vm407_vm0, %v406_v4 }
 0x277   :  { %515 = shalt.err (!%p512_p4)
}
 0x278   :  { %s516_s21 = scalar_lea.hbm %s639_s5, 32 }
 0x279   :  { %p517_p5 = scmp.ne.s32.totalorder %s639_s5, %s516_s21  ;;  %p520_p6 = scmp.lt.u32.totalorder %s516_s21, %s639_s5 }
 0x27b   :  { %p522_p7 = pnand %p520_p6, %p517_p5 }
 0x27d   :  { %525 = shalt.err (!%p522_p7)
}
 0x27e   :  { %418 = dma.vmem_to_hbm [thread:$0]  %s416_s18, 32, %s639_s5, [#allocation3]  }
 0x27f   :  { %526 = dma.done.wait [#allocation3], 32  }
 0x280   :  { %527 = vsyncadd [#allocation3], 4294967264 }
 0x281   :  { %422 = vsyncpa [#allocation3], 1 }

// kernel: mapping_layer_forward.6
= control target key start
LH: loop header
LB: loop body
LE: loop exit
PB: predicated region body
PF: predicated region fallthrough
CT: control target
= control target key end

     0   :  { %s2804_s27 = smov 0   ;;  %s3438_s0 = inlined_call_operand.vmem [shape: bf16[2,32,384], index: 0, kind: input, shape index: {}]   ;;  %s3439_s1 = inlined_call_operand.vmem [shape: bf16[64,288], index: 1, kind: input, shape index: {}]   ;;  %s3440_s2 = inlined_call_operand.vmem [shape: f32[64,1], index: 2, kind: input, shape index: {}, may-alias: {2,4,7}]   ;;  %s3441_s3 = inlined_call_operand.vmem [shape: bf16[64,576], index: 3, kind: input, shape index: {}]   ;;  %s3442_s4 = inlined_call_operand.vmem [shape: f32[64,1], index: 4, kind: input, shape index: {}, may-alias: {2,4,7}]   ;;  %s3443_s5 = inlined_call_operand.vmem [shape: bf16[286,128], index: 5, kind: input, shape index: {}]   ;;  %s3444_s6 = inlined_call_operand.vmem [shape: bf16[64,32], index: 6, kind: input, shape index: {}]   ;;  %s3445_s7 = inlined_call_operand.vmem [shape: f32[64,1], index: 7, kind: input, shape index: {}, may-alias: {2,4,7}]   ;;  %s3446_s8 = inlined_call_operand.vmem [shape: bf16[2,64,128], index: 8, kind: output, shape index: {}]  }
   0x1 LB: > { %s2153_s28 = sadd.s32 4294967295, %s2742_s27   ;;  %p2157_p0 = scmp.ge.s32.totalorder %s2742_s27, 1  ;;  %s2742_s27 = sphi %s2804_s27, %s18_s27  }
   0x2   : > { %p262_p1 = scmp.lt.s32.totalorder %s2742_s27, 3 }
   0x4   : > { %p263_p2 = pnand %p2157_p0, %p262_p1 }
   0x5   : > { %p296_p3 = scmp.lt.s32.totalorder (!%p263_p2), %s2153_s28, 1  ;;  %s2744_s11 = smov (!%p263_p2), 127   ;;  %v2864_v6 = vld [vmem:[%s3439_s1 + $0x4] ss:$12 sps:$4 sm:$0xff] (!%p263_p2)   ;;  %v2873_v7 = vld [vmem:[%s3439_s1 + $0x34] ss:$12 sps:$4 sm:$0xff] (!%p263_p2)  }
   0x6   : > { %266 = sbr.rel (%p263_p2) target bundleno = 1289 (0x509), region = 52  ;;  %s2745_s12 = smov (!%p263_p2), 126   ;;  %700 = vmatprep.mubr.bf16.mxu0 (!%p263_p2), %v2864_v6  ;;  %862 = vmatprep.mubr.bf16.mxu1 (!%p263_p2), %v2873_v7  ;;  %v2752_v8 = vmov (!%p263_p2), 0   ;;  %vm383_vm0 = vcmask (!%p263_p2), 1039360   ;;  %vm406_vm1 = vcmask (!%p263_p2), 1031168   ;;  %vm429_vm2 = vcmask (!%p263_p2), 900096  }
   0x7   : > { %s2746_s13 = smov (!%p263_p2), 110   ;;  %s2747_s14 = smov (!%p263_p2), 109   ;;  %2640 = vset.pattern.permute.xlu0 (!%p263_p2), %v2752_v8  ;;  %2641 = vset.pattern.permute.xlu1 (!%p263_p2), %v2752_v8  ;;  %v323_v35 = vld [vmem:[%s3440_s2] sm:$0xff] (!%p263_p2)  ;;  %v324_v36 = vld [vmem:[%s3440_s2 + $0x8] sm:$0xff] (!%p263_p2)  ;;  %v325_v38 = vld [vmem:[%s3440_s2 + $0x10] sm:$0xff] (!%p263_p2)  ;;  %vm452_vm3 = vcmask (!%p263_p2), 891904  }
   0x8   : > { %s2748_s15 = smov (!%p263_p2), 108   ;;  %s2749_s16 = smov (!%p263_p2), 92   ;;  %v326_v41 = vld [vmem:[%s3440_s2 + $0x18] sm:$0xff] (!%p263_p2)  ;;  %v327_v45 = vld [vmem:[%s3440_s2 + $0x20] sm:$0xff] (!%p263_p2)  ;;  %v328_v46 = vld [vmem:[%s3440_s2 + $0x28] sm:$0xff] (!%p263_p2)  ;;  %vm475_vm4 = vcmask (!%p263_p2), 883712  }
   0x9   : > { %s2750_s19 = smov (!%p263_p2), 91   ;;  %s2751_s22 = smov (!%p263_p2), 90   ;;  %v329_v51 = vld [vmem:[%s3440_s2 + $0x30] sm:$0xff] (!%p263_p2)  ;;  %v330_v52 = vld [vmem:[%s3440_s2 + $0x38] sm:$0xff] (!%p263_p2)  ;;  %vm498_vm5 = vcmask (!%p263_p2), 752640   ;;  %vm521_vm6 = vcmask (!%p263_p2), 744448  }
   0xa   : > { %vm544_vm7 = vcmask (!%p263_p2), 736256   ;;  %vm655_vm8 = vcmask (!%p263_p2), 261120   ;;  %vm1142_vm9 = vcmask (!%p263_p2), 1046528   ;;  %vm1123_vm10 = vcmask (!%p263_p2), 244736  }
   0xb   : > { %vm1755_vm11 = vcmask (!%p263_p2), 523264  }
   0xd   : > { %s3452_s28 = smov (!%p296_p3, %s2153_s28), 1 }
   0xe   : > { %s2614_s29 = smul.u32 48, %s3452_s28 }
  0x10   : > { %s300_s10 = scalar_lea.vmem %s3438_s0, %s2614_s29  ;;  %s2753_s29 = smov 117  }
  0x11   : > { %v2662_v0 = vld [vmem:[%s300_s10 + $0x4] ss:$12 sps:$4 sm:$0xff]   ;;  %v2818_v1 = vld [vmem:[%s300_s10] ss:$12 sps:$4 sm:$0xff]   ;;  %v2821_v2 = vld [vmem:[%s300_s10 + $0x8] ss:$12 sps:$4 sm:$0xff]  }
  0x12   : > { %373 = vrot.lane.b32.xlu0 %v2662_v0, %s2744_s11  ;;  %668 = vmatprep.subr.bf16.mxu0 %v2662_v0  ;;  %v2666_v3 = vld [vmem:[%s300_s10 + $0x1c] ss:$12 sps:$4 sm:$0xff]   ;;  %v2826_v4 = vld [vmem:[%s300_s10 + $0x20] ss:$12 sps:$4 sm:$0xff]   ;;  %v2669_v5 = vld [vmem:[%s300_s10 + $0x18] ss:$12 sps:$4 sm:$0xff]  }
  0x13   : > { %371 = vrot.lane.b32.xlu1 %v2818_v1, %s2744_s11  ;;  %669 = vmatpush1.bf16.msra.mxu0 %v2818_v1  ;;  %s2754_s10 = smov 107  }
  0x14   : > { %670 = vmatprep.subr.bf16.mxu0 %v2666_v3 }
  0x16   : > { %375 = vrot.lane.b32.xlu0 %v2821_v2, %s2744_s11 }
  0x17   : > { %379 = vrot.lane.b32.xlu1 %v2666_v3, %s2744_s11  ;;  %671 = vmatpush1.bf16.msra.mxu0 %v2669_v5 }
  0x1a   : > { %381 = vrot.lane.b32.xlu0 %v2826_v4, %s2744_s11 }
  0x1b   : > { %377 = vrot.lane.b32.xlu1 %v2669_v5, %s2744_s11 }
  0x1e   : > { %396 = vrot.lane.b32.xlu0 %v2662_v0, %s2745_s12 }
  0x1f   : > { %398 = vrot.lane.b32.xlu1 %v2821_v2, %s2745_s12 }
  0x22   : > { %394 = vrot.lane.b32.xlu0 %v2818_v1, %s2745_s12 }
  0x23   : > { %402 = vrot.lane.b32.xlu1 %v2666_v3, %s2745_s12 }
  0x26   : > { %404 = vrot.lane.b32.xlu0 %v2826_v4, %s2745_s12 }
  0x27   : > { %400 = vrot.lane.b32.xlu1 %v2669_v5, %s2745_s12 }
  0x2a   : > { %419 = vrot.lane.b32.xlu0 %v2662_v0, %s2746_s13 }
  0x2b   : > { %421 = vrot.lane.b32.xlu1 %v2821_v2, %s2746_s13 }
  0x2e   : > { %417 = vrot.lane.b32.xlu0 %v2818_v1, %s2746_s13 }
  0x2f   : > { %425 = vrot.lane.b32.xlu1 %v2666_v3, %s2746_s13 }
  0x32   : > { %427 = vrot.lane.b32.xlu0 %v2826_v4, %s2746_s13 }
  0x33   : > { %423 = vrot.lane.b32.xlu1 %v2669_v5, %s2746_s13  ;;  %s2755_s13 = smov 116  }
  0x36   : > { %442 = vrot.lane.b32.xlu0 %v2662_v0, %s2747_s14 }
  0x37   : > { %444 = vrot.lane.b32.xlu1 %v2821_v2, %s2747_s14 }
  0x3a   : > { %440 = vrot.lane.b32.xlu0 %v2818_v1, %s2747_s14 }
  0x3b   : > { %448 = vrot.lane.b32.xlu1 %v2666_v3, %s2747_s14 }
  0x3e   : > { %450 = vrot.lane.b32.xlu0 %v2826_v4, %s2747_s14 }
  0x3f   : > { %446 = vrot.lane.b32.xlu1 %v2669_v5, %s2747_s14  ;;  %s2756_s14 = smov 118  }
  0x42   : > { %465 = vrot.lane.b32.xlu0 %v2662_v0, %s2748_s15 }
  0x43   : > { %467 = vrot.lane.b32.xlu1 %v2821_v2, %s2748_s15 }
  0x46   : > { %463 = vrot.lane.b32.xlu0 %v2818_v1, %s2748_s15 }
  0x47   : > { %471 = vrot.lane.b32.xlu1 %v2666_v3, %s2748_s15 }
  0x4a   : > { %473 = vrot.lane.b32.xlu0 %v2826_v4, %s2748_s15 }
  0x4b   : > { %469 = vrot.lane.b32.xlu1 %v2669_v5, %s2748_s15 }
  0x4e   : > { %488 = vrot.lane.b32.xlu0 %v2662_v0, %s2749_s16 }
  0x4f   : > { %490 = vrot.lane.b32.xlu1 %v2821_v2, %s2749_s16 }
  0x52   : > { %486 = vrot.lane.b32.xlu0 %v2818_v1, %s2749_s16 }
  0x53   : > { %494 = vrot.lane.b32.xlu1 %v2666_v3, %s2749_s16 }
  0x56   : > { %496 = vrot.lane.b32.xlu0 %v2826_v4, %s2749_s16 }
  0x57   : > { %492 = vrot.lane.b32.xlu1 %v2669_v5, %s2749_s16  ;;  %s2757_s16 = smov 106  }
  0x5a   : > { %511 = vrot.lane.b32.xlu0 %v2662_v0, %s2750_s19 }
  0x5b   : > { %513 = vrot.lane.b32.xlu1 %v2821_v2, %s2750_s19 }
  0x5e   : > { %509 = vrot.lane.b32.xlu0 %v2818_v1, %s2750_s19 }
  0x5f   : > { %517 = vrot.lane.b32.xlu1 %v2666_v3, %s2750_s19 }
  0x62   : > { %519 = vrot.lane.b32.xlu0 %v2826_v4, %s2750_s19 }
  0x63   : > { %515 = vrot.lane.b32.xlu1 %v2669_v5, %s2750_s19 }
  0x66   : > { %534 = vrot.lane.b32.xlu0 %v2662_v0, %s2751_s22 }
  0x67   : > { %536 = vrot.lane.b32.xlu1 %v2821_v2, %s2751_s22 }
  0x6a   : > { %532 = vrot.lane.b32.xlu0 %v2818_v1, %s2751_s22 }
  0x6b   : > { %540 = vrot.lane.b32.xlu1 %v2666_v3, %s2751_s22 }
  0x6e   : > { %542 = vrot.lane.b32.xlu0 %v2826_v4, %s2751_s22 }
  0x6f   : > { %538 = vrot.lane.b32.xlu1 %v2669_v5, %s2751_s22 }
  0x72   : > { %557 = vperm.xlu0 %2640, %v323_v35   ;;  %v2678_v35 = vld [vmem:[%s3439_s1 + $0x30] ss:$12 sps:$4 sm:$0xff]  }
  0x73   : > { %562 = vperm.xlu1 %2641, %v324_v36  }
  0x76   : > { %572 = vperm.xlu0 %2640, %v326_v41  }
  0x77   : > { %567 = vperm.xlu1 %2641, %v325_v38  }
  0x7a   : > { %582 = vperm.xlu0 %2640, %v328_v46   ;;  %v2681_v46 = vld [vmem:[%s3439_s1 + $0x48] ss:$12 sps:$4 sm:$0xff]  }
  0x7b   : > { %577 = vperm.xlu1 %2641, %v327_v45   ;;  %v3018_v45 = vld [vmem:[%s3439_s1 + $0x18] ss:$12 sps:$4 sm:$0xff]  }
  0x7e   : > { %592 = vperm.xlu0 %2640, %v330_v52   ;;  %v2686_v52 = vld [vmem:[%s3443_s5 + $0x40] sm:$0xff]  }
  0x7f   : > { %587 = vperm.xlu1 %2641, %v329_v51  }
  0x84   : > { %v374_v9 = vpop.permute.xlu0 %373 }
  0x85   : > { %v372_v10 = vpop.permute.xlu1 %371 }
  0x86   : > { %v384_v14 = vsel %vm383_vm0, %v372_v10, %v374_v9 }
  0x88   : > { %v2881_v11 = vpop.permute.xlu0 %375 }
  0x89   : > { %v380_v12 = vpop.permute.xlu1 %379  ;;  %v385_v13 = vsel %vm383_vm0, %v374_v9, %v2881_v11 }
  0x8a   : > { %672 = vmatprep.subr.bf16.mxu0 %v385_v13 }
  0x8b   : > { %673 = vmatpush1.bf16.msra.mxu0 %v384_v14 }
  0x8c   : > { %v2884_v15 = vpop.permute.xlu0 %381 }
  0x8d   : > { %v378_v16 = vpop.permute.xlu1 %377  ;;  %v387_v17 = vsel %vm383_vm0, %v380_v12, %v2884_v15 }
  0x8e   : > { %674 = vmatprep.subr.bf16.mxu0 %v387_v17  ;;  %v386_v18 = vsel %vm383_vm0, %v378_v16, %v380_v12  ;;  %vm2040_vm0 = vcmask 89088  }
  0x8f   : > { %675 = vmatpush1.bf16.msra.mxu0 %v386_v18 }
  0x90   : > { %v397_v19 = vpop.permute.xlu0 %396 }
  0x91   : > { %v2887_v20 = vpop.permute.xlu1 %398 }
  0x92   : > { %v408_v21 = vsel %vm406_vm1, %v397_v19, %v2887_v20 }
  0x93   : > { %676 = vmatprep.subr.bf16.mxu0 %v408_v21 }
  0x94   : > { %v395_v22 = vpop.permute.xlu0 %394 }
  0x95   : > { %v403_v23 = vpop.permute.xlu1 %402  ;;  %v407_v24 = vsel %vm406_vm1, %v395_v22, %v397_v19 }
  0x96   : > { %677 = vmatpush1.bf16.msra.mxu0 %v407_v24 }
  0x98   : > { %v2890_v25 = vpop.permute.xlu0 %404 }
  0x99   : > { %v401_v26 = vpop.permute.xlu1 %400  ;;  %v410_v27 = vsel %vm406_vm1, %v403_v23, %v2890_v25 }
  0x9a   : > { %678 = vmatprep.subr.bf16.mxu0 %v410_v27  ;;  %v409_v28 = vsel %vm406_vm1, %v401_v26, %v403_v23  ;;  %vm2049_vm1 = vcmask 728064  }
  0x9b   : > { %679 = vmatpush1.bf16.msra.mxu0 %v409_v28 }
  0x9c   : > { %v420_v29 = vpop.permute.xlu0 %419 }
  0x9d   : > { %v2893_v30 = vpop.permute.xlu1 %421 }
  0x9e   : > { %v431_v31 = vsel %vm429_vm2, %v420_v29, %v2893_v30 }
  0x9f   : > { %680 = vmatprep.subr.bf16.mxu0 %v431_v31 }
  0xa0   : > { %v418_v32 = vpop.permute.xlu0 %417 }
  0xa1   : > { %v426_v33 = vpop.permute.xlu1 %425  ;;  %v430_v34 = vsel %vm429_vm2, %v418_v32, %v420_v29 }
  0xa2   : > { %681 = vmatpush1.bf16.msra.mxu0 %v430_v34  ;;  %v3003_v34 = vld [vmem:[%s3439_s1 + $0x1c] ss:$12 sps:$4 sm:$0xff]  }
  0xa4   : > { %v2904_v37 = vpop.permute.xlu0 %427 }
  0xa5   : > { %v424_v39 = vpop.permute.xlu1 %423  ;;  %v433_v40 = vsel %vm429_vm2, %v426_v33, %v2904_v37 }
  0xa6   : > { %682 = vmatprep.subr.bf16.mxu0 %v433_v40  ;;  %v432_v42 = vsel %vm429_vm2, %v424_v39, %v426_v33  ;;  %v2998_v33 = vld [vmem:[%s3439_s1] ss:$12 sps:$4 sm:$0xff]  }
  0xa7   : > { %683 = vmatpush1.bf16.msra.mxu0 %v432_v42  ;;  %v2679_v40 = vld [vmem:[%s3439_s1 + $0x4c] ss:$12 sps:$4 sm:$0xff]  }
  0xa8   : > { %v443_v43 = vpop.permute.xlu0 %442 }
  0xa9   : > { %v2915_v44 = vpop.permute.xlu1 %444 }
  0xaa   : > { %v2925_v47 = vsel %vm452_vm3, %v443_v43, %v2915_v44  ;;  %2541 = vmatprep.subr.bf16.mxu1 %v2915_v44 }
  0xab   : > { %684 = vmatprep.subr.bf16.mxu0 %v2925_v47  ;;  %2549 = vmatpush3.bf16.msra.mxu1 %v2821_v2 }
  0xac   : > { %v441_v48 = vpop.permute.xlu0 %440 }
  0xad   : > { %v449_v49 = vpop.permute.xlu1 %448  ;;  %v2931_v50 = vsel %vm452_vm3, %v441_v48, %v443_v43 }
  0xae   : > { %685 = vmatpush1.bf16.msra.mxu0 %v2931_v50 }
  0xb0   : > { %v2940_v53 = vpop.permute.xlu0 %450 }
  0xb1   : > { %v447_v54 = vpop.permute.xlu1 %446  ;;  %2542 = vmatprep.subr.bf16.mxu1 %v2940_v53  ;;  %v2945_v55 = vsel %vm452_vm3, %v449_v49, %v2940_v53 }
  0xb2   : > { %686 = vmatprep.subr.bf16.mxu0 %v2945_v55  ;;  %2550 = vmatpush3.bf16.msra.mxu1 %v2826_v4  ;;  %v2950_v56 = vsel %vm452_vm3, %v447_v54, %v449_v49 }
  0xb3   : > { %687 = vmatpush1.bf16.msra.mxu0 %v2950_v56 }
  0xb4   : > { %v466_v57 = vpop.permute.xlu0 %465 }
  0xb5   : > { %v2953_v58 = vpop.permute.xlu1 %467 }
  0xb6   : > { %2543 = vmatprep.subr.bf16.mxu1 %v2953_v58  ;;  %v477_v59 = vsel %vm475_vm4, %v466_v57, %v2953_v58 }
  0xb7   : > { %688 = vmatprep.subr.bf16.mxu0 %v477_v59  ;;  %2551 = vmatpush3.bf16.msra.mxu1 %v2881_v11  ;;  %v2683_v59 = vld [vmem:[%s3439_s1 + $0x20] ss:$12 sps:$4 sm:$0xff]  }
  0xb8   : > { %v464_v60 = vpop.permute.xlu0 %463 }
  0xb9   : > { %v472_v61 = vpop.permute.xlu1 %471  ;;  %v476_v62 = vsel %vm475_vm4, %v464_v60, %v466_v57  ;;  %v2682_v57 = vld [vmem:[%s3439_s1 + $0x8] ss:$12 sps:$4 sm:$0xff]   ;;  %v2687_v60 = vld [vmem:[%s3443_s5] sm:$0xff]  }
  0xba   : > { %689 = vmatpush1.bf16.msra.mxu0 %v476_v62  ;;  %v2689_v62 = vld [vmem:[%s3443_s5 + $0x8] sm:$0xff]  }
  0xbc   : > { %v2960_v63 = vpop.permute.xlu0 %473 }
  0xbd   : > { %v470_v0 = vpop.permute.xlu1 %469  ;;  %2544 = vmatprep.subr.bf16.mxu1 %v2960_v63  ;;  %v479_v1 = vsel %vm475_vm4, %v472_v61, %v2960_v63 }
  0xbe   : > { %690 = vmatprep.subr.bf16.mxu0 %v479_v1  ;;  %2552 = vmatpush3.bf16.msra.mxu1 %v2884_v15  ;;  %v478_v3 = vsel %vm475_vm4, %v470_v0, %v472_v61  ;;  %v2688_v61 = vld [vmem:[%s3443_s5 + $0x48] sm:$0xff]   ;;  %v2690_v0 = vld [vmem:[%s3443_s5 + $0x50] sm:$0xff]  }
  0xbf   : > { %691 = vmatpush1.bf16.msra.mxu0 %v478_v3  ;;  %v2685_v1 = vld [vmem:[%s3439_s1 + $0x50] ss:$12 sps:$4 sm:$0xff]  }
  0xc0   : > { %v489_v5 = vpop.permute.xlu0 %488  ;;  %v2691_v3 = vld [vmem:[%s3443_s5 + $0x10] sm:$0xff]  }
  0xc1   : > { %v2967_v9 = vpop.permute.xlu1 %490 }
  0xc2   : > { %2545 = vmatprep.subr.bf16.mxu1 %v2967_v9  ;;  %v500_v10 = vsel %vm498_vm5, %v489_v5, %v2967_v9 }
  0xc3   : > { %692 = vmatprep.subr.bf16.mxu0 %v500_v10  ;;  %2553 = vmatpush3.bf16.msra.mxu1 %v2887_v20  ;;  %v2693_v10 = vld [vmem:[%s3443_s5 + $0x18] sm:$0xff]  }
  0xc4   : > { %v487_v12 = vpop.permute.xlu0 %486 }
  0xc5   : > { %v495_v13 = vpop.permute.xlu1 %494  ;;  %v499_v14 = vsel %vm498_vm5, %v487_v12, %v489_v5  ;;  %v2692_v5 = vld [vmem:[%s3443_s5 + $0x58] sm:$0xff]   ;;  %v2694_v12 = vld [vmem:[%s3443_s5 + $0x60] sm:$0xff]  }
  0xc6   : > { %693 = vmatpush1.bf16.msra.mxu0 %v499_v14  ;;  %v2696_v14 = vld [vmem:[%s3443_s5 + $0x68] sm:$0xff]  }
  0xc8   : > { %v2974_v16 = vpop.permute.xlu0 %496 }
  0xc9   : > { %v493_v17 = vpop.permute.xlu1 %492  ;;  %2546 = vmatprep.subr.bf16.mxu1 %v2974_v16  ;;  %v502_v18 = vsel %vm498_vm5, %v495_v13, %v2974_v16 }
  0xca   : > { %694 = vmatprep.subr.bf16.mxu0 %v502_v18  ;;  %2554 = vmatpush3.bf16.msra.mxu1 %v2890_v25  ;;  %v501_v19 = vsel %vm498_vm5, %v493_v17, %v495_v13  ;;  %v2695_v13 = vld [vmem:[%s3443_s5 + $0x20] sm:$0xff]  }
  0xcb   : > { %695 = vmatpush1.bf16.msra.mxu0 %v501_v19 }
  0xcc   : > { %v512_v21 = vpop.permute.xlu0 %511 }
  0xcd   : > { %v2981_v22 = vpop.permute.xlu1 %513 }
  0xce   : > { %2547 = vmatprep.subr.bf16.mxu1 %v2981_v22  ;;  %v523_v23 = vsel %vm521_vm6, %v512_v21, %v2981_v22 }
  0xcf   : > { %696 = vmatprep.subr.bf16.mxu0 %v523_v23  ;;  %2555 = vmatpush3.bf16.msra.mxu1 %v2893_v30 }
  0xd0   : > { %v510_v24 = vpop.permute.xlu0 %509 }
  0xd1   : > { %v518_v26 = vpop.permute.xlu1 %517  ;;  %v522_v27 = vsel %vm521_vm6, %v510_v24, %v512_v21 }
  0xd2   : > { %697 = vmatpush1.bf16.msra.mxu0 %v522_v27 }
  0xd4   : > { %v2988_v28 = vpop.permute.xlu0 %519 }
  0xd5   : > { %v516_v29 = vpop.permute.xlu1 %515  ;;  %2548 = vmatprep.subr.bf16.mxu1 %v2988_v28  ;;  %v525_v31 = vsel %vm521_vm6, %v518_v26, %v2988_v28 }
  0xd6   : > { %698 = vmatprep.subr.bf16.mxu0 %v525_v31  ;;  %2556 = vmatpush3.bf16.msra.mxu1 %v2904_v37  ;;  %v524_v32 = vsel %vm521_vm6, %v516_v29, %v518_v26 }
  0xd7   : > { %699 = vmatpush1.bf16.msra.mxu0 %v524_v32 }
  0xd8   : > { %v535_v36 = vpop.permute.xlu0 %534 }
  0xd9   : > { %v537_v38 = vpop.permute.xlu1 %536  ;;  %863 = vmatmul.mubr.bf16.vlgmr.msra.gmra.mrb[0].mxu1 %v2678_v35 }
  0xda   : > { %701 = vmatmul.mubr.bf16.vlgmr.msra.gmra.mrb[0].mxu0 %v2998_v33  ;;  %v546_v39 = vsel %vm544_vm7, %v535_v36, %v537_v38  ;;  %2485 = vmatprep.subr.bf16.mxu1 %v537_v38 }
  0xdb   : > { %741 = vmatprep.subr.bf16.mxu0 %v546_v39  ;;  %710 = vmatprep.mubr.bf16.mxu0 %v3003_v34 }
  0xdc   : > { %v533_v41 = vpop.permute.xlu0 %532  ;;  %2486 = vmatpush3.bf16.msra.mxu1 %v537_v38  ;;  %870 = vmatprep.mubr.bf16.mxu1 %v2679_v40 }
  0xdd   : > { %v545_v42 = vsel %vm544_vm7, %v533_v41, %v535_v36  ;;  %v541_v43 = vpop.permute.xlu1 %540 }
  0xde   : > { %742 = vmatpush1.bf16.msra.mxu0 %v545_v42 }
  0xe0   : > { %v543_v48 = vpop.permute.xlu0 %542 }
  0xe1   : > { %v539_v49 = vpop.permute.xlu1 %538  ;;  %v548_v51 = vsel %vm544_vm7, %v541_v43, %v543_v48  ;;  %2487 = vmatprep.subr.bf16.mxu1 %v543_v48  ;;  %871 = vmatmul.mubr.bf16.gmra.mrb[4].mxu1 %v2681_v46 }
  0xe2   : > { %v547_v54 = vsel %vm544_vm7, %v539_v49, %v541_v43  ;;  %711 = vmatmul.mubr.bf16.gmra.mrb[4].mxu0 %v3018_v45  ;;  %743 = vmatprep.subr.bf16.mxu0 %v548_v51 }
  0xe3   : > { %744 = vmatpush1.bf16.msra.mxu0 %v547_v54  ;;  %720 = vmatprep.mubr.bf16.mxu0 %v2873_v7  ;;  %v2684_v7 = vld [vmem:[%s3439_s1 + $0x38] ss:$12 sps:$4 sm:$0xff]  }
  0xe4   : > { %2285 = vmatprep.subr.bf16.mxu0 %v2915_v44  ;;  %2488 = vmatpush3.bf16.msra.mxu1 %v543_v48 }
  0xe5   : > { %2489 = vmatprep.mubr.msk.bf16.mxu1 %vm655_vm8, %v2682_v57  ;;  %2331 = vmatprep.subr.bf16.mxu1 %v2686_v52 }
  0xe9   : > { %2490 = vmatmul.mubr.msk.bf16.vlgmr.msra.gmra.mrb[8].mxu1 %vm655_vm8, %v2683_v59 }
  0xea   : > { %721 = vmatmul.mubr.bf16.gmra.mrb[8].mxu0 %v2678_v35  ;;  %2493 = vmatprep.mubr.msk.bf16.mxu1 %vm655_vm8, %v2684_v7 }
  0xeb   : > { %730 = vmatprep.mubr.bf16.mxu0 %v2679_v40  ;;  %2332 = vmatpush3.bf16.msra.mxu1 %v2687_v60 }
  0xec   : > { %2333 = vmatprep.subr.bf16.mxu1 %v2688_v61 }
  0xef   : > { %2334 = vmatpush3.bf16.msra.mxu1 %v2689_v62 }
  0xf0   : > { %2335 = vmatprep.subr.bf16.mxu1 %v2690_v0 }
  0xf1   : > { %2494 = vmatmul.mubr.msk.bf16.gmra.mrb[12].mxu1 %vm655_vm8, %v2685_v1  ;;  %v3127_v18 = vpop.permute.xlu0 %557 }
  0xf2   : > { %731 = vmatmul.mubr.bf16.gmra.mrb[12].mxu0 %v2681_v46 }
  0xf3   : > { %773 = vmatprep.mubr.bf16.mxu0 %v2752_v8  ;;  %2336 = vmatpush3.bf16.msra.mxu1 %v2691_v3 }
  0xf4   : > { %2337 = vmatprep.subr.bf16.mxu1 %v2692_v5 }
  0xf5   : > { %v3131_v23 = vpop.permute.xlu0 %572 }
  0xf7   : > { %2338 = vmatpush3.bf16.msra.mxu1 %v2693_v10 }
  0xf8   : > { %2339 = vmatprep.subr.bf16.mxu1 %v2694_v12 }
  0xf9   : > { %v3133_v31 = vpop.permute.xlu0 %582 }
  0xfa   : > { %2179 = vmatmul.mubr.msk.bf16.vlgmr.msra.gmra.mrb[0].mxu0 %vm655_vm8, %v2682_v57 }
  0xfb   : > { %2286 = vmatpush3.bf16.msra.mxu0 %v2821_v2  ;;  %783 = vmatprep.mubr.bf16.mxu0 %v2752_v8  ;;  %v2697_v2 = vld [vmem:[%s3443_s5 + $0x28] sm:$0xff]  }
  0xfc   : > { %2287 = vmatprep.subr.bf16.mxu0 %v2940_v53  ;;  %2340 = vmatpush3.bf16.msra.mxu1 %v2695_v13 }
  0xfd   : > { %2341 = vmatprep.subr.bf16.mxu1 %v2696_v14  ;;  %v3145_v38 = vpop.permute.xlu0 %592 }
  0xff   : > { %2288 = vmatpush3.bf16.msra.mxu0 %v2826_v4  ;;  %v2698_v4 = vld [vmem:[%s3443_s5 + $0x70] sm:$0xff]  }
 0x100   : > { %2289 = vmatprep.subr.bf16.mxu0 %v2953_v58  ;;  %2342 = vmatpush3.bf16.msra.mxu1 %v2697_v2 }
 0x101   : > { %2343 = vmatprep.subr.bf16.mxu1 %v2698_v4 }
 0x102   : > { %2180 = vmatmul.mubr.msk.bf16.gmra.mrb[4].mxu0 %vm655_vm8, %v2683_v59 }
 0x103   : > { %2290 = vmatpush3.bf16.msra.mxu0 %v2881_v11  ;;  %793 = vmatprep.mubr.bf16.mxu0 %v2752_v8  ;;  %v2701_v11 = vld [vmem:[%s3443_s5 + $0x38] sm:$0xff]  }
 0x104   : > { %2291 = vmatprep.subr.bf16.mxu0 %v2960_v63 }
 0x107   : > { %2292 = vmatpush3.bf16.msra.mxu0 %v2884_v15  ;;  %v2702_v15 = vld [vmem:[%s3443_s5 + $0x80] sm:$0xff]  }
 0x108   : > { %2293 = vmatprep.subr.bf16.mxu0 %v2967_v9 }
 0x10a   : > { %2181 = vmatmul.mubr.msk.bf16.gmra.mrb[8].mxu0 %vm655_vm8, %v2684_v7 }
 0x10b   : > { %2294 = vmatpush3.bf16.msra.mxu0 %v2887_v20  ;;  %803 = vmatprep.mubr.bf16.mxu0 %v2752_v8  ;;  %v2700_v8 = vld [vmem:[%s3443_s5 + $0x78] sm:$0xff]   ;;  %v2703_v20 = vld [vmem:[%s3443_s5 + $0x88] sm:$0x7f]  }
 0x10c   : > { %2295 = vmatprep.subr.bf16.mxu0 %v2974_v16  ;;  %v3125_v16 = vpop.permute.xlu1 %562 }
 0x10f   : > { %2296 = vmatpush3.bf16.msra.mxu0 %v2890_v25  ;;  %v1144_v25 = vsel %vm1142_vm9, %v2703_v20, 0 }
 0x110   : > { %2297 = vmatprep.subr.bf16.mxu0 %v2981_v22  ;;  %v3129_v19 = vpop.permute.xlu1 %567 }
 0x112   : > { %2182 = vmatmul.mubr.msk.bf16.gmra.mrb[12].mxu0 %vm655_vm8, %v2685_v1 }
 0x113   : > { %2298 = vmatpush3.bf16.msra.mxu0 %v2893_v30  ;;  %846 = vmatprep.mubr.bf16.mxu0 %v2864_v6  ;;  %v2699_v6 = vld [vmem:[%s3443_s5 + $0x30] sm:$0xff]  }
 0x114   : > { %2299 = vmatprep.subr.bf16.mxu0 %v2988_v28  ;;  %2344 = vmatpush3.bf16.msra.mxu1 %v2699_v6  ;;  %v578_v28 = vpop.permute.xlu1 %577 }
 0x115   : > { %2345 = vmatprep.subr.bf16.mxu1 %v2700_v8 }
 0x117   : > { %2300 = vmatpush3.bf16.msra.mxu0 %v2904_v37 }
 0x118   : > { %2346 = vmatpush3.bf16.msra.mxu1 %v2701_v11  ;;  %2497 = vmatprep.subr.bf16.mxu0 %v2702_v15 }
 0x11a   : > { %847 = vmatmul.mubr.bf16.vlgmr.msra.gmra.mrb[16].mxu0 %v2998_v33 }
 0x11b   : > { %854 = vmatprep.mubr.bf16.mxu0 %v3003_v34  ;;  %2498 = vmatpush3.bf16.msra.mxu0 %v2702_v15  ;;  %v3139_v34 = vpop.permute.xlu1 %587 }
 0x11c   : > { %2613 = vmatprep.subr.msk.bf16.mxu0 %vm1142_vm9, %v2703_v20 }
 0x11f   : > { %2500 = vmatpush3.bf16.msra.mxu0 %v1144_v25 }
 0x122   : > { %855 = vmatmul.mubr.bf16.gmra.mrb[20].mxu0 %v3018_v45 }
 0x1ac   : > { %v2313_v30 = vpop.f32.mrb[0].mxu1 }
 0x1ad   : > { %v2314_v37 = vpop.f32.mrb[1].mxu1 }
 0x1ae   : > { %v2315_v58 = vadd.f32 %v2314_v37, %v2313_v30  ;;  %v2316_v63 = vpop.f32.mrb[2].mxu1 }
 0x1af   : > { %v2317_v9 = vpop.f32.mrb[3].mxu1 }
 0x1b0   : > { %v2318_v17 = vadd.f32 %v2317_v9, %v2316_v63  ;;  %v865_v40 = vadd.f32 %v2315_v58, %v578_v28 }
 0x1b2   : > { %v868_v43 = vadd.f32 %v2318_v17, %v3133_v31 }
 0x1b4   : > { %v2319_v21 = vpop.f32.mrb[4].mxu1 }
 0x1b5   : > { %v2320_v22 = vpop.f32.mrb[5].mxu1 }
 0x1b6   : > { %v2321_v24 = vadd.f32 %v2320_v22, %v2319_v21  ;;  %v2322_v26 = vpop.f32.mrb[6].mxu1 }
 0x1b7   : > { %v2323_v27 = vpop.f32.mrb[7].mxu1 }
 0x1b8   : > { %v2324_v29 = vadd.f32 %v2323_v27, %v2322_v26  ;;  %v873_v39 = vadd.f32 %v2321_v24, %v3139_v34 }
 0x1ba   : > { %v876_v41 = vadd.f32 %v2324_v29, %v3145_v38 }
 0x1bc   : > { %v3135_v32 = vpop.f32.mrb[8].mxu1 }
 0x1bd   : > { %v3137_v33 = vpop.f32.mrb[9].mxu1 }
 0x1be   : > { %v3141_v35 = vpop.f32.mrb[10].mxu1 }
 0x1bf   : > { %v3143_v36 = vpop.f32.mrb[11].mxu1 }
 0x1c4   : > { %v2495_v42 = vpop.f32.mrb[12].mxu1 }
 0x1c5   : > { %v938_v45 = vadd.f32 %v2495_v42, %v873_v39  ;;  %v929_v46 = vpop.f32.mrb[13].mxu1 }
 0x1c6   : > { %v930_v48 = vadd.f32 %v929_v46, %v865_v40  ;;  %v2496_v49 = vpop.f32.mrb[14].mxu1 }
 0x1c7   : > { %v964_v51 = vmax.f32 %v938_v45, 0.0  ;;  %v941_v52 = vadd.f32 %v2496_v49, %v876_v41  ;;  %v932_v54 = vpop.f32.mrb[15].mxu1 }
 0x1c8   : > { %v958_v57 = vmax.f32 %v930_v48, 0.0  ;;  %v933_v59 = vadd.f32 %v932_v54, %v868_v43 }
 0x1c9   : > { %v967_v60 = vmax.f32 %v941_v52, 0.0 }
 0x1ca   : > { %v961_v7 = vmax.f32 %v933_v59, 0.0 }
 0x1cb   : > { %v3150_v61 = vpack.c.bf16 %v967_v60, %v964_v51 }
 0x1cc   : > { %v3152_v62 = vpack.c.bf16 %v961_v7, %v958_v57 }
 0x1cd   : > { %v775_v0 = vpop.f32.mrb[0].mxu0 }
 0x1ce   : > { %v2557_v1 = vadd.f32 %v775_v0, %v3127_v18  ;;  %v777_v3 = vpop.f32.mrb[1].mxu0 }
 0x1cf   : > { %v2558_v5 = vadd.f32 %v777_v3, %v3127_v18  ;;  %v779_v10 = vpop.f32.mrb[2].mxu0 }
 0x1d0   : > { %v2559_v12 = vadd.f32 %v779_v10, %v3125_v16  ;;  %v781_v13 = vpop.f32.mrb[3].mxu0  ;;  %v944_v2 = vmax.f32 %v2557_v1, 0.0 }
 0x1d1   : > { %v2560_v14 = vadd.f32 %v781_v13, %v3125_v16  ;;  %v945_v6 = vmax.f32 %v2558_v5, 0.0 }
 0x1d2   : > { %v947_v4 = vmax.f32 %v2559_v12, 0.0 }
 0x1d3   : > { %v948_v8 = vmax.f32 %v2560_v14, 0.0 }
 0x1d4   : > { %v968_v11 = vpack.c.bf16 %v947_v4, %v944_v2 }
 0x1d5   : > { %v969_v15 = vpack.c.bf16 %v948_v8, %v945_v6  ;;  %v785_v20 = vpop.f32.mrb[4].mxu0 }
 0x1d6   : > { %v2561_v25 = vadd.f32 %v785_v20, %v3129_v19  ;;  %v787_v30 = vpop.f32.mrb[5].mxu0 }
 0x1d7   : > { %v2562_v37 = vadd.f32 %v787_v30, %v3129_v19  ;;  %v789_v58 = vpop.f32.mrb[6].mxu0  ;;  %1178 = vmatprep.mubr.bf16.mxu1 %v969_v15 }
 0x1d8   : > { %v2563_v63 = vadd.f32 %v789_v58, %v3131_v23  ;;  %v791_v9 = vpop.f32.mrb[7].mxu0  ;;  %1179 = vmatmul.mubr.bf16.vlgmr.msra.gmra.mrb[16].mxu1 %v968_v11  ;;  %v950_v21 = vmax.f32 %v2561_v25, 0.0 }
 0x1d9   : > { %v2564_v17 = vadd.f32 %v791_v9, %v3131_v23  ;;  %v951_v24 = vmax.f32 %v2562_v37, 0.0 }
 0x1da   : > { %v953_v22 = vmax.f32 %v2563_v63, 0.0 }
 0x1db   : > { %v954_v26 = vmax.f32 %v2564_v17, 0.0 }
 0x1dc   : > { %v971_v27 = vpack.c.bf16 %v953_v22, %v950_v21 }
 0x1dd   : > { %v972_v29 = vpack.c.bf16 %v954_v26, %v951_v24  ;;  %v795_v39 = vpop.f32.mrb[8].mxu0 }
 0x1de   : > { %v2565_v40 = vadd.f32 %v795_v39, %v578_v28  ;;  %v797_v41 = vpop.f32.mrb[9].mxu0 }
 0x1df   : > { %v2566_v42 = vadd.f32 %v797_v41, %v578_v28  ;;  %v799_v43 = vpop.f32.mrb[10].mxu0  ;;  %1186 = vmatprep.mubr.bf16.mxu1 %v972_v29 }
 0x1e0   : > { %v2567_v45 = vadd.f32 %v799_v43, %v3133_v31  ;;  %v801_v46 = vpop.f32.mrb[11].mxu0  ;;  %1187 = vmatmul.mubr.bf16.gmra.mrb[20].mxu1 %v971_v27  ;;  %v956_v49 = vmax.f32 %v2565_v40, 0.0 }
 0x1e1   : > { %v2568_v48 = vadd.f32 %v801_v46, %v3133_v31  ;;  %v957_v52 = vmax.f32 %v2566_v42, 0.0 }
 0x1e2   : > { %v959_v51 = vmax.f32 %v2567_v45, 0.0 }
 0x1e3   : > { %v960_v54 = vmax.f32 %v2568_v48, 0.0 }
 0x1e4   : > { %v974_v57 = vpack.c.bf16 %v959_v51, %v956_v49 }
 0x1e5   : > { %v975_v59 = vpack.c.bf16 %v960_v54, %v957_v52  ;;  %v805_v60 = vpop.f32.mrb[12].mxu0 }
 0x1e6   : > { %v2569_v7 = vadd.f32 %v805_v60, %v3139_v34  ;;  %v807_v0 = vpop.f32.mrb[13].mxu0 }
 0x1e7   : > { %v2570_v28 = vadd.f32 %v807_v0, %v3139_v34  ;;  %v809_v1 = vpop.f32.mrb[14].mxu0  ;;  %1194 = vmatprep.mubr.bf16.mxu1 %v975_v59 }
 0x1e8   : > { %v2571_v3 = vadd.f32 %v809_v1, %v3145_v38  ;;  %v811_v5 = vpop.f32.mrb[15].mxu0  ;;  %1195 = vmatmul.mubr.bf16.gmra.mrb[24].mxu1 %v974_v57  ;;  %v962_v10 = vmax.f32 %v2569_v7, 0.0 }
 0x1e9   : > { %v2572_v31 = vadd.f32 %v811_v5, %v3145_v38  ;;  %v963_v13 = vmax.f32 %v2570_v28, 0.0 }
 0x1ea   : > { %v965_v12 = vmax.f32 %v2571_v3, 0.0 }
 0x1eb   : > { %v966_v14 = vmax.f32 %v2572_v31, 0.0 }
 0x1ec   : > { %v977_v2 = vpack.c.bf16 %v965_v12, %v962_v10 }
 0x1ed   : > { %v978_v4 = vpack.c.bf16 %v966_v14, %v963_v13  ;;  %v2301_v6 = vpop.f32.mrb[16].mxu0 }
 0x1ee   : > { %v2302_v8 = vpop.f32.mrb[17].mxu0 }
 0x1ef   : > { %v2303_v11 = vadd.f32 %v2302_v8, %v2301_v6  ;;  %v2304_v15 = vpop.f32.mrb[18].mxu0  ;;  %1202 = vmatprep.mubr.bf16.mxu1 %v978_v4 }
 0x1f0   : > { %v2305_v34 = vpop.f32.mrb[19].mxu0  ;;  %1203 = vmatmul.mubr.bf16.gmra.mrb[28].mxu1 %v977_v2 }
 0x1f1   : > { %v849_v20 = vadd.f32 %v2303_v11, %v3127_v18  ;;  %v2306_v25 = vadd.f32 %v2305_v34, %v2304_v15  ;;  %1210 = vmatprep.mubr.bf16.mxu1 %v2925_v47 }
 0x1f3   : > { %v914_v38 = vadd.f32 %v3137_v33, %v849_v20  ;;  %v852_v30 = vadd.f32 %v2306_v25, %v3125_v16 }
 0x1f5   : > { %v917_v37 = vadd.f32 %v3143_v36, %v852_v30  ;;  %v2307_v58 = vpop.f32.mrb[20].mxu0  ;;  %v946_v9 = vmax.f32 %v914_v38, 0.0 }
 0x1f6   : > { %v2308_v63 = vpop.f32.mrb[21].mxu0 }
 0x1f7   : > { %v949_v17 = vmax.f32 %v917_v37, 0.0  ;;  %v2309_v21 = vadd.f32 %v2308_v63, %v2307_v58  ;;  %v2310_v22 = vpop.f32.mrb[22].mxu0 }
 0x1f8   : > { %v2311_v24 = vpop.f32.mrb[23].mxu0  ;;  %1211 = vmatmul.mubr.bf16.gmra.mrb[32].mxu1 %v2931_v50 }
 0x1f9   : > { %v970_v18 = vpack.c.bf16 %v949_v17, %v946_v9  ;;  %v857_v26 = vadd.f32 %v2309_v21, %v3129_v19  ;;  %v2312_v47 = vadd.f32 %v2311_v24, %v2310_v22  ;;  %1218 = vmatprep.mubr.bf16.mxu1 %v2945_v55 }
 0x1fb   : > { %v922_v16 = vadd.f32 %v3135_v32, %v857_v26  ;;  %v860_v33 = vadd.f32 %v2312_v47, %v3131_v23  ;;  %2501 = vmatprep.mubr.msk.bf16.mxu0 %vm1123_vm10, %v970_v18 }
 0x1fd   : > { %v925_v36 = vadd.f32 %v3141_v35, %v860_v33  ;;  %v952_v27 = vmax.f32 %v922_v16, 0.0 }
 0x1ff   : > { %v955_v29 = vmax.f32 %v925_v36, 0.0 }
 0x200   : > { %1219 = vmatmul.mubr.bf16.gmra.mrb[36].mxu1 %v2950_v56 }
 0x201   : > { %v973_v50 = vpack.c.bf16 %v955_v29, %v952_v27  ;;  %v2704_v27 = vld [vmem:[%s3444_s6] sm:$0xff]  }
 0x202   : > { %2517 = vmatprep.mubr.msk.bf16.mxu1 %vm655_vm8, %v2704_v27 }
 0x203   : > { %2502 = vmatmul.mubr.msk.bf16.vlgmr.msra.gmra.mrb[24].mxu0 %vm1123_vm10, %v973_v50 }
 0x204   : > { %2505 = vmatprep.mubr.msk.bf16.mxu0 %vm1123_vm10, %v3152_v62 }
 0x20b   : > { %2506 = vmatmul.mubr.msk.bf16.gmra.mrb[28].mxu0 %vm1123_vm10, %v3150_v61 }
 0x20c   : > { %2509 = vmatprep.mubr.msk.bf16.mxu0 %vm1123_vm10, %v2915_v44 }
 0x213   : > { %2510 = vmatmul.mubr.msk.bf16.gmra.mrb[32].mxu0 %vm1123_vm10, %v2940_v53 }
 0x2ab   : > { %v2347_v55 = vpop.f32.mrb[16].mxu1 }
 0x2ac   : > { %v2348_v19 = vpop.f32.mrb[17].mxu1 }
 0x2ad   : > { %v2349_v23 = vadd.f32 %v2348_v19, %v2347_v55  ;;  %v2350_v32 = vpop.f32.mrb[18].mxu1 }
 0x2ae   : > { %v2351_v56 = vpop.f32.mrb[19].mxu1 }
 0x2af   : > { %v2352_v35 = vadd.f32 %v2351_v56, %v2350_v32  ;;  %v2713_v32 = vld [vmem:[%s3441_s3 + $0x4] ss:$20 sps:$4 sm:$0xff]   ;;  %v1504_v56 = vld [vmem:[%s3442_s4 + $0x8] sm:$0xff] }
 0x2b0   : > { %1800 = vmatprep.mubr.bf16.mxu0 %v2713_v32 }
 0x2b3   : > { %v2353_v39 = vpop.f32.mrb[20].mxu1 }
 0x2b4   : > { %v2354_v40 = vpop.f32.mrb[21].mxu1 }
 0x2b5   : > { %v2355_v41 = vadd.f32 %v2354_v40, %v2353_v39  ;;  %v2356_v42 = vpop.f32.mrb[22].mxu1  ;;  %v1506_v39 = vld [vmem:[%s3442_s4 + $0x18] sm:$0xff]  ;;  %v1505_v40 = vld [vmem:[%s3442_s4 + $0x10] sm:$0xff] }
 0x2b6   : > { %v2357_v62 = vpop.f32.mrb[23].mxu1 }
 0x2b7   : > { %v2358_v43 = vadd.f32 %v2357_v62, %v2356_v42  ;;  %v1507_v42 = vld [vmem:[%s3442_s4 + $0x20] sm:$0xff]  ;;  %v1510_v62 = vld [vmem:[%s3442_s4 + $0x38] sm:$0xff] }
 0x2bb   : > { %v2359_v45 = vpop.f32.mrb[24].mxu1 }
 0x2bc   : > { %v2360_v61 = vpop.f32.mrb[25].mxu1 }
 0x2bd   : > { %v2361_v46 = vadd.f32 %v2360_v61, %v2359_v45  ;;  %v2362_v48 = vpop.f32.mrb[26].mxu1  ;;  %v1327_v45 = vld [vmem:[%s3445_s7 + $0x8] sm:$0xff]  ;;  %v1326_v61 = vld [vmem:[%s3445_s7] sm:$0xff] }
 0x2be   : > { %v2363_v44 = vpop.f32.mrb[27].mxu1 }
 0x2bf   : > { %v2364_v49 = vadd.f32 %v2363_v44, %v2362_v48  ;;  %v1328_v48 = vld [vmem:[%s3445_s7 + $0x10] sm:$0xff]  ;;  %v1331_v44 = vld [vmem:[%s3445_s7 + $0x28] sm:$0xff] }
 0x2c3   : > { %v2365_v51 = vpop.f32.mrb[28].mxu1 }
 0x2c4   : > { %v2366_v53 = vpop.f32.mrb[29].mxu1 }
 0x2c5   : > { %v2367_v52 = vadd.f32 %v2366_v53, %v2365_v51  ;;  %v2368_v54 = vpop.f32.mrb[30].mxu1  ;;  %v1333_v51 = vld [vmem:[%s3445_s7 + $0x38] sm:$0xff]  ;;  %v1332_v53 = vld [vmem:[%s3445_s7 + $0x30] sm:$0xff] }
 0x2c6   : > { %v2369_v57 = vpop.f32.mrb[31].mxu1 }
 0x2c7   : > { %v2370_v59 = vadd.f32 %v2369_v57, %v2368_v54 }
 0x2cb   : > { %v2371_v60 = vpop.f32.mrb[32].mxu1 }
 0x2cc   : > { %v2372_v7 = vpop.f32.mrb[33].mxu1 }
 0x2cd   : > { %v2373_v0 = vadd.f32 %v2372_v7, %v2371_v60  ;;  %v2374_v28 = vpop.f32.mrb[34].mxu1 }
 0x2ce   : > { %v2375_v1 = vpop.f32.mrb[35].mxu1 }
 0x2cf   : > { %v2376_v3 = vadd.f32 %v2375_v1, %v2374_v28 }
 0x2d3   : > { %v2377_v5 = vpop.f32.mrb[36].mxu1 }
 0x2d4   : > { %v2378_v31 = vpop.f32.mrb[37].mxu1 }
 0x2d5   : > { %v2379_v10 = vadd.f32 %v2378_v31, %v2377_v5  ;;  %v2380_v12 = vpop.f32.mrb[38].mxu1  ;;  %v2705_v5 = vld [vmem:[%s3444_s6 + $0x8] sm:$0xff]   ;;  %v2706_v31 = vld [vmem:[%s3444_s6 + $0x10] sm:$0xff]  }
 0x2d6   : > { %v2381_v13 = vpop.f32.mrb[39].mxu1  ;;  %v2503_v14 = vpop.f32.mrb[24].mxu0 }
 0x2d7   : > { %v2382_v2 = vadd.f32 %v2381_v13, %v2380_v12  ;;  %v1270_v4 = vadd.f32 %v2503_v14, %v2355_v41  ;;  %v1261_v6 = vpop.f32.mrb[25].mxu0  ;;  %v1508_v41 = vld [vmem:[%s3442_s4 + $0x28] sm:$0xff] }
 0x2d8   : > { %v1262_v8 = vadd.f32 %v2349_v23, %v1261_v6  ;;  %v2504_v11 = vpop.f32.mrb[26].mxu0  ;;  %v2710_v6 = vld [vmem:[%s3441_s3 + $0xc] ss:$20 sps:$4 sm:$0xff]  }
 0x2d9   : > { %v1273_v15 = vadd.f32 %v2504_v11, %v2358_v43  ;;  %v1264_v34 = vpop.f32.mrb[27].mxu0  ;;  %v1509_v43 = vld [vmem:[%s3442_s4 + $0x30] sm:$0xff] }
 0x2da   : > { %v1265_v20 = vadd.f32 %v2352_v35, %v1264_v34  ;;  %v1503_v35 = vld [vmem:[%s3442_s4] sm:$0xff] }
 0x2db   : > { %v3190_v25 = vpack.c.bf16 %v1273_v15, %v1270_v4 }
 0x2dc   : > { %v3192_v38 = vpack.c.bf16 %v1265_v20, %v1262_v8 }
 0x2dd   : > { %1557 = vrot.lane.b32.xlu0 %v3190_v25, %s2753_s29  ;;  %1581 = vrot.lane.b32.xlu1 %v3190_v25, %s2748_s15 }
 0x2de   : > { %v2507_v30 = vpop.f32.mrb[28].mxu0 }
 0x2df   : > { %v1286_v37 = vadd.f32 %v2507_v30, %v2367_v52  ;;  %v1277_v58 = vpop.f32.mrb[29].mxu0 }
 0x2e0   : > { %v1278_v63 = vadd.f32 %v2361_v46, %v1277_v58  ;;  %v2508_v9 = vpop.f32.mrb[30].mxu0  ;;  %v1329_v46 = vld [vmem:[%s3445_s7 + $0x18] sm:$0xff] }
 0x2e1   : > { %v1289_v17 = vadd.f32 %v2508_v9, %v2370_v59  ;;  %v1280_v21 = vpop.f32.mrb[31].mxu0  ;;  %1555 = vrot.lane.b32.xlu0 %v3192_v38, %s2753_s29  ;;  %1579 = vrot.lane.b32.xlu1 %v3192_v38, %s2748_s15  ;;  %v2708_v9 = vld [vmem:[%s3441_s3 + $0x8] ss:$20 sps:$4 sm:$0xff]  }
 0x2e2   : > { %v1281_v22 = vadd.f32 %v2364_v49, %v1280_v21  ;;  %v1330_v49 = vld [vmem:[%s3445_s7 + $0x20] sm:$0xff] }
 0x2e3   : > { %v3202_v24 = vpack.c.bf16 %v1289_v17, %v1286_v37  ;;  %v2714_v17 = vld [vmem:[%s3441_s3 + $0x34] ss:$20 sps:$4 sm:$0xff]  }
 0x2e4   : > { %v3204_v18 = vpack.c.bf16 %v1281_v22, %v1278_v63 }
 0x2e5   : > { %1531 = vrot.lane.b32.xlu1 %v3192_v38, %s2745_s12 }
 0x2e6   : > { %v2511_v26 = vpop.f32.mrb[32].mxu0  ;;  %1583 = vrot.lane.b32.xlu0 %v3204_v18, %s2748_s15 }
 0x2e7   : > { %v1302_v47 = vadd.f32 %v2511_v26, %v2379_v10  ;;  %v1293_v16 = vpop.f32.mrb[33].mxu0  ;;  %v2711_v26 = vld [vmem:[%s3441_s3] ss:$20 sps:$4 sm:$0xff]  }
 0x2e8   : > { %v1294_v33 = vadd.f32 %v2373_v0, %v1293_v16  ;;  %v2512_v36 = vpop.f32.mrb[34].mxu0  ;;  %v2717_v16 = vld [vmem:[%s3441_s3 + $0x2c] ss:$20 sps:$4 sm:$0xff]  }
 0x2e9   : > { %v1305_v29 = vadd.f32 %v2512_v36, %v2382_v2  ;;  %v1296_v50 = vpop.f32.mrb[35].mxu0  ;;  %v2707_v2 = vld [vmem:[%s3444_s6 + $0x18] sm:$0xff]  }
 0x2ea   : > { %v1297_v55 = vadd.f32 %v2376_v3, %v1296_v50  ;;  %v2722_v50 = vld [vmem:[%s3441_s3 + $0x58] ss:$20 sps:$4 sm:$0xff]  }
 0x2eb   : > { %v1317_v19 = vpack.c.bf16 %v1305_v29, %v1302_v47  ;;  %v2716_v47 = vld [vmem:[%s3441_s3 + $0x30] ss:$20 sps:$4 sm:$0xff]   ;;  %v2721_v29 = vld [vmem:[%s3441_s3 + $0x28] ss:$20 sps:$4 sm:$0xff]  }
 0x2ec   : > { %v1316_v23 = vpack.c.bf16 %v1297_v55, %v1294_v33  ;;  %v2719_v33 = vld [vmem:[%s3441_s3 + $0x5c] ss:$20 sps:$4 sm:$0xff]   ;;  %v2723_v55 = vld [vmem:[%s3441_s3 + $0x54] ss:$20 sps:$4 sm:$0xff]  }
 0x2ed   : > { %1398 = vrot.lane.b32.xlu0 %v1317_v19, %s2753_s29  ;;  %v2725_v19 = vld [vmem:[%s3441_s3 + $0x84] ss:$20 sps:$4 sm:$0xff]  }
 0x2ee   : > { %1396 = vrot.lane.b32.xlu1 %v1316_v23, %s2753_s29 }
 0x2f1   : > { %1533 = vrot.lane.b32.xlu0 %v3190_v25, %s2745_s12 }
 0x2f2   : > { %1559 = vrot.lane.b32.xlu1 %v3204_v18, %s2753_s29 }
 0x2f5   : > { %1561 = vrot.lane.b32.xlu0 %v3202_v24, %s2753_s29 }
 0x2f6   : > { %1585 = vrot.lane.b32.xlu1 %v3202_v24, %s2748_s15 }
 0x2f9   : > { %1591 = vrot.lane.b32.xlu0 %v3192_v38, %s2754_s10 }
 0x2fa   : > { %1535 = vrot.lane.b32.xlu1 %v3204_v18, %s2745_s12 }
 0x2fd   : > { %1537 = vrot.lane.b32.xlu0 %v3202_v24, %s2745_s12  ;;  %s2253_s12 = sshll.u32 %s3452_s28, 5 }
 0x2fe   : > { %1567 = vrot.lane.b32.xlu1 %v3192_v38, %s2755_s13  ;;  %s305_s17 = scalar_lea.vmem %s3446_s8, %s2253_s12 }
 0x301   : > { %1569 = vrot.lane.b32.xlu0 %v3190_v25, %s2755_s13 }
 0x302   : > { %1593 = vrot.lane.b32.xlu1 %v3190_v25, %s2754_s10 }
 0x305   : > { %1595 = vrot.lane.b32.xlu0 %v3204_v18, %s2754_s10 }
 0x306   : > { %1543 = vrot.lane.b32.xlu1 %v3192_v38, %s2756_s14 }
 0x309   : > { %1571 = vrot.lane.b32.xlu0 %v3204_v18, %s2755_s13 }
 0x30a   : > { %1519 = vrot.lane.b32.xlu1 %v3192_v38, %s2744_s11 }
 0x30d   : > { %1597 = vrot.lane.b32.xlu0 %v3202_v24, %s2754_s10 }
 0x30e   : > { %1545 = vrot.lane.b32.xlu1 %v3190_v25, %s2756_s14 }
 0x311   : > { %1573 = vrot.lane.b32.xlu0 %v3202_v24, %s2755_s13 }
 0x312   : > { %1521 = vrot.lane.b32.xlu1 %v3190_v25, %s2744_s11 }
 0x315   : > { %1523 = vrot.lane.b32.xlu0 %v3204_v18, %s2744_s11 }
 0x316   : > { %1547 = vrot.lane.b32.xlu1 %v3204_v18, %s2756_s14 }
 0x319   : > { %1525 = vrot.lane.b32.xlu0 %v3202_v24, %s2744_s11 }
 0x31a   : > { %1549 = vrot.lane.b32.xlu1 %v3202_v24, %s2756_s14  ;;  %s2758_s14 = smov 11  }
 0x31d   : > { %1605 = vrot.lane.b32.xlu0 %v3190_v25, %s2757_s16 }
 0x31e   : > { %1603 = vrot.lane.b32.xlu1 %v3192_v38, %s2757_s16 }
 0x321   : > { %1609 = vrot.lane.b32.xlu0 %v3202_v24, %s2757_s16 }
 0x322   : > { %1607 = vrot.lane.b32.xlu1 %v3204_v18, %s2757_s16 }
 0x325   : > { %1622 = vperm.xlu0 %2640, %v1504_v56   ;;  %v2727_v56 = vld [vmem:[%s3441_s3 + $0x50] ss:$20 sps:$4 sm:$0xff]  }
 0x326   : > { %1617 = vperm.xlu1 %2641, %v1503_v35   ;;  %v2728_v35 = vld [vmem:[%s3441_s3 + $0x80] ss:$20 sps:$4 sm:$0xff]  }
 0x329   : > { %1632 = vperm.xlu0 %2640, %v1506_v39   ;;  %v2729_v39 = vld [vmem:[%s3441_s3 + $0x7c] ss:$20 sps:$4 sm:$0xff]  }
 0x32a   : > { %1627 = vperm.xlu1 %2641, %v1505_v40   ;;  %v2731_v40 = vld [vmem:[%s3441_s3 + $0x10] ss:$20 sps:$4 sm:$0xff]  }
 0x32d   : > { %1642 = vperm.xlu0 %2640, %v1508_v41   ;;  %v2732_v41 = vld [vmem:[%s3441_s3 + $0x78] ss:$20 sps:$4 sm:$0xff]  }
 0x32e   : > { %1637 = vperm.xlu1 %2641, %v1507_v42   ;;  %v2733_v42 = vld [vmem:[%s3441_s3 + $0x38] ss:$20 sps:$4 sm:$0xff]  }
 0x331   : > { %1652 = vperm.xlu0 %2640, %v1510_v62   ;;  %v2734_v62 = vld [vmem:[%s3441_s3 + $0x60] ss:$20 sps:$4 sm:$0xff]  }
 0x332   : > { %1647 = vperm.xlu1 %2641, %v1509_v43   ;;  %v2735_v43 = vld [vmem:[%s3441_s3 + $0x88] ss:$20 sps:$4 sm:$0xff]  }
 0x335   : > { %1341 = vperm.xlu0 %2640, %v1327_v45  }
 0x336   : > { %1336 = vperm.xlu1 %2641, %v1326_v61  }
 0x339   : > { %1351 = vperm.xlu0 %2640, %v1329_v46  }
 0x33a   : > { %1346 = vperm.xlu1 %2641, %v1328_v48  }
 0x33d   : > { %1361 = vperm.xlu0 %2640, %v1331_v44   ;;  %v1979_v44 = vlaneseq }
 0x33e   : > { %1356 = vperm.xlu1 %2641, %v1330_v49  }
 0x341   : > { %1371 = vperm.xlu0 %2640, %v1333_v51  }
 0x342   : > { %1366 = vperm.xlu1 %2641, %v1332_v53  }
 0x34f   : > { %v1558_v52 = vpop.permute.xlu0 %1557  ;;  %v1582_v54 = vpop.permute.xlu1 %1581 }
 0x353   : > { %v1580_v57 = vpop.permute.xlu1 %1579  ;;  %v1556_v59 = vpop.permute.xlu0 %1555 }
 0x357   : > { %v1532_v60 = vpop.permute.xlu1 %1531 }
 0x358   : > { %2397 = vmatprep.subr.bf16.mxu0 %v1532_v60  ;;  %v1584_v7 = vpop.permute.xlu0 %1583 }
 0x359   : > { %2398 = vmatpush3.bf16.msra.mxu0 %v3192_v38 }
 0x35f   : > { %v1399_v0 = vpop.permute.xlu0 %1398 }
 0x360   : > { %v1397_v28 = vpop.permute.xlu1 %1396 }
 0x361   : > { %2513 = vmatprep.subr.bf16.mxu1 %v1397_v28 }
 0x362   : > { %2514 = vmatpush3.bf16.msra.mxu1 %v1397_v28 }
 0x363   : > { %v1534_v1 = vpop.permute.xlu0 %1533  ;;  %2515 = vmatprep.subr.bf16.mxu1 %v1399_v0 }
 0x364   : > { %2399 = vmatprep.subr.bf16.mxu0 %v1534_v1  ;;  %v1560_v3 = vpop.permute.xlu1 %1559 }
 0x365   : > { %2400 = vmatpush3.bf16.msra.mxu0 %v3190_v25 }
 0x366   : > { %2516 = vmatpush3.bf16.msra.mxu1 %v1399_v0 }
 0x367   : > { %v1562_v10 = vpop.permute.xlu0 %1561  ;;  %2437 = vmatprep.subr.bf16.mxu1 %v1580_v57 }
 0x368   : > { %v1586_v12 = vpop.permute.xlu1 %1585 }
 0x369   : > { %2518 = vmatmul.mubr.msk.bf16.vlgmr.msra.gmra.mrb[40].mxu1 %vm655_vm8, %v2705_v5 }
 0x36a   : > { %2438 = vmatpush3.bf16.msra.mxu1 %v1556_v59  ;;  %2521 = vmatprep.mubr.msk.bf16.mxu1 %vm655_vm8, %v2706_v31  ;;  %v1980_v59 = vand.u32 127, %v1979_v44 }
 0x36b   : > { %v1592_v13 = vpop.permute.xlu0 %1591  ;;  %2439 = vmatprep.subr.bf16.mxu1 %v1582_v54 }
 0x36c   : > { %v1536_v14 = vpop.permute.xlu1 %1535  ;;  %v3378_v0 = vmul.u32.u64.low 3435973837, %v1980_v59  ;;  %v3379_v28 = vmul.u32.u64.high 3435973837, %v1980_v59, %v3378_v0 }
 0x36d   : > { %2401 = vmatprep.subr.bf16.mxu0 %v1536_v14 }
 0x36e   : > { %2402 = vmatpush3.bf16.msra.mxu0 %v3204_v18  ;;  %2440 = vmatpush3.bf16.msra.mxu1 %v1558_v52 }
 0x36f   : > { %v1538_v4 = vpop.permute.xlu0 %1537  ;;  %2441 = vmatprep.subr.bf16.mxu1 %v1584_v7 }
 0x370   : > { %2403 = vmatprep.subr.bf16.mxu0 %v1538_v4  ;;  %v1568_v8 = vpop.permute.xlu1 %1567 }
 0x371   : > { %2522 = vmatmul.mubr.msk.bf16.gmra.mrb[44].mxu1 %vm655_vm8, %v2707_v2 }
 0x372   : > { %2404 = vmatpush3.bf16.msra.mxu0 %v3202_v24  ;;  %2442 = vmatpush3.bf16.msra.mxu1 %v1560_v3 }
 0x373   : > { %v1570_v11 = vpop.permute.xlu0 %1569  ;;  %2443 = vmatprep.subr.bf16.mxu1 %v1586_v12  ;;  %1865 = vmatprep.mubr.bf16.mxu1 %v2710_v6 }
 0x374   : > { %v1594_v15 = vpop.permute.xlu1 %1593 }
 0x376   : > { %2444 = vmatpush3.bf16.msra.mxu1 %v1562_v10 }
 0x377   : > { %v1596_v34 = vpop.permute.xlu0 %1595  ;;  %2445 = vmatprep.subr.bf16.mxu1 %v1592_v13 }
 0x378   : > { %v1544_v20 = vpop.permute.xlu1 %1543 }
 0x379   : > { %2405 = vmatprep.subr.bf16.mxu0 %v1544_v20 }
 0x37a   : > { %2446 = vmatpush3.bf16.msra.mxu1 %v1568_v8 }
 0x37b   : > { %v1572_v25 = vpop.permute.xlu0 %1571  ;;  %2447 = vmatprep.subr.bf16.mxu1 %v1594_v15 }
 0x37c   : > { %v1520_v38 = vpop.permute.xlu1 %1519 }
 0x37d   : > { %2406 = vmatpush3.bf16.msra.mxu0 %v1520_v38  ;;  %v1987_v38 = vshrl.u32 %v3379_v28, 3 }
 0x37e   : > { %2448 = vmatpush3.bf16.msra.mxu1 %v1570_v11 }
 0x37f   : > { %v1598_v30 = vpop.permute.xlu0 %1597  ;;  %2449 = vmatprep.subr.bf16.mxu1 %v1596_v34 }
 0x380   : > { %v1546_v37 = vpop.permute.xlu1 %1545 }
 0x381   : > { %2407 = vmatprep.subr.bf16.mxu0 %v1546_v37 }
 0x382   : > { %2450 = vmatpush3.bf16.msra.mxu1 %v1572_v25 }
 0x383   : > { %v1574_v58 = vpop.permute.xlu0 %1573  ;;  %2451 = vmatprep.subr.bf16.mxu1 %v1598_v30 }
 0x384   : > { %v1522_v63 = vpop.permute.xlu1 %1521 }
 0x385   : > { %2408 = vmatpush3.bf16.msra.mxu0 %v1522_v63 }
 0x386   : > { %2452 = vmatpush3.bf16.msra.mxu1 %v1574_v58 }
 0x387   : > { %v1524_v21 = vpop.permute.xlu0 %1523 }
 0x388   : > { %v1548_v22 = vpop.permute.xlu1 %1547 }
 0x389   : > { %2409 = vmatprep.subr.bf16.mxu0 %v1548_v22  ;;  %1866 = vmatmul.mubr.bf16.vlgmr.msra.gmra.mrb[48].mxu1 %v2708_v9 }
 0x38a   : > { %2410 = vmatpush3.bf16.msra.mxu0 %v1524_v21  ;;  %1873 = vmatprep.mubr.bf16.mxu1 %v2714_v17 }
 0x38b   : > { %v1526_v18 = vpop.permute.xlu0 %1525 }
 0x38c   : > { %v1550_v24 = vpop.permute.xlu1 %1549 }
 0x38d   : > { %2411 = vmatprep.subr.bf16.mxu0 %v1550_v24 }
 0x38e   : > { %2412 = vmatpush3.bf16.msra.mxu0 %v1526_v18 }
 0x38f   : > { %v1606_v27 = vpop.permute.xlu0 %1605 }
 0x390   : > { %v1604_v36 = vpop.permute.xlu1 %1603 }
 0x391   : > { %1801 = vmatmul.mubr.bf16.vlgmr.msra.gmra.mrb[36].mxu0 %v2711_v26  ;;  %1874 = vmatmul.mubr.bf16.gmra.mrb[52].mxu1 %v2716_v47  ;;  %v1988_v47 = vmul.u32 10, %v1987_v38 }
 0x392   : > { %2525 = vmatprep.subr.bf16.mxu1 %v1604_v36  ;;  %1808 = vmatprep.mubr.bf16.mxu0 %v2717_v16 }
 0x393   : > { %2526 = vmatpush3.bf16.msra.mxu1 %v1604_v36  ;;  %1881 = vmatprep.mubr.bf16.mxu1 %v2719_v33  ;;  %v1610_v32 = vpop.permute.xlu0 %1609 }
 0x394   : > { %2527 = vmatprep.subr.bf16.mxu1 %v1606_v27  ;;  %v1608_v23 = vpop.permute.xlu1 %1607 }
 0x397   : > { %2528 = vmatpush3.bf16.msra.mxu1 %v1606_v27 }
 0x398   : > { %2529 = vmatprep.subr.bf16.mxu1 %v1608_v23 }
 0x399   : > { %1809 = vmatmul.mubr.bf16.gmra.mrb[40].mxu0 %v2721_v29  ;;  %1882 = vmatmul.mubr.bf16.gmra.mrb[56].mxu1 %v2722_v50 }
 0x39a   : > { %1816 = vmatprep.mubr.bf16.mxu0 %v2723_v55  ;;  %1889 = vmatprep.mubr.bf16.mxu1 %v2725_v19  ;;  %v1989_v19 = vsub.s32 %v1980_v59, %v1988_v47 }
 0x39b   : > { %2530 = vmatpush3.bf16.msra.mxu1 %v1608_v23 }
 0x39c   : > { %2531 = vmatprep.subr.bf16.mxu1 %v1610_v32  ;;  %vm1992_vm12 = vcmp.ne.s32.totalorder %v1989_v19, 0  ;;  %vm1993_vm13 = vcmp.lt.s32.totalorder %v1989_v19, 0 }
 0x39d   : > { %vm3386_vm14 = vmand %vm1993_vm13, %vm1992_vm12 }
 0x39f   : > { %2532 = vmatpush3.bf16.msra.mxu1 %v1610_v32 }
 0x3a1   : > { %1817 = vmatmul.mubr.bf16.gmra.mrb[44].mxu0 %v2727_v56  ;;  %1890 = vmatmul.mubr.bf16.gmra.mrb[60].mxu1 %v2728_v35 }
 0x3a2   : > { %1824 = vmatprep.mubr.bf16.mxu0 %v2729_v39  ;;  %2533 = vmatprep.mubr.msk.bf16.mxu1 %vm1755_vm11, %v2731_v40 }
 0x3a4   : > { %v1623_v45 = vpop.permute.xlu0 %1622 }
 0x3a5   : > { %v1618_v61 = vpop.permute.xlu1 %1617 }
 0x3a8   : > { %v1633_v46 = vpop.permute.xlu0 %1632 }
 0x3a9   : > { %1825 = vmatmul.mubr.bf16.gmra.mrb[48].mxu0 %v2732_v41  ;;  %2534 = vmatmul.mubr.msk.bf16.vlgmr.msra.gmra.mrb[40].mxu1 %vm1755_vm11, %v2733_v42  ;;  %v1628_v48 = vpop.permute.xlu1 %1627 }
 0x3aa   : > { %2537 = vmatprep.mubr.msk.bf16.mxu1 %vm1755_vm11, %v2734_v62 }
 0x3ac   : > { %v3376_v49 = vpop.permute.xlu0 %1642 }
 0x3ad   : > { %v1638_v53 = vpop.permute.xlu1 %1637 }
 0x3b0   : > { %v3381_v1 = vpop.permute.xlu0 %1652 }
 0x3b1   : > { %2538 = vmatmul.mubr.msk.bf16.gmra.mrb[44].mxu1 %vm1755_vm11, %v2735_v43  ;;  %v3383_v3 = vpop.permute.xlu1 %1647 }
 0x3b4   : > { %v1342_v30 = vpop.permute.xlu0 %1341 }
 0x3b5   : > { %v1337_v37 = vpop.permute.xlu1 %1336 }
 0x3b8   : > { %v1352_v23 = vpop.permute.xlu0 %1351 }
 0x3b9   : > { %v1347_v32 = vpop.permute.xlu1 %1346 }
 0x45c   : > { %v2453_v51 = vpop.f32.mrb[48].mxu1 }
 0x45d   : > { %v2454_v52 = vpop.f32.mrb[49].mxu1 }
 0x45e   : > { %v2455_v54 = vadd.f32 %v2454_v52, %v2453_v51  ;;  %v2456_v57 = vpop.f32.mrb[50].mxu1  ;;  %v1995_v52 = vadd.s32 10, %v1989_v19 }
 0x45f   : > { %v2457_v60 = vpop.f32.mrb[51].mxu1 }
 0x460   : > { %v2458_v7 = vadd.f32 %v2457_v60, %v2456_v57  ;;  %v1362_v60 = vpop.permute.xlu0 %1361 }
 0x464   : > { %v2413_v5 = vpop.f32.mrb[36].mxu0  ;;  %v2459_v31 = vpop.f32.mrb[52].mxu1 }
 0x465   : > { %v2414_v10 = vpop.f32.mrb[37].mxu0  ;;  %v2460_v12 = vpop.f32.mrb[53].mxu1 }
 0x466   : > { %v2415_v13 = vadd.f32 %v2414_v10, %v2413_v5  ;;  %v2416_v14 = vpop.f32.mrb[38].mxu0  ;;  %v2461_v2 = vadd.f32 %v2460_v12, %v2459_v31  ;;  %v2462_v4 = vpop.f32.mrb[54].mxu1  ;;  %v1996_v10 = vsel %vm3386_vm14, %v1995_v52, %v1989_v19 }
 0x467   : > { %v2417_v6 = vpop.f32.mrb[39].mxu0  ;;  %v2463_v8 = vpop.f32.mrb[55].mxu1  ;;  %vm3393_vm15 = vcmp.lt.s32.totalorder %v1996_v10, 8 }
 0x468   : > { %v1803_v11 = vadd.f32 %v2415_v13, %v1618_v61  ;;  %v2418_v15 = vadd.f32 %v2417_v6, %v2416_v14  ;;  %v2464_v34 = vadd.f32 %v2463_v8, %v2462_v4 }
 0x46a   : > { %v1806_v20 = vadd.f32 %v2418_v15, %v1623_v45  ;;  %v1868_v25 = vadd.f32 %v2455_v54, %v1803_v11 }
 0x46c   : > { %v1871_v58 = vadd.f32 %v2458_v7, %v1806_v20  ;;  %v2419_v63 = vpop.f32.mrb[40].mxu0  ;;  %v2465_v9 = vpop.f32.mrb[56].mxu1 }
 0x46d   : > { %v2420_v17 = vpop.f32.mrb[41].mxu0  ;;  %v2466_v21 = vpop.f32.mrb[57].mxu1 }
 0x46e   : > { %v2421_v22 = vadd.f32 %v2420_v17, %v2419_v63  ;;  %v2422_v24 = vpop.f32.mrb[42].mxu0  ;;  %v2467_v18 = vadd.f32 %v2466_v21, %v2465_v9  ;;  %v2468_v26 = vpop.f32.mrb[58].mxu1  ;;  %v2579_v15 = vadd.f32 %v1871_v58, %v1342_v30 }
 0x46f   : > { %v2423_v16 = vpop.f32.mrb[43].mxu0  ;;  %v2469_v33 = vpop.f32.mrb[59].mxu1 }
 0x470   : > { %v1811_v36 = vadd.f32 %v2421_v22, %v1628_v48  ;;  %v2424_v27 = vadd.f32 %v2423_v16, %v2422_v24  ;;  %v2470_v29 = vadd.f32 %v2469_v33, %v2468_v26  ;;  %v1357_v7 = vpop.permute.xlu1 %1356 }
 0x472   : > { %v1814_v50 = vadd.f32 %v2424_v27, %v1633_v46  ;;  %v1876_v55 = vadd.f32 %v2461_v2, %v1811_v36 }
 0x474   : > { %v1879_v56 = vadd.f32 %v2464_v34, %v1814_v50  ;;  %v2425_v35 = vpop.f32.mrb[44].mxu0  ;;  %v2471_v39 = vpop.f32.mrb[60].mxu1  ;;  %v2573_v0 = vadd.f32 %v1876_v55, %v1347_v32 }
 0x475   : > { %v2426_v40 = vpop.f32.mrb[45].mxu0  ;;  %v2472_v41 = vpop.f32.mrb[61].mxu1 }
 0x476   : > { %v2427_v42 = vadd.f32 %v2426_v40, %v2425_v35  ;;  %v2428_v62 = vpop.f32.mrb[46].mxu0  ;;  %v2473_v43 = vadd.f32 %v2472_v41, %v2471_v39  ;;  %v2474_v45 = vpop.f32.mrb[62].mxu1  ;;  %v2577_v2 = vadd.f32 %v1879_v56, %v1352_v23 }
 0x477   : > { %v2429_v61 = vpop.f32.mrb[47].mxu0  ;;  %v2475_v48 = vpop.f32.mrb[63].mxu1 }
 0x478   : > { %v1819_v44 = vadd.f32 %v2427_v42, %v1638_v53  ;;  %v2430_v51 = vadd.f32 %v2429_v61, %v2428_v62  ;;  %v2476_v46 = vadd.f32 %v2475_v48, %v2474_v45  ;;  %v2575_v53 = vadd.f32 %v1868_v25, %v1337_v37  ;;  %v1367_v26 = vpop.permute.xlu1 %1366 }
 0x47a   : > { %v1884_v57 = vadd.f32 %v2467_v18, %v1819_v44  ;;  %v1822_v59 = vadd.f32 %v2430_v51, %v3376_v49 }
 0x47c   : > { %v1887_v28 = vadd.f32 %v2470_v29, %v1822_v59  ;;  %v2431_v5 = vpop.f32.mrb[48].mxu0  ;;  %v2535_v31 = vpop.f32.mrb[40].mxu1  ;;  %v2583_v16 = vadd.f32 %v1884_v57, %v1357_v7 }
 0x47d   : > { %v2574_v12 = vadd.f32 %v2573_v0, %v2535_v31  ;;  %v2432_v13 = vpop.f32.mrb[49].mxu0  ;;  %v1932_v14 = vpop.f32.mrb[41].mxu1 }
 0x47e   : > { %v2433_v4 = vadd.f32 %v2432_v13, %v2431_v5  ;;  %v2576_v6 = vadd.f32 %v2575_v53, %v1932_v14  ;;  %v2434_v8 = vpop.f32.mrb[50].mxu0  ;;  %v2536_v11 = vpop.f32.mrb[42].mxu1  ;;  %v2587_v35 = vadd.f32 %v1887_v28, %v1362_v60 }
 0x47f   : > { %v1973_v49 = vmax.f32 %v2574_v12, 0.0  ;;  %v2578_v20 = vadd.f32 %v2577_v2, %v2536_v11  ;;  %v2435_v38 = vpop.f32.mrb[51].mxu0  ;;  %v1935_v63 = vpop.f32.mrb[43].mxu1 }
 0x480   : > { %v1827_v9 = vadd.f32 %v2433_v4, %v3383_v3  ;;  %v1971_v25 = vmax.f32 %v2576_v6, 0.0  ;;  %v2436_v37 = vadd.f32 %v2435_v38, %v2434_v8  ;;  %v2580_v17 = vadd.f32 %v2579_v15, %v1935_v63  ;;  %v1372_v29 = vpop.permute.xlu0 %1371 }
 0x481   : > { %v1974_v21 = vmax.f32 %v2578_v20, 0.0  ;;  %v2002_v30 = vsel %vm3393_vm15, %v1973_v49, 0.0 }
 0x482   : > { %v1830_v22 = vadd.f32 %v2436_v37, %v3381_v1  ;;  %v1972_v24 = vmax.f32 %v2580_v17, 0.0  ;;  %v1892_v18 = vadd.f32 %v2473_v43, %v1827_v9  ;;  %v2000_v58 = vsel %vm3393_vm15, %v1971_v25, 0.0 }
 0x483   : > { %v2003_v47 = vsel %vm3393_vm15, %v1974_v21, 0.0 }
 0x484   : > { %v2642_v3 = vpack.i.bf16 %v2003_v47, %v2002_v30  ;;  %v2001_v33 = vsel %vm3393_vm15, %v1972_v24, 0.0  ;;  %v2539_v36 = vpop.f32.mrb[44].mxu1  ;;  %v2581_v27 = vadd.f32 %v1892_v18, %v1367_v26  ;;  %v1895_v1 = vadd.f32 %v2476_v46, %v1830_v22 }
 0x485   : > { %v2647_v50 = vpack.i.bf16 %v2001_v33, %v2000_v58  ;;  %v1948_v55 = vpop.f32.mrb[45].mxu1 }
 0x486   : > { %v2582_v19 = vadd.f32 %v2581_v27, %v2539_v36  ;;  %v2584_v23 = vadd.f32 %v2583_v16, %v1948_v55  ;;  %v2540_v32 = vpop.f32.mrb[46].mxu1  ;;  %v2585_v56 = vadd.f32 %v1895_v1, %v1372_v29  ;;  %2643 = vrot.lane.b32.xlu0 %v2642_v3, %s2758_s14 }
 0x487   : > { %v1951_v39 = vpop.f32.mrb[47].mxu1  ;;  %2648 = vrot.lane.b32.xlu1 %v2647_v50, %s2758_s14 }
 0x488   : > { %v1977_v40 = vmax.f32 %v2582_v19, 0.0  ;;  %v1975_v41 = vmax.f32 %v2584_v23, 0.0  ;;  %v2586_v42 = vadd.f32 %v2585_v56, %v2540_v32  ;;  %v2588_v62 = vadd.f32 %v2587_v35, %v1951_v39 }
 0x48a   : > { %v1978_v43 = vmax.f32 %v2586_v42, 0.0  ;;  %v1976_v45 = vmax.f32 %v2588_v62, 0.0  ;;  %v2006_v61 = vsel %vm3393_vm15, %v1977_v40, 0.0  ;;  %v2004_v48 = vsel %vm3393_vm15, %v1975_v41, 0.0 }
 0x48c   : > { %v2007_v44 = vsel %vm3393_vm15, %v1978_v43, 0.0  ;;  %v2005_v51 = vsel %vm3393_vm15, %v1976_v45, 0.0 }
 0x48d   : > { %v2657_v46 = vpack.i.bf16 %v2007_v44, %v2006_v61  ;;  %v2652_v52 = vpack.i.bf16 %v2005_v51, %v2004_v48 }
 0x48f   : > { %2653 = vrot.lane.b32.xlu1 %v2652_v52, %s2758_s14  ;;  %2658 = vrot.lane.b32.xlu0 %v2657_v46, %s2758_s14 }
 0x4f8   : > { %v2644_v54 = vpop.permute.xlu0 %2643 }
 0x4f9   : > { %v2646_v57 = vunpack.i.h.bf16 %v2644_v54  ;;  %v2645_v59 = vunpack.i.l.bf16 %v2644_v54  ;;  %v2649_v60 = vpop.permute.xlu1 %2648 }
 0x4fa   : > { %v2651_v7 = vunpack.i.h.bf16 %v2649_v60  ;;  %v2650_v0 = vunpack.i.l.bf16 %v2649_v60 }
 0x4fb   : > { %v2044_v28 = vsel %vm2040_vm0, 0.0, %v2646_v57  ;;  %v2043_v5 = vsel %vm2040_vm0, 0.0, %v2645_v59 }
 0x4fc   : > { %v2053_v31 = vsel %vm2049_vm1, %v2044_v28, 0.0  ;;  %v2052_v10 = vsel %vm2049_vm1, %v2043_v5, 0.0  ;;  %v2042_v53 = vsel %vm2040_vm0, 0.0, %v2651_v7  ;;  %v2041_v12 = vsel %vm2040_vm0, 0.0, %v2650_v0 }
 0x4fd   : > { %v2270_v13 = vpack.c.bf16 %v2053_v31, %v2052_v10  ;;  %v2051_v14 = vsel %vm2049_vm1, %v2042_v53, 0.0  ;;  %v2050_v2 = vsel %vm2049_vm1, %v2041_v12, 0.0 }
 0x4fe   : > { %v2265_v4 = vpack.c.bf16 %v2051_v14, %v2050_v2 }
 0x4ff   : > { %2282 = vst [vmem:[%s305_s17 + $0x8] sm:$0xff] %v2270_v13  }
 0x500   : > { %2266 = vst [vmem:[%s305_s17] sm:$0xff] %v2265_v4  }
 0x501   : > { %v2659_v6 = vpop.permute.xlu0 %2658  ;;  %v2654_v8 = vpop.permute.xlu1 %2653 }
 0x502   : > { %v2661_v11 = vunpack.i.h.bf16 %v2659_v6  ;;  %v2660_v15 = vunpack.i.l.bf16 %v2659_v6  ;;  %v2656_v49 = vunpack.i.h.bf16 %v2654_v8  ;;  %v2655_v34 = vunpack.i.l.bf16 %v2654_v8 }
 0x504   : > { %v2048_v20 = vsel %vm2040_vm0, 0.0, %v2661_v11  ;;  %v2047_v38 = vsel %vm2040_vm0, 0.0, %v2660_v15  ;;  %v2046_v63 = vsel %vm2040_vm0, 0.0, %v2656_v49  ;;  %v2045_v9 = vsel %vm2040_vm0, 0.0, %v2655_v34 }
 0x505   : > { %v2057_v25 = vsel %vm2049_vm1, %v2048_v20, 0.0  ;;  %v2056_v37 = vsel %vm2049_vm1, %v2047_v38, 0.0  ;;  %v2055_v17 = vsel %vm2049_vm1, %v2046_v63, 0.0  ;;  %v2054_v21 = vsel %vm2049_vm1, %v2045_v9, 0.0 }
 0x506   : > { %v2280_v22 = vpack.c.bf16 %v2057_v25, %v2056_v37  ;;  %v2275_v24 = vpack.c.bf16 %v2055_v17, %v2054_v21 }
 0x508   : > { %2284 = vst [vmem:[%s305_s17 + $0x18] sm:$0xff] %v2280_v22   ;;  %2283 = vst [vmem:[%s305_s17 + $0x10] sm:$0xff] %v2275_v24  }
 0x509 PF: > { %s18_s27 = sadd.s32 1, %s2742_s27  }
 0x50a   : > { %p15_p4 = scmp.ge.s32.totalorder %s18_s27, 4  }
 0x50c   :  { %17 = sbr.rel (!%p15_p4) target bundleno = 1 (0x1), region = 82 }

// kernel: mapping_layer_forward.5
= control target key start
LH: loop header
LB: loop body
LE: loop exit
PB: predicated region body
PF: predicated region fallthrough
CT: control target
= control target key end

     0   :  { %s4990_s27 = smov 0   ;;  %s6419_s0 = inlined_call_operand.vmem [shape: bf16[2,16,1280], index: 0, kind: input, shape index: {}]   ;;  %s6420_s1 = inlined_call_operand.vmem [shape: bf16[32,144], index: 1, kind: input, shape index: {}]   ;;  %s6421_s2 = inlined_call_operand.vmem [shape: f32[32,1], index: 2, kind: input, shape index: {}, may-alias: {2,4,7}]   ;;  %s6422_s3 = inlined_call_operand.vmem [shape: bf16[32,288], index: 3, kind: input, shape index: {}]   ;;  %s6423_s4 = inlined_call_operand.vmem [shape: f32[32,1], index: 4, kind: input, shape index: {}, may-alias: {2,4,7}]   ;;  %s6424_s5 = inlined_call_operand.vmem [shape: bf16[1086,384], index: 5, kind: input, shape index: {}]   ;;  %s6425_s6 = inlined_call_operand.vmem [shape: bf16[32,16], index: 6, kind: input, shape index: {}]   ;;  %s6426_s7 = inlined_call_operand.vmem [shape: f32[32,1], index: 7, kind: input, shape index: {}, may-alias: {2,4,7}]   ;;  %s6427_s8 = inlined_call_operand.vmem [shape: bf16[2,32,384], index: 8, kind: output, shape index: {}]  }
   0x1 LB: > { %s3962_s28 = sadd.s32 4294967295, %s4926_s27   ;;  %p3966_p0 = scmp.ge.s32.totalorder %s4926_s27, 1  ;;  %s4926_s27 = sphi %s4990_s27, %s18_s27  }
   0x2   : > { %p262_p1 = scmp.lt.s32.totalorder %s4926_s27, 3 }
   0x4   : > { %p263_p2 = pnand %p3966_p0, %p262_p1 }
   0x5   : > { %p296_p3 = scmp.lt.s32.totalorder (!%p263_p2), %s3962_s28, 1  ;;  %s4928_s11 = smov (!%p263_p2), 127   ;;  %v4932_v4 = vmov (!%p263_p2), 0   ;;  %v5033_v5 = vld [vmem:[%s6420_s1 + $0x4] ss:$8 sps:$4 sm:$0xff] (!%p263_p2)   ;;  %vm756_vm0 = vcmask (!%p263_p2), 130048  }
   0x6   : > { %266 = sbr.rel (%p263_p2) target bundleno = 1439 (0x59f), region = 52  ;;  %s4929_s12 = smov (!%p263_p2), 126   ;;  %4585 = vset.pattern.permute.xlu1 (!%p263_p2), %v4932_v4  ;;  %4584 = vset.pattern.permute.xlu0 (!%p263_p2), %v4932_v4  ;;  %vm399_vm1 = vcmask (!%p263_p2), 1039360   ;;  %vm435_vm2 = vcmask (!%p263_p2), 1031168   ;;  %vm471_vm3 = vcmask (!%p263_p2), 769024   ;;  %vm507_vm4 = vcmask (!%p263_p2), 760832  }
   0x7   : > { %s4930_s13 = smov (!%p263_p2), 94   ;;  %s4931_s14 = smov (!%p263_p2), 93   ;;  %3992 = vmatprep.mubr.msk.bf16.mxu0 (!%p263_p2), %vm756_vm0, %v5033_v5  ;;  %3994 = vmatprep.mubr.msk.bf16.mxu1 (!%p263_p2), %vm756_vm0, %v5033_v5  ;;  %vm543_vm5 = vcmask (!%p263_p2), 752640   ;;  %vm621_vm6 = vcmask (!%p263_p2), 490496   ;;  %v311_v39 = vld [vmem:[%s6421_s2] sm:$0xff] (!%p263_p2)  ;;  %v312_v41 = vld [vmem:[%s6421_s2 + $0x8] sm:$0xff] (!%p263_p2) }
   0x8   : > { %s4933_s15 = smov (!%p263_p2), 92   ;;  %s4934_s16 = smov (!%p263_p2), 60   ;;  %vm660_vm7 = vcmask (!%p263_p2), 482304   ;;  %v313_v45 = vld [vmem:[%s6421_s2 + $0x10] sm:$0xff] (!%p263_p2)  ;;  %v314_v50 = vld [vmem:[%s6421_s2 + $0x18] sm:$0xff] (!%p263_p2)  ;;  %vm699_vm8 = vcmask (!%p263_p2), 474112  }
   0x9   : > { %s4935_s19 = smov (!%p263_p2), 59   ;;  %s4936_s20 = smov (!%p263_p2), 58   ;;  %v5208_v57 = vld [vmem:[%s6420_s1] ss:$8 sps:$4 sm:$0xff] (!%p263_p2)   ;;  %v5213_v58 = vld [vmem:[%s6420_s1 + $0x14] ss:$8 sps:$4 sm:$0xff] (!%p263_p2)  }
   0xa   : > { %vm2445_vm9 = vcmask (!%p263_p2), 1046528   ;;  %vm4938_vm10 = vmmov (!%p263_p2), 0   ;;  %vm2435_vm11 = vcmask (!%p263_p2), 506880   ;;  %s4939_s18 = smov (!%p263_p2), 109   ;;  %vm3117_vm12 = vcmask (!%p263_p2), 891904  }
   0xb   : > { %vm3311_vm13 = vcmask (!%p263_p2), 900096   ;;  %vm3356_vm14 = vcmask (!%p263_p2), 883712   ;;  %vm3401_vm15 = vcmask (!%p263_p2), 744448  }
   0xd   : > { %s6439_s28 = smov (!%p296_p3, %s3962_s28), 1 }
   0xe   : > { %s4551_s29 = smul.u32 80, %s6439_s28 }
  0x10   : > { %s5004_s10 = scalar_lea.vmem %s6419_s0, %s4551_s29 }
  0x11   : > { %v4616_v0 = vld [vmem:[%s5004_s10 + $0x4] ss:$40 sps:$4 sm:$0xff]   ;;  %v4618_v1 = vld [vmem:[%s5004_s10] ss:$40 sps:$4 sm:$0xff]   ;;  %v5044_v6 = vld [vmem:[%s5004_s10 + $0x10] ss:$40 sps:$4 sm:$0xff]  }
  0x12   : > { %383 = vrot.lane.b32.xlu0 %v4616_v0, %s4928_s11  ;;  %v4619_v2 = vld [vmem:[%s5004_s10 + $0x8] ss:$40 sps:$4 sm:$0xff]   ;;  %v4621_v3 = vld [vmem:[%s5004_s10 + $0xc] ss:$40 sps:$4 sm:$0xff]   ;;  %763 = vmatprep.subr.bf16.mxu0 %v4616_v0  ;;  %v5073_v8 = vld [vmem:[%s5004_s10 + $0x18] ss:$40 sps:$4 sm:$0xff]  }
  0x13   : > { %381 = vrot.lane.b32.xlu1 %v4618_v1, %s4928_s11  ;;  %764 = vmatpush1.bf16.msra.mxu0 %v4618_v1  ;;  %v5070_v7 = vld [vmem:[%s5004_s10 + $0x14] ss:$40 sps:$4 sm:$0xff]   ;;  %v5114_v10 = vld [vmem:[%s5004_s10 + $0x20] ss:$40 sps:$4 sm:$0xff]   ;;  %v4631_v35 = vld [vmem:[%s5004_s10 + $0x24] ss:$40 sps:$4 sm:$0xff]  }
  0x14   : > { %816 = vmatprep.subr.bf16.mxu1 %v4621_v3  ;;  %v5109_v9 = vld [vmem:[%s5004_s10 + $0x1c] ss:$40 sps:$4 sm:$0xff]   ;;  %v4629_v24 = vld [vmem:[%s5004_s10 + $0x20] ss:$40 sps:$4 sm:$0xff]  }
  0x15   : > { %817 = vmatpush1.bf16.msra.mxu1 %v4619_v2 }
  0x16   : > { %385 = vrot.lane.b32.xlu0 %v4619_v2, %s4928_s11 }
  0x17   : > { %419 = vrot.lane.b32.xlu1 %v4616_v0, %s4929_s12 }
  0x1a   : > { %421 = vrot.lane.b32.xlu0 %v4619_v2, %s4929_s12 }
  0x1b   : > { %417 = vrot.lane.b32.xlu1 %v4618_v1, %s4929_s12 }
  0x1e   : > { %455 = vrot.lane.b32.xlu0 %v4616_v0, %s4930_s13 }
  0x1f   : > { %457 = vrot.lane.b32.xlu1 %v4619_v2, %s4930_s13 }
  0x22   : > { %453 = vrot.lane.b32.xlu0 %v4618_v1, %s4930_s13 }
  0x23   : > { %491 = vrot.lane.b32.xlu1 %v4616_v0, %s4931_s14 }
  0x26   : > { %493 = vrot.lane.b32.xlu0 %v4619_v2, %s4931_s14 }
  0x27   : > { %489 = vrot.lane.b32.xlu1 %v4618_v1, %s4931_s14 }
  0x2a   : > { %527 = vrot.lane.b32.xlu0 %v4616_v0, %s4933_s15 }
  0x2b   : > { %529 = vrot.lane.b32.xlu1 %v4619_v2, %s4933_s15 }
  0x2e   : > { %525 = vrot.lane.b32.xlu0 %v4618_v1, %s4933_s15 }
  0x2f   : > { %603 = vrot.lane.b32.xlu1 %v4616_v0, %s4934_s16 }
  0x32   : > { %605 = vrot.lane.b32.xlu0 %v4619_v2, %s4934_s16 }
  0x33   : > { %601 = vrot.lane.b32.xlu1 %v4618_v1, %s4934_s16 }
  0x36   : > { %642 = vrot.lane.b32.xlu0 %v4616_v0, %s4935_s19 }
  0x37   : > { %644 = vrot.lane.b32.xlu1 %v4619_v2, %s4935_s19 }
  0x3a   : > { %640 = vrot.lane.b32.xlu0 %v4618_v1, %s4935_s19 }
  0x3b   : > { %681 = vrot.lane.b32.xlu1 %v4616_v0, %s4936_s20 }
  0x3e   : > { %683 = vrot.lane.b32.xlu0 %v4619_v2, %s4936_s20 }
  0x3f   : > { %679 = vrot.lane.b32.xlu1 %v4618_v1, %s4936_s20 }
  0x42   : > { %387 = vrot.lane.b32.xlu0 %v4621_v3, %s4928_s11 }
  0x43   : > { %389 = vrot.lane.b32.xlu1 %v5044_v6, %s4928_s11 }
  0x46   : > { %423 = vrot.lane.b32.xlu0 %v4621_v3, %s4929_s12 }
  0x47   : > { %425 = vrot.lane.b32.xlu1 %v5044_v6, %s4929_s12 }
  0x4a   : > { %459 = vrot.lane.b32.xlu0 %v4621_v3, %s4930_s13 }
  0x4b   : > { %461 = vrot.lane.b32.xlu1 %v5044_v6, %s4930_s13 }
  0x4e   : > { %495 = vrot.lane.b32.xlu0 %v4621_v3, %s4931_s14 }
  0x4f   : > { %497 = vrot.lane.b32.xlu1 %v5044_v6, %s4931_s14 }
  0x52   : > { %531 = vrot.lane.b32.xlu0 %v4621_v3, %s4933_s15 }
  0x53   : > { %533 = vrot.lane.b32.xlu1 %v5044_v6, %s4933_s15 }
  0x56   : > { %607 = vrot.lane.b32.xlu0 %v4621_v3, %s4934_s16 }
  0x57   : > { %609 = vrot.lane.b32.xlu1 %v5044_v6, %s4934_s16 }
  0x5a   : > { %646 = vrot.lane.b32.xlu0 %v4621_v3, %s4935_s19 }
  0x5b   : > { %648 = vrot.lane.b32.xlu1 %v5044_v6, %s4935_s19 }
  0x5e   : > { %685 = vrot.lane.b32.xlu0 %v4621_v3, %s4936_s20  ;;  %v5229_v3 = vld [vmem:[%s6420_s1 + $0x10] ss:$8 sps:$4 sm:$0xff]  }
  0x5f   : > { %687 = vrot.lane.b32.xlu1 %v5044_v6, %s4936_s20 }
  0x62   : > { %391 = vrot.lane.b32.xlu0 %v5070_v7, %s4928_s11 }
  0x63   : > { %393 = vrot.lane.b32.xlu1 %v5073_v8, %s4928_s11 }
  0x66   : > { %427 = vrot.lane.b32.xlu0 %v5070_v7, %s4929_s12 }
  0x67   : > { %429 = vrot.lane.b32.xlu1 %v5073_v8, %s4929_s12 }
  0x6a   : > { %463 = vrot.lane.b32.xlu0 %v5070_v7, %s4930_s13 }
  0x6b   : > { %465 = vrot.lane.b32.xlu1 %v5073_v8, %s4930_s13 }
  0x6e   : > { %499 = vrot.lane.b32.xlu0 %v5070_v7, %s4931_s14 }
  0x6f   : > { %501 = vrot.lane.b32.xlu1 %v5073_v8, %s4931_s14 }
  0x72   : > { %535 = vrot.lane.b32.xlu0 %v5070_v7, %s4933_s15 }
  0x73   : > { %537 = vrot.lane.b32.xlu1 %v5073_v8, %s4933_s15 }
  0x76   : > { %611 = vrot.lane.b32.xlu0 %v5070_v7, %s4934_s16 }
  0x77   : > { %613 = vrot.lane.b32.xlu1 %v5073_v8, %s4934_s16 }
  0x7a   : > { %650 = vrot.lane.b32.xlu0 %v5070_v7, %s4935_s19 }
  0x7b   : > { %652 = vrot.lane.b32.xlu1 %v5073_v8, %s4935_s19 }
  0x7e   : > { %689 = vrot.lane.b32.xlu0 %v5070_v7, %s4936_s20 }
  0x7f   : > { %691 = vrot.lane.b32.xlu1 %v5073_v8, %s4936_s20 }
  0x82   : > { %395 = vrot.lane.b32.xlu0 %v5109_v9, %s4928_s11 }
  0x83   : > { %397 = vrot.lane.b32.xlu1 %v5114_v10, %s4928_s11 }
  0x84   : > { %v384_v11 = vpop.permute.xlu0 %383 }
  0x85   : > { %v382_v12 = vpop.permute.xlu1 %381 }
  0x86   : > { %431 = vrot.lane.b32.xlu0 %v5109_v9, %s4929_s12  ;;  %v400_v16 = vsel %vm399_vm1, %v382_v12, %v384_v11 }
  0x87   : > { %433 = vrot.lane.b32.xlu1 %v5114_v10, %s4929_s12 }
  0x88   : > { %v5124_v13 = vpop.permute.xlu0 %385 }
  0x89   : > { %v420_v14 = vpop.permute.xlu1 %419  ;;  %v401_v15 = vsel %vm399_vm1, %v384_v11, %v5124_v13 }
  0x8a   : > { %467 = vrot.lane.b32.xlu0 %v5109_v9, %s4930_s13  ;;  %765 = vmatprep.subr.bf16.mxu0 %v401_v15 }
  0x8b   : > { %469 = vrot.lane.b32.xlu1 %v5114_v10, %s4930_s13  ;;  %766 = vmatpush1.bf16.msra.mxu0 %v400_v16 }
  0x8c   : > { %v5133_v17 = vpop.permute.xlu0 %421 }
  0x8d   : > { %v418_v18 = vpop.permute.xlu1 %417  ;;  %v437_v19 = vsel %vm435_vm2, %v420_v14, %v5133_v17 }
  0x8e   : > { %503 = vrot.lane.b32.xlu0 %v5109_v9, %s4931_s14  ;;  %767 = vmatprep.subr.bf16.mxu0 %v437_v19  ;;  %v436_v20 = vsel %vm435_vm2, %v418_v18, %v420_v14 }
  0x8f   : > { %505 = vrot.lane.b32.xlu1 %v5114_v10, %s4931_s14  ;;  %768 = vmatpush1.bf16.msra.mxu0 %v436_v20  ;;  %s4944_s14 = smov 19  }
  0x90   : > { %v456_v21 = vpop.permute.xlu0 %455 }
  0x91   : > { %v5142_v22 = vpop.permute.xlu1 %457 }
  0x92   : > { %539 = vrot.lane.b32.xlu0 %v5109_v9, %s4933_s15  ;;  %v473_v23 = vsel %vm471_vm3, %v456_v21, %v5142_v22 }
  0x93   : > { %541 = vrot.lane.b32.xlu1 %v5114_v10, %s4933_s15  ;;  %769 = vmatprep.subr.bf16.mxu0 %v473_v23 }
  0x94   : > { %v454_v25 = vpop.permute.xlu0 %453 }
  0x95   : > { %v492_v26 = vpop.permute.xlu1 %491  ;;  %v472_v27 = vsel %vm471_vm3, %v454_v25, %v456_v21 }
  0x96   : > { %615 = vrot.lane.b32.xlu0 %v5109_v9, %s4934_s16  ;;  %770 = vmatpush1.bf16.msra.mxu0 %v472_v27 }
  0x97   : > { %617 = vrot.lane.b32.xlu1 %v4629_v24, %s4934_s16 }
  0x98   : > { %v5155_v28 = vpop.permute.xlu0 %493 }
  0x99   : > { %v490_v29 = vpop.permute.xlu1 %489  ;;  %v5159_v30 = vsel %vm507_vm4, %v492_v26, %v5155_v28 }
  0x9a   : > { %654 = vrot.lane.b32.xlu0 %v5109_v9, %s4935_s19  ;;  %771 = vmatprep.subr.bf16.mxu0 %v5159_v30  ;;  %v5165_v31 = vsel %vm507_vm4, %v490_v29, %v492_v26 }
  0x9b   : > { %656 = vrot.lane.b32.xlu1 %v4629_v24, %s4935_s19  ;;  %772 = vmatpush1.bf16.msra.mxu0 %v5165_v31 }
  0x9c   : > { %v528_v32 = vpop.permute.xlu0 %527 }
  0x9d   : > { %v5169_v33 = vpop.permute.xlu1 %529 }
  0x9e   : > { %693 = vrot.lane.b32.xlu0 %v5109_v9, %s4936_s20  ;;  %v545_v34 = vsel %vm543_vm5, %v528_v32, %v5169_v33 }
  0x9f   : > { %695 = vrot.lane.b32.xlu1 %v4629_v24, %s4936_s20  ;;  %773 = vmatprep.subr.bf16.mxu0 %v545_v34 }
  0xa0   : > { %v526_v36 = vpop.permute.xlu0 %525 }
  0xa1   : > { %v604_v37 = vpop.permute.xlu1 %603  ;;  %v544_v38 = vsel %vm543_vm5, %v526_v36, %v528_v32 }
  0xa2   : > { %774 = vmatpush1.bf16.msra.mxu0 %v544_v38  ;;  %619 = vrot.lane.b32.xlu0 %v4631_v35, %s4934_s16  ;;  %s4552_s16 = smul.u32 48, %s6439_s28 }
  0xa3   : > { %658 = vrot.lane.b32.xlu1 %v4631_v35, %s4935_s19  ;;  %s4940_s19 = smov 110  }
  0xa4   : > { %v5183_v40 = vpop.permute.xlu0 %605 }
  0xa5   : > { %v602_v42 = vpop.permute.xlu1 %601  ;;  %v623_v43 = vsel %vm621_vm6, %v604_v37, %v5183_v40 }
  0xa6   : > { %775 = vmatprep.subr.bf16.mxu0 %v623_v43  ;;  %v622_v44 = vsel %vm621_vm6, %v602_v42, %v604_v37  ;;  %720 = vperm.xlu0 %4584, %v311_v39  }
  0xa7   : > { %725 = vperm.xlu1 %4585, %v312_v41   ;;  %776 = vmatpush1.bf16.msra.mxu0 %v622_v44 }
  0xa8   : > { %v643_v46 = vpop.permute.xlu0 %642 }
  0xa9   : > { %v5194_v47 = vpop.permute.xlu1 %644 }
  0xaa   : > { %v662_v48 = vsel %vm660_vm7, %v643_v46, %v5194_v47  ;;  %730 = vperm.xlu0 %4584, %v313_v45  }
  0xab   : > { %777 = vmatprep.subr.bf16.mxu0 %v662_v48  ;;  %697 = vrot.lane.b32.xlu1 %v4631_v35, %s4936_s20  ;;  %s4943_s20 = smov 90  }
  0xac   : > { %v641_v49 = vpop.permute.xlu0 %640 }
  0xad   : > { %v682_v51 = vpop.permute.xlu1 %681  ;;  %v661_v52 = vsel %vm660_vm7, %v641_v49, %v643_v46 }
  0xae   : > { %778 = vmatpush1.bf16.msra.mxu0 %v661_v52 }
  0xaf   : > { %735 = vperm.xlu1 %4585, %v314_v50  }
  0xb0   : > { %v684_v53 = vpop.permute.xlu0 %683 }
  0xb1   : > { %v680_v54 = vpop.permute.xlu1 %679  ;;  %v701_v55 = vsel %vm699_vm8, %v682_v51, %v684_v53 }
  0xb2   : > { %779 = vmatprep.subr.bf16.mxu0 %v701_v55  ;;  %v700_v56 = vsel %vm699_vm8, %v680_v54, %v682_v51 }
  0xb3   : > { %780 = vmatpush1.bf16.msra.mxu0 %v700_v56 }
  0xb4   : > { %v388_v59 = vpop.permute.xlu0 %387  ;;  %869 = vmatprep.subr.bf16.mxu0 %v5070_v7 }
  0xb5   : > { %v390_v60 = vpop.permute.xlu1 %389  ;;  %v402_v61 = vsel %vm399_vm1, %v5124_v13, %v388_v59 }
  0xb6   : > { %796 = vmatmul.mubr.bf16.vlgmr.msra.gmra.mrb[0].mxu0 %v5208_v57  ;;  %v403_v62 = vsel %vm399_vm1, %v388_v59, %v390_v60 }
  0xb7   : > { %818 = vmatprep.subr.bf16.mxu1 %v403_v62  ;;  %3993 = vmatprep.mubr.msk.bf16.mxu0 %vm756_vm0, %v5213_v58 }
  0xb8   : > { %819 = vmatpush1.bf16.msra.mxu1 %v402_v61  ;;  %v424_v63 = vpop.permute.xlu0 %423  ;;  %870 = vmatpush1.bf16.msra.mxu0 %v5044_v6 }
  0xb9   : > { %v426_v0 = vpop.permute.xlu1 %425  ;;  %v438_v1 = vsel %vm435_vm2, %v5133_v17, %v424_v63 }
  0xba   : > { %v439_v2 = vsel %vm435_vm2, %v424_v63, %v426_v0 }
  0xbb   : > { %820 = vmatprep.subr.bf16.mxu1 %v439_v2 }
  0xbc   : > { %821 = vmatpush1.bf16.msra.mxu1 %v438_v1  ;;  %v460_v7 = vpop.permute.xlu0 %459 }
  0xbd   : > { %v462_v11 = vpop.permute.xlu1 %461  ;;  %v474_v12 = vsel %vm471_vm3, %v5142_v22, %v460_v7 }
  0xbe   : > { %806 = vmatmul.mubr.bf16.gmra.mrb[4].mxu0 %v5229_v3  ;;  %v475_v6 = vsel %vm471_vm3, %v460_v7, %v462_v11 }
  0xbf   : > { %822 = vmatprep.subr.bf16.mxu1 %v475_v6  ;;  %3996 = vmatprep.mubr.msk.bf16.mxu0 %vm756_vm0, %v5033_v5 }
  0xc0   : > { %823 = vmatpush1.bf16.msra.mxu1 %v474_v12  ;;  %v496_v13 = vpop.permute.xlu0 %495 }
  0xc1   : > { %v498_v14 = vpop.permute.xlu1 %497  ;;  %v5239_v15 = vsel %vm507_vm4, %v5155_v28, %v496_v13 }
  0xc2   : > { %v5242_v16 = vsel %vm507_vm4, %v496_v13, %v498_v14 }
  0xc3   : > { %824 = vmatprep.subr.bf16.mxu1 %v5242_v16 }
  0xc4   : > { %825 = vmatpush1.bf16.msra.mxu1 %v5239_v15  ;;  %v532_v17 = vpop.permute.xlu0 %531 }
  0xc5   : > { %v534_v18 = vpop.permute.xlu1 %533  ;;  %v546_v19 = vsel %vm543_vm5, %v5169_v33, %v532_v17 }
  0xc6   : > { %v547_v20 = vsel %vm543_vm5, %v532_v17, %v534_v18 }
  0xc7   : > { %826 = vmatprep.subr.bf16.mxu1 %v547_v20 }
  0xc8   : > { %827 = vmatpush1.bf16.msra.mxu1 %v546_v19  ;;  %v608_v21 = vpop.permute.xlu0 %607 }
  0xc9   : > { %v610_v22 = vpop.permute.xlu1 %609  ;;  %v624_v23 = vsel %vm621_vm6, %v5183_v40, %v608_v21 }
  0xca   : > { %v625_v24 = vsel %vm621_vm6, %v608_v21, %v610_v22 }
  0xcb   : > { %828 = vmatprep.subr.bf16.mxu1 %v625_v24 }
  0xcc   : > { %829 = vmatpush1.bf16.msra.mxu1 %v624_v23  ;;  %v647_v25 = vpop.permute.xlu0 %646 }
  0xcd   : > { %v649_v26 = vpop.permute.xlu1 %648  ;;  %v663_v27 = vsel %vm660_vm7, %v5194_v47, %v647_v25 }
  0xce   : > { %v664_v28 = vsel %vm660_vm7, %v647_v25, %v649_v26 }
  0xcf   : > { %830 = vmatprep.subr.bf16.mxu1 %v664_v28 }
  0xd0   : > { %831 = vmatpush1.bf16.msra.mxu1 %v663_v27  ;;  %v686_v29 = vpop.permute.xlu0 %685 }
  0xd1   : > { %v688_v32 = vpop.permute.xlu1 %687  ;;  %v702_v33 = vsel %vm699_vm8, %v684_v53, %v686_v29 }
  0xd2   : > { %v703_v34 = vsel %vm699_vm8, %v686_v29, %v688_v32 }
  0xd3   : > { %832 = vmatprep.subr.bf16.mxu1 %v703_v34 }
  0xd4   : > { %833 = vmatpush1.bf16.msra.mxu1 %v702_v33  ;;  %v392_v35 = vpop.permute.xlu0 %391 }
  0xd5   : > { %v394_v36 = vpop.permute.xlu1 %393  ;;  %v404_v37 = vsel %vm399_vm1, %v390_v60, %v392_v35  ;;  %922 = vmatprep.subr.bf16.mxu1 %v5109_v9 }
  0xd6   : > { %v405_v38 = vsel %vm399_vm1, %v392_v35, %v394_v36 }
  0xd7   : > { %849 = vmatmul.mubr.bf16.vlgmr.msra.gmra.mrb[0].mxu1 %v5208_v57  ;;  %871 = vmatprep.subr.bf16.mxu0 %v405_v38 }
  0xd8   : > { %872 = vmatpush1.bf16.msra.mxu0 %v404_v37  ;;  %v428_v39 = vpop.permute.xlu0 %427  ;;  %3995 = vmatprep.mubr.msk.bf16.mxu1 %vm756_vm0, %v5213_v58 }
  0xd9   : > { %v430_v40 = vpop.permute.xlu1 %429  ;;  %v440_v41 = vsel %vm435_vm2, %v426_v0, %v428_v39  ;;  %923 = vmatpush1.bf16.msra.mxu1 %v5073_v8 }
  0xda   : > { %v441_v42 = vsel %vm435_vm2, %v428_v39, %v430_v40 }
  0xdb   : > { %873 = vmatprep.subr.bf16.mxu0 %v441_v42  ;;  %v4640_v42 = vld [vmem:[%s6424_s5 + $0x4] ss:$12 sps:$4 sm:$0xff]  }
  0xdc   : > { %874 = vmatpush1.bf16.msra.mxu0 %v440_v41  ;;  %v464_v9 = vpop.permute.xlu0 %463 }
  0xdd   : > { %v466_v43 = vpop.permute.xlu1 %465  ;;  %v476_v44 = vsel %vm471_vm3, %v462_v11, %v464_v9 }
  0xde   : > { %v477_v45 = vsel %vm471_vm3, %v464_v9, %v466_v43 }
  0xdf   : > { %859 = vmatmul.mubr.bf16.gmra.mrb[4].mxu1 %v5229_v3  ;;  %875 = vmatprep.subr.bf16.mxu0 %v477_v45 }
  0xe0   : > { %876 = vmatpush1.bf16.msra.mxu0 %v476_v44  ;;  %v500_v46 = vpop.permute.xlu0 %499  ;;  %3998 = vmatprep.mubr.msk.bf16.mxu1 %vm756_vm0, %v5033_v5  ;;  %v4638_v44 = vld [vmem:[%s6424_s5] ss:$12 sps:$4 sm:$0xff]  }
  0xe1   : > { %v5272_v8 = vsel %vm507_vm4, %v498_v14, %v500_v46  ;;  %v502_v47 = vpop.permute.xlu1 %501 }
  0xe2   : > { %v5275_v48 = vsel %vm507_vm4, %v500_v46, %v502_v47  ;;  %v4643_v46 = vld [vmem:[%s6424_s5 + $0x1c] ss:$12 sps:$4 sm:$0xff]  }
  0xe3   : > { %877 = vmatprep.subr.bf16.mxu0 %v5275_v48 }
  0xe4   : > { %878 = vmatpush1.bf16.msra.mxu0 %v5272_v8  ;;  %v536_v49 = vpop.permute.xlu0 %535 }
  0xe5   : > { %v548_v50 = vsel %vm543_vm5, %v534_v18, %v536_v49  ;;  %v538_v51 = vpop.permute.xlu1 %537 }
  0xe6   : > { %v549_v52 = vsel %vm543_vm5, %v536_v49, %v538_v51 }
  0xe7   : > { %879 = vmatprep.subr.bf16.mxu0 %v549_v52  ;;  %v4644_v52 = vld [vmem:[%s6424_s5 + $0x30] ss:$12 sps:$4 sm:$0xff]  }
  0xe8   : > { %880 = vmatpush1.bf16.msra.mxu0 %v548_v50  ;;  %v612_v53 = vpop.permute.xlu0 %611  ;;  %v4641_v50 = vld [vmem:[%s6424_s5 + $0x18] ss:$12 sps:$4 sm:$0xff]  }
  0xe9   : > { %v626_v54 = vsel %vm621_vm6, %v610_v22, %v612_v53  ;;  %v614_v55 = vpop.permute.xlu1 %613 }
  0xea   : > { %v627_v56 = vsel %vm621_vm6, %v612_v53, %v614_v55  ;;  %v4649_v53 = vld [vmem:[%s6424_s5 + $0x4c] ss:$12 sps:$4 sm:$0xff]  }
  0xeb   : > { %881 = vmatprep.subr.bf16.mxu0 %v627_v56  ;;  %v4650_v56 = vld [vmem:[%s6424_s5 + $0x60] ss:$12 sps:$4 sm:$0xff]  }
  0xec   : > { %882 = vmatpush1.bf16.msra.mxu0 %v626_v54  ;;  %v651_v59 = vpop.permute.xlu0 %650  ;;  %v4647_v54 = vld [vmem:[%s6424_s5 + $0x48] ss:$12 sps:$4 sm:$0xff]  }
  0xed   : > { %v665_v60 = vsel %vm660_vm7, %v649_v26, %v651_v59  ;;  %v5284_v61 = vpop.permute.xlu1 %652 }
  0xee   : > { %v666_v62 = vsel %vm660_vm7, %v651_v59, %v5284_v61  ;;  %v4655_v59 = vld [vmem:[%s6424_s5 + $0x7c] ss:$12 sps:$4 sm:$0xff]  }
  0xef   : > { %883 = vmatprep.subr.bf16.mxu0 %v666_v62  ;;  %v4658_v62 = vld [vmem:[%s6424_s5 + $0x94] ss:$12 sps:$4 sm:$0xff]  }
  0xf0   : > { %884 = vmatpush1.bf16.msra.mxu0 %v665_v60  ;;  %v690_v63 = vpop.permute.xlu0 %689 }
  0xf1   : > { %v704_v0 = vsel %vm699_vm8, %v688_v32, %v690_v63  ;;  %v5289_v1 = vpop.permute.xlu1 %691 }
  0xf2   : > { %v705_v2 = vsel %vm699_vm8, %v690_v63, %v5289_v1  ;;  %v4665_v63 = vld [vmem:[%s6424_s5 + $0xc8] ss:$12 sps:$4 sm:$0xff]  }
  0xf3   : > { %885 = vmatprep.subr.bf16.mxu0 %v705_v2  ;;  %v4656_v2 = vld [vmem:[%s6424_s5 + $0x90] ss:$12 sps:$4 sm:$0xff]  }
  0xf4   : > { %886 = vmatpush1.bf16.msra.mxu0 %v704_v0  ;;  %v396_v7 = vpop.permute.xlu0 %395 }
  0xf5   : > { %v406_v11 = vsel %vm399_vm1, %v394_v36, %v396_v7  ;;  %v398_v12 = vpop.permute.xlu1 %397  ;;  %975 = vmatprep.subr.bf16.mxu0 %v4932_v4 }
  0xf6   : > { %v407_v6 = vsel %vm399_vm1, %v396_v7, %v398_v12  ;;  %v4661_v7 = vld [vmem:[%s6424_s5 + $0xac] ss:$12 sps:$4 sm:$0xff]  }
  0xf7   : > { %902 = vmatmul.mubr.bf16.vlgmr.msra.gmra.mrb[8].mxu0 %v5208_v57  ;;  %924 = vmatprep.subr.bf16.mxu1 %v407_v6  ;;  %v4659_v6 = vld [vmem:[%s6424_s5 + $0xa8] ss:$12 sps:$4 sm:$0xff]  }
  0xf8   : > { %925 = vmatpush1.bf16.msra.mxu1 %v406_v11  ;;  %v432_v13 = vpop.permute.xlu0 %431  ;;  %3997 = vmatprep.mubr.msk.bf16.mxu0 %vm756_vm0, %v5213_v58  ;;  %v4666_v11 = vld [vmem:[%s6424_s5 + $0x8] ss:$12 sps:$4 sm:$0xff]  }
  0xf9   : > { %v442_v14 = vsel %vm435_vm2, %v430_v40, %v432_v13  ;;  %v434_v17 = vpop.permute.xlu1 %433  ;;  %976 = vmatpush1.bf16.msra.mxu0 %v5114_v10 }
  0xfa   : > { %v443_v18 = vsel %vm435_vm2, %v432_v13, %v434_v17  ;;  %977 = vmatprep.subr.bf16.mxu0 %v4932_v4  ;;  %v4664_v13 = vld [vmem:[%s6424_s5 + $0xc4] ss:$12 sps:$4 sm:$0xff]  }
  0xfb   : > { %926 = vmatprep.subr.bf16.mxu1 %v443_v18  ;;  %v4676_v18 = vld [vmem:[%s6424_s5 + $0x38] ss:$12 sps:$4 sm:$0xff]  }
  0xfc   : > { %927 = vmatpush1.bf16.msra.mxu1 %v442_v14  ;;  %v468_v19 = vpop.permute.xlu0 %467  ;;  %v4671_v14 = vld [vmem:[%s6424_s5 + $0x20] ss:$12 sps:$4 sm:$0xff]  }
  0xfd   : > { %v478_v20 = vsel %vm471_vm3, %v466_v43, %v468_v19  ;;  %v470_v21 = vpop.permute.xlu1 %469  ;;  %978 = vmatpush1.bf16.msra.mxu0 %v398_v12  ;;  %v4670_v12 = vld [vmem:[%s6424_s5 + $0xe0] ss:$12 sps:$4 sm:$0xff]  }
  0xfe   : > { %v479_v22 = vsel %vm471_vm3, %v468_v19, %v470_v21  ;;  %979 = vmatprep.subr.bf16.mxu0 %v4932_v4  ;;  %v4680_v19 = vld [vmem:[%s6424_s5 + $0x110] ss:$12 sps:$4 sm:$0xff]  }
  0xff   : > { %912 = vmatmul.mubr.bf16.gmra.mrb[12].mxu0 %v5229_v3  ;;  %928 = vmatprep.subr.bf16.mxu1 %v479_v22  ;;  %v4681_v22 = vld [vmem:[%s6424_s5 + $0x50] ss:$12 sps:$4 sm:$0xff]  }
 0x100   : > { %929 = vmatpush1.bf16.msra.mxu1 %v478_v20  ;;  %v504_v10 = vpop.permute.xlu0 %503  ;;  %4000 = vmatprep.mubr.msk.bf16.mxu0 %vm756_vm0, %v5033_v5  ;;  %v4667_v20 = vld [vmem:[%s6424_s5 + $0xd8] ss:$12 sps:$4 sm:$0xff]  }
 0x101   : > { %v5310_v23 = vsel %vm507_vm4, %v502_v47, %v504_v10  ;;  %v5312_v24 = vpop.permute.xlu1 %505  ;;  %980 = vmatpush1.bf16.msra.mxu0 %v434_v17  ;;  %v4669_v17 = vld [vmem:[%s6424_s5 + $0xdc] ss:$12 sps:$4 sm:$0xff]  }
 0x102   : > { %v5316_v25 = vsel %vm507_vm4, %v504_v10, %v5312_v24  ;;  %981 = vmatprep.subr.bf16.mxu0 %v4932_v4  ;;  %v4672_v10 = vld [vmem:[%s6424_s5 + $0xf0] ss:$12 sps:$4 sm:$0xff]  }
 0x103   : > { %930 = vmatprep.subr.bf16.mxu1 %v5316_v25 }
 0x104   : > { %931 = vmatpush1.bf16.msra.mxu1 %v5310_v23  ;;  %v540_v26 = vpop.permute.xlu0 %539 }
 0x105   : > { %v550_v27 = vsel %vm543_vm5, %v538_v51, %v540_v26  ;;  %v542_v5 = vpop.permute.xlu1 %541  ;;  %982 = vmatpush1.bf16.msra.mxu0 %v470_v21  ;;  %v4646_v51 = vld [vmem:[%s6424_s5 + $0x34] ss:$12 sps:$4 sm:$0xff]  }
 0x106   : > { %v551_v28 = vsel %vm543_vm5, %v540_v26, %v542_v5  ;;  %983 = vmatprep.subr.bf16.mxu0 %v4932_v4  ;;  %v4674_v21 = vld [vmem:[%s6424_s5 + $0xf4] ss:$12 sps:$4 sm:$0xff]   ;;  %v4679_v26 = vld [vmem:[%s6424_s5 + $0x10c] ss:$12 sps:$4 sm:$0xff]  }
 0x107   : > { %932 = vmatprep.subr.bf16.mxu1 %v551_v28  ;;  %v4677_v28 = vld [vmem:[%s6424_s5 + $0x108] ss:$12 sps:$4 sm:$0xff]  }
 0x108   : > { %933 = vmatpush1.bf16.msra.mxu1 %v550_v27  ;;  %v616_v29 = vpop.permute.xlu0 %615  ;;  %v4686_v27 = vld [vmem:[%s6424_s5 + $0x68] ss:$12 sps:$4 sm:$0xff]  }
 0x109   : > { %v628_v32 = vsel %vm621_vm6, %v614_v55, %v616_v29  ;;  %v618_v33 = vpop.permute.xlu1 %617  ;;  %984 = vmatpush1.bf16.msra.mxu0 %v5312_v24  ;;  %v4652_v55 = vld [vmem:[%s6424_s5 + $0x64] ss:$12 sps:$4 sm:$0xff]  }
 0x10a   : > { %v629_v34 = vsel %vm621_vm6, %v616_v29, %v618_v33  ;;  %985 = vmatprep.subr.bf16.mxu0 %v4932_v4  ;;  %v4684_v29 = vld [vmem:[%s6424_s5 + $0x124] ss:$12 sps:$4 sm:$0xff]  }
 0x10b   : > { %934 = vmatprep.subr.bf16.mxu1 %v629_v34  ;;  %v4682_v34 = vld [vmem:[%s6424_s5 + $0x120] ss:$12 sps:$4 sm:$0xff]  }
 0x10c   : > { %935 = vmatpush1.bf16.msra.mxu1 %v628_v32  ;;  %v655_v35 = vpop.permute.xlu0 %654  ;;  %v4691_v32 = vld [vmem:[%s6424_s5 + $0x80] ss:$12 sps:$4 sm:$0xff]  }
 0x10d   : > { %v667_v36 = vsel %vm660_vm7, %v5284_v61, %v655_v35  ;;  %v657_v37 = vpop.permute.xlu1 %656  ;;  %986 = vmatpush1.bf16.msra.mxu0 %v542_v5  ;;  %v4653_v61 = vld [vmem:[%s6424_s5 + $0x78] ss:$12 sps:$4 sm:$0xff]   ;;  %v4690_v5 = vld [vmem:[%s6424_s5 + $0x140] ss:$12 sps:$4 sm:$0xff]  }
 0x10e   : > { %v668_v38 = vsel %vm660_vm7, %v655_v35, %v657_v37  ;;  %987 = vmatprep.subr.bf16.mxu0 %v4932_v4  ;;  %v4689_v35 = vld [vmem:[%s6424_s5 + $0x13c] ss:$12 sps:$4 sm:$0xff]  }
 0x10f   : > { %936 = vmatprep.subr.bf16.mxu1 %v668_v38  ;;  %v4687_v38 = vld [vmem:[%s6424_s5 + $0x138] ss:$12 sps:$4 sm:$0xff]  }
 0x110   : > { %937 = vmatpush1.bf16.msra.mxu1 %v667_v36  ;;  %v694_v39 = vpop.permute.xlu0 %693  ;;  %v4696_v36 = vld [vmem:[%s6424_s5 + $0x98] ss:$12 sps:$4 sm:$0xff]  }
 0x111   : > { %v706_v40 = vsel %vm699_vm8, %v5289_v1, %v694_v39  ;;  %v696_v41 = vpop.permute.xlu1 %695 }
 0x112   : > { %v707_v9 = vsel %vm699_vm8, %v694_v39, %v696_v41  ;;  %v4694_v39 = vld [vmem:[%s6424_s5 + $0x154] ss:$12 sps:$4 sm:$0xff]  }
 0x113   : > { %938 = vmatprep.subr.bf16.mxu1 %v707_v9  ;;  %v4699_v9 = vld [vmem:[%s6424_s5 + $0x16c] ss:$12 sps:$4 sm:$0xff]  }
 0x114   : > { %939 = vmatpush1.bf16.msra.mxu1 %v706_v40  ;;  %v620_v43 = vpop.permute.xlu0 %619  ;;  %v4701_v40 = vld [vmem:[%s6424_s5 + $0xb0] ss:$12 sps:$4 sm:$0xff]  }
 0x115   : > { %v630_v45 = vsel %vm621_vm6, %v618_v33, %v620_v43  ;;  %2455 = vmatprep.subr.bf16.mxu1 %v4640_v42  ;;  %v659_v47 = vpop.permute.xlu1 %658  ;;  %v4695_v33 = vld [vmem:[%s6424_s5 + $0x158] ss:$12 sps:$4 sm:$0xff]   ;;  %v4692_v42 = vld [vmem:[%s6424_s5 + $0x150] ss:$12 sps:$4 sm:$0xff]   ;;  %v4697_v43 = vld [vmem:[%s6424_s5 + $0x168] ss:$12 sps:$4 sm:$0xff]  }
 0x116   : > { %988 = vmatpush1.bf16.msra.mxu0 %v630_v45  ;;  %v669_v49 = vsel %vm660_vm7, %v657_v37, %v659_v47  ;;  %v4700_v37 = vld [vmem:[%s6424_s5 + $0x170] ss:$12 sps:$4 sm:$0xff]  }
 0x117   : > { %955 = vmatmul.mubr.bf16.vlgmr.msra.gmra.mrb[8].mxu1 %v5208_v57  ;;  %989 = vmatprep.subr.bf16.mxu0 %v4932_v4 }
 0x118   : > { %3999 = vmatprep.mubr.msk.bf16.mxu1 %vm756_vm0, %v5213_v58  ;;  %2456 = vmatpush1.bf16.msra.mxu1 %v4638_v44  ;;  %v4704_v44 = vld [vmem:[%s6424_s5 + $0x184] ss:$12 sps:$4 sm:$0xff]  }
 0x119   : > { %2457 = vmatprep.subr.bf16.mxu1 %v4643_v46 }
 0x11a   : > { %990 = vmatpush1.bf16.msra.mxu0 %v669_v49 }
 0x11b   : > { %991 = vmatprep.subr.bf16.mxu0 %v4932_v4 }
 0x11c   : > { %2458 = vmatpush1.bf16.msra.mxu1 %v4641_v50 }
 0x11d   : > { %2459 = vmatprep.subr.bf16.mxu1 %v4646_v51 }
 0x11f   : > { %965 = vmatmul.mubr.bf16.gmra.mrb[12].mxu1 %v5229_v3 }
 0x120   : > { %2460 = vmatpush1.bf16.msra.mxu1 %v4644_v52 }
 0x121   : > { %2461 = vmatprep.subr.bf16.mxu1 %v4649_v53 }
 0x124   : > { %2462 = vmatpush1.bf16.msra.mxu1 %v4647_v54 }
 0x125   : > { %2463 = vmatprep.subr.bf16.mxu1 %v4652_v55  ;;  %v5500_v45 = vpop.permute.xlu0 %720 }
 0x126   : > { %v5376_v60 = vpop.permute.xlu1 %725 }
 0x128   : > { %2464 = vmatpush1.bf16.msra.mxu1 %v4650_v56 }
 0x129   : > { %2465 = vmatprep.subr.bf16.mxu1 %v4655_v59 }
 0x12a   : > { %v698_v0 = vpop.permute.xlu1 %697 }
 0x12b   : > { %v708_v1 = vsel %vm699_vm8, %v696_v41, %v698_v0  ;;  %v4705_v41 = vld [vmem:[%s6424_s5 + $0x248] ss:$12 sps:$4 sm:$0xff]  }
 0x12c   : > { %992 = vmatpush1.bf16.msra.mxu0 %v708_v1  ;;  %2466 = vmatpush1.bf16.msra.mxu1 %v4653_v61 }
 0x12d   : > { %2467 = vmatprep.subr.bf16.mxu1 %v4658_v62  ;;  %4247 = vmatprep.subr.bf16.mxu0 %v4665_v63  ;;  %v5506_v63 = vpop.permute.xlu0 %730 }
 0x12f   : > { %1008 = vmatmul.mubr.bf16.vlgmr.msra.gmra.mrb[16].mxu0 %v5208_v57  ;;  %v4675_v57 = vld [vmem:[%s6424_s5 + $0xf8] ss:$12 sps:$4 sm:$0xff]  }
 0x130   : > { %4001 = vmatprep.mubr.msk.bf16.mxu0 %vm756_vm0, %v5213_v58  ;;  %2468 = vmatpush1.bf16.msra.mxu1 %v4656_v2  ;;  %v4662_v58 = vld [vmem:[%s6424_s5 + $0xc0] ss:$12 sps:$4 sm:$0xff]  }
 0x131   : > { %2469 = vmatprep.subr.bf16.mxu1 %v4661_v7  ;;  %4248 = vmatpush3.bf16.msra.mxu0 %v4666_v11  ;;  %v4702_v2 = vld [vmem:[%s6424_s5 + $0x180] ss:$12 sps:$4 sm:$0xff]   ;;  %v4706_v7 = vld [vmem:[%s6424_s5 + $0x188] ss:$12 sps:$4 sm:$0xff]  }
 0x132   : > { %4249 = vmatprep.subr.bf16.mxu0 %v4670_v12 }
 0x134   : > { %2470 = vmatpush1.bf16.msra.mxu1 %v4659_v6  ;;  %v4709_v6 = vld [vmem:[%s6424_s5 + $0x19c] ss:$12 sps:$4 sm:$0xff]  }
 0x135   : > { %2471 = vmatprep.subr.bf16.mxu1 %v4664_v13  ;;  %4250 = vmatpush3.bf16.msra.mxu0 %v4671_v14  ;;  %v4710_v13 = vld [vmem:[%s6424_s5 + $0x260] ss:$12 sps:$4 sm:$0xff]   ;;  %v5521_v14 = vpop.permute.xlu1 %735 }
 0x136   : > { %4251 = vmatprep.subr.bf16.mxu0 %v4675_v57 }
 0x137   : > { %1016 = vmatmul.mubr.bf16.gmra.mrb[20].mxu0 %v5229_v3  ;;  %v4685_v3 = vld [vmem:[%s6424_s5 + $0x128] ss:$12 sps:$4 sm:$0xff]  }
 0x138   : > { %2472 = vmatpush1.bf16.msra.mxu1 %v4662_v58 }
 0x139   : > { %2473 = vmatprep.subr.bf16.mxu1 %v4669_v17  ;;  %4252 = vmatpush3.bf16.msra.mxu0 %v4676_v18 }
 0x13a   : > { %4253 = vmatprep.subr.bf16.mxu0 %v4680_v19 }
 0x13c   : > { %2474 = vmatpush1.bf16.msra.mxu1 %v4667_v20  ;;  %v4707_v20 = vld [vmem:[%s6424_s5 + $0x198] ss:$12 sps:$4 sm:$0xff]  }
 0x13d   : > { %2475 = vmatprep.subr.bf16.mxu1 %v4674_v21  ;;  %4254 = vmatpush3.bf16.msra.mxu0 %v4681_v22  ;;  %v4711_v21 = vld [vmem:[%s6424_s5 + $0x1a0] ss:$12 sps:$4 sm:$0xff]  }
 0x13e   : > { %4255 = vmatprep.subr.bf16.mxu0 %v4685_v3 }
 0x140   : > { %2476 = vmatpush1.bf16.msra.mxu1 %v4672_v10  ;;  %v4714_v10 = vld [vmem:[%s6424_s5 + $0x1b4] ss:$12 sps:$4 sm:$0xff]  }
 0x141   : > { %2477 = vmatprep.subr.bf16.mxu1 %v4679_v26  ;;  %4256 = vmatpush3.bf16.msra.mxu0 %v4686_v27  ;;  %v4715_v26 = vld [vmem:[%s6424_s5 + $0x278] ss:$12 sps:$4 sm:$0xff]  }
 0x142   : > { %4257 = vmatprep.subr.bf16.mxu0 %v4690_v5 }
 0x144   : > { %2478 = vmatpush1.bf16.msra.mxu1 %v4677_v28 }
 0x145   : > { %2479 = vmatprep.subr.bf16.mxu1 %v4684_v29  ;;  %4258 = vmatpush3.bf16.msra.mxu0 %v4691_v32  ;;  %v4712_v32 = vld [vmem:[%s6424_s5 + $0x1b0] ss:$12 sps:$4 sm:$0xff]  }
 0x146   : > { %4259 = vmatprep.subr.bf16.mxu0 %v4695_v33  ;;  %v4716_v33 = vld [vmem:[%s6424_s5 + $0x1b8] ss:$12 sps:$4 sm:$0xff]  }
 0x148   : > { %2480 = vmatpush1.bf16.msra.mxu1 %v4682_v34  ;;  %v4719_v34 = vld [vmem:[%s6424_s5 + $0x1cc] ss:$12 sps:$4 sm:$0xff]  }
 0x149   : > { %2481 = vmatprep.subr.bf16.mxu1 %v4689_v35  ;;  %4260 = vmatpush3.bf16.msra.mxu0 %v4696_v36  ;;  %v4720_v35 = vld [vmem:[%s6424_s5 + $0x290] ss:$12 sps:$4 sm:$0xff]   ;;  %v4717_v36 = vld [vmem:[%s6424_s5 + $0x1c8] ss:$12 sps:$4 sm:$0xff]  }
 0x14a   : > { %4261 = vmatprep.subr.bf16.mxu0 %v4700_v37  ;;  %v4721_v37 = vld [vmem:[%s6424_s5 + $0x1d0] ss:$12 sps:$4 sm:$0xff]  }
 0x14c   : > { %2482 = vmatpush1.bf16.msra.mxu1 %v4687_v38  ;;  %v4724_v38 = vld [vmem:[%s6424_s5 + $0x1e4] ss:$12 sps:$4 sm:$0xff]  }
 0x14d   : > { %2483 = vmatprep.subr.bf16.mxu1 %v4694_v39  ;;  %4262 = vmatpush3.bf16.msra.mxu0 %v4701_v40  ;;  %v4725_v39 = vld [vmem:[%s6424_s5 + $0x2a8] ss:$12 sps:$4 sm:$0xff]  }
 0x14e   : > { %4281 = vmatprep.subr.bf16.mxu0 %v4705_v41  ;;  %v4726_v40 = vld [vmem:[%s6424_s5 + $0x1e8] ss:$12 sps:$4 sm:$0xff]  }
 0x14f   : > { %v4729_v41 = vld [vmem:[%s6424_s5 + $0x1fc] ss:$12 sps:$4 sm:$0xff]  }
 0x150   : > { %2484 = vmatpush1.bf16.msra.mxu1 %v4692_v42  ;;  %v4730_v42 = vld [vmem:[%s6424_s5 + $0x2c0] ss:$12 sps:$4 sm:$0xff]  }
 0x151   : > { %2485 = vmatprep.subr.bf16.mxu1 %v4699_v9  ;;  %v4727_v9 = vld [vmem:[%s6424_s5 + $0x1f8] ss:$12 sps:$4 sm:$0xff]  }
 0x154   : > { %2486 = vmatpush1.bf16.msra.mxu1 %v4697_v43  ;;  %v4731_v43 = vld [vmem:[%s6424_s5 + $0x200] ss:$12 sps:$4 sm:$0xff]  }
 0x155   : > { %2518 = vmatprep.subr.bf16.mxu1 %v4704_v44  ;;  %v4734_v44 = vld [vmem:[%s6424_s5 + $0x214] ss:$12 sps:$4 sm:$0xff]  }
 0x189   : > { %v797_v46 = vpop.f32.mrb[0].mxu0 }
 0x18a   : > { %v798_v47 = vadd.f32 %v797_v46, %v5500_v45  ;;  %v799_v49 = vpop.f32.mrb[1].mxu0  ;;  %v4732_v46 = vld [vmem:[%s6424_s5 + $0x210] ss:$12 sps:$4 sm:$0xff]  }
 0x18b   : > { %v800_v50 = vadd.f32 %v799_v49, %v5500_v45  ;;  %v801_v51 = vpop.f32.mrb[2].mxu0  ;;  %v4736_v49 = vld [vmem:[%s6424_s5 + $0x218] ss:$12 sps:$4 sm:$0xff]  }
 0x18c   : > { %v802_v52 = vadd.f32 %v801_v51, %v5376_v60  ;;  %v803_v53 = vpop.f32.mrb[3].mxu0  ;;  %v1024_v55 = vmax.f32 %v798_v47, 0.0 }
 0x18d   : > { %v804_v54 = vadd.f32 %v803_v53, %v5376_v60  ;;  %v1025_v59 = vmax.f32 %v800_v50, 0.0  ;;  %v4739_v50 = vld [vmem:[%s6424_s5 + $0x22c] ss:$12 sps:$4 sm:$0xff]   ;;  %v4740_v53 = vld [vmem:[%s6424_s5 + $0x2f0] ss:$12 sps:$4 sm:$0xff]  }
 0x18e   : > { %v1033_v56 = vmax.f32 %v802_v52, 0.0 }
 0x18f   : > { %v1034_v61 = vmax.f32 %v804_v54, 0.0 }
 0x190   : > { %v1060_v62 = vpack.c.bf16 %v1033_v56, %v1024_v55 }
 0x191   : > { %v1061_v0 = vpack.c.bf16 %v1034_v61, %v1025_v59  ;;  %v807_v1 = vpop.f32.mrb[4].mxu0  ;;  %v4737_v61 = vld [vmem:[%s6424_s5 + $0x228] ss:$12 sps:$4 sm:$0xff]  }
 0x192   : > { %v808_v11 = vadd.f32 %v807_v1, %v5506_v63  ;;  %v809_v12 = vpop.f32.mrb[5].mxu0  ;;  %v4744_v1 = vld [vmem:[%s6424_s5 + $0x244] ss:$12 sps:$4 sm:$0xff]  }
 0x193   : > { %v810_v57 = vadd.f32 %v809_v12, %v5506_v63  ;;  %v811_v58 = vpop.f32.mrb[6].mxu0  ;;  %2487 = vmatprep.mubr.bf16.mxu1 %v1061_v0  ;;  %2802 = vmatprep.mubr.bf16.mxu0 %v1061_v0  ;;  %v4741_v0 = vld [vmem:[%s6424_s5 + $0x230] ss:$12 sps:$4 sm:$0xff]  }
 0x194   : > { %v812_v17 = vadd.f32 %v811_v58, %v5521_v14  ;;  %v813_v18 = vpop.f32.mrb[7].mxu0  ;;  %2488 = vmatmul.mubr.bf16.vlgmr.msra.gmra.mrb[16].mxu1 %v1060_v62  ;;  %2803 = vmatmul.mubr.bf16.vlgmr.msra.gmra.mrb[24].mxu0 %v1060_v62  ;;  %v1042_v22 = vmax.f32 %v808_v11, 0.0  ;;  %v4745_v11 = vld [vmem:[%s6424_s5 + $0x3c8] ss:$12 sps:$4 sm:$0xff]  }
 0x195   : > { %v814_v19 = vadd.f32 %v813_v18, %v5521_v14  ;;  %2519 = vmatpush1.bf16.msra.mxu1 %v4702_v2  ;;  %4282 = vmatpush3.bf16.msra.mxu0 %v4706_v7  ;;  %v1043_v27 = vmax.f32 %v810_v57, 0.0  ;;  %v4742_v57 = vld [vmem:[%s6424_s5 + $0x240] ss:$12 sps:$4 sm:$0xff]   ;;  %v4746_v18 = vld [vmem:[%s6424_s5 + $0x308] ss:$12 sps:$4 sm:$0xff]  }
 0x196   : > { %v1051_v3 = vmax.f32 %v812_v17, 0.0  ;;  %2520 = vmatprep.subr.bf16.mxu1 %v4709_v6  ;;  %4283 = vmatprep.subr.bf16.mxu0 %v4710_v13 }
 0x197   : > { %v1052_v5 = vmax.f32 %v814_v19, 0.0  ;;  %v4749_v19 = vld [vmem:[%s6424_s5 + $0x25c] ss:$12 sps:$4 sm:$0xff]  }
 0x198   : > { %v1069_v28 = vpack.c.bf16 %v1051_v3, %v1042_v22  ;;  %v4750_v22 = vld [vmem:[%s6424_s5 + $0x3e0] ss:$12 sps:$4 sm:$0xff]  }
 0x199   : > { %v1070_v29 = vpack.c.bf16 %v1052_v5, %v1043_v27  ;;  %2521 = vmatpush1.bf16.msra.mxu1 %v4707_v20  ;;  %4284 = vmatpush3.bf16.msra.mxu0 %v4711_v21  ;;  %v4747_v5 = vld [vmem:[%s6424_s5 + $0x258] ss:$12 sps:$4 sm:$0xff]  }
 0x19a   : > { %2522 = vmatprep.subr.bf16.mxu1 %v4714_v10  ;;  %4285 = vmatprep.subr.bf16.mxu0 %v4715_v26 }
 0x19b   : > { %2497 = vmatprep.mubr.bf16.mxu1 %v1070_v29  ;;  %2810 = vmatprep.mubr.bf16.mxu0 %v1070_v29  ;;  %v4751_v29 = vld [vmem:[%s6424_s5 + $0x320] ss:$12 sps:$4 sm:$0xff]  }
 0x19c   : > { %2498 = vmatmul.mubr.bf16.gmra.mrb[20].mxu1 %v1069_v28  ;;  %2811 = vmatmul.mubr.bf16.gmra.mrb[28].mxu0 %v1069_v28 }
 0x19d   : > { %2523 = vmatpush1.bf16.msra.mxu1 %v4712_v32  ;;  %2507 = vmatprep.mubr.bf16.mxu1 %v5159_v30  ;;  %v4754_v32 = vld [vmem:[%s6424_s5 + $0x274] ss:$12 sps:$4 sm:$0xff]  }
 0x19e   : > { %2818 = vmatprep.mubr.bf16.mxu0 %v5159_v30  ;;  %4286 = vmatpush3.bf16.msra.mxu0 %v4716_v33  ;;  %v4722_v30 = vld [vmem:[%s6424_s5 + $0x1e0] ss:$12 sps:$4 sm:$0xff]  }
 0x19f   : > { %2524 = vmatprep.subr.bf16.mxu1 %v4719_v34  ;;  %4287 = vmatprep.subr.bf16.mxu0 %v4720_v35  ;;  %v4755_v35 = vld [vmem:[%s6424_s5 + $0x3f8] ss:$12 sps:$4 sm:$0xff]  }
 0x1a1   : > { %2525 = vmatpush1.bf16.msra.mxu1 %v4717_v36 }
 0x1a2   : > { %4288 = vmatpush3.bf16.msra.mxu0 %v4721_v37  ;;  %2526 = vmatprep.subr.bf16.mxu1 %v4724_v38 }
 0x1a3   : > { %4289 = vmatprep.subr.bf16.mxu0 %v4725_v39  ;;  %v4752_v39 = vld [vmem:[%s6424_s5 + $0x270] ss:$12 sps:$4 sm:$0xff]  }
 0x1a4   : > { %2508 = vmatmul.mubr.bf16.gmra.mrb[24].mxu1 %v5165_v31  ;;  %2819 = vmatmul.mubr.bf16.gmra.mrb[32].mxu0 %v5165_v31  ;;  %v4735_v31 = vld [vmem:[%s6424_s5 + $0x2d8] ss:$12 sps:$4 sm:$0xff]  }
 0x1a5   : > { %2527 = vmatpush1.bf16.msra.mxu1 %v4722_v30 }
 0x1a6   : > { %4290 = vmatpush3.bf16.msra.mxu0 %v4726_v40  ;;  %2528 = vmatprep.subr.bf16.mxu1 %v4729_v41  ;;  %v4756_v40 = vld [vmem:[%s6424_s5 + $0x338] ss:$12 sps:$4 sm:$0xff]  }
 0x1a7   : > { %4291 = vmatprep.subr.bf16.mxu0 %v4730_v42  ;;  %v4759_v41 = vld [vmem:[%s6424_s5 + $0x28c] ss:$12 sps:$4 sm:$0xff]   ;;  %v4760_v42 = vld [vmem:[%s6424_s5 + $0x410] ss:$12 sps:$4 sm:$0xff]  }
 0x1a9   : > { %2529 = vmatpush1.bf16.msra.mxu1 %v4727_v9  ;;  %v4757_v9 = vld [vmem:[%s6424_s5 + $0x288] ss:$12 sps:$4 sm:$0xff]  }
 0x1aa   : > { %v850_v47 = vpop.f32.mrb[0].mxu1  ;;  %4292 = vmatpush3.bf16.msra.mxu0 %v4731_v43  ;;  %2530 = vmatprep.subr.bf16.mxu1 %v4734_v44  ;;  %v4761_v43 = vld [vmem:[%s6424_s5 + $0x350] ss:$12 sps:$4 sm:$0xff]  }
 0x1ab   : > { %v851_v51 = vadd.f32 %v850_v47, %v5500_v45  ;;  %v852_v52 = vpop.f32.mrb[1].mxu1  ;;  %4293 = vmatprep.subr.bf16.mxu0 %v4735_v31  ;;  %v4764_v44 = vld [vmem:[%s6424_s5 + $0x2a4] ss:$12 sps:$4 sm:$0xff]   ;;  %v4765_v31 = vld [vmem:[%s6424_s5 + $0x428] ss:$12 sps:$4 sm:$0xff]  }
 0x1ac   : > { %v853_v54 = vadd.f32 %v852_v52, %v5500_v45  ;;  %v854_v55 = vpop.f32.mrb[2].mxu1  ;;  %v4766_v47 = vld [vmem:[%s6424_s5 + $0x368] ss:$12 sps:$4 sm:$0xff]   ;;  %v4771_v52 = vld [vmem:[%s6424_s5 + $0x380] ss:$12 sps:$4 sm:$0xff]  }
 0x1ad   : > { %v855_v56 = vadd.f32 %v854_v55, %v5376_v60  ;;  %v856_v59 = vpop.f32.mrb[3].mxu1  ;;  %2531 = vmatpush1.bf16.msra.mxu1 %v4732_v46  ;;  %v1026_v2 = vmax.f32 %v851_v51, 0.0  ;;  %v4762_v46 = vld [vmem:[%s6424_s5 + $0x2a0] ss:$12 sps:$4 sm:$0xff]   ;;  %v4767_v51 = vld [vmem:[%s6424_s5 + $0x2b8] ss:$12 sps:$4 sm:$0xff]  }
 0x1ae   : > { %v857_v62 = vadd.f32 %v856_v59, %v5376_v60  ;;  %4294 = vmatpush3.bf16.msra.mxu0 %v4736_v49  ;;  %2532 = vmatprep.subr.bf16.mxu1 %v4739_v50  ;;  %v1027_v12 = vmax.f32 %v853_v54, 0.0  ;;  %v4769_v49 = vld [vmem:[%s6424_s5 + $0x2bc] ss:$12 sps:$4 sm:$0xff]   ;;  %v4770_v50 = vld [vmem:[%s6424_s5 + $0x440] ss:$12 sps:$4 sm:$0xff]  }
 0x1af   : > { %v1035_v7 = vmax.f32 %v855_v56, 0.0  ;;  %4295 = vmatprep.subr.bf16.mxu0 %v4740_v53  ;;  %v4774_v53 = vld [vmem:[%s6424_s5 + $0x2d4] ss:$12 sps:$4 sm:$0xff]   ;;  %v4775_v54 = vld [vmem:[%s6424_s5 + $0x458] ss:$12 sps:$4 sm:$0xff]  }
 0x1b0   : > { %v1036_v6 = vmax.f32 %v857_v62, 0.0  ;;  %v4772_v55 = vld [vmem:[%s6424_s5 + $0x2d0] ss:$12 sps:$4 sm:$0xff]   ;;  %v4776_v59 = vld [vmem:[%s6424_s5 + $0x398] ss:$12 sps:$4 sm:$0xff]  }
 0x1b1   : > { %v5618_v13 = vpack.c.bf16 %v1035_v7, %v1026_v2  ;;  %2533 = vmatpush1.bf16.msra.mxu1 %v4737_v61  ;;  %v4779_v61 = vld [vmem:[%s6424_s5 + $0x2ec] ss:$12 sps:$4 sm:$0xff]  }
 0x1b2   : > { %v1063_v58 = vpack.c.bf16 %v1036_v6, %v1027_v12  ;;  %v860_v17 = vpop.f32.mrb[4].mxu1  ;;  %4296 = vmatpush3.bf16.msra.mxu0 %v4741_v0  ;;  %2534 = vmatprep.subr.bf16.mxu1 %v4744_v1  ;;  %v4780_v1 = vld [vmem:[%s6424_s5 + $0x470] ss:$12 sps:$4 sm:$0xff]   ;;  %v4777_v6 = vld [vmem:[%s6424_s5 + $0x2e8] ss:$12 sps:$4 sm:$0xff]  }
 0x1b3   : > { %v861_v20 = vadd.f32 %v860_v17, %v5506_v63  ;;  %v862_v21 = vpop.f32.mrb[5].mxu1  ;;  %4315 = vmatprep.subr.bf16.mxu0 %v4745_v11  ;;  %v4784_v17 = vld [vmem:[%s6424_s5 + $0x304] ss:$12 sps:$4 sm:$0xff]  }
 0x1b4   : > { %v863_v3 = vadd.f32 %v862_v21, %v5506_v63  ;;  %v864_v10 = vpop.f32.mrb[6].mxu1  ;;  %2550 = vmatprep.mubr.bf16.mxu1 %v1063_v58  ;;  %2859 = vmatprep.mubr.bf16.mxu0 %v1063_v58  ;;  %v4781_v58 = vld [vmem:[%s6424_s5 + $0x3b0] ss:$12 sps:$4 sm:$0xff]  }
 0x1b5   : > { %v865_v26 = vadd.f32 %v864_v10, %v5521_v14  ;;  %v866_v27 = vpop.f32.mrb[7].mxu1  ;;  %2535 = vmatpush1.bf16.msra.mxu1 %v4742_v57  ;;  %2860 = vmatmul.mubr.bf16.vlgmr.msra.gmra.mrb[36].mxu0 %v5618_v13  ;;  %v1044_v33 = vmax.f32 %v861_v20, 0.0  ;;  %v4785_v20 = vld [vmem:[%s6424_s5 + $0x548] ss:$12 sps:$4 sm:$0xff]   ;;  %v4782_v10 = vld [vmem:[%s6424_s5 + $0x300] ss:$12 sps:$4 sm:$0xff]  }
 0x1b6   : > { %v867_v28 = vadd.f32 %v866_v27, %v5521_v14  ;;  %4316 = vmatpush3.bf16.msra.mxu0 %v4746_v18  ;;  %2536 = vmatprep.subr.bf16.mxu1 %v4749_v19  ;;  %v1045_v36 = vmax.f32 %v863_v3, 0.0 }
 0x1b7   : > { %v1053_v34 = vmax.f32 %v865_v26, 0.0  ;;  %4317 = vmatprep.subr.bf16.mxu0 %v4750_v22 }
 0x1b8   : > { %v1054_v37 = vmax.f32 %v867_v28, 0.0 }
 0x1b9   : > { %v5649_v38 = vpack.c.bf16 %v1053_v34, %v1044_v33  ;;  %2537 = vmatpush1.bf16.msra.mxu1 %v4747_v5  ;;  %v4789_v5 = vld [vmem:[%s6424_s5 + $0x31c] ss:$12 sps:$4 sm:$0xff]  }
 0x1ba   : > { %v5654_v30 = vpack.c.bf16 %v1054_v37, %v1045_v36  ;;  %4318 = vmatpush3.bf16.msra.mxu0 %v4751_v29  ;;  %2538 = vmatprep.subr.bf16.mxu1 %v4754_v32  ;;  %v4786_v32 = vld [vmem:[%s6424_s5 + $0x488] ss:$12 sps:$4 sm:$0xff]  }
 0x1bb   : > { %4319 = vmatprep.subr.bf16.mxu0 %v4755_v35  ;;  %v4790_v35 = vld [vmem:[%s6424_s5 + $0x560] ss:$12 sps:$4 sm:$0xff]  }
 0x1bc   : > { %2867 = vmatprep.mubr.bf16.mxu0 %v5654_v30 }
 0x1bd   : > { %2539 = vmatpush1.bf16.msra.mxu1 %v4752_v39  ;;  %2868 = vmatmul.mubr.bf16.gmra.mrb[40].mxu0 %v5649_v38  ;;  %v4787_v39 = vld [vmem:[%s6424_s5 + $0x318] ss:$12 sps:$4 sm:$0xff]  }
 0x1be   : > { %2875 = vmatprep.mubr.bf16.mxu0 %v5242_v16  ;;  %4320 = vmatpush3.bf16.msra.mxu0 %v4756_v40 }
 0x1bf   : > { %2540 = vmatprep.subr.bf16.mxu1 %v4759_v41  ;;  %4321 = vmatprep.subr.bf16.mxu0 %v4760_v42 }
 0x1c1   : > { %2541 = vmatpush1.bf16.msra.mxu1 %v4757_v9 }
 0x1c2   : > { %4322 = vmatpush3.bf16.msra.mxu0 %v4761_v43  ;;  %2542 = vmatprep.subr.bf16.mxu1 %v4764_v44 }
 0x1c3   : > { %4323 = vmatprep.subr.bf16.mxu0 %v4765_v31  ;;  %v4792_v31 = vld [vmem:[%s6424_s5 + $0x330] ss:$12 sps:$4 sm:$0xff]  }
 0x1c5   : > { %2543 = vmatpush1.bf16.msra.mxu1 %v4762_v46  ;;  %2876 = vmatmul.mubr.bf16.gmra.mrb[44].mxu0 %v5239_v15 }
 0x1c6   : > { %4324 = vmatpush3.bf16.msra.mxu0 %v4766_v47  ;;  %2544 = vmatprep.subr.bf16.mxu1 %v4769_v49  ;;  %v4795_v47 = vld [vmem:[%s6424_s5 + $0x578] ss:$12 sps:$4 sm:$0xff]  }
 0x1c7   : > { %4325 = vmatprep.subr.bf16.mxu0 %v4770_v50  ;;  %v4796_v49 = vld [vmem:[%s6424_s5 + $0x4b8] ss:$12 sps:$4 sm:$0xff]  }
 0x1c8   : > { %v4799_v50 = vld [vmem:[%s6424_s5 + $0x34c] ss:$12 sps:$4 sm:$0xff]  }
 0x1c9   : > { %2545 = vmatpush1.bf16.msra.mxu1 %v4767_v51  ;;  %v4800_v51 = vld [vmem:[%s6424_s5 + $0x590] ss:$12 sps:$4 sm:$0xff]  }
 0x1ca   : > { %v903_v56 = vpop.f32.mrb[8].mxu0  ;;  %4326 = vmatpush3.bf16.msra.mxu0 %v4771_v52  ;;  %2546 = vmatprep.subr.bf16.mxu1 %v4774_v53  ;;  %v4797_v52 = vld [vmem:[%s6424_s5 + $0x348] ss:$12 sps:$4 sm:$0xff]   ;;  %v4801_v53 = vld [vmem:[%s6424_s5 + $0x4d0] ss:$12 sps:$4 sm:$0xff]  }
 0x1cb   : > { %v904_v62 = vadd.f32 %v903_v56, %v5500_v45  ;;  %v905_v0 = vpop.f32.mrb[9].mxu0  ;;  %4327 = vmatprep.subr.bf16.mxu0 %v4775_v54  ;;  %v4802_v54 = vld [vmem:[%s6424_s5 + $0x360] ss:$12 sps:$4 sm:$0xff]   ;;  %v4806_v56 = vld [vmem:[%s6424_s5 + $0x4e8] ss:$12 sps:$4 sm:$0xff]  }
 0x1cc   : > { %v906_v2 = vadd.f32 %v905_v0, %v5500_v45  ;;  %v907_v7 = vpop.f32.mrb[10].mxu0  ;;  %v4815_v0 = vld [vmem:[%s6424_s5 + $0x5d8] ss:$12 sps:$4 sm:$0xff]  }
 0x1cd   : > { %v908_v11 = vadd.f32 %v907_v7, %v5376_v60  ;;  %v909_v12 = vpop.f32.mrb[11].mxu0  ;;  %2547 = vmatpush1.bf16.msra.mxu1 %v4772_v55  ;;  %v1028_v18 = vmax.f32 %v904_v62, 0.0  ;;  %v4809_v55 = vld [vmem:[%s6424_s5 + $0x37c] ss:$12 sps:$4 sm:$0xff]   ;;  %v4814_v62 = vld [vmem:[%s6424_s5 + $0x394] ss:$12 sps:$4 sm:$0xff]  }
 0x1ce   : > { %v910_v57 = vadd.f32 %v909_v12, %v5376_v60  ;;  %4328 = vmatpush3.bf16.msra.mxu0 %v4776_v59  ;;  %2548 = vmatprep.subr.bf16.mxu1 %v4779_v61  ;;  %v1029_v21 = vmax.f32 %v906_v2, 0.0  ;;  %v4810_v59 = vld [vmem:[%s6424_s5 + $0x5c0] ss:$12 sps:$4 sm:$0xff]   ;;  %v4807_v61 = vld [vmem:[%s6424_s5 + $0x378] ss:$12 sps:$4 sm:$0xff]  }
 0x1cf   : > { %v1037_v19 = vmax.f32 %v908_v11, 0.0  ;;  %4329 = vmatprep.subr.bf16.mxu0 %v4780_v1  ;;  %v4812_v1 = vld [vmem:[%s6424_s5 + $0x390] ss:$12 sps:$4 sm:$0xff]   ;;  %v4819_v7 = vld [vmem:[%s6424_s5 + $0x3ac] ss:$12 sps:$4 sm:$0xff]  }
 0x1d0   : > { %v1038_v22 = vmax.f32 %v910_v57, 0.0 }
 0x1d1   : > { %v5733_v3 = vpack.c.bf16 %v1037_v19, %v1028_v18  ;;  %2549 = vmatpush1.bf16.msra.mxu1 %v4777_v6  ;;  %v4816_v6 = vld [vmem:[%s6424_s5 + $0x518] ss:$12 sps:$4 sm:$0xff]  }
 0x1d2   : > { %v5738_v26 = vpack.c.bf16 %v1038_v22, %v1029_v21  ;;  %v913_v27 = vpop.f32.mrb[12].mxu0  ;;  %4330 = vmatpush3.bf16.msra.mxu0 %v4781_v58  ;;  %2581 = vmatprep.subr.bf16.mxu1 %v4784_v17  ;;  %v4820_v17 = vld [vmem:[%s6424_s5 + $0x5f0] ss:$12 sps:$4 sm:$0xff]  }
 0x1d3   : > { %v914_v28 = vadd.f32 %v913_v27, %v5506_v63  ;;  %v915_v29 = vpop.f32.mrb[13].mxu0  ;;  %4349 = vmatprep.subr.bf16.mxu0 %v4785_v20  ;;  %v4817_v20 = vld [vmem:[%s6424_s5 + $0x3a8] ss:$12 sps:$4 sm:$0xff]   ;;  %v4824_v22 = vld [vmem:[%s6424_s5 + $0x3c4] ss:$12 sps:$4 sm:$0xff]  }
 0x1d4   : > { %v916_v33 = vadd.f32 %v915_v29, %v5506_v63  ;;  %v917_v34 = vpop.f32.mrb[14].mxu0  ;;  %2551 = vmatmul.mubr.bf16.vlgmr.msra.gmra.mrb[16].mxu1 %v5618_v13  ;;  %2916 = vmatprep.mubr.bf16.mxu0 %v5738_v26  ;;  %v4794_v13 = vld [vmem:[%s6424_s5 + $0x334] ss:$12 sps:$4 sm:$0xff]   ;;  %v4821_v27 = vld [vmem:[%s6424_s5 + $0x530] ss:$12 sps:$4 sm:$0xff]  }
 0x1d5   : > { %v918_v36 = vadd.f32 %v917_v34, %v5521_v14  ;;  %v919_v37 = vpop.f32.mrb[15].mxu0  ;;  %2560 = vmatprep.mubr.bf16.mxu1 %v5654_v30  ;;  %2582 = vmatpush1.bf16.msra.mxu1 %v4782_v10  ;;  %v1046_v41 = vmax.f32 %v914_v28, 0.0  ;;  %v4791_v30 = vld [vmem:[%s6424_s5 + $0x4a0] ss:$12 sps:$4 sm:$0xff]  }
 0x1d6   : > { %v920_v40 = vadd.f32 %v919_v37, %v5521_v14  ;;  %2917 = vmatmul.mubr.bf16.vlgmr.msra.gmra.mrb[48].mxu0 %v5733_v3  ;;  %2583 = vmatprep.subr.bf16.mxu1 %v4789_v5  ;;  %v1047_v9 = vmax.f32 %v916_v33, 0.0 }
 0x1d7   : > { %v1055_v42 = vmax.f32 %v918_v36, 0.0  ;;  %4350 = vmatpush3.bf16.msra.mxu0 %v4786_v32  ;;  %v4822_v32 = vld [vmem:[%s6424_s5 + $0x3c0] ss:$12 sps:$4 sm:$0xff]  }
 0x1d8   : > { %v1056_v43 = vmax.f32 %v920_v40, 0.0  ;;  %4351 = vmatprep.subr.bf16.mxu0 %v4790_v35  ;;  %v4827_v35 = vld [vmem:[%s6424_s5 + $0x3dc] ss:$12 sps:$4 sm:$0xff]  }
 0x1d9   : > { %v5766_v44 = vpack.c.bf16 %v1055_v42, %v1046_v41  ;;  %2584 = vmatpush1.bf16.msra.mxu1 %v4787_v39  ;;  %v4831_v39 = vld [vmem:[%s6424_s5 + $0x608] ss:$12 sps:$4 sm:$0xff]   ;;  %v4937_v41 = vmov 0.0  }
 0x1da   : > { %v5771_v46 = vpack.c.bf16 %v1056_v43, %v1047_v9  ;;  %2585 = vmatprep.subr.bf16.mxu1 %v4794_v13  ;;  %v4825_v9 = vld [vmem:[%s6424_s5 + $0x3d8] ss:$12 sps:$4 sm:$0xff]  }
 0x1db   : > { %4352 = vmatpush3.bf16.msra.mxu0 %v4791_v30 }
 0x1dc   : > { %2561 = vmatmul.mubr.bf16.gmra.mrb[20].mxu1 %v5649_v38  ;;  %2924 = vmatprep.mubr.bf16.mxu0 %v5771_v46  ;;  %v4804_v38 = vld [vmem:[%s6424_s5 + $0x364] ss:$12 sps:$4 sm:$0xff]  }
 0x1dd   : > { %2570 = vmatprep.mubr.bf16.mxu1 %v5242_v16  ;;  %2586 = vmatpush1.bf16.msra.mxu1 %v4792_v31  ;;  %v4805_v16 = vld [vmem:[%s6424_s5 + $0x5a8] ss:$12 sps:$4 sm:$0xff]  }
 0x1de   : > { %2925 = vmatmul.mubr.bf16.gmra.mrb[52].mxu0 %v5766_v44  ;;  %4353 = vmatprep.subr.bf16.mxu0 %v4795_v47  ;;  %v4830_v31 = vld [vmem:[%s6424_s5 + $0x3f4] ss:$12 sps:$4 sm:$0xff]  }
 0x1df   : > { %2932 = vmatprep.mubr.bf16.mxu0 %v5275_v48  ;;  %4354 = vmatpush3.bf16.msra.mxu0 %v4796_v49 }
 0x1e0   : > { %2587 = vmatprep.subr.bf16.mxu1 %v4799_v50  ;;  %4355 = vmatprep.subr.bf16.mxu0 %v4800_v51  ;;  %v4835_v50 = vld [vmem:[%s6424_s5 + $0x620] ss:$12 sps:$4 sm:$0xff]  }
 0x1e1   : > { %2588 = vmatpush1.bf16.msra.mxu1 %v4797_v52 }
 0x1e2   : > { %2589 = vmatprep.subr.bf16.mxu1 %v4804_v38 }
 0x1e3   : > { %4356 = vmatpush3.bf16.msra.mxu0 %v4801_v53  ;;  %v4828_v53 = vld [vmem:[%s6424_s5 + $0x3f0] ss:$12 sps:$4 sm:$0xff]  }
 0x1e4   : > { %2571 = vmatmul.mubr.bf16.gmra.mrb[24].mxu1 %v5239_v15  ;;  %4357 = vmatprep.subr.bf16.mxu0 %v4805_v16  ;;  %v4811_v15 = vld [vmem:[%s6424_s5 + $0x500] ss:$12 sps:$4 sm:$0xff]  }
 0x1e5   : > { %2590 = vmatpush1.bf16.msra.mxu1 %v4802_v54  ;;  %2613 = vmatprep.mubr.bf16.mxu1 %v5738_v26  ;;  %v4834_v54 = vld [vmem:[%s6424_s5 + $0x40c] ss:$12 sps:$4 sm:$0xff]  }
 0x1e6   : > { %2933 = vmatmul.mubr.bf16.gmra.mrb[56].mxu0 %v5272_v8  ;;  %2591 = vmatprep.subr.bf16.mxu1 %v4809_v55  ;;  %v4839_v55 = vld [vmem:[%s6424_s5 + $0x638] ss:$12 sps:$4 sm:$0xff]  }
 0x1e7   : > { %4358 = vmatpush3.bf16.msra.mxu0 %v4806_v56  ;;  %v4843_v56 = vld [vmem:[%s6424_s5 + $0x650] ss:$12 sps:$4 sm:$0x7f]  }
 0x1e8   : > { %4359 = vmatprep.subr.bf16.mxu0 %v4810_v59  ;;  %v4832_v59 = vld [vmem:[%s6424_s5 + $0x408] ss:$12 sps:$4 sm:$0xff]  }
 0x1e9   : > { %2592 = vmatpush1.bf16.msra.mxu1 %v4807_v61  ;;  %v4838_v61 = vld [vmem:[%s6424_s5 + $0x424] ss:$12 sps:$4 sm:$0xff]  }
 0x1ea   : > { %v956_v2 = vpop.f32.mrb[8].mxu1  ;;  %2593 = vmatprep.subr.bf16.mxu1 %v4814_v62  ;;  %v2453_v62 = vsel %vm2445_vm9, %v4843_v56, 0  ;;  %v4894_v56 = vld [vmem:[%s6424_s5 + $0x5d4] ss:$12 sps:$4 sm:$0xff]  }
 0x1eb   : > { %v957_v11 = vadd.f32 %v956_v2, %v5500_v45  ;;  %4360 = vmatpush3.bf16.msra.mxu0 %v4811_v15  ;;  %v958_v12 = vpop.f32.mrb[9].mxu1  ;;  %v4836_v15 = vld [vmem:[%s6424_s5 + $0x420] ss:$12 sps:$4 sm:$0xff]  }
 0x1ec   : > { %v959_v57 = vadd.f32 %v958_v12, %v5500_v45  ;;  %v960_v58 = vpop.f32.mrb[10].mxu1  ;;  %4361 = vmatprep.subr.bf16.mxu0 %v4815_v0 }
 0x1ed   : > { %v961_v18 = vadd.f32 %v960_v58, %v5376_v60  ;;  %v962_v19 = vpop.f32.mrb[11].mxu1  ;;  %2594 = vmatpush1.bf16.msra.mxu1 %v4812_v1  ;;  %v1030_v10 = vmax.f32 %v957_v11, 0.0  ;;  %v4842_v1 = vld [vmem:[%s6424_s5 + $0x43c] ss:$12 sps:$4 sm:$0xff]   ;;  %v4846_v58 = vld [vmem:[%s6424_s5 + $0x454] ss:$12 sps:$4 sm:$0xff]  }
 0x1ee   : > { %v963_v21 = vadd.f32 %v962_v19, %v5376_v60  ;;  %2595 = vmatprep.subr.bf16.mxu1 %v4819_v7  ;;  %v1031_v5 = vmax.f32 %v959_v57, 0.0 }
 0x1ef   : > { %v1039_v26 = vmax.f32 %v961_v18, 0.0  ;;  %4362 = vmatpush3.bf16.msra.mxu0 %v4816_v6  ;;  %v4840_v6 = vld [vmem:[%s6424_s5 + $0x438] ss:$12 sps:$4 sm:$0xff]   ;;  %v4844_v18 = vld [vmem:[%s6424_s5 + $0x450] ss:$12 sps:$4 sm:$0xff]  }
 0x1f0   : > { %v1040_v28 = vmax.f32 %v963_v21, 0.0  ;;  %4363 = vmatprep.subr.bf16.mxu0 %v4820_v17 }
 0x1f1   : > { %v5854_v29 = vpack.c.bf16 %v1039_v26, %v1030_v10  ;;  %2596 = vmatpush1.bf16.msra.mxu1 %v4817_v20  ;;  %v4849_v20 = vld [vmem:[%s6424_s5 + $0x46c] ss:$12 sps:$4 sm:$0xff]  }
 0x1f2   : > { %v5859_v33 = vpack.c.bf16 %v1040_v28, %v1031_v5  ;;  %v966_v34 = vpop.f32.mrb[12].mxu1  ;;  %2597 = vmatprep.subr.bf16.mxu1 %v4824_v22  ;;  %v4852_v28 = vld [vmem:[%s6424_s5 + $0x484] ss:$12 sps:$4 sm:$0xff]  }
 0x1f3   : > { %v967_v36 = vadd.f32 %v966_v34, %v5506_v63  ;;  %4364 = vmatpush3.bf16.msra.mxu0 %v4821_v27  ;;  %v968_v37 = vpop.f32.mrb[13].mxu1  ;;  %v4847_v27 = vld [vmem:[%s6424_s5 + $0x468] ss:$12 sps:$4 sm:$0xff]   ;;  %v4850_v34 = vld [vmem:[%s6424_s5 + $0x480] ss:$12 sps:$4 sm:$0xff]  }
 0x1f4   : > { %v969_v40 = vadd.f32 %v968_v37, %v5506_v63  ;;  %v970_v13 = vpop.f32.mrb[14].mxu1  ;;  %2973 = vmatprep.mubr.bf16.mxu0 %v5859_v33  ;;  %4425 = vmatprep.subr.bf16.mxu0 %v4937_v41  ;;  %v4858_v37 = vld [vmem:[%s6424_s5 + $0x4b4] ss:$12 sps:$4 sm:$0xff]  }
 0x1f5   : > { %v971_v42 = vadd.f32 %v970_v13, %v5521_v14  ;;  %v972_v30 = vpop.f32.mrb[15].mxu1  ;;  %2598 = vmatpush1.bf16.msra.mxu1 %v4822_v32  ;;  %v1048_v47 = vmax.f32 %v967_v36, 0.0  ;;  %v4853_v36 = vld [vmem:[%s6424_s5 + $0x498] ss:$12 sps:$4 sm:$0xff]  }
 0x1f6   : > { %v973_v43 = vadd.f32 %v972_v30, %v5521_v14  ;;  %2974 = vmatmul.mubr.bf16.vlgmr.msra.gmra.mrb[60].mxu0 %v5854_v29  ;;  %2599 = vmatprep.subr.bf16.mxu1 %v4827_v35  ;;  %v1049_v51 = vmax.f32 %v969_v40, 0.0  ;;  %v4855_v35 = vld [vmem:[%s6424_s5 + $0x49c] ss:$12 sps:$4 sm:$0xff]   ;;  %v4864_v40 = vld [vmem:[%s6424_s5 + $0x4e4] ss:$12 sps:$4 sm:$0xff]  }
 0x1f7   : > { %v1057_v49 = vmax.f32 %v971_v42, 0.0  ;;  %4426 = vmatpush3.bf16.msra.mxu0 %v4831_v39  ;;  %v4859_v39 = vld [vmem:[%s6424_s5 + $0x4c8] ss:$12 sps:$4 sm:$0xff]   ;;  %v4865_v13 = vld [vmem:[%s6424_s5 + $0x4f8] ss:$12 sps:$4 sm:$0xff]  }
 0x1f8   : > { %v1058_v52 = vmax.f32 %v973_v43, 0.0  ;;  %4427 = vmatprep.subr.bf16.mxu0 %v4937_v41  ;;  %v4868_v42 = vld [vmem:[%s6424_s5 + $0x510] ss:$12 sps:$4 sm:$0xff]  }
 0x1f9   : > { %v5884_v38 = vpack.c.bf16 %v1057_v49, %v1048_v47  ;;  %2600 = vmatpush1.bf16.msra.mxu1 %v4825_v9  ;;  %v4876_v30 = vld [vmem:[%s6424_s5 + $0x544] ss:$12 sps:$4 sm:$0xff]   ;;  %v4874_v9 = vld [vmem:[%s6424_s5 + $0x540] ss:$12 sps:$4 sm:$0xff]   ;;  %v4879_v43 = vld [vmem:[%s6424_s5 + $0x55c] ss:$12 sps:$4 sm:$0xff]  }
 0x1fa   : > { %v5889_v16 = vpack.c.bf16 %v1058_v52, %v1049_v51  ;;  %2601 = vmatprep.subr.bf16.mxu1 %v4830_v31  ;;  %v4877_v31 = vld [vmem:[%s6424_s5 + $0x558] ss:$12 sps:$4 sm:$0xff]   ;;  %v4882_v47 = vld [vmem:[%s6424_s5 + $0x574] ss:$12 sps:$4 sm:$0xff]   ;;  %v4880_v49 = vld [vmem:[%s6424_s5 + $0x570] ss:$12 sps:$4 sm:$0xff]  }
 0x1fb   : > { %4428 = vmatpush3.bf16.msra.mxu0 %v4835_v50  ;;  %v4885_v50 = vld [vmem:[%s6424_s5 + $0x58c] ss:$12 sps:$4 sm:$0xff]   ;;  %v4883_v51 = vld [vmem:[%s6424_s5 + $0x588] ss:$12 sps:$4 sm:$0xff]   ;;  %v4888_v52 = vld [vmem:[%s6424_s5 + $0x5a4] ss:$12 sps:$4 sm:$0xff]  }
 0x1fc   : > { %2981 = vmatprep.mubr.bf16.mxu0 %v5889_v16  ;;  %4429 = vmatprep.subr.bf16.mxu0 %v4937_v41 }
 0x1fd   : > { %2602 = vmatpush1.bf16.msra.mxu1 %v4828_v53  ;;  %v4886_v53 = vld [vmem:[%s6424_s5 + $0x5a0] ss:$12 sps:$4 sm:$0xff]  }
 0x1fe   : > { %2982 = vmatmul.mubr.bf16.gmra.mrb[64].mxu0 %v5884_v38  ;;  %2603 = vmatprep.subr.bf16.mxu1 %v4834_v54  ;;  %v4891_v54 = vld [vmem:[%s6424_s5 + $0x5bc] ss:$12 sps:$4 sm:$0xff]  }
 0x1ff   : > { %2989 = vmatprep.mubr.bf16.mxu0 %v5316_v25  ;;  %4430 = vmatpush3.bf16.msra.mxu0 %v4839_v55  ;;  %v4889_v55 = vld [vmem:[%s6424_s5 + $0x5b8] ss:$12 sps:$4 sm:$0xff]  }
 0x200   : > { %4431 = vmatprep.subr.bf16.mxu0 %v4937_v41 }
 0x201   : > { %2604 = vmatpush1.bf16.msra.mxu1 %v4832_v59  ;;  %v4892_v59 = vld [vmem:[%s6424_s5 + $0x5d0] ss:$12 sps:$4 sm:$0xff]  }
 0x202   : > { %v1009_v0 = vpop.f32.mrb[16].mxu0  ;;  %2605 = vmatprep.subr.bf16.mxu1 %v4838_v61  ;;  %v4897_v61 = vld [vmem:[%s6424_s5 + $0x5ec] ss:$12 sps:$4 sm:$0xff]  }
 0x203   : > { %v1010_v2 = vadd.f32 %v1009_v0, %v5500_v45  ;;  %v1011_v7 = vpop.f32.mrb[17].mxu0  ;;  %4432 = vmatpush3.bf16.msra.mxu0 %v2453_v62  ;;  %v4895_v62 = vld [vmem:[%s6424_s5 + $0x5e8] ss:$12 sps:$4 sm:$0xff]   ;;  %v4898_v0 = vld [vmem:[%s6424_s5 + $0x600] ss:$12 sps:$4 sm:$0xff]  }
 0x204   : > { %v1012_v11 = vpop.f32.mrb[18].mxu0  ;;  %v4906_v7 = vld [vmem:[%s6424_s5 + $0x634] ss:$12 sps:$4 sm:$0xff]  }
 0x205   : > { %v1013_v12 = vadd.f32 %v1012_v11, %v5376_v60  ;;  %2606 = vmatpush1.bf16.msra.mxu1 %v4836_v15  ;;  %v1014_v57 = vpop.f32.mrb[19].mxu0  ;;  %v1032_v17 = vmax.f32 %v1010_v2, 0.0  ;;  %v4900_v15 = vld [vmem:[%s6424_s5 + $0x604] ss:$12 sps:$4 sm:$0xff]  }
 0x206   : > { %2990 = vmatmul.mubr.bf16.gmra.mrb[68].mxu0 %v5310_v23  ;;  %2607 = vmatprep.subr.bf16.mxu1 %v4842_v1  ;;  %v4903_v1 = vld [vmem:[%s6424_s5 + $0x61c] ss:$12 sps:$4 sm:$0xff]   ;;  %v4901_v2 = vld [vmem:[%s6424_s5 + $0x618] ss:$12 sps:$4 sm:$0xff]  }
 0x207   : > { %v1041_v45 = vmax.f32 %v1013_v12, 0.0  ;;  %4433 = vmatprep.mubr.msk.bf16.mxu0 %vm4938_vm10, %v4937_v41  ;;  %v4904_v11 = vld [vmem:[%s6424_s5 + $0x630] ss:$12 sps:$4 sm:$0xff]  }
 0x209   : > { %v5929_v60 = vpack.c.bf16 %v1041_v45, %v1032_v17  ;;  %2608 = vmatpush1.bf16.msra.mxu1 %v4840_v6 }
 0x20a   : > { %v1017_v19 = vpop.f32.mrb[20].mxu0  ;;  %2609 = vmatprep.subr.bf16.mxu1 %v4846_v58 }
 0x20b   : > { %v1018_v21 = vadd.f32 %v1017_v19, %v5506_v63  ;;  %v1019_v22 = vpop.f32.mrb[21].mxu0 }
 0x20c   : > { %v1020_v10 = vpop.f32.mrb[22].mxu0 }
 0x20d   : > { %v1021_v26 = vadd.f32 %v1020_v10, %v5521_v14  ;;  %2610 = vmatpush1.bf16.msra.mxu1 %v4844_v18  ;;  %v1022_v5 = vpop.f32.mrb[23].mxu0  ;;  %v1050_v63 = vmax.f32 %v1018_v21, 0.0 }
 0x20e   : > { %4434 = vmatmul.mubr.msk.bf16.vlgmr.msra.gmra.mrb[72].mxu0 %vm2435_vm11, %v5929_v60  ;;  %2611 = vmatprep.subr.bf16.mxu1 %v4849_v20 }
 0x20f   : > { %v1059_v32 = vmax.f32 %v1021_v26, 0.0  ;;  %4437 = vmatprep.mubr.msk.bf16.mxu0 %vm4938_vm10, %v4937_v41 }
 0x211   : > { %v5949_v14 = vpack.c.bf16 %v1059_v32, %v1050_v63  ;;  %2612 = vmatpush1.bf16.msra.mxu1 %v4847_v27 }
 0x212   : > { %2644 = vmatprep.subr.bf16.mxu1 %v4852_v28 }
 0x214   : > { %2614 = vmatmul.mubr.bf16.vlgmr.msra.gmra.mrb[16].mxu1 %v5733_v3  ;;  %v4856_v3 = vld [vmem:[%s6424_s5 + $0x4b0] ss:$12 sps:$4 sm:$0xff]  }
 0x215   : > { %2623 = vmatprep.mubr.bf16.mxu1 %v5771_v46  ;;  %2645 = vmatpush1.bf16.msra.mxu1 %v4850_v34  ;;  %v4861_v46 = vld [vmem:[%s6424_s5 + $0x4cc] ss:$12 sps:$4 sm:$0xff]  }
 0x216   : > { %4438 = vmatmul.mubr.msk.bf16.gmra.mrb[76].mxu0 %vm2435_vm11, %v5949_v14  ;;  %2646 = vmatprep.subr.bf16.mxu1 %v4855_v35 }
 0x217   : > { %4441 = vmatprep.mubr.msk.bf16.mxu0 %vm4938_vm10, %v4937_v41  ;;  %v4870_v41 = vld [vmem:[%s6424_s5 + $0x514] ss:$12 sps:$4 sm:$0xff]  }
 0x219   : > { %2647 = vmatpush1.bf16.msra.mxu1 %v4853_v36 }
 0x21a   : > { %2648 = vmatprep.subr.bf16.mxu1 %v4858_v37 }
 0x21c   : > { %2624 = vmatmul.mubr.bf16.gmra.mrb[20].mxu1 %v5766_v44  ;;  %v4867_v44 = vld [vmem:[%s6424_s5 + $0x4fc] ss:$12 sps:$4 sm:$0xff]  }
 0x21d   : > { %2633 = vmatprep.mubr.bf16.mxu1 %v5275_v48  ;;  %2649 = vmatpush1.bf16.msra.mxu1 %v4856_v3  ;;  %v4862_v48 = vld [vmem:[%s6424_s5 + $0x4e0] ss:$12 sps:$4 sm:$0xff]  }
 0x21e   : > { %4442 = vmatmul.mubr.msk.bf16.gmra.mrb[80].mxu0 %vm2435_vm11, %v5312_v24  ;;  %2650 = vmatprep.subr.bf16.mxu1 %v4861_v46 }
 0x21f   : > { %3161 = vmatprep.mubr.bf16.mxu0 %v4932_v4 }
 0x221   : > { %2651 = vmatpush1.bf16.msra.mxu1 %v4859_v39 }
 0x222   : > { %2652 = vmatprep.subr.bf16.mxu1 %v4864_v40 }
 0x224   : > { %2634 = vmatmul.mubr.bf16.gmra.mrb[24].mxu1 %v5272_v8  ;;  %v4873_v8 = vld [vmem:[%s6424_s5 + $0x52c] ss:$12 sps:$4 sm:$0xff]  }
 0x225   : > { %2653 = vmatpush1.bf16.msra.mxu1 %v4862_v48  ;;  %2676 = vmatprep.mubr.bf16.mxu1 %v5859_v33  ;;  %v4871_v33 = vld [vmem:[%s6424_s5 + $0x528] ss:$12 sps:$4 sm:$0xff]  }
 0x226   : > { %2654 = vmatprep.subr.bf16.mxu1 %v4867_v44 }
 0x229   : > { %2655 = vmatpush1.bf16.msra.mxu1 %v4865_v13 }
 0x22a   : > { %2656 = vmatprep.subr.bf16.mxu1 %v4870_v41 }
 0x22d   : > { %2657 = vmatpush1.bf16.msra.mxu1 %v4868_v42 }
 0x22e   : > { %2658 = vmatprep.subr.bf16.mxu1 %v4873_v8 }
 0x231   : > { %2659 = vmatpush1.bf16.msra.mxu1 %v4871_v33 }
 0x232   : > { %2660 = vmatprep.subr.bf16.mxu1 %v4876_v30 }
 0x235   : > { %2661 = vmatpush1.bf16.msra.mxu1 %v4874_v9 }
 0x236   : > { %2662 = vmatprep.subr.bf16.mxu1 %v4879_v43 }
 0x239   : > { %2663 = vmatpush1.bf16.msra.mxu1 %v4877_v31 }
 0x23a   : > { %2664 = vmatprep.subr.bf16.mxu1 %v4882_v47 }
 0x23d   : > { %2665 = vmatpush1.bf16.msra.mxu1 %v4880_v49 }
 0x23e   : > { %2666 = vmatprep.subr.bf16.mxu1 %v4885_v50 }
 0x241   : > { %2667 = vmatpush1.bf16.msra.mxu1 %v4883_v51 }
 0x242   : > { %2668 = vmatprep.subr.bf16.mxu1 %v4888_v52 }
 0x245   : > { %2669 = vmatpush1.bf16.msra.mxu1 %v4886_v53 }
 0x246   : > { %2670 = vmatprep.subr.bf16.mxu1 %v4891_v54 }
 0x249   : > { %2671 = vmatpush1.bf16.msra.mxu1 %v4889_v55 }
 0x24a   : > { %2672 = vmatprep.subr.bf16.mxu1 %v4894_v56 }
 0x24d   : > { %2673 = vmatpush1.bf16.msra.mxu1 %v4892_v59 }
 0x24e   : > { %2674 = vmatprep.subr.bf16.mxu1 %v4897_v61 }
 0x251   : > { %2675 = vmatpush1.bf16.msra.mxu1 %v4895_v62 }
 0x252   : > { %2707 = vmatprep.subr.bf16.mxu1 %v4900_v15 }
 0x254   : > { %2677 = vmatmul.mubr.bf16.vlgmr.msra.gmra.mrb[16].mxu1 %v5854_v29  ;;  %v4907_v29 = vld [vmem:[%s6424_s5 + $0x64c] ss:$12 sps:$4 sm:$0x7f]  }
 0x255   : > { %2686 = vmatprep.mubr.bf16.mxu1 %v5889_v16  ;;  %2708 = vmatpush1.bf16.msra.mxu1 %v4898_v0  ;;  %v4909_v16 = vld [vmem:[%s6424_s5 + $0x648] ss:$12 sps:$4 sm:$0x7f]  }
 0x256   : > { %2709 = vmatprep.subr.bf16.mxu1 %v4903_v1  ;;  %v2447_v12 = vsel %vm2445_vm9, %v4909_v16, 0 }
 0x259   : > { %2710 = vmatpush1.bf16.msra.mxu1 %v4901_v2 }
 0x25a   : > { %2711 = vmatprep.subr.bf16.mxu1 %v4906_v7 }
 0x25c   : > { %2687 = vmatmul.mubr.bf16.gmra.mrb[20].mxu1 %v5884_v38 }
 0x25d   : > { %2696 = vmatprep.mubr.bf16.mxu1 %v5316_v25  ;;  %2712 = vmatpush1.bf16.msra.mxu1 %v4904_v11 }
 0x25e   : > { %4206 = vmatprep.subr.msk.bf16.mxu1 %vm2445_vm9, %v4907_v29 }
 0x261   : > { %2714 = vmatpush1.bf16.msra.mxu1 %v2447_v12 }
 0x264   : > { %2697 = vmatmul.mubr.bf16.gmra.mrb[24].mxu1 %v5310_v23 }
 0x265   : > { %2739 = vmatprep.mubr.bf16.mxu1 %v4932_v4 }
 0x267   : > { %v4263_v6 = vpop.f32.mrb[24].mxu0 }
 0x268   : > { %v4264_v57 = vpop.f32.mrb[25].mxu0 }
 0x269   : > { %v4265_v58 = vadd.f32 %v4264_v57, %v4263_v6  ;;  %v4266_v17 = vpop.f32.mrb[26].mxu0 }
 0x26a   : > { %v4267_v45 = vpop.f32.mrb[27].mxu0 }
 0x26b   : > { %v4268_v18 = vadd.f32 %v4267_v45, %v4266_v17 }
 0x26c   : > { %4207 = vmatmul.mubr.msk.bf16.vlgmr.msra.gmra.mrb[16].mxu1 %vm2435_vm11, %v5929_v60 }
 0x26d   : > { %2749 = vmatprep.mubr.bf16.mxu1 %v4932_v4 }
 0x26f   : > { %v4269_v25 = vpop.f32.mrb[28].mxu0 }
 0x270   : > { %v4270_v38 = vpop.f32.mrb[29].mxu0 }
 0x271   : > { %v4271_v19 = vadd.f32 %v4270_v38, %v4269_v25  ;;  %v4272_v20 = vpop.f32.mrb[30].mxu0 }
 0x272   : > { %v4273_v21 = vpop.f32.mrb[31].mxu0 }
 0x273   : > { %v4274_v22 = vadd.f32 %v4273_v21, %v4272_v20 }
 0x274   : > { %4208 = vmatmul.mubr.msk.bf16.gmra.mrb[20].mxu1 %vm2435_vm11, %v5949_v14 }
 0x275   : > { %2759 = vmatprep.mubr.bf16.mxu1 %v4932_v4 }
 0x277   : > { %v4275_v23 = vpop.f32.mrb[32].mxu0 }
 0x278   : > { %v4276_v10 = vpop.f32.mrb[33].mxu0 }
 0x279   : > { %v4277_v26 = vadd.f32 %v4276_v10, %v4275_v23  ;;  %v4278_v27 = vpop.f32.mrb[34].mxu0 }
 0x27a   : > { %v4279_v5 = vpop.f32.mrb[35].mxu0 }
 0x27b   : > { %v4280_v28 = vadd.f32 %v4279_v5, %v4278_v27 }
 0x27c   : > { %4209 = vmatmul.mubr.msk.bf16.gmra.mrb[24].mxu1 %vm2435_vm11, %v5312_v24 }
 0x288   : > { %v4297_v60 = vpop.f32.mrb[36].mxu0 }
 0x289   : > { %v4298_v63 = vpop.f32.mrb[37].mxu0 }
 0x28a   : > { %v4299_v32 = vadd.f32 %v4298_v63, %v4297_v60  ;;  %v4300_v34 = vpop.f32.mrb[38].mxu0 }
 0x28b   : > { %v4301_v35 = vpop.f32.mrb[39].mxu0 }
 0x28c   : > { %v2862_v36 = vadd.f32 %v4299_v32, %v4265_v58  ;;  %v4302_v37 = vadd.f32 %v4301_v35, %v4300_v34 }
 0x28e   : > { %v2865_v3 = vadd.f32 %v4302_v37, %v4268_v18 }
 0x290   : > { %v4303_v14 = vpop.f32.mrb[40].mxu0 }
 0x291   : > { %v4304_v46 = vpop.f32.mrb[41].mxu0 }
 0x292   : > { %v4305_v39 = vadd.f32 %v4304_v46, %v4303_v14  ;;  %v4306_v40 = vpop.f32.mrb[42].mxu0 }
 0x293   : > { %v4307_v48 = vpop.f32.mrb[43].mxu0 }
 0x294   : > { %v2870_v44 = vadd.f32 %v4305_v39, %v4271_v19  ;;  %v4308_v13 = vadd.f32 %v4307_v48, %v4306_v40 }
 0x296   : > { %v2873_v41 = vadd.f32 %v4308_v13, %v4274_v22 }
 0x298   : > { %v4309_v42 = vpop.f32.mrb[44].mxu0 }
 0x299   : > { %v4310_v8 = vpop.f32.mrb[45].mxu0 }
 0x29a   : > { %v4311_v33 = vadd.f32 %v4310_v8, %v4309_v42  ;;  %v4312_v24 = vpop.f32.mrb[46].mxu0 }
 0x29b   : > { %v4313_v30 = vpop.f32.mrb[47].mxu0 }
 0x29c   : > { %v2878_v9 = vadd.f32 %v4311_v33, %v4277_v26  ;;  %v4314_v43 = vadd.f32 %v4313_v30, %v4312_v24 }
 0x29e   : > { %v2881_v31 = vadd.f32 %v4314_v43, %v4280_v28 }
 0x2a9   : > { %v4331_v47 = vpop.f32.mrb[48].mxu0 }
 0x2aa   : > { %v4332_v49 = vpop.f32.mrb[49].mxu0 }
 0x2ab   : > { %v4333_v50 = vadd.f32 %v4332_v49, %v4331_v47  ;;  %v4334_v51 = vpop.f32.mrb[50].mxu0 }
 0x2ac   : > { %v4335_v52 = vpop.f32.mrb[51].mxu0 }
 0x2ad   : > { %v2919_v53 = vadd.f32 %v4333_v50, %v2862_v36  ;;  %v4336_v54 = vadd.f32 %v4335_v52, %v4334_v51 }
 0x2af   : > { %v2922_v55 = vadd.f32 %v4336_v54, %v2865_v3 }
 0x2b1   : > { %v4337_v56 = vpop.f32.mrb[52].mxu0 }
 0x2b2   : > { %v4338_v59 = vpop.f32.mrb[53].mxu0 }
 0x2b3   : > { %v4339_v61 = vadd.f32 %v4338_v59, %v4337_v56  ;;  %v4340_v62 = vpop.f32.mrb[54].mxu0 }
 0x2b4   : > { %v4341_v15 = vpop.f32.mrb[55].mxu0 }
 0x2b5   : > { %v2927_v0 = vadd.f32 %v4339_v61, %v2870_v44  ;;  %v4342_v1 = vadd.f32 %v4341_v15, %v4340_v62 }
 0x2b7   : > { %v2930_v2 = vadd.f32 %v4342_v1, %v2873_v41 }
 0x2b9   : > { %v4343_v7 = vpop.f32.mrb[56].mxu0 }
 0x2ba   : > { %v4344_v11 = vpop.f32.mrb[57].mxu0 }
 0x2bb   : > { %v4345_v29 = vadd.f32 %v4344_v11, %v4343_v7  ;;  %v4346_v16 = vpop.f32.mrb[58].mxu0 }
 0x2bc   : > { %v4347_v12 = vpop.f32.mrb[59].mxu0 }
 0x2bd   : > { %v2935_v6 = vadd.f32 %v4345_v29, %v2878_v9  ;;  %v4348_v57 = vadd.f32 %v4347_v12, %v4346_v16 }
 0x2bf   : > { %v2938_v58 = vadd.f32 %v4348_v57, %v2881_v31 }
 0x2c9   : > { %v4365_v17 = vpop.f32.mrb[60].mxu0 }
 0x2ca   : > { %v4366_v45 = vpop.f32.mrb[61].mxu0 }
 0x2cb   : > { %v4367_v18 = vadd.f32 %v4366_v45, %v4365_v17  ;;  %v4368_v25 = vpop.f32.mrb[62].mxu0  ;;  %v4914_v17 = vld [vmem:[%s6422_s3 + $0x4] ss:$12 sps:$4 sm:$0xff]  }
 0x2cc   : > { %v4369_v38 = vpop.f32.mrb[63].mxu0  ;;  %3630 = vmatprep.mubr.bf16.mxu1 %v4914_v17  ;;  %v3239_v45 = vld [vmem:[%s6423_s4] sm:$0xff] }
 0x2cd   : > { %v4370_v19 = vadd.f32 %v4369_v38, %v4368_v25  ;;  %v2976_v20 = vadd.f32 %v4367_v18, %v2919_v53  ;;  %v3241_v18 = vld [vmem:[%s6423_s4 + $0x10] sm:$0xff]  ;;  %v3074_v25 = vld [vmem:[%s6426_s7] sm:$0xff] }
 0x2ce   : > { %v3076_v38 = vld [vmem:[%s6426_s7 + $0x10] sm:$0xff] }
 0x2cf   : > { %v2979_v21 = vadd.f32 %v4370_v19, %v2922_v55 }
 0x2d1   : > { %v4371_v22 = vpop.f32.mrb[64].mxu0 }
 0x2d2   : > { %v4372_v23 = vpop.f32.mrb[65].mxu0 }
 0x2d3   : > { %v4373_v10 = vadd.f32 %v4372_v23, %v4371_v22  ;;  %v4374_v26 = vpop.f32.mrb[66].mxu0  ;;  %v3242_v22 = vld [vmem:[%s6423_s4 + $0x18] sm:$0xff] }
 0x2d4   : > { %v4375_v27 = vpop.f32.mrb[67].mxu0 }
 0x2d5   : > { %v4376_v5 = vadd.f32 %v4375_v27, %v4374_v26  ;;  %v2984_v28 = vadd.f32 %v4373_v10, %v2927_v0  ;;  %v3075_v10 = vld [vmem:[%s6426_s7 + $0x8] sm:$0xff]  ;;  %v3077_v27 = vld [vmem:[%s6426_s7 + $0x18] sm:$0xff] }
 0x2d7   : > { %v2987_v60 = vadd.f32 %v4376_v5, %v2930_v2 }
 0x2d9   : > { %v4377_v63 = vpop.f32.mrb[68].mxu0 }
 0x2da   : > { %v4378_v32 = vpop.f32.mrb[69].mxu0 }
 0x2db   : > { %v4379_v34 = vadd.f32 %v4378_v32, %v4377_v63  ;;  %v4380_v35 = vpop.f32.mrb[70].mxu0 }
 0x2dc   : > { %v4381_v36 = vpop.f32.mrb[71].mxu0 }
 0x2dd   : > { %v4382_v37 = vadd.f32 %v4381_v36, %v4380_v35  ;;  %v2992_v3 = vadd.f32 %v4379_v34, %v2935_v6 }
 0x2df   : > { %v2995_v14 = vadd.f32 %v4382_v37, %v2938_v58  ;;  %v4910_v37 = vld [vmem:[%s6425_s6] sm:$0xff]  }
 0x2e1   : > { %v3032_v46 = vpop.f32.mrb[72].mxu0 }
 0x2e2   : > { %v3033_v39 = vadd.f32 %v3032_v46, %v2976_v20  ;;  %v4435_v40 = vpop.f32.mrb[73].mxu0  ;;  %v3240_v20 = vld [vmem:[%s6423_s4 + $0x8] sm:$0xff] }
 0x2e3   : > { %v3035_v48 = vpop.f32.mrb[74].mxu0  ;;  %v4911_v40 = vld [vmem:[%s6425_s6 + $0x8] sm:$0xff]  }
 0x2e4   : > { %v3036_v44 = vadd.f32 %v3035_v48, %v2979_v21  ;;  %v4436_v13 = vpop.f32.mrb[75].mxu0 }
 0x2e6   : > { %v6097_v41 = vpack.c.bf16 %v3036_v44, %v3033_v39 }
 0x2e8   : > { %3259 = vrot.lane.b32.xlu0 %v6097_v41, %s4928_s11 }
 0x2e9   : > { %v3040_v42 = vpop.f32.mrb[76].mxu0 }
 0x2ea   : > { %v3041_v8 = vadd.f32 %v3040_v42, %v2984_v28  ;;  %v4439_v33 = vpop.f32.mrb[77].mxu0 }
 0x2eb   : > { %v3043_v24 = vpop.f32.mrb[78].mxu0 }
 0x2ec   : > { %v3044_v30 = vadd.f32 %v3043_v24, %v2987_v60  ;;  %v4440_v9 = vpop.f32.mrb[79].mxu0 }
 0x2ee   : > { %v6101_v43 = vpack.c.bf16 %v3044_v30, %v3041_v8 }
 0x2f1   : > { %v3048_v31 = vpop.f32.mrb[80].mxu0 }
 0x2f2   : > { %v3049_v47 = vadd.f32 %v3048_v31, %v2992_v3  ;;  %v4443_v49 = vpop.f32.mrb[81].mxu0 }
 0x2f3   : > { %v3051_v50 = vpop.f32.mrb[82].mxu0 }
 0x2f4   : > { %v3052_v51 = vadd.f32 %v3051_v50, %v2995_v14  ;;  %v4444_v52 = vpop.f32.mrb[83].mxu0 }
 0x2f6   : > { %v3069_v53 = vpack.c.bf16 %v3052_v51, %v3049_v47 }
 0x2f8   : > { %3115 = vrot.lane.b32.xlu1 %v3069_v53, %s4939_s18 }
 0x33f   : > { %v2741_v54 = vpop.f32.mrb[16].mxu1 }
 0x340   : > { %v2743_v55 = vpop.f32.mrb[17].mxu1 }
 0x341   : > { %v2745_v56 = vpop.f32.mrb[18].mxu1 }
 0x342   : > { %v6104_v59 = vpack.c.bf16 %v2745_v56, %v2741_v54  ;;  %v2747_v61 = vpop.f32.mrb[19].mxu1 }
 0x343   : > { %v6106_v62 = vpack.c.bf16 %v2747_v61, %v2743_v55 }
 0x344   : > { %3255 = vrot.lane.b32.xlu1 %v6104_v59, %s4928_s11 }
 0x347   : > { %v2751_v15 = vpop.f32.mrb[20].mxu1 }
 0x348   : > { %3257 = vrot.lane.b32.xlu1 %v6106_v62, %s4928_s11  ;;  %v2753_v0 = vpop.f32.mrb[21].mxu1 }
 0x349   : > { %v2755_v1 = vpop.f32.mrb[22].mxu1 }
 0x34a   : > { %v6112_v2 = vpack.c.bf16 %v2755_v1, %v2751_v15  ;;  %v2757_v7 = vpop.f32.mrb[23].mxu1 }
 0x34b   : > { %v6114_v11 = vpack.c.bf16 %v2757_v7, %v2753_v0 }
 0x34c   : > { %3265 = vrot.lane.b32.xlu1 %v6101_v43, %s4928_s11 }
 0x34f   : > { %v2761_v29 = vpop.f32.mrb[24].mxu1 }
 0x350   : > { %3279 = vrot.lane.b32.xlu1 %v6106_v62, %s4929_s12  ;;  %v2763_v16 = vpop.f32.mrb[25].mxu1 }
 0x351   : > { %v2765_v12 = vpop.f32.mrb[26].mxu1 }
 0x352   : > { %v3067_v6 = vpack.c.bf16 %v2765_v12, %v2761_v29  ;;  %v2767_v57 = vpop.f32.mrb[27].mxu1 }
 0x353   : > { %v3068_v58 = vpack.c.bf16 %v2767_v57, %v2763_v16 }
 0x354   : > { %3277 = vrot.lane.b32.xlu1 %v6104_v59, %s4929_s12  ;;  %3111 = vrot.lane.b32.xlu0 %v3067_v6, %s4939_s18 }
 0x358   : > { %3287 = vrot.lane.b32.xlu1 %v6101_v43, %s4929_s12  ;;  %3113 = vrot.lane.b32.xlu0 %v3068_v58, %s4939_s18 }
 0x35a   : > { %v6213_v5 = vpop.permute.xlu0 %3259 }
 0x35c   : > { %3301 = vrot.lane.b32.xlu1 %v6106_v62, %s4940_s19  ;;  %3263 = vrot.lane.b32.xlu0 %v6114_v11, %s4928_s11 }
 0x360   : > { %3299 = vrot.lane.b32.xlu1 %v6104_v59, %s4940_s19  ;;  %3261 = vrot.lane.b32.xlu0 %v6112_v2, %s4928_s11  ;;  %s4941_s11 = smov 108  }
 0x364   : > { %3309 = vrot.lane.b32.xlu1 %v6101_v43, %s4940_s19  ;;  %3281 = vrot.lane.b32.xlu0 %v6097_v41, %s4929_s12 }
 0x368   : > { %3324 = vrot.lane.b32.xlu1 %v6106_v62, %s4939_s18  ;;  %3285 = vrot.lane.b32.xlu0 %v6114_v11, %s4929_s12 }
 0x36a   : > { %v3116_v19 = vpop.permute.xlu1 %3115 }
 0x36c   : > { %3322 = vrot.lane.b32.xlu1 %v6104_v59, %s4939_s18  ;;  %3283 = vrot.lane.b32.xlu0 %v6112_v2, %s4929_s12  ;;  %s4942_s12 = smov 91  }
 0x370   : > { %3332 = vrot.lane.b32.xlu1 %v6101_v43, %s4939_s18  ;;  %3303 = vrot.lane.b32.xlu0 %v6097_v41, %s4940_s19 }
 0x374   : > { %3346 = vrot.lane.b32.xlu1 %v6106_v62, %s4941_s11  ;;  %3307 = vrot.lane.b32.xlu0 %v6114_v11, %s4940_s19 }
 0x378   : > { %3344 = vrot.lane.b32.xlu1 %v6104_v59, %s4941_s11  ;;  %3305 = vrot.lane.b32.xlu0 %v6112_v2, %s4940_s19  ;;  %s6391_s19 = scalar_lea.vmem %s6427_s8, %s4552_s16 }
 0x37c   : > { %3354 = vrot.lane.b32.xlu1 %v6101_v43, %s4941_s11  ;;  %3326 = vrot.lane.b32.xlu0 %v6097_v41, %s4939_s18 }
 0x380   : > { %3369 = vrot.lane.b32.xlu1 %v6106_v62, %s4933_s15  ;;  %3330 = vrot.lane.b32.xlu0 %v6114_v11, %s4939_s18 }
 0x384   : > { %3367 = vrot.lane.b32.xlu1 %v6104_v59, %s4933_s15  ;;  %3328 = vrot.lane.b32.xlu0 %v6112_v2, %s4939_s18 }
 0x388   : > { %3377 = vrot.lane.b32.xlu1 %v6101_v43, %s4933_s15  ;;  %3348 = vrot.lane.b32.xlu0 %v6097_v41, %s4941_s11 }
 0x38c   : > { %3391 = vrot.lane.b32.xlu1 %v6106_v62, %s4942_s12  ;;  %3352 = vrot.lane.b32.xlu0 %v6114_v11, %s4941_s11 }
 0x390   : > { %3389 = vrot.lane.b32.xlu1 %v6104_v59, %s4942_s12  ;;  %3350 = vrot.lane.b32.xlu0 %v6112_v2, %s4941_s11 }
 0x394   : > { %3399 = vrot.lane.b32.xlu1 %v6101_v43, %s4942_s12  ;;  %3371 = vrot.lane.b32.xlu0 %v6097_v41, %s4933_s15 }
 0x398   : > { %3414 = vrot.lane.b32.xlu1 %v6106_v62, %s4943_s20  ;;  %3375 = vrot.lane.b32.xlu0 %v6114_v11, %s4933_s15 }
 0x39c   : > { %3412 = vrot.lane.b32.xlu1 %v6104_v59, %s4943_s20  ;;  %3373 = vrot.lane.b32.xlu0 %v6112_v2, %s4933_s15 }
 0x3a0   : > { %3422 = vrot.lane.b32.xlu1 %v6101_v43, %s4943_s20  ;;  %3393 = vrot.lane.b32.xlu0 %v6097_v41, %s4942_s12 }
 0x3a4   : > { %3437 = vperm.xlu1 %4585, %v3239_v45   ;;  %3397 = vrot.lane.b32.xlu0 %v6114_v11, %s4942_s12 }
 0x3a8   : > { %3447 = vperm.xlu1 %4585, %v3241_v18   ;;  %3395 = vrot.lane.b32.xlu0 %v6112_v2, %s4942_s12 }
 0x3ac   : > { %3080 = vperm.xlu1 %4585, %v3074_v25   ;;  %3416 = vrot.lane.b32.xlu0 %v6097_v41, %s4943_s20 }
 0x3b0   : > { %3090 = vperm.xlu1 %4585, %v3076_v38   ;;  %3420 = vrot.lane.b32.xlu0 %v6114_v11, %s4943_s20 }
 0x3b4   : > { %3418 = vrot.lane.b32.xlu0 %v6112_v2, %s4943_s20 }
 0x3b6   : > { %v3256_v21 = vpop.permute.xlu1 %3255 }
 0x3b8   : > { %3442 = vperm.xlu0 %4584, %v3240_v20  }
 0x3ba   : > { %v3258_v23 = vpop.permute.xlu1 %3257 }
 0x3bb   : > { %v3268_v9 = vsel %vm399_vm1, %v3258_v23, %v6213_v5  ;;  %v3267_v49 = vsel %vm399_vm1, %v3256_v21, %v3258_v23 }
 0x3bc   : > { %3452 = vperm.xlu0 %4584, %v3242_v22  }
 0x3be   : > { %v6208_v26 = vpop.permute.xlu1 %3265 }
 0x3c0   : > { %3085 = vperm.xlu0 %4584, %v3075_v10  }
 0x3c2   : > { %v3280_v28 = vpop.permute.xlu1 %3279 }
 0x3c4   : > { %3095 = vperm.xlu0 %4584, %v3077_v27  }
 0x3c6   : > { %v3278_v60 = vpop.permute.xlu1 %3277  ;;  %v3112_v63 = vpop.permute.xlu0 %3111 }
 0x3ca   : > { %v6215_v32 = vpop.permute.xlu1 %3287  ;;  %v3114_v34 = vpop.permute.xlu0 %3113 }
 0x3cb   : > { %v3118_v35 = vsel %vm3117_vm12, %v3112_v63, %v3114_v34  ;;  %v3119_v36 = vsel %vm3117_vm12, %v3114_v34, %v3116_v19 }
 0x3cc   : > { %3129 = vmatprep.subr.bf16.mxu0 %v3119_v36 }
 0x3cd   : > { %3130 = vmatpush1.bf16.msra.mxu0 %v3118_v35 }
 0x3ce   : > { %v3302_v3 = vpop.permute.xlu1 %3301  ;;  %4445 = vmatprep.subr.bf16.mxu0 %v3116_v19  ;;  %v3264_v14 = vpop.permute.xlu0 %3263 }
 0x3cf   : > { %v3270_v50 = vsel %vm399_vm1, %v3264_v14, %v6208_v26 }
 0x3d0   : > { %4215 = vmatmul.mubr.msk.bf16.vlgmr.msra.gmra.mrb[84].mxu0 %vm756_vm0, %v4910_v37 }
 0x3d1   : > { %4446 = vmatpush3.bf16.msra.mxu0 %v3116_v19  ;;  %3171 = vmatprep.mubr.bf16.mxu0 %v4932_v4 }
 0x3d2   : > { %v3300_v46 = vpop.permute.xlu1 %3299  ;;  %3492 = vmatprep.subr.bf16.mxu0 %v6106_v62  ;;  %v3262_v39 = vpop.permute.xlu0 %3261 }
 0x3d3   : > { %v3269_v53 = vsel %vm399_vm1, %v3262_v39, %v3264_v14  ;;  %v3312_v7 = vsel %vm3311_vm13, %v3300_v46, %v3302_v3  ;;  %v4915_v14 = vld [vmem:[%s6422_s3 + $0x1c] ss:$12 sps:$4 sm:$0xff]   ;;  %vm3485_vm1 = vcmask 261120  }
 0x3d6   : > { %v6228_v48 = vpop.permute.xlu1 %3309  ;;  %v6230_v44 = vpop.permute.xlu0 %3281 }
 0x3d7   : > { %v3290_v54 = vsel %vm435_vm2, %v3280_v28, %v6230_v44 }
 0x3d8   : > { %4216 = vmatmul.mubr.msk.bf16.gmra.mrb[88].mxu0 %vm756_vm0, %v4911_v40 }
 0x3d9   : > { %4447 = vmatprep.mubr.msk.bf16.mxu0 %vm756_vm0, %v4910_v37  ;;  %v4912_v37 = vld [vmem:[%s6422_s3] ss:$12 sps:$4 sm:$0xff]  }
 0x3da   : > { %v3325_v13 = vpop.permute.xlu1 %3324  ;;  %v3286_v42 = vpop.permute.xlu0 %3285 }
 0x3db   : > { %v3292_v61 = vsel %vm435_vm2, %v3286_v42, %v6215_v32 }
 0x3de   : > { %v3323_v8 = vpop.permute.xlu1 %3322  ;;  %v3284_v33 = vpop.permute.xlu0 %3283 }
 0x3df   : > { %v3291_v0 = vsel %vm435_vm2, %v3284_v33, %v3286_v42  ;;  %v3334_v57 = vsel %vm3117_vm12, %v3323_v8, %v3325_v13 }
 0x3e0   : > { %4448 = vmatmul.mubr.msk.bf16.vlgmr.msra.gmra.mrb[92].mxu0 %vm756_vm0, %v4911_v40  ;;  %vm3424_vm0 = vcmask 736256  }
 0x3e1   : > { %3493 = vmatpush1.bf16.msra.mxu0 %v6104_v59  ;;  %3524 = vmatprep.mubr.bf16.mxu0 %v4914_v17  ;;  %v3289_v59 = vsel %vm435_vm2, %v3278_v60, %v3280_v28 }
 0x3e2   : > { %3494 = vmatprep.subr.bf16.mxu0 %v6114_v11  ;;  %v3333_v24 = vpop.permute.xlu1 %3332  ;;  %v6237_v30 = vpop.permute.xlu0 %3303 }
 0x3e3   : > { %v3313_v1 = vsel %vm3311_vm13, %v3302_v3, %v6237_v30 }
 0x3e5   : > { %3495 = vmatpush1.bf16.msra.mxu0 %v6112_v2 }
 0x3e6   : > { %3496 = vmatprep.subr.bf16.mxu0 %v3268_v9  ;;  %v3347_v31 = vpop.permute.xlu1 %3346  ;;  %v3308_v47 = vpop.permute.xlu0 %3307 }
 0x3e7   : > { %v3315_v11 = vsel %vm3311_vm13, %v3308_v47, %v6228_v48 }
 0x3e9   : > { %3497 = vmatpush1.bf16.msra.mxu0 %v3267_v49  ;;  %v3720_v49 = vlaneseq }
 0x3ea   : > { %3498 = vmatprep.subr.bf16.mxu0 %v3270_v50  ;;  %v3345_v51 = vpop.permute.xlu1 %3344  ;;  %v3306_v52 = vpop.permute.xlu0 %3305 }
 0x3eb   : > { %v3314_v16 = vsel %vm3311_vm13, %v3306_v52, %v3308_v47  ;;  %v3357_v19 = vsel %vm3356_vm14, %v3345_v51, %v3347_v31  ;;  %v4919_v47 = vld [vmem:[%s6422_s3 + $0x20] ss:$12 sps:$4 sm:$0xff]   ;;  %v3721_v50 = vand.u32 127, %v3720_v49 }
 0x3ed   : > { %3499 = vmatpush1.bf16.msra.mxu0 %v3269_v53  ;;  %v6299_v51 = vmul.u32.u64.low 3817748708, %v3721_v50  ;;  %v6300_v52 = vmul.u32.u64.high 3817748708, %v3721_v50, %v6299_v51 }
 0x3ee   : > { %3500 = vmatprep.subr.bf16.mxu0 %v3290_v54  ;;  %v3355_v55 = vpop.permute.xlu1 %3354  ;;  %v3327_v56 = vpop.permute.xlu0 %3326 }
 0x3ef   : > { %4393 = vmatprep.subr.bf16.mxu1 %v3327_v56  ;;  %v3335_v12 = vsel %vm3117_vm12, %v3325_v13, %v3327_v56 }
 0x3f0   : > { %4394 = vmatpush3.bf16.msra.mxu1 %v6097_v41 }
 0x3f1   : > { %3501 = vmatpush1.bf16.msra.mxu0 %v3289_v59  ;;  %4395 = vmatprep.subr.bf16.mxu1 %v3333_v24 }
 0x3f2   : > { %3502 = vmatprep.subr.bf16.mxu0 %v3292_v61  ;;  %v3370_v62 = vpop.permute.xlu1 %3369  ;;  %v3331_v15 = vpop.permute.xlu0 %3330  ;;  %v3730_v61 = vshrl.u32 %v6300_v52, 4 }
 0x3f3   : > { %v3337_v58 = vsel %vm3117_vm12, %v3331_v15, %v3333_v24 }
 0x3f4   : > { %4396 = vmatpush3.bf16.msra.mxu1 %v6101_v43 }
 0x3f5   : > { %3503 = vmatpush1.bf16.msra.mxu0 %v3291_v0 }
 0x3f6   : > { %3504 = vmatprep.subr.bf16.mxu0 %v3313_v1  ;;  %v3329_v2 = vpop.permute.xlu0 %3328  ;;  %v3368_v41 = vpop.permute.xlu1 %3367  ;;  %v3722_v1 = vadd.s32 128, %v3721_v50 }
 0x3f7   : > { %v3336_v45 = vsel %vm3117_vm12, %v3329_v2, %v3331_v15  ;;  %v3379_v27 = vsel %vm543_vm5, %v3368_v41, %v3370_v62  ;;  %v3723_v15 = vadd.s32 256, %v3721_v50 }
 0x3f9   : > { %3505 = vmatpush1.bf16.msra.mxu0 %v3312_v7  ;;  %v3731_v7 = vmul.u32 18, %v3730_v61 }
 0x3fa   : > { %3506 = vmatprep.subr.bf16.mxu0 %v3315_v11  ;;  %v3349_v29 = vpop.permute.xlu0 %3348  ;;  %v3378_v43 = vpop.permute.xlu1 %3377 }
 0x3fb   : > { %4397 = vmatprep.subr.bf16.mxu1 %v3349_v29  ;;  %v3358_v25 = vsel %vm3356_vm14, %v3347_v31, %v3349_v29  ;;  %v4918_v31 = vld [vmem:[%s6422_s3 + $0x8] ss:$12 sps:$4 sm:$0xff]   ;;  %v6311_v11 = vmul.u32.u64.low 3817748708, %v3723_v15  ;;  %v6312_v29 = vmul.u32.u64.high 3817748708, %v3723_v15, %v6311_v11 }
 0x3fc   : > { %4398 = vmatpush3.bf16.msra.mxu1 %v6213_v5 }
 0x3fd   : > { %3507 = vmatpush1.bf16.msra.mxu0 %v3314_v16  ;;  %4399 = vmatprep.subr.bf16.mxu1 %v3355_v55 }
 0x3fe   : > { %3508 = vmatprep.subr.bf16.mxu0 %v3335_v12  ;;  %v3353_v6 = vpop.permute.xlu0 %3352  ;;  %v3392_v18 = vpop.permute.xlu1 %3391 }
 0x3ff   : > { %v3360_v20 = vsel %vm3356_vm14, %v3353_v6, %v3355_v55 }
 0x400   : > { %4400 = vmatpush3.bf16.msra.mxu1 %v6208_v26 }
 0x401   : > { %3509 = vmatpush1.bf16.msra.mxu0 %v3334_v57 }
 0x402   : > { %3510 = vmatprep.subr.bf16.mxu0 %v3337_v58  ;;  %v3351_v17 = vpop.permute.xlu0 %3350  ;;  %v3390_v21 = vpop.permute.xlu1 %3389  ;;  %v6314_v57 = vmul.u32.u64.low 3817748708, %v3722_v1  ;;  %v6315_v58 = vmul.u32.u64.high 3817748708, %v3722_v1, %v6314_v57 }
 0x403   : > { %v3359_v23 = vsel %vm3356_vm14, %v3351_v17, %v3353_v6  ;;  %v3402_v3 = vsel %vm3401_vm15, %v3390_v21, %v3392_v18  ;;  %vm3829_vm14 = vcmask 154624  }
 0x404   : > { %v3741_v21 = vshrl.u32 %v6315_v58, 4 }
 0x405   : > { %3511 = vmatpush1.bf16.msra.mxu0 %v3336_v45  ;;  %v3732_v45 = vsub.s32 %v3721_v50, %v3731_v7 }
 0x406   : > { %3512 = vmatprep.subr.bf16.mxu0 %v3358_v25  ;;  %v3372_v38 = vpop.permute.xlu0 %3371  ;;  %v3400_v5 = vpop.permute.xlu1 %3399 }
 0x407   : > { %4401 = vmatprep.subr.bf16.mxu1 %v3372_v38  ;;  %v3380_v10 = vsel %vm543_vm5, %v3370_v62, %v3372_v38  ;;  %vm3757_vm2 = vcmp.ne.s32.totalorder %v3732_v45, 0  ;;  %vm3760_vm3 = vcmp.lt.s32.totalorder %v3732_v45, 0  ;;  %v3752_v38 = vshrl.u32 %v6312_v29, 4 }
 0x408   : > { %4402 = vmatpush3.bf16.msra.mxu1 %v6230_v44  ;;  %vm3763_vm4 = vmand %vm3760_vm3, %vm3757_vm2 }
 0x409   : > { %3513 = vmatpush1.bf16.msra.mxu0 %v3357_v19  ;;  %4403 = vmatprep.subr.bf16.mxu1 %v3378_v43  ;;  %v3766_v19 = vadd.s32 18, %v3732_v45 }
 0x40a   : > { %3514 = vmatprep.subr.bf16.mxu0 %v3360_v20  ;;  %v3376_v22 = vpop.permute.xlu0 %3375 }
 0x40b   : > { %v3382_v28 = vsel %vm543_vm5, %v3376_v22, %v3378_v43 }
 0x40c   : > { %4404 = vmatpush3.bf16.msra.mxu1 %v6215_v32  ;;  %v3415_v32 = vpop.permute.xlu1 %3414 }
 0x40d   : > { %3515 = vmatpush1.bf16.msra.mxu0 %v3359_v23 }
 0x40e   : > { %3516 = vmatprep.subr.bf16.mxu0 %v3380_v10  ;;  %v3374_v26 = vpop.permute.xlu0 %3373  ;;  %v3753_v10 = vmul.u32 18, %v3752_v38 }
 0x40f   : > { %v3381_v34 = vsel %vm543_vm5, %v3374_v26, %v3376_v22 }
 0x410   : > { %v3413_v40 = vpop.permute.xlu1 %3412 }
 0x411   : > { %3517 = vmatpush1.bf16.msra.mxu0 %v3379_v27  ;;  %v3425_v42 = vsel %vm3424_vm0, %v3413_v40, %v3415_v32 }
 0x412   : > { %3518 = vmatprep.subr.bf16.mxu0 %v3382_v28  ;;  %v3394_v60 = vpop.permute.xlu0 %3393 }
 0x413   : > { %4405 = vmatprep.subr.bf16.mxu1 %v3394_v60  ;;  %v3403_v63 = vsel %vm3401_vm15, %v3392_v18, %v3394_v60  ;;  %v3742_v60 = vmul.u32 18, %v3741_v21 }
 0x414   : > { %4406 = vmatpush3.bf16.msra.mxu1 %v6237_v30  ;;  %v3423_v8 = vpop.permute.xlu1 %3422 }
 0x415   : > { %3519 = vmatpush1.bf16.msra.mxu0 %v3381_v34  ;;  %4407 = vmatprep.subr.bf16.mxu1 %v3400_v5 }
 0x416   : > { %3520 = vmatprep.subr.bf16.mxu0 %v3403_v63  ;;  %v3398_v35 = vpop.permute.xlu0 %3397 }
 0x417   : > { %v3405_v36 = vsel %vm3401_vm15, %v3398_v35, %v3400_v5  ;;  %v3769_v5 = vsel %vm3763_vm4, %v3766_v19, %v3732_v45 }
 0x418   : > { %4408 = vmatpush3.bf16.msra.mxu1 %v6228_v48  ;;  %v4917_v48 = vld [vmem:[%s6422_s3 + $0x18] ss:$12 sps:$4 sm:$0xff]   ;;  %vm6324_vm5 = vcmp.lt.s32.totalorder %v3769_v5, 16 }
 0x419   : > { %3521 = vmatpush1.bf16.msra.mxu0 %v3402_v3  ;;  %v3754_v3 = vsub.s32 %v3723_v15, %v3753_v10 }
 0x41a   : > { %3522 = vmatprep.subr.bf16.mxu0 %v3405_v36  ;;  %v3396_v46 = vpop.permute.xlu0 %3395 }
 0x41b   : > { %v3404_v39 = vsel %vm3401_vm15, %v3396_v46, %v3398_v35  ;;  %3631 = vmatmul.mubr.bf16.vlgmr.msra.gmra.mrb[28].mxu1 %v4912_v37  ;;  %vm3759_vm6 = vcmp.ne.s32.totalorder %v3754_v3, 0  ;;  %vm3762_vm7 = vcmp.lt.s32.totalorder %v3754_v3, 0  ;;  %vm3854_vm15 = vcmask 400384  }
 0x41c   : > { %3638 = vmatprep.mubr.bf16.mxu1 %v4915_v14  ;;  %vm6338_vm10 = vmand %vm3762_vm7, %vm3759_vm6 }
 0x41d   : > { %3523 = vmatpush1.bf16.msra.mxu0 %v3404_v39  ;;  %v3743_v39 = vsub.s32 %v3722_v1, %v3742_v60 }
 0x41e   : > { %v3417_v44 = vpop.permute.xlu0 %3416 }
 0x41f   : > { %v3426_v13 = vsel %vm3424_vm0, %v3415_v32, %v3417_v44  ;;  %vm3758_vm8 = vcmp.ne.s32.totalorder %v3743_v39, 0  ;;  %vm3761_vm9 = vcmp.lt.s32.totalorder %v3743_v39, 0 }
 0x420   : > { %3525 = vmatmul.mubr.bf16.vlgmr.msra.gmra.mrb[84].mxu0 %v4912_v37  ;;  %3545 = vmatprep.subr.bf16.mxu0 %v3426_v13  ;;  %vm6344_vm11 = vmand %vm3761_vm9, %vm3758_vm8 }
 0x421   : > { %3546 = vmatpush1.bf16.msra.mxu0 %v3425_v42  ;;  %3534 = vmatprep.mubr.bf16.mxu0 %v4915_v14 }
 0x422   : > { %v3421_v33 = vpop.permute.xlu0 %3420 }
 0x423   : > { %3639 = vmatmul.mubr.bf16.gmra.mrb[32].mxu1 %v4917_v48  ;;  %v3428_v24 = vsel %vm3424_vm0, %v3421_v33, %v3423_v8  ;;  %v6307_v62 = vpop.permute.xlu1 %3437 }
 0x424   : > { %3547 = vmatprep.subr.bf16.mxu0 %v3428_v24 }
 0x426   : > { %v3419_v30 = vpop.permute.xlu0 %3418 }
 0x427   : > { %v3427_v9 = vsel %vm3424_vm0, %v3419_v30, %v3421_v33  ;;  %v3448_v43 = vpop.permute.xlu1 %3447 }
 0x428   : > { %3535 = vmatmul.mubr.bf16.gmra.mrb[88].mxu0 %v4917_v48 }
 0x429   : > { %3548 = vmatpush1.bf16.msra.mxu0 %v3427_v9  ;;  %3577 = vmatprep.mubr.bf16.mxu0 %v4932_v4  ;;  %v3768_v9 = vadd.s32 18, %v3754_v3 }
 0x42a   : > { %4451 = vmatprep.subr.bf16.mxu0 %v3417_v44 }
 0x42b   : > { %v3081_v25 = vpop.permute.xlu1 %3080 }
 0x42c   : > { %v4459_v22 = vadd.f32 %v6307_v62, %v3081_v25 }
 0x42f   : > { %v3091_v36 = vpop.permute.xlu1 %3090 }
 0x430   : > { %4225 = vmatmul.mubr.msk.bf16.vlgmr.msra.gmra.mrb[84].mxu0 %vm3485_vm1, %v4918_v31  ;;  %v4467_v40 = vadd.f32 %v3448_v43, %v3091_v36 }
 0x431   : > { %4452 = vmatpush3.bf16.msra.mxu0 %v3417_v44  ;;  %3587 = vmatprep.mubr.bf16.mxu0 %v4932_v4 }
 0x432   : > { %4453 = vmatprep.subr.bf16.mxu0 %v3423_v8 }
 0x435   : > { %4454 = vmatpush3.bf16.msra.mxu0 %v3423_v8 }
 0x437   : > { %v6309_v0 = vpop.permute.xlu0 %3442 }
 0x438   : > { %4226 = vmatmul.mubr.msk.bf16.gmra.mrb[88].mxu0 %vm3485_vm1, %v4919_v47 }
 0x439   : > { %4455 = vmatprep.mubr.msk.bf16.mxu0 %vm3485_vm1, %v4918_v31 }
 0x43b   : > { %v3453_v18 = vpop.permute.xlu0 %3452 }
 0x43f   : > { %v6318_v20 = vpop.permute.xlu0 %3085 }
 0x440   : > { %4456 = vmatmul.mubr.msk.bf16.vlgmr.msra.gmra.mrb[92].mxu0 %vm3485_vm1, %v4919_v47  ;;  %v4463_v26 = vadd.f32 %v6309_v0, %v6318_v20 }
 0x443   : > { %v3096_v46 = vpop.permute.xlu0 %3095 }
 0x444   : > { %v4471_v8 = vadd.f32 %v3453_v18, %v3096_v46 }
 0x4ee   : > { %v4409_v53 = vpop.f32.mrb[28].mxu1 }
 0x4ef   : > { %v4410_v54 = vpop.f32.mrb[29].mxu1 }
 0x4f0   : > { %v6302_v55 = vadd.f32 %v4410_v54, %v4409_v53  ;;  %v4412_v56 = vpop.f32.mrb[30].mxu1  ;;  %v3767_v53 = vadd.s32 18, %v3743_v39 }
 0x4f1   : > { %v4413_v4 = vpop.f32.mrb[31].mxu1 }
 0x4f2   : > { %v6304_v59 = vadd.f32 %v4413_v4, %v4412_v56  ;;  %v3633_v52 = vadd.f32 %v6302_v55, %v6307_v62  ;;  %v3770_v11 = vsel %vm6344_vm11, %v3767_v53, %v3743_v39 }
 0x4f3   : > { %vm6363_vm13 = vcmp.lt.s32.totalorder %v3770_v11, 16 }
 0x4f4   : > { %v3636_v15 = vadd.f32 %v6304_v59, %v6309_v0 }
 0x4f6   : > { %v4415_v2 = vpop.f32.mrb[32].mxu1  ;;  %v4481_v38 = vadd.f32 %v3636_v15, %v6318_v20 }
 0x4f7   : > { %v4416_v41 = vpop.f32.mrb[33].mxu1 }
 0x4f8   : > { %v4417_v16 = vadd.f32 %v4416_v41, %v4415_v2  ;;  %v4418_v12 = vpop.f32.mrb[34].mxu1  ;;  %v3771_v2 = vsel %vm6338_vm10, %v3768_v9, %v3754_v3 }
 0x4f9   : > { %v4419_v6 = vpop.f32.mrb[35].mxu1  ;;  %vm6358_vm12 = vcmp.lt.s32.totalorder %v3771_v2, 16 }
 0x4fa   : > { %v4420_v17 = vadd.f32 %v4419_v6, %v4418_v12  ;;  %v3641_v31 = vadd.f32 %v4417_v16, %v3448_v43  ;;  %v4477_v43 = vadd.f32 %v3633_v52, %v3081_v25 }
 0x4fc   : > { %v3644_v54 = vadd.f32 %v4420_v17, %v3453_v18  ;;  %v4475_v41 = vadd.f32 %v3641_v31, %v3091_v36 }
 0x4fe   : > { %v4479_v57 = vadd.f32 %v3644_v54, %v3096_v46 }
 0x503   : > { %v3579_v23 = vpop.f32.mrb[84].mxu0 }
 0x504   : > { %v4460_v27 = vadd.f32 %v4459_v22, %v3579_v23  ;;  %v3581_v28 = vpop.f32.mrb[85].mxu0 }
 0x505   : > { %v3583_v63 = vpop.f32.mrb[86].mxu0  ;;  %v4462_v1 = vadd.f32 %v4459_v22, %v3581_v28 }
 0x506   : > { %v3708_v34 = vmax.f32 %v4460_v27, 0.0  ;;  %v4464_v32 = vadd.f32 %v4463_v26, %v3583_v63  ;;  %v3585_v35 = vpop.f32.mrb[87].mxu0 }
 0x507   : > { %v4466_v29 = vadd.f32 %v4463_v26, %v3585_v35  ;;  %v3709_v58 = vmax.f32 %v4462_v1, 0.0 }
 0x508   : > { %v3711_v14 = vmax.f32 %v4464_v32, 0.0  ;;  %v6330_v44 = vsel %vm6324_vm5, %v3708_v34, 0.0 }
 0x509   : > { %v3712_v10 = vmax.f32 %v4466_v29, 0.0  ;;  %v3782_v20 = vsel %vm6363_vm13, %v3709_v58, 0.0 }
 0x50a   : > { %v6334_v13 = vsel %vm6324_vm5, %v3711_v14, 0.0 }
 0x50b   : > { %v4606_v48 = vpack.i.bf16 %v6334_v13, %v6330_v44  ;;  %v3589_v42 = vpop.f32.mrb[88].mxu0  ;;  %v3785_v3 = vsel %vm6363_vm13, %v3712_v10, 0.0 }
 0x50c   : > { %v4468_v33 = vadd.f32 %v4467_v40, %v3589_v42  ;;  %v3591_v24 = vpop.f32.mrb[89].mxu0 }
 0x50d   : > { %v3593_v30 = vpop.f32.mrb[90].mxu0  ;;  %v4470_v4 = vadd.f32 %v4467_v40, %v3591_v24 }
 0x50e   : > { %v3714_v47 = vmax.f32 %v4468_v33, 0.0  ;;  %v4472_v49 = vadd.f32 %v4471_v8, %v3593_v30  ;;  %v3595_v50 = vpop.f32.mrb[91].mxu0 }
 0x50f   : > { %v4474_v62 = vadd.f32 %v4471_v8, %v3595_v50  ;;  %v3715_v59 = vmax.f32 %v4470_v4, 0.0 }
 0x510   : > { %v3717_v61 = vmax.f32 %v4472_v49, 0.0  ;;  %v3787_v7 = vsel %vm6324_vm5, %v3714_v47, 0.0 }
 0x511   : > { %v3718_v21 = vmax.f32 %v4474_v62, 0.0  ;;  %v3788_v5 = vsel %vm6363_vm13, %v3715_v59, 0.0 }
 0x512   : > { %v3790_v55 = vsel %vm6324_vm5, %v3717_v61, 0.0 }
 0x513   : > { %v4611_v16 = vpack.i.bf16 %v3790_v55, %v3787_v7  ;;  %v4457_v12 = vpop.f32.mrb[92].mxu0  ;;  %v3791_v35 = vsel %vm6363_vm13, %v3718_v21, 0.0 }
 0x514   : > { %v4476_v0 = vadd.f32 %v4475_v41, %v4457_v12  ;;  %v3681_v6 = vpop.f32.mrb[93].mxu0 }
 0x515   : > { %v4478_v45 = vadd.f32 %v4477_v43, %v3681_v6  ;;  %v4458_v18 = vpop.f32.mrb[94].mxu0 }
 0x516   : > { %v3716_v22 = vmax.f32 %v4476_v0, 0.0  ;;  %v4480_v25 = vadd.f32 %v4479_v57, %v4458_v18  ;;  %v3684_v23 = vpop.f32.mrb[95].mxu0 }
 0x517   : > { %v3710_v26 = vmax.f32 %v4478_v45, 0.0  ;;  %v4482_v27 = vadd.f32 %v4481_v38, %v3684_v23 }
 0x518   : > { %v3789_v28 = vsel %vm6358_vm12, %v3716_v22, 0.0  ;;  %v3719_v60 = vmax.f32 %v4480_v25, 0.0 }
 0x519   : > { %v4586_v63 = vpack.i.bf16 %v3789_v28, %v3788_v5  ;;  %v3783_v34 = vsel %vm6358_vm12, %v3710_v26, 0.0  ;;  %v3713_v32 = vmax.f32 %v4482_v27, 0.0 }
 0x51a   : > { %v4591_v36 = vpack.i.bf16 %v3783_v34, %v3782_v20  ;;  %v3792_v37 = vsel %vm6358_vm12, %v3719_v60, 0.0 }
 0x51b   : > { %v4596_v14 = vpack.i.bf16 %v3792_v37, %v3791_v35  ;;  %v3786_v46 = vsel %vm6358_vm12, %v3713_v32, 0.0  ;;  %4587 = vrot.lane.b32.xlu1 %v4586_v63, %s4944_s14 }
 0x51c   : > { %v4601_v39 = vpack.i.bf16 %v3786_v46, %v3785_v3 }
 0x51d   : > { %4597 = vrot.lane.b32.xlu0 %v4596_v14, %s4944_s14 }
 0x51f   : > { %4592 = vrot.lane.b32.xlu1 %v4591_v36, %s4944_s14 }
 0x521   : > { %4602 = vrot.lane.b32.xlu0 %v4601_v39, %s4944_s14 }
 0x523   : > { %4607 = vrot.lane.b32.xlu1 %v4606_v48, %s4944_s14 }
 0x525   : > { %4612 = vrot.lane.b32.xlu0 %v4611_v16, %s4944_s14 }
 0x58d   : > { %v4588_v40 = vpop.permute.xlu1 %4587 }
 0x58e   : > { %v4590_v42 = vunpack.i.h.bf16 %v4588_v40  ;;  %v4589_v8 = vunpack.i.l.bf16 %v4588_v40 }
 0x58f   : > { %v4598_v33 = vpop.permute.xlu0 %4597 }
 0x590   : > { %v3835_v24 = vsel %vm3829_vm14, %v4589_v8, %v4590_v42  ;;  %v4600_v30 = vunpack.i.h.bf16 %v4598_v33  ;;  %v4599_v9 = vunpack.i.l.bf16 %v4598_v33 }
 0x591   : > { %v3857_v44 = vsel %vm3854_vm15, %v3835_v24, 0.0  ;;  %v4593_v13 = vpop.permute.xlu1 %4592 }
 0x592   : > { %v4244_v48 = vpack.c.bf16 %v3857_v44, %v3857_v44  ;;  %v3837_v31 = vsel %vm3829_vm14, %v4599_v9, %v4600_v30  ;;  %v4595_v47 = vunpack.i.h.bf16 %v4593_v13  ;;  %v4594_v49 = vunpack.i.l.bf16 %v4593_v13 }
 0x593   : > { %v3858_v50 = vsel %vm3854_vm15, %v3837_v31, 0.0  ;;  %v4603_v51 = vpop.permute.xlu0 %4602 }
 0x594   : > { %3904 = vst [vmem:[%s6391_s19 + $0x20] sm:$0xf] %v4244_v48  ;;  %v4246_v52 = vpack.c.bf16 %v3858_v50, %v3858_v50  ;;  %v3831_v53 = vsel %vm3829_vm14, %v4594_v49, %v4595_v47  ;;  %v4605_v54 = vunpack.i.h.bf16 %v4603_v51  ;;  %v4604_v56 = vunpack.i.l.bf16 %v4603_v51 }
 0x595   : > { %v3855_v4 = vsel %vm3854_vm15, %v3831_v53, 0.0  ;;  %v4608_v61 = vpop.permute.xlu1 %4607 }
 0x596   : > { %3906 = vst [vmem:[%s6391_s19 + $0x2c] sm:$0xf] %v4246_v52  ;;  %v4240_v15 = vpack.c.bf16 %v3855_v4, %v3855_v4  ;;  %v3833_v1 = vsel %vm3829_vm14, %v4604_v56, %v4605_v54  ;;  %v4610_v2 = vunpack.i.h.bf16 %v4608_v61  ;;  %v4609_v7 = vunpack.i.l.bf16 %v4608_v61 }
 0x597   : > { %v3856_v55 = vsel %vm3854_vm15, %v3833_v1, 0.0  ;;  %v4613_v62 = vpop.permute.xlu0 %4612 }
 0x598   : > { %3900 = vst [vmem:[%s6391_s19 + $0x8] sm:$0xf] %v4240_v15  ;;  %v4242_v41 = vpack.c.bf16 %v3856_v55, %v3856_v55  ;;  %v3851_v11 = vsel %vm3829_vm14, 0.0, %v4610_v2  ;;  %v3830_v29 = vsel %vm3829_vm14, %v4609_v7, %v4594_v49  ;;  %v3832_v16 = vsel %vm3829_vm14, %v4610_v2, %v4604_v56 }
 0x599   : > { %v3850_v12 = vsel %vm3829_vm14, 0.0, %v4609_v7  ;;  %v4241_v43 = vpack.c.bf16 %v3832_v16, %v3851_v11  ;;  %v4615_v59 = vunpack.i.h.bf16 %v4613_v62  ;;  %v4614_v0 = vunpack.i.l.bf16 %v4613_v62 }
 0x59a   : > { %3902 = vst [vmem:[%s6391_s19 + $0x14] sm:$0xf] %v4242_v41  ;;  %v4239_v6 = vpack.c.bf16 %v3830_v29, %v3850_v12 }
 0x59b   : > { %3901 = vst [vmem:[%s6391_s19 + $0xc] sm:$0xff] %v4241_v43  ;;  %v3836_v57 = vsel %vm3829_vm14, %v4615_v59, %v4599_v9  ;;  %v3853_v58 = vsel %vm3829_vm14, 0.0, %v4615_v59  ;;  %v3834_v17 = vsel %vm3829_vm14, %v4614_v0, %v4589_v8  ;;  %v3852_v45 = vsel %vm3829_vm14, 0.0, %v4614_v0 }
 0x59c   : > { %3899 = vst [vmem:[%s6391_s19] sm:$0xff] %v4239_v6  ;;  %v4245_v18 = vpack.c.bf16 %v3836_v57, %v3853_v58  ;;  %v4243_v38 = vpack.c.bf16 %v3834_v17, %v3852_v45 }
 0x59e   : > { %3905 = vst [vmem:[%s6391_s19 + $0x24] sm:$0xff] %v4245_v18  ;;  %3903 = vst [vmem:[%s6391_s19 + $0x18] sm:$0xff] %v4243_v38 }
 0x59f PF: > { %s18_s27 = sadd.s32 1, %s4926_s27  }
 0x5a0   : > { %p15_p4 = scmp.ge.s32.totalorder %s18_s27, 4  }
 0x5a2   :  { %17 = sbr.rel (!%p15_p4) target bundleno = 1 (0x1), region = 82 }

</bundles_post_ra>
